<compile_context>
chip_gen: v5e
topology: v5e:2x2
jax: 0.10.0
libtpu: 0.0.40
codegen_flags: <defaults>
</compile_context>

<pallas_src>
import jax
import jax.numpy as jnp
from jax.experimental import pallas as pl
from jax.experimental.pallas import tpu as pltpu

# ---- static geometry for 32x32x3 inputs (kernel 5, pool 2) ------------------
H_IN = 32
KS = 5
C1, C2 = 3, 64
H1 = H_IN - KS + 1            # 28 : conv1 output size
HP1 = H1 // 2                 # 14 : pool1 output size (= conv2 input size)
HB = HP1 // 2                 # 7  : parity-block side of the pooled map
HP2 = (HP1 - KS + 1) // 2     # 5  : pool2 output size
Q1 = HP1 * HP1                # 196 pooled layer-1 positions per image
K1 = KS * KS * C1             # 75   conv1 im2col depth
K2P = 6 * 6 * C2              # 2304 zero-padded per-phase conv2 im2col depth
NROW = (HP2 - 1) * HB + HP2   # 33 rows of the padded 5x5 output window
NROW_PAD = 40                 # output rows padded up to a multiple of 8


# ------------------------------ Pallas kernel -------------------------------
def _make_fused_kernel(nb):
    """Whole-net fused kernel for a block of `nb` (even) 32x32x3 images."""

    def kernel(p1_ref, w1_ref, b1_ref, w2_ref, b2_ref, o_ref, a1_ref):
        # p1_ref: (4, nb*196, 75) bf16  conv1 im2col, one row-slab per pool phase
        # w1_ref: (75, 64)  bf16        b1_ref: (1, 64) f32
        # w2_ref: (4, 2304, 64) bf16    b2_ref: (1, 64) f32
        # o_ref : (nb, 40, 64) f32
        # a1_ref: (nb*2, 49, 128) bf16  VMEM scratch: pooled map, parity-blocked
        w1 = w1_ref[...]

        # conv1: one flattened-spatial matmul per pool phase; their elementwise
        # max is exactly maxpool1 (2x2 / stride 2).
        y1 = jnp.dot(p1_ref[0], w1, preferred_element_type=jnp.float32)
        for s in range(1, 4):
            y1 = jnp.maximum(
                y1, jnp.dot(p1_ref[s], w1, preferred_element_type=jnp.float32))
        # bias + ReLU commute with max -> applied once, after pooling.
        a1 = jnp.maximum(y1 + b1_ref[...], 0.0).astype(jnp.bfloat16)  # (nb*196,64)

        # Stage the pooled 14x14x64 map into VMEM, parity-blocked:
        #   slab index = (image, h-parity), row = hp2*7 + wp2,
        #   lanes = w-parity*64 + channel.
        for n in range(nb):
            for ph in range(2):
                base = (n * 4 + ph * 2) * (HB * HB)
                a1_ref[n * 2 + ph] = jnp.concatenate(
                    [a1[base:base + HB * HB, :],
                     a1[base + HB * HB:base + 2 * HB * HB, :]], axis=-1)

        # conv2 + maxpool2: per image build one (33, 2304) "superpatch" from 18
        # contiguous (33, 128) window reads; contract it against the 4 per-phase
        # zero-padded weights; their elementwise max is maxpool2.  Row
        # r = h*7 + w (h, w < 5) holds pooled output (h, w); the remaining 8
        # rows are junk and dropped on the host.
        b2 = b2_ref[...]
        for n in range(nb):
            pieces = []
            for hb in range(6):
                for wpair in range(3):
                    start = (hb // 2) * HB + wpair
                    pieces.append(
                        a1_ref[n * 2 + (hb % 2), start:start + NROW, :])
            patch = jnp.concatenate(pieces, axis=-1)                # (33, 2304)

            y2 = jnp.dot(patch, w2_ref[0], preferred_element_type=jnp.float32)
            for s in range(1, 4):
                y2 = jnp.maximum(
                    y2, jnp.dot(patch, w2_ref[s],
                                preferred_element_type=jnp.float32))
            o_ref[n, 0:NROW, :] = jnp.maximum(y2 + b2, 0.0)
            o_ref[n, NROW:NROW_PAD, :] = jnp.zeros(
                (NROW_PAD - NROW, C2), jnp.float32)

    return kernel


# ------------------------------ model wrapper --------------------------------
def convnet_pallas(x_nchw, params, *, block_n=2):
    """Forward pass of `convnet` (32x32 inputs) fused into one pallas_call."""
    w1, b1, w2, b2 = params
    x = jnp.transpose(x_nchw, (0, 2, 3, 1))                  # NCHW -> NHWC
    n, h, w, cin = x.shape
    assert (h, w, cin) == (H_IN, H_IN, C1), "kernel is specialized to 32x32x3"
    assert block_n % 2 == 0 and n % block_n == 0

    # conv1 im2col with rows ordered (pool-phase | image, h-parity, w-parity,
    # hp2, wp2): pooling becomes a max over the 4 leading phase slabs, and the
    # layer-2 window reads become contiguous.
    win = jnp.concatenate(
        [x[:, ky:ky + H1, kx:kx + H1, :] for ky in range(KS) for kx in range(KS)],
        axis=-1)                                              # (N, 28, 28, 75)
    win = win.reshape(n, HB, 2, 2, HB, 2, 2, K1)
    p1 = jnp.transpose(win, (3, 6, 0, 2, 5, 1, 4, 7)).reshape(4, n * Q1, K1)
    p1 = p1.astype(jnp.bfloat16)

    w1m = w1.reshape(K1, C2).astype(jnp.bfloat16)
    b1m = b1.reshape(1, C2).astype(jnp.float32)

    # conv2 weights zero-padded per pooling phase: K lane = (hb*6 + wb)*64 + ci
    w2p = jnp.zeros((2, 2, 6, 6, C2, C2), w2.dtype)
    for c in range(2):
        for d in range(2):
            w2p = w2p.at[c, d, c:c + KS, d:d + KS].set(w2)
    w2p = w2p.reshape(4, K2P, C2).astype(jnp.bfloat16)
    b2m = b2.reshape(1, C2).astype(jnp.float32)

    out = pl.pallas_call(
        _make_fused_kernel(block_n),
        out_shape=jax.ShapeDtypeStruct((n, NROW_PAD, C2), jnp.float32),
        grid=(n // block_n,),
        in_specs=[
            pl.BlockSpec((4, block_n * Q1, K1), lambda i: (0, i, 0)),
            pl.BlockSpec((K1, C2), lambda i: (0, 0)),       # weights stay resident
            pl.BlockSpec((1, C2), lambda i: (0, 0)),
            pl.BlockSpec((4, K2P, C2), lambda i: (0, 0, 0)),
            pl.BlockSpec((1, C2), lambda i: (0, 0)),
        ],
        out_specs=pl.BlockSpec((block_n, NROW_PAD, C2), lambda i: (i, 0, 0)),
        scratch_shapes=[pltpu.VMEM((block_n * 2, HB * HB, 2 * C2), jnp.bfloat16)],
        compiler_params=pltpu.CompilerParams(
            dimension_semantics=("parallel",)),
    )(p1, w1m, b1m, w2p, b2m)

    # Tiny XLA epilogue: drop junk rows and emit torch's NCHW flatten order.
    valid = jnp.array([hh * HB + ww for hh in range(HP2) for ww in range(HP2)],
                      dtype=jnp.int32)
    feat = out[:, valid, :]                                   # (N, 25, 64)
    return jnp.transpose(feat, (0, 2, 1)).reshape(n, C2 * HP2 * HP2)


@jax.jit
def convnet_forward(x_nchw, params):
    return convnet_pallas(x_nchw, params, block_n=2)


# ------------------------------ init + reference -----------------------------
def init_params(key):
    k1, k2, k3, k4 = jax.random.split(key, 4)

    def kaiming(k, kh, kw, cin, cout):
        std = (2.0 / (cin * kh * kw)) ** 0.5       # kaiming_normal_, a=0, fan_in
        return std * jax.random.normal(k, (kh, kw, cin, cout), jnp.float32)

    w1 = kaiming(k1, KS, KS, C1, C2)
    w2 = kaiming(k2, KS, KS, C2, C2)
    bnd1 = 1.0 / (KS * KS * C1) ** 0.5             # nn.Conv2d default bias init
    bnd2 = 1.0 / (KS * KS * C2) ** 0.5
    b1 = jax.random.uniform(k3, (C2,), jnp.float32, -bnd1, bnd1)
    b2 = jax.random.uniform(k4, (C2,), jnp.float32, -bnd2, bnd2)
    return w1, b1, w2, b2


def reference_forward(x_nchw, params):
    w1, b1, w2, b2 = params

    def conv(x, w, b):
        y = jax.lax.conv_general_dilated(
            x, w, (1, 1), "VALID",
            dimension_numbers=("NHWC", "HWIO", "NHWC"),
            precision=jax.lax.Precision.HIGHEST)
        return jax.nn.relu(y + b)

    def pool(x):
        return jax.lax.reduce_window(x, -jnp.inf, jax.lax.max,
                                     (1, 2, 2, 1), (1, 2, 2, 1), "VALID")

    x = jnp.transpose(x_nchw, (0, 2, 3, 1))
    x = pool(conv(x, w1, b1))
    x = pool(conv(x, w2, b2))
    x = jnp.transpose(x, (0, 3, 1, 2))
    return x.reshape(x.shape[0], -1)


if __name__ == "__main__":
    key = jax.random.PRNGKey(0)
    kx, kp = jax.random.split(key)
    params = init_params(kp)

    # 32x32: 32 -conv5-> 28 -pool-> 14 -conv5-> 10 -pool-> 5 ; flat = 64*5*5 = 1600
    x = jax.random.normal(kx, (4, 3, 32, 32), jnp.float32)   # batch 4 -> grid of 2

    y = jax.block_until_ready(convnet_forward(x, params))
    y_ref = jax.block_until_ready(reference_forward(x, params))

    assert y.shape == (4, C2 * HP2 * HP2), y.shape
    err = float(jnp.max(jnp.abs(y - y_ref)))
    # bf16 MXU operands with f32 accumulation vs. an f32 HIGHEST-precision
    # reference over a K=1600 contraction -> a few e-2 of error is expected.
    assert jnp.allclose(y, y_ref, atol=5e-2, rtol=1e-1), err
    print("KERNEL_OK")
</pallas_src>

<mosaic_0001>
module attributes {stable_mosaic.version = 11 : i64} {
  func.func @kernel(%arg0: i32, %arg1: memref<4x392x75xbf16, #tpu.memory_space<vmem>>, %arg2: memref<75x64xbf16, #tpu.memory_space<vmem>>, %arg3: memref<1x64xf32, #tpu.memory_space<vmem>>, %arg4: memref<4x2304x64xbf16, #tpu.memory_space<vmem>>, %arg5: memref<1x64xf32, #tpu.memory_space<vmem>>, %arg6: memref<2x40x64xf32, #tpu.memory_space<vmem>>, %arg7: memref<4x49x128xbf16, #tpu.memory_space<vmem>>) attributes {dimension_semantics = [#tpu.dimension_semantics<parallel>], iteration_bounds = array<i64: 2>, scalar_prefetch = 0 : i64, scratch_operands = 1 : i64, tpu.core_type = #tpu.core_type<tc>, window_params = [{transform_indices = @transform_0, window_bounds = array<i64: 4, 392, 75>}, {pipeline_mode = #tpu.pipeline_mode<synchronous>, transform_indices = @transform_1, window_bounds = array<i64: 75, 64>}, {pipeline_mode = #tpu.pipeline_mode<synchronous>, transform_indices = @transform_2, window_bounds = array<i64: 1, 64>}, {pipeline_mode = #tpu.pipeline_mode<synchronous>, transform_indices = @transform_3, window_bounds = array<i64: 4, 2304, 64>}, {pipeline_mode = #tpu.pipeline_mode<synchronous>, transform_indices = @transform_4, window_bounds = array<i64: 1, 64>}, {transform_indices = @transform_5, window_bounds = array<i64: 2, 40, 64>}]} {
    %c0 = arith.constant 0 : index
    %c0_0 = arith.constant 0 : index
    %0 = vector.load %arg2[%c0, %c0_0] : memref<75x64xbf16, #tpu.memory_space<vmem>>, vector<75x64xbf16>
    %c0_1 = arith.constant 0 : index
    %c0_2 = arith.constant 0 : index
    %c0_3 = arith.constant 0 : index
    %1 = vector.load %arg1[%c0_1, %c0_2, %c0_3] : memref<4x392x75xbf16, #tpu.memory_space<vmem>>, vector<1x392x75xbf16>
    %2 = vector.shape_cast %1 : vector<1x392x75xbf16> to vector<392x75xbf16>
    %cst = arith.constant dense<0.000000e+00> : vector<392x64xf32>
    %3 = tpu.matmul %2, %0, %cst {dimension_numbers = #tpu.dot_dimension_numbers<[1], [0], [0], [1], [0, 0, 1, 1], [], []>} : vector<392x75xbf16>, vector<75x64xbf16>, vector<392x64xf32> -> vector<392x64xf32>
    %c1 = arith.constant 1 : index
    %c0_4 = arith.constant 0 : index
    %c0_5 = arith.constant 0 : index
    %4 = vector.load %arg1[%c1, %c0_4, %c0_5] : memref<4x392x75xbf16, #tpu.memory_space<vmem>>, vector<1x392x75xbf16>
    %5 = vector.shape_cast %4 : vector<1x392x75xbf16> to vector<392x75xbf16>
    %cst_6 = arith.constant dense<0.000000e+00> : vector<392x64xf32>
    %6 = tpu.matmul %5, %0, %cst_6 {dimension_numbers = #tpu.dot_dimension_numbers<[1], [0], [0], [1], [0, 0, 1, 1], [], []>} : vector<392x75xbf16>, vector<75x64xbf16>, vector<392x64xf32> -> vector<392x64xf32>
    %7 = arith.maximumf %3, %6 : vector<392x64xf32>
    %c2 = arith.constant 2 : index
    %c0_7 = arith.constant 0 : index
    %c0_8 = arith.constant 0 : index
    %8 = vector.load %arg1[%c2, %c0_7, %c0_8] : memref<4x392x75xbf16, #tpu.memory_space<vmem>>, vector<1x392x75xbf16>
    %9 = vector.shape_cast %8 : vector<1x392x75xbf16> to vector<392x75xbf16>
    %cst_9 = arith.constant dense<0.000000e+00> : vector<392x64xf32>
    %10 = tpu.matmul %9, %0, %cst_9 {dimension_numbers = #tpu.dot_dimension_numbers<[1], [0], [0], [1], [0, 0, 1, 1], [], []>} : vector<392x75xbf16>, vector<75x64xbf16>, vector<392x64xf32> -> vector<392x64xf32>
    %11 = arith.maximumf %7, %10 : vector<392x64xf32>
    %c3 = arith.constant 3 : index
    %c0_10 = arith.constant 0 : index
    %c0_11 = arith.constant 0 : index
    %12 = vector.load %arg1[%c3, %c0_10, %c0_11] : memref<4x392x75xbf16, #tpu.memory_space<vmem>>, vector<1x392x75xbf16>
    %13 = vector.shape_cast %12 : vector<1x392x75xbf16> to vector<392x75xbf16>
    %cst_12 = arith.constant dense<0.000000e+00> : vector<392x64xf32>
    %14 = tpu.matmul %13, %0, %cst_12 {dimension_numbers = #tpu.dot_dimension_numbers<[1], [0], [0], [1], [0, 0, 1, 1], [], []>} : vector<392x75xbf16>, vector<75x64xbf16>, vector<392x64xf32> -> vector<392x64xf32>
    %15 = arith.maximumf %11, %14 : vector<392x64xf32>
    %c0_13 = arith.constant 0 : index
    %c0_14 = arith.constant 0 : index
    %16 = vector.load %arg3[%c0_13, %c0_14] : memref<1x64xf32, #tpu.memory_space<vmem>>, vector<1x64xf32>
    %17 = vector.broadcast %16 : vector<1x64xf32> to vector<392x64xf32>
    %18 = arith.addf %15, %17 : vector<392x64xf32>
    %cst_15 = arith.constant 0.000000e+00 : f32
    %19 = vector.broadcast %cst_15 : f32 to vector<392x64xf32>
    %20 = arith.maximumf %18, %19 : vector<392x64xf32>
    %21 = arith.truncf %20 : vector<392x64xf32> to vector<392x64xbf16>
    %22 = vector.extract_strided_slice %21 {offsets = [0, 0], sizes = [49, 64], strides = [1, 1]} : vector<392x64xbf16> to vector<49x64xbf16>
    %23 = vector.extract_strided_slice %21 {offsets = [49, 0], sizes = [49, 64], strides = [1, 1]} : vector<392x64xbf16> to vector<49x64xbf16>
    %24 = tpu.concatenate %22, %23 in 1 : vector<49x64xbf16>, vector<49x64xbf16> -> vector<49x128xbf16>
    %c0_16 = arith.constant 0 : index
    %c0_17 = arith.constant 0 : index
    %c0_18 = arith.constant 0 : index
    %25 = vector.load %arg7[%c0_16, %c0_17, %c0_18] : memref<4x49x128xbf16, #tpu.memory_space<vmem>>, vector<1x49x128xbf16>
    %26 = vector.shape_cast %25 : vector<1x49x128xbf16> to vector<49x128xbf16>
    %27 = vector.shape_cast %24 : vector<49x128xbf16> to vector<1x49x128xbf16>
    tpu.vector_store %arg7[%c0_16, %c0_17, %c0_18], %27 {strides = array<i32>} : memref<4x49x128xbf16, #tpu.memory_space<vmem>>, vector<1x49x128xbf16>,
    %28 = vector.extract_strided_slice %21 {offsets = [98, 0], sizes = [49, 64], strides = [1, 1]} : vector<392x64xbf16> to vector<49x64xbf16>
    %29 = vector.extract_strided_slice %21 {offsets = [147, 0], sizes = [49, 64], strides = [1, 1]} : vector<392x64xbf16> to vector<49x64xbf16>
    %30 = tpu.concatenate %28, %29 in 1 : vector<49x64xbf16>, vector<49x64xbf16> -> vector<49x128xbf16>
    %c1_19 = arith.constant 1 : index
    %c0_20 = arith.constant 0 : index
    %c0_21 = arith.constant 0 : index
    %31 = vector.load %arg7[%c1_19, %c0_20, %c0_21] : memref<4x49x128xbf16, #tpu.memory_space<vmem>>, vector<1x49x128xbf16>
    %32 = vector.shape_cast %31 : vector<1x49x128xbf16> to vector<49x128xbf16>
    %33 = vector.shape_cast %30 : vector<49x128xbf16> to vector<1x49x128xbf16>
    tpu.vector_store %arg7[%c1_19, %c0_20, %c0_21], %33 {strides = array<i32>} : memref<4x49x128xbf16, #tpu.memory_space<vmem>>, vector<1x49x128xbf16>,
    %34 = vector.extract_strided_slice %21 {offsets = [196, 0], sizes = [49, 64], strides = [1, 1]} : vector<392x64xbf16> to vector<49x64xbf16>
    %35 = vector.extract_strided_slice %21 {offsets = [245, 0], sizes = [49, 64], strides = [1, 1]} : vector<392x64xbf16> to vector<49x64xbf16>
    %36 = tpu.concatenate %34, %35 in 1 : vector<49x64xbf16>, vector<49x64xbf16> -> vector<49x128xbf16>
    %c2_22 = arith.constant 2 : index
    %c0_23 = arith.constant 0 : index
    %c0_24 = arith.constant 0 : index
    %37 = vector.load %arg7[%c2_22, %c0_23, %c0_24] : memref<4x49x128xbf16, #tpu.memory_space<vmem>>, vector<1x49x128xbf16>
    %38 = vector.shape_cast %37 : vector<1x49x128xbf16> to vector<49x128xbf16>
    %39 = vector.shape_cast %36 : vector<49x128xbf16> to vector<1x49x128xbf16>
    tpu.vector_store %arg7[%c2_22, %c0_23, %c0_24], %39 {strides = array<i32>} : memref<4x49x128xbf16, #tpu.memory_space<vmem>>, vector<1x49x128xbf16>,
    %40 = vector.extract_strided_slice %21 {offsets = [294, 0], sizes = [49, 64], strides = [1, 1]} : vector<392x64xbf16> to vector<49x64xbf16>
    %41 = vector.extract_strided_slice %21 {offsets = [343, 0], sizes = [49, 64], strides = [1, 1]} : vector<392x64xbf16> to vector<49x64xbf16>
    %42 = tpu.concatenate %40, %41 in 1 : vector<49x64xbf16>, vector<49x64xbf16> -> vector<49x128xbf16>
    %c3_25 = arith.constant 3 : index
    %c0_26 = arith.constant 0 : index
    %c0_27 = arith.constant 0 : index
    %43 = vector.load %arg7[%c3_25, %c0_26, %c0_27] : memref<4x49x128xbf16, #tpu.memory_space<vmem>>, vector<1x49x128xbf16>
    %44 = vector.shape_cast %43 : vector<1x49x128xbf16> to vector<49x128xbf16>
    %45 = vector.shape_cast %42 : vector<49x128xbf16> to vector<1x49x128xbf16>
    tpu.vector_store %arg7[%c3_25, %c0_26, %c0_27], %45 {strides = array<i32>} : memref<4x49x128xbf16, #tpu.memory_space<vmem>>, vector<1x49x128xbf16>,
    %c0_28 = arith.constant 0 : index
    %c0_29 = arith.constant 0 : index
    %46 = vector.load %arg5[%c0_28, %c0_29] : memref<1x64xf32, #tpu.memory_space<vmem>>, vector<1x64xf32>
    %c0_30 = arith.constant 0 : index
    %c0_31 = arith.constant 0 : index
    %c0_32 = arith.constant 0 : index
    %47 = vector.load %arg7[%c0_30, %c0_31, %c0_32] : memref<4x49x128xbf16, #tpu.memory_space<vmem>>, vector<1x33x128xbf16>
    %48 = vector.shape_cast %47 : vector<1x33x128xbf16> to vector<33x128xbf16>
    %c0_33 = arith.constant 0 : index
    %c1_34 = arith.constant 1 : index
    %c0_35 = arith.constant 0 : index
    %49 = vector.load %arg7[%c0_33, %c1_34, %c0_35] : memref<4x49x128xbf16, #tpu.memory_space<vmem>>, vector<1x33x128xbf16>
    %50 = vector.shape_cast %49 : vector<1x33x128xbf16> to vector<33x128xbf16>
    %c0_36 = arith.constant 0 : index
    %c2_37 = arith.constant 2 : index
    %c0_38 = arith.constant 0 : index
    %51 = vector.load %arg7[%c0_36, %c2_37, %c0_38] : memref<4x49x128xbf16, #tpu.memory_space<vmem>>, vector<1x33x128xbf16>
    %52 = vector.shape_cast %51 : vector<1x33x128xbf16> to vector<33x128xbf16>
    %c1_39 = arith.constant 1 : index
    %c0_40 = arith.constant 0 : index
    %c0_41 = arith.constant 0 : index
    %53 = vector.load %arg7[%c1_39, %c0_40, %c0_41] : memref<4x49x128xbf16, #tpu.memory_space<vmem>>, vector<1x33x128xbf16>
    %54 = vector.shape_cast %53 : vector<1x33x128xbf16> to vector<33x128xbf16>
    %c1_42 = arith.constant 1 : index
    %c1_43 = arith.constant 1 : index
    %c0_44 = arith.constant 0 : index
    %55 = vector.load %arg7[%c1_42, %c1_43, %c0_44] : memref<4x49x128xbf16, #tpu.memory_space<vmem>>, vector<1x33x128xbf16>
    %56 = vector.shape_cast %55 : vector<1x33x128xbf16> to vector<33x128xbf16>
    %c1_45 = arith.constant 1 : index
    %c2_46 = arith.constant 2 : index
    %c0_47 = arith.constant 0 : index
    %57 = vector.load %arg7[%c1_45, %c2_46, %c0_47] : memref<4x49x128xbf16, #tpu.memory_space<vmem>>, vector<1x33x128xbf16>
    %58 = vector.shape_cast %57 : vector<1x33x128xbf16> to vector<33x128xbf16>
    %c0_48 = arith.constant 0 : index
    %c7 = arith.constant 7 : index
    %c0_49 = arith.constant 0 : index
    %59 = vector.load %arg7[%c0_48, %c7, %c0_49] : memref<4x49x128xbf16, #tpu.memory_space<vmem>>, vector<1x33x128xbf16>
    %60 = vector.shape_cast %59 : vector<1x33x128xbf16> to vector<33x128xbf16>
    %c0_50 = arith.constant 0 : index
    %c8 = arith.constant 8 : index
    %c0_51 = arith.constant 0 : index
    %61 = vector.load %arg7[%c0_50, %c8, %c0_51] : memref<4x49x128xbf16, #tpu.memory_space<vmem>>, vector<1x33x128xbf16>
    %62 = vector.shape_cast %61 : vector<1x33x128xbf16> to vector<33x128xbf16>
    %c0_52 = arith.constant 0 : index
    %c9 = arith.constant 9 : index
    %c0_53 = arith.constant 0 : index
    %63 = vector.load %arg7[%c0_52, %c9, %c0_53] : memref<4x49x128xbf16, #tpu.memory_space<vmem>>, vector<1x33x128xbf16>
    %64 = vector.shape_cast %63 : vector<1x33x128xbf16> to vector<33x128xbf16>
    %c1_54 = arith.constant 1 : index
    %c7_55 = arith.constant 7 : index
    %c0_56 = arith.constant 0 : index
    %65 = vector.load %arg7[%c1_54, %c7_55, %c0_56] : memref<4x49x128xbf16, #tpu.memory_space<vmem>>, vector<1x33x128xbf16>
    %66 = vector.shape_cast %65 : vector<1x33x128xbf16> to vector<33x128xbf16>
    %c1_57 = arith.constant 1 : index
    %c8_58 = arith.constant 8 : index
    %c0_59 = arith.constant 0 : index
    %67 = vector.load %arg7[%c1_57, %c8_58, %c0_59] : memref<4x49x128xbf16, #tpu.memory_space<vmem>>, vector<1x33x128xbf16>
    %68 = vector.shape_cast %67 : vector<1x33x128xbf16> to vector<33x128xbf16>
    %c1_60 = arith.constant 1 : index
    %c9_61 = arith.constant 9 : index
    %c0_62 = arith.constant 0 : index
    %69 = vector.load %arg7[%c1_60, %c9_61, %c0_62] : memref<4x49x128xbf16, #tpu.memory_space<vmem>>, vector<1x33x128xbf16>
    %70 = vector.shape_cast %69 : vector<1x33x128xbf16> to vector<33x128xbf16>
    %c0_63 = arith.constant 0 : index
    %c14 = arith.constant 14 : index
    %c0_64 = arith.constant 0 : index
    %71 = vector.load %arg7[%c0_63, %c14, %c0_64] : memref<4x49x128xbf16, #tpu.memory_space<vmem>>, vector<1x33x128xbf16>
    %72 = vector.shape_cast %71 : vector<1x33x128xbf16> to vector<33x128xbf16>
    %c0_65 = arith.constant 0 : index
    %c15 = arith.constant 15 : index
    %c0_66 = arith.constant 0 : index
    %73 = vector.load %arg7[%c0_65, %c15, %c0_66] : memref<4x49x128xbf16, #tpu.memory_space<vmem>>, vector<1x33x128xbf16>
    %74 = vector.shape_cast %73 : vector<1x33x128xbf16> to vector<33x128xbf16>
    %c0_67 = arith.constant 0 : index
    %c16 = arith.constant 16 : index
    %c0_68 = arith.constant 0 : index
    %75 = vector.load %arg7[%c0_67, %c16, %c0_68] : memref<4x49x128xbf16, #tpu.memory_space<vmem>>, vector<1x33x128xbf16>
    %76 = vector.shape_cast %75 : vector<1x33x128xbf16> to vector<33x128xbf16>
    %c1_69 = arith.constant 1 : index
    %c14_70 = arith.constant 14 : index
    %c0_71 = arith.constant 0 : index
    %77 = vector.load %arg7[%c1_69, %c14_70, %c0_71] : memref<4x49x128xbf16, #tpu.memory_space<vmem>>, vector<1x33x128xbf16>
    %78 = vector.shape_cast %77 : vector<1x33x128xbf16> to vector<33x128xbf16>
    %c1_72 = arith.constant 1 : index
    %c15_73 = arith.constant 15 : index
    %c0_74 = arith.constant 0 : index
    %79 = vector.load %arg7[%c1_72, %c15_73, %c0_74] : memref<4x49x128xbf16, #tpu.memory_space<vmem>>, vector<1x33x128xbf16>
    %80 = vector.shape_cast %79 : vector<1x33x128xbf16> to vector<33x128xbf16>
    %c1_75 = arith.constant 1 : index
    %c16_76 = arith.constant 16 : index
    %c0_77 = arith.constant 0 : index
    %81 = vector.load %arg7[%c1_75, %c16_76, %c0_77] : memref<4x49x128xbf16, #tpu.memory_space<vmem>>, vector<1x33x128xbf16>
    %82 = vector.shape_cast %81 : vector<1x33x128xbf16> to vector<33x128xbf16>
    %83 = tpu.concatenate %48, %50, %52, %54, %56, %58, %60, %62, %64, %66, %68, %70, %72, %74, %76, %78 in 1 : vector<33x128xbf16>, vector<33x128xbf16>, vector<33x128xbf16>, vector<33x128xbf16>, vector<33x128xbf16>, vector<33x128xbf16>, vector<33x128xbf16>, vector<33x128xbf16>, vector<33x128xbf16>, vector<33x128xbf16>, vector<33x128xbf16>, vector<33x128xbf16>, vector<33x128xbf16>, vector<33x128xbf16>, vector<33x128xbf16>, vector<33x128xbf16> -> vector<33x2048xbf16>
    %84 = tpu.concatenate %80, %82 in 1 : vector<33x128xbf16>, vector<33x128xbf16> -> vector<33x256xbf16>
    %85 = tpu.concatenate %83, %84 in 1 : vector<33x2048xbf16>, vector<33x256xbf16> -> vector<33x2304xbf16>
    %c0_78 = arith.constant 0 : index
    %c0_79 = arith.constant 0 : index
    %c0_80 = arith.constant 0 : index
    %86 = vector.load %arg4[%c0_78, %c0_79, %c0_80] : memref<4x2304x64xbf16, #tpu.memory_space<vmem>>, vector<1x2304x64xbf16>
    %87 = vector.shape_cast %86 : vector<1x2304x64xbf16> to vector<2304x64xbf16>
    %cst_81 = arith.constant dense<0.000000e+00> : vector<33x64xf32>
    %88 = tpu.matmul %85, %87, %cst_81 {dimension_numbers = #tpu.dot_dimension_numbers<[1], [0], [0], [1], [0, 0, 1, 1], [], []>} : vector<33x2304xbf16>, vector<2304x64xbf16>, vector<33x64xf32> -> vector<33x64xf32>
    %c1_82 = arith.constant 1 : index
    %c0_83 = arith.constant 0 : index
    %c0_84 = arith.constant 0 : index
    %89 = vector.load %arg4[%c1_82, %c0_83, %c0_84] : memref<4x2304x64xbf16, #tpu.memory_space<vmem>>, vector<1x2304x64xbf16>
    %90 = vector.shape_cast %89 : vector<1x2304x64xbf16> to vector<2304x64xbf16>
    %cst_85 = arith.constant dense<0.000000e+00> : vector<33x64xf32>
    %91 = tpu.matmul %85, %90, %cst_85 {dimension_numbers = #tpu.dot_dimension_numbers<[1], [0], [0], [1], [0, 0, 1, 1], [], []>} : vector<33x2304xbf16>, vector<2304x64xbf16>, vector<33x64xf32> -> vector<33x64xf32>
    %92 = arith.maximumf %88, %91 : vector<33x64xf32>
    %c2_86 = arith.constant 2 : index
    %c0_87 = arith.constant 0 : index
    %c0_88 = arith.constant 0 : index
    %93 = vector.load %arg4[%c2_86, %c0_87, %c0_88] : memref<4x2304x64xbf16, #tpu.memory_space<vmem>>, vector<1x2304x64xbf16>
    %94 = vector.shape_cast %93 : vector<1x2304x64xbf16> to vector<2304x64xbf16>
    %cst_89 = arith.constant dense<0.000000e+00> : vector<33x64xf32>
    %95 = tpu.matmul %85, %94, %cst_89 {dimension_numbers = #tpu.dot_dimension_numbers<[1], [0], [0], [1], [0, 0, 1, 1], [], []>} : vector<33x2304xbf16>, vector<2304x64xbf16>, vector<33x64xf32> -> vector<33x64xf32>
    %96 = arith.maximumf %92, %95 : vector<33x64xf32>
    %c3_90 = arith.constant 3 : index
    %c0_91 = arith.constant 0 : index
    %c0_92 = arith.constant 0 : index
    %97 = vector.load %arg4[%c3_90, %c0_91, %c0_92] : memref<4x2304x64xbf16, #tpu.memory_space<vmem>>, vector<1x2304x64xbf16>
    %98 = vector.shape_cast %97 : vector<1x2304x64xbf16> to vector<2304x64xbf16>
    %cst_93 = arith.constant dense<0.000000e+00> : vector<33x64xf32>
    %99 = tpu.matmul %85, %98, %cst_93 {dimension_numbers = #tpu.dot_dimension_numbers<[1], [0], [0], [1], [0, 0, 1, 1], [], []>} : vector<33x2304xbf16>, vector<2304x64xbf16>, vector<33x64xf32> -> vector<33x64xf32>
    %100 = arith.maximumf %96, %99 : vector<33x64xf32>
    %101 = vector.broadcast %46 : vector<1x64xf32> to vector<33x64xf32>
    %102 = arith.addf %100, %101 : vector<33x64xf32>
    %cst_94 = arith.constant 0.000000e+00 : f32
    %103 = vector.broadcast %cst_94 : f32 to vector<33x64xf32>
    %104 = arith.maximumf %102, %103 : vector<33x64xf32>
    %c0_95 = arith.constant 0 : index
    %c0_96 = arith.constant 0 : index
    %c0_97 = arith.constant 0 : index
    %105 = vector.load %arg6[%c0_95, %c0_96, %c0_97] : memref<2x40x64xf32, #tpu.memory_space<vmem>>, vector<1x33x64xf32>
    %106 = vector.shape_cast %105 : vector<1x33x64xf32> to vector<33x64xf32>
    %107 = vector.shape_cast %104 : vector<33x64xf32> to vector<1x33x64xf32>
    tpu.vector_store %arg6[%c0_95, %c0_96, %c0_97], %107 {strides = array<i32>} : memref<2x40x64xf32, #tpu.memory_space<vmem>>, vector<1x33x64xf32>,
    %cst_98 = arith.constant 0.000000e+00 : f32
    %108 = vector.broadcast %cst_98 : f32 to vector<7x64xf32>
    %c0_99 = arith.constant 0 : index
    %c33 = arith.constant 33 : index
    %c0_100 = arith.constant 0 : index
    %109 = vector.load %arg6[%c0_99, %c33, %c0_100] : memref<2x40x64xf32, #tpu.memory_space<vmem>>, vector<1x7x64xf32>
    %110 = vector.shape_cast %109 : vector<1x7x64xf32> to vector<7x64xf32>
    %111 = vector.shape_cast %108 : vector<7x64xf32> to vector<1x7x64xf32>
    tpu.vector_store %arg6[%c0_99, %c33, %c0_100], %111 {strides = array<i32>} : memref<2x40x64xf32, #tpu.memory_space<vmem>>, vector<1x7x64xf32>,
    %c2_101 = arith.constant 2 : index
    %c0_102 = arith.constant 0 : index
    %c0_103 = arith.constant 0 : index
    %112 = vector.load %arg7[%c2_101, %c0_102, %c0_103] : memref<4x49x128xbf16, #tpu.memory_space<vmem>>, vector<1x33x128xbf16>
    %113 = vector.shape_cast %112 : vector<1x33x128xbf16> to vector<33x128xbf16>
    %c2_104 = arith.constant 2 : index
    %c1_105 = arith.constant 1 : index
    %c0_106 = arith.constant 0 : index
    %114 = vector.load %arg7[%c2_104, %c1_105, %c0_106] : memref<4x49x128xbf16, #tpu.memory_space<vmem>>, vector<1x33x128xbf16>
    %115 = vector.shape_cast %114 : vector<1x33x128xbf16> to vector<33x128xbf16>
    %c2_107 = arith.constant 2 : index
    %c2_108 = arith.constant 2 : index
    %c0_109 = arith.constant 0 : index
    %116 = vector.load %arg7[%c2_107, %c2_108, %c0_109] : memref<4x49x128xbf16, #tpu.memory_space<vmem>>, vector<1x33x128xbf16>
    %117 = vector.shape_cast %116 : vector<1x33x128xbf16> to vector<33x128xbf16>
    %c3_110 = arith.constant 3 : index
    %c0_111 = arith.constant 0 : index
    %c0_112 = arith.constant 0 : index
    %118 = vector.load %arg7[%c3_110, %c0_111, %c0_112] : memref<4x49x128xbf16, #tpu.memory_space<vmem>>, vector<1x33x128xbf16>
    %119 = vector.shape_cast %118 : vector<1x33x128xbf16> to vector<33x128xbf16>
    %c3_113 = arith.constant 3 : index
    %c1_114 = arith.constant 1 : index
    %c0_115 = arith.constant 0 : index
    %120 = vector.load %arg7[%c3_113, %c1_114, %c0_115] : memref<4x49x128xbf16, #tpu.memory_space<vmem>>, vector<1x33x128xbf16>
    %121 = vector.shape_cast %120 : vector<1x33x128xbf16> to vector<33x128xbf16>
    %c3_116 = arith.constant 3 : index
    %c2_117 = arith.constant 2 : index
    %c0_118 = arith.constant 0 : index
    %122 = vector.load %arg7[%c3_116, %c2_117, %c0_118] : memref<4x49x128xbf16, #tpu.memory_space<vmem>>, vector<1x33x128xbf16>
    %123 = vector.shape_cast %122 : vector<1x33x128xbf16> to vector<33x128xbf16>
    %c2_119 = arith.constant 2 : index
    %c7_120 = arith.constant 7 : index
    %c0_121 = arith.constant 0 : index
    %124 = vector.load %arg7[%c2_119, %c7_120, %c0_121] : memref<4x49x128xbf16, #tpu.memory_space<vmem>>, vector<1x33x128xbf16>
    %125 = vector.shape_cast %124 : vector<1x33x128xbf16> to vector<33x128xbf16>
    %c2_122 = arith.constant 2 : index
    %c8_123 = arith.constant 8 : index
    %c0_124 = arith.constant 0 : index
    %126 = vector.load %arg7[%c2_122, %c8_123, %c0_124] : memref<4x49x128xbf16, #tpu.memory_space<vmem>>, vector<1x33x128xbf16>
    %127 = vector.shape_cast %126 : vector<1x33x128xbf16> to vector<33x128xbf16>
    %c2_125 = arith.constant 2 : index
    %c9_126 = arith.constant 9 : index
    %c0_127 = arith.constant 0 : index
    %128 = vector.load %arg7[%c2_125, %c9_126, %c0_127] : memref<4x49x128xbf16, #tpu.memory_space<vmem>>, vector<1x33x128xbf16>
    %129 = vector.shape_cast %128 : vector<1x33x128xbf16> to vector<33x128xbf16>
    %c3_128 = arith.constant 3 : index
    %c7_129 = arith.constant 7 : index
    %c0_130 = arith.constant 0 : index
    %130 = vector.load %arg7[%c3_128, %c7_129, %c0_130] : memref<4x49x128xbf16, #tpu.memory_space<vmem>>, vector<1x33x128xbf16>
    %131 = vector.shape_cast %130 : vector<1x33x128xbf16> to vector<33x128xbf16>
    %c3_131 = arith.constant 3 : index
    %c8_132 = arith.constant 8 : index
    %c0_133 = arith.constant 0 : index
    %132 = vector.load %arg7[%c3_131, %c8_132, %c0_133] : memref<4x49x128xbf16, #tpu.memory_space<vmem>>, vector<1x33x128xbf16>
    %133 = vector.shape_cast %132 : vector<1x33x128xbf16> to vector<33x128xbf16>
    %c3_134 = arith.constant 3 : index
    %c9_135 = arith.constant 9 : index
    %c0_136 = arith.constant 0 : index
    %134 = vector.load %arg7[%c3_134, %c9_135, %c0_136] : memref<4x49x128xbf16, #tpu.memory_space<vmem>>, vector<1x33x128xbf16>
    %135 = vector.shape_cast %134 : vector<1x33x128xbf16> to vector<33x128xbf16>
    %c2_137 = arith.constant 2 : index
    %c14_138 = arith.constant 14 : index
    %c0_139 = arith.constant 0 : index
    %136 = vector.load %arg7[%c2_137, %c14_138, %c0_139] : memref<4x49x128xbf16, #tpu.memory_space<vmem>>, vector<1x33x128xbf16>
    %137 = vector.shape_cast %136 : vector<1x33x128xbf16> to vector<33x128xbf16>
    %c2_140 = arith.constant 2 : index
    %c15_141 = arith.constant 15 : index
    %c0_142 = arith.constant 0 : index
    %138 = vector.load %arg7[%c2_140, %c15_141, %c0_142] : memref<4x49x128xbf16, #tpu.memory_space<vmem>>, vector<1x33x128xbf16>
    %139 = vector.shape_cast %138 : vector<1x33x128xbf16> to vector<33x128xbf16>
    %c2_143 = arith.constant 2 : index
    %c16_144 = arith.constant 16 : index
    %c0_145 = arith.constant 0 : index
    %140 = vector.load %arg7[%c2_143, %c16_144, %c0_145] : memref<4x49x128xbf16, #tpu.memory_space<vmem>>, vector<1x33x128xbf16>
    %141 = vector.shape_cast %140 : vector<1x33x128xbf16> to vector<33x128xbf16>
    %c3_146 = arith.constant 3 : index
    %c14_147 = arith.constant 14 : index
    %c0_148 = arith.constant 0 : index
    %142 = vector.load %arg7[%c3_146, %c14_147, %c0_148] : memref<4x49x128xbf16, #tpu.memory_space<vmem>>, vector<1x33x128xbf16>
    %143 = vector.shape_cast %142 : vector<1x33x128xbf16> to vector<33x128xbf16>
    %c3_149 = arith.constant 3 : index
    %c15_150 = arith.constant 15 : index
    %c0_151 = arith.constant 0 : index
    %144 = vector.load %arg7[%c3_149, %c15_150, %c0_151] : memref<4x49x128xbf16, #tpu.memory_space<vmem>>, vector<1x33x128xbf16>
    %145 = vector.shape_cast %144 : vector<1x33x128xbf16> to vector<33x128xbf16>
    %c3_152 = arith.constant 3 : index
    %c16_153 = arith.constant 16 : index
    %c0_154 = arith.constant 0 : index
    %146 = vector.load %arg7[%c3_152, %c16_153, %c0_154] : memref<4x49x128xbf16, #tpu.memory_space<vmem>>, vector<1x33x128xbf16>
    %147 = vector.shape_cast %146 : vector<1x33x128xbf16> to vector<33x128xbf16>
    %148 = tpu.concatenate %113, %115, %117, %119, %121, %123, %125, %127, %129, %131, %133, %135, %137, %139, %141, %143 in 1 : vector<33x128xbf16>, vector<33x128xbf16>, vector<33x128xbf16>, vector<33x128xbf16>, vector<33x128xbf16>, vector<33x128xbf16>, vector<33x128xbf16>, vector<33x128xbf16>, vector<33x128xbf16>, vector<33x128xbf16>, vector<33x128xbf16>, vector<33x128xbf16>, vector<33x128xbf16>, vector<33x128xbf16>, vector<33x128xbf16>, vector<33x128xbf16> -> vector<33x2048xbf16>
    %149 = tpu.concatenate %145, %147 in 1 : vector<33x128xbf16>, vector<33x128xbf16> -> vector<33x256xbf16>
    %150 = tpu.concatenate %148, %149 in 1 : vector<33x2048xbf16>, vector<33x256xbf16> -> vector<33x2304xbf16>
    %c0_155 = arith.constant 0 : index
    %c0_156 = arith.constant 0 : index
    %c0_157 = arith.constant 0 : index
    %151 = vector.load %arg4[%c0_155, %c0_156, %c0_157] : memref<4x2304x64xbf16, #tpu.memory_space<vmem>>, vector<1x2304x64xbf16>
    %152 = vector.shape_cast %151 : vector<1x2304x64xbf16> to vector<2304x64xbf16>
    %cst_158 = arith.constant dense<0.000000e+00> : vector<33x64xf32>
    %153 = tpu.matmul %150, %152, %cst_158 {dimension_numbers = #tpu.dot_dimension_numbers<[1], [0], [0], [1], [0, 0, 1, 1], [], []>} : vector<33x2304xbf16>, vector<2304x64xbf16>, vector<33x64xf32> -> vector<33x64xf32>
    %c1_159 = arith.constant 1 : index
    %c0_160 = arith.constant 0 : index
    %c0_161 = arith.constant 0 : index
    %154 = vector.load %arg4[%c1_159, %c0_160, %c0_161] : memref<4x2304x64xbf16, #tpu.memory_space<vmem>>, vector<1x2304x64xbf16>
    %155 = vector.shape_cast %154 : vector<1x2304x64xbf16> to vector<2304x64xbf16>
    %cst_162 = arith.constant dense<0.000000e+00> : vector<33x64xf32>
    %156 = tpu.matmul %150, %155, %cst_162 {dimension_numbers = #tpu.dot_dimension_numbers<[1], [0], [0], [1], [0, 0, 1, 1], [], []>} : vector<33x2304xbf16>, vector<2304x64xbf16>, vector<33x64xf32> -> vector<33x64xf32>
    %157 = arith.maximumf %153, %156 : vector<33x64xf32>
    %c2_163 = arith.constant 2 : index
    %c0_164 = arith.constant 0 : index
    %c0_165 = arith.constant 0 : index
    %158 = vector.load %arg4[%c2_163, %c0_164, %c0_165] : memref<4x2304x64xbf16, #tpu.memory_space<vmem>>, vector<1x2304x64xbf16>
    %159 = vector.shape_cast %158 : vector<1x2304x64xbf16> to vector<2304x64xbf16>
    %cst_166 = arith.constant dense<0.000000e+00> : vector<33x64xf32>
    %160 = tpu.matmul %150, %159, %cst_166 {dimension_numbers = #tpu.dot_dimension_numbers<[1], [0], [0], [1], [0, 0, 1, 1], [], []>} : vector<33x2304xbf16>, vector<2304x64xbf16>, vector<33x64xf32> -> vector<33x64xf32>
    %161 = arith.maximumf %157, %160 : vector<33x64xf32>
    %c3_167 = arith.constant 3 : index
    %c0_168 = arith.constant 0 : index
    %c0_169 = arith.constant 0 : index
    %162 = vector.load %arg4[%c3_167, %c0_168, %c0_169] : memref<4x2304x64xbf16, #tpu.memory_space<vmem>>, vector<1x2304x64xbf16>
    %163 = vector.shape_cast %162 : vector<1x2304x64xbf16> to vector<2304x64xbf16>
    %cst_170 = arith.constant dense<0.000000e+00> : vector<33x64xf32>
    %164 = tpu.matmul %150, %163, %cst_170 {dimension_numbers = #tpu.dot_dimension_numbers<[1], [0], [0], [1], [0, 0, 1, 1], [], []>} : vector<33x2304xbf16>, vector<2304x64xbf16>, vector<33x64xf32> -> vector<33x64xf32>
    %165 = arith.maximumf %161, %164 : vector<33x64xf32>
    %166 = vector.broadcast %46 : vector<1x64xf32> to vector<33x64xf32>
    %167 = arith.addf %165, %166 : vector<33x64xf32>
    %cst_171 = arith.constant 0.000000e+00 : f32
    %168 = vector.broadcast %cst_171 : f32 to vector<33x64xf32>
    %169 = arith.maximumf %167, %168 : vector<33x64xf32>
    %c1_172 = arith.constant 1 : index
    %c0_173 = arith.constant 0 : index
    %c0_174 = arith.constant 0 : index
    %170 = vector.load %arg6[%c1_172, %c0_173, %c0_174] : memref<2x40x64xf32, #tpu.memory_space<vmem>>, vector<1x33x64xf32>
    %171 = vector.shape_cast %170 : vector<1x33x64xf32> to vector<33x64xf32>
    %172 = vector.shape_cast %169 : vector<33x64xf32> to vector<1x33x64xf32>
    tpu.vector_store %arg6[%c1_172, %c0_173, %c0_174], %172 {strides = array<i32>} : memref<2x40x64xf32, #tpu.memory_space<vmem>>, vector<1x33x64xf32>,
    %cst_175 = arith.constant 0.000000e+00 : f32
    %173 = vector.broadcast %cst_175 : f32 to vector<7x64xf32>
    %c1_176 = arith.constant 1 : index
    %c33_177 = arith.constant 33 : index
    %c0_178 = arith.constant 0 : index
    %174 = vector.load %arg6[%c1_176, %c33_177, %c0_178] : memref<2x40x64xf32, #tpu.memory_space<vmem>>, vector<1x7x64xf32>
    %175 = vector.shape_cast %174 : vector<1x7x64xf32> to vector<7x64xf32>
    %176 = vector.shape_cast %173 : vector<7x64xf32> to vector<1x7x64xf32>
    tpu.vector_store %arg6[%c1_176, %c33_177, %c0_178], %176 {strides = array<i32>} : memref<2x40x64xf32, #tpu.memory_space<vmem>>, vector<1x7x64xf32>,
    return
  }
  func.func @transform_0(%arg0: i32) -> (i32, i32, i32) {
    %c0_i32 = arith.constant 0 : i32
    %c0_i32_0 = arith.constant 0 : i32
    %c0_i32_1 = arith.constant 0 : i32
    return %c0_i32, %arg0, %c0_i32_0 : i32, i32, i32
  }
  func.func @transform_1(%arg0: i32) -> (i32, i32) {
    %c0_i32 = arith.constant 0 : i32
    %c0_i32_0 = arith.constant 0 : i32
    %c0_i32_1 = arith.constant 0 : i32
    return %c0_i32, %c0_i32_0 : i32, i32
  }
  func.func @transform_2(%arg0: i32) -> (i32, i32) {
    %c0_i32 = arith.constant 0 : i32
    %c0_i32_0 = arith.constant 0 : i32
    %c0_i32_1 = arith.constant 0 : i32
    return %c0_i32, %c0_i32_0 : i32, i32
  }
  func.func @transform_3(%arg0: i32) -> (i32, i32, i32) {
    %c0_i32 = arith.constant 0 : i32
    %c0_i32_0 = arith.constant 0 : i32
    %c0_i32_1 = arith.constant 0 : i32
    %c0_i32_2 = arith.constant 0 : i32
    return %c0_i32, %c0_i32_0, %c0_i32_1 : i32, i32, i32
  }
  func.func @transform_4(%arg0: i32) -> (i32, i32) {
    %c0_i32 = arith.constant 0 : i32
    %c0_i32_0 = arith.constant 0 : i32
    %c0_i32_1 = arith.constant 0 : i32
    return %c0_i32, %c0_i32_0 : i32, i32
  }
  func.func @transform_5(%arg0: i32) -> (i32, i32, i32) {
    %c0_i32 = arith.constant 0 : i32
    %c0_i32_0 = arith.constant 0 : i32
    %c0_i32_1 = arith.constant 0 : i32
    return %arg0, %c0_i32, %c0_i32_0 : i32, i32, i32
  }
}

</mosaic_0001>

<bundles_post_ra>
// kernel: convnet_forward.1
= control target key start
LH: loop header
LB: loop body
LE: loop exit
PB: predicated region body
PF: predicated region fallthrough
CT: control target
= control target key end

     0   :  { %s25326_s18 = smov 0   ;;  %s25328_s19 = smov 0   ;;  %s31039_s0 = inlined_call_operand.vmem [shape: bf16[4,784,75], index: 0, kind: input, shape index: {}]   ;;  %s31040_s1 = inlined_call_operand.vmem [shape: bf16[75,64], index: 1, kind: input, shape index: {}]   ;;  %s31041_s2 = inlined_call_operand.vmem [shape: f32[1,64], index: 2, kind: input, shape index: {}]   ;;  %s31042_s3 = inlined_call_operand.vmem [shape: bf16[4,2304,64], index: 3, kind: input, shape index: {}]   ;;  %s31043_s4 = inlined_call_operand.vmem [shape: f32[1,64], index: 4, kind: input, shape index: {}]   ;;  %s31044_s5 = inlined_call_operand.vmem [shape: f32[4,40,64], index: 5, kind: output, shape index: {}]  }
   0x1   :  { %s25330_s20 = smov 0  }
   0x2 LB: > { %s16923_s21 = sadd.s32 4294967295, %s25291_s20   ;;  %s25343_s22 = sadd.s32 1, %s25291_s20   ;;  %s25291_s20 = sphi %s25330_s20, %s31476_s20   ;;  %s25287_s19 = sphi %s25328_s19, %s31475_s19   ;;  %s25283_s18 = sphi %s25326_s18, %s31474_s18  }
   0x3   : > { %s19_s23 = ssub.s32 %s25291_s20, %s25343_s22  ;;  %s22_s24 = sadd.s32 1, %s25287_s19 }
   0x4   : > { %p20_p0 = scmp.eq.s32.totalorder %s19_s23, 0  ;;  %p29_p1 = scmp.ne.s32.totalorder %s25287_s19, %s25283_s18 }
   0x5   : > { %p30_p2 = scmp.eq.s32.totalorder %s25291_s20, 0  ;;  %p16926_p4 = scmp.ge.s32.totalorder %s25291_s20, 2 }
   0x6   : > { %s25352_s25 = scalar_select %p20_p0, %s25287_s19, %s22_s24  }
   0x7   : > { %p31_p3 = por %p30_p2, %p29_p1  ;;  %177 = sbr.rel (%p16926_p4) target bundleno = 117 (0x75), region = 32 }
   0xc   : > { %180 = sbr.rel (!%p31_p3) target bundleno = 117 (0x75), region = 36  ;;  %s182_s26 = sand.u32 (%p31_p3), 1, %s25287_s19  }
   0xd   : > { %s23929_s27 = smul.u32 (%p31_p3), 196, %s25291_s20 }
   0xe   : > { %s25211_s28 = smul.u32 (%p31_p3), 784, %s182_s26 }
   0xf   : > { %s25360_s6 = scalar_lea.vmem (%p31_p3), %s31039_s0, %s23929_s27 }
  0x10   : > { %v204_v0 = vld [vmem:[%s25360_s6] sm:$0xff] (%p31_p3)   ;;  %v208_v1 = vld [vmem:[%s25360_s6 + $0x8] sm:$0xff] (%p31_p3)   ;;  %v212_v2 = vld [vmem:[%s25360_s6 + $0x10] sm:$0xff] (%p31_p3)   ;;  %s25365_s7 = scalar_lea.vmem (%p31_p3), [#allocation3], %s25211_s28 }
  0x11   : > { %205 = vst [vmem:[%s25365_s7] sm:$0xff] %v204_v0   ;;  %v216_v3 = vld [vmem:[%s25360_s6 + $0x18] sm:$0xff]   ;;  %v220_v4 = vld [vmem:[%s25360_s6 + $0x20] sm:$0xff]   ;;  %v224_v5 = vld [vmem:[%s25360_s6 + $0x28] sm:$0xff]  }
  0x12   : > { %209 = vst [vmem:[%s25365_s7 + $0x8] sm:$0xff] %v208_v1   ;;  %v228_v6 = vld [vmem:[%s25360_s6 + $0x30] sm:$0xff]   ;;  %v232_v7 = vld [vmem:[%s25360_s6 + $0x38] sm:$0xff]   ;;  %v236_v8 = vld [vmem:[%s25360_s6 + $0x40] sm:$0xff]  }
  0x13   : > { %213 = vst [vmem:[%s25365_s7 + $0x10] sm:$0xff] %v212_v2   ;;  %v240_v9 = vld [vmem:[%s25360_s6 + $0x48] sm:$0xff]   ;;  %v244_v10 = vld [vmem:[%s25360_s6 + $0x50] sm:$0xff]   ;;  %v248_v11 = vld [vmem:[%s25360_s6 + $0x58] sm:$0xff]  }
  0x14   : > { %217 = vst [vmem:[%s25365_s7 + $0x18] sm:$0xff] %v216_v3   ;;  %v252_v12 = vld [vmem:[%s25360_s6 + $0x60] sm:$0xff]   ;;  %v256_v13 = vld [vmem:[%s25360_s6 + $0x68] sm:$0xff]   ;;  %v260_v14 = vld [vmem:[%s25360_s6 + $0x70] sm:$0xff]  }
  0x15   : > { %221 = vst [vmem:[%s25365_s7 + $0x20] sm:$0xff] %v220_v4   ;;  %v264_v15 = vld [vmem:[%s25360_s6 + $0x78] sm:$0xff]   ;;  %v268_v16 = vld [vmem:[%s25360_s6 + $0x80] sm:$0xff]   ;;  %v272_v17 = vld [vmem:[%s25360_s6 + $0x88] sm:$0xff]  }
  0x16   : > { %225 = vst [vmem:[%s25365_s7 + $0x28] sm:$0xff] %v224_v5   ;;  %v276_v18 = vld [vmem:[%s25360_s6 + $0x90] sm:$0xff]   ;;  %v280_v19 = vld [vmem:[%s25360_s6 + $0x98] sm:$0xff]   ;;  %v284_v20 = vld [vmem:[%s25360_s6 + $0xa0] sm:$0xff]  }
  0x17   : > { %229 = vst [vmem:[%s25365_s7 + $0x30] sm:$0xff] %v228_v6   ;;  %v288_v21 = vld [vmem:[%s25360_s6 + $0xa8] sm:$0xff]   ;;  %v292_v22 = vld [vmem:[%s25360_s6 + $0xb0] sm:$0xff]   ;;  %v296_v23 = vld [vmem:[%s25360_s6 + $0xb8] sm:$0xff]  }
  0x18   : > { %233 = vst [vmem:[%s25365_s7 + $0x38] sm:$0xff] %v232_v7   ;;  %v300_v24 = vld [vmem:[%s25360_s6 + $0xc0] sm:$0xf]  ;;  %v302_v25 = vld [vmem:[%s25360_s6 + $0x188] sm:$0xff]   ;;  %v306_v26 = vld [vmem:[%s25360_s6 + $0x190] sm:$0xff]  }
  0x19   : > { %237 = vst [vmem:[%s25365_s7 + $0x40] sm:$0xff] %v236_v8   ;;  %v310_v27 = vld [vmem:[%s25360_s6 + $0x198] sm:$0xff]   ;;  %v314_v28 = vld [vmem:[%s25360_s6 + $0x1a0] sm:$0xff]   ;;  %v318_v29 = vld [vmem:[%s25360_s6 + $0x1a8] sm:$0xff]  }
  0x1a   : > { %241 = vst [vmem:[%s25365_s7 + $0x48] sm:$0xff] %v240_v9   ;;  %v322_v30 = vld [vmem:[%s25360_s6 + $0x1b0] sm:$0xff]   ;;  %v326_v31 = vld [vmem:[%s25360_s6 + $0x1b8] sm:$0xff]   ;;  %v330_v32 = vld [vmem:[%s25360_s6 + $0x1c0] sm:$0xff]  }
  0x1b   : > { %245 = vst [vmem:[%s25365_s7 + $0x50] sm:$0xff] %v244_v10   ;;  %v334_v33 = vld [vmem:[%s25360_s6 + $0x1c8] sm:$0xff]   ;;  %v338_v34 = vld [vmem:[%s25360_s6 + $0x1d0] sm:$0xff]   ;;  %v342_v35 = vld [vmem:[%s25360_s6 + $0x1d8] sm:$0xff]  }
  0x1c   : > { %249 = vst [vmem:[%s25365_s7 + $0x58] sm:$0xff] %v248_v11   ;;  %v346_v36 = vld [vmem:[%s25360_s6 + $0x1e0] sm:$0xff]   ;;  %v350_v37 = vld [vmem:[%s25360_s6 + $0x1e8] sm:$0xff]   ;;  %v354_v38 = vld [vmem:[%s25360_s6 + $0x1f0] sm:$0xff]  }
  0x1d   : > { %253 = vst [vmem:[%s25365_s7 + $0x60] sm:$0xff] %v252_v12   ;;  %v358_v39 = vld [vmem:[%s25360_s6 + $0x1f8] sm:$0xff]   ;;  %v362_v40 = vld [vmem:[%s25360_s6 + $0x200] sm:$0xff]   ;;  %v366_v41 = vld [vmem:[%s25360_s6 + $0x208] sm:$0xff]  }
  0x1e   : > { %257 = vst [vmem:[%s25365_s7 + $0x68] sm:$0xff] %v256_v13   ;;  %v370_v42 = vld [vmem:[%s25360_s6 + $0x210] sm:$0xff]   ;;  %v374_v43 = vld [vmem:[%s25360_s6 + $0x218] sm:$0xff]   ;;  %v378_v44 = vld [vmem:[%s25360_s6 + $0x220] sm:$0xff]  }
  0x1f   : > { %261 = vst [vmem:[%s25365_s7 + $0x70] sm:$0xff] %v260_v14   ;;  %v382_v45 = vld [vmem:[%s25360_s6 + $0x228] sm:$0xff]   ;;  %v386_v46 = vld [vmem:[%s25360_s6 + $0x230] sm:$0xff]   ;;  %v390_v47 = vld [vmem:[%s25360_s6 + $0x238] sm:$0xff]  }
  0x20   : > { %265 = vst [vmem:[%s25365_s7 + $0x78] sm:$0xff] %v264_v15   ;;  %v394_v48 = vld [vmem:[%s25360_s6 + $0x240] sm:$0xff]   ;;  %v398_v49 = vld [vmem:[%s25360_s6 + $0x248] sm:$0xf]  ;;  %v400_v50 = vld [vmem:[%s25360_s6 + $0x310] sm:$0xff]  }
  0x21   : > { %269 = vst [vmem:[%s25365_s7 + $0x80] sm:$0xff] %v268_v16   ;;  %v404_v51 = vld [vmem:[%s25360_s6 + $0x318] sm:$0xff]   ;;  %v408_v52 = vld [vmem:[%s25360_s6 + $0x320] sm:$0xff]   ;;  %v412_v53 = vld [vmem:[%s25360_s6 + $0x328] sm:$0xff]  }
  0x22   : > { %273 = vst [vmem:[%s25365_s7 + $0x88] sm:$0xff] %v272_v17   ;;  %v416_v54 = vld [vmem:[%s25360_s6 + $0x330] sm:$0xff]   ;;  %v420_v55 = vld [vmem:[%s25360_s6 + $0x338] sm:$0xff]   ;;  %v424_v56 = vld [vmem:[%s25360_s6 + $0x340] sm:$0xff]  }
  0x23   : > { %277 = vst [vmem:[%s25365_s7 + $0x90] sm:$0xff] %v276_v18   ;;  %v428_v57 = vld [vmem:[%s25360_s6 + $0x348] sm:$0xff]   ;;  %v432_v58 = vld [vmem:[%s25360_s6 + $0x350] sm:$0xff]   ;;  %v436_v59 = vld [vmem:[%s25360_s6 + $0x358] sm:$0xff]  }
  0x24   : > { %281 = vst [vmem:[%s25365_s7 + $0x98] sm:$0xff] %v280_v19   ;;  %v440_v60 = vld [vmem:[%s25360_s6 + $0x360] sm:$0xff]   ;;  %v444_v61 = vld [vmem:[%s25360_s6 + $0x368] sm:$0xff]   ;;  %v448_v62 = vld [vmem:[%s25360_s6 + $0x370] sm:$0xff]  }
  0x25   : > { %285 = vst [vmem:[%s25365_s7 + $0xa0] sm:$0xff] %v284_v20   ;;  %v452_v63 = vld [vmem:[%s25360_s6 + $0x378] sm:$0xff]   ;;  %v456_v0 = vld [vmem:[%s25360_s6 + $0x380] sm:$0xff]   ;;  %v460_v1 = vld [vmem:[%s25360_s6 + $0x388] sm:$0xff]  }
  0x26   : > { %289 = vst [vmem:[%s25365_s7 + $0xa8] sm:$0xff] %v288_v21   ;;  %v464_v2 = vld [vmem:[%s25360_s6 + $0x390] sm:$0xff]   ;;  %v468_v3 = vld [vmem:[%s25360_s6 + $0x398] sm:$0xff]   ;;  %v472_v4 = vld [vmem:[%s25360_s6 + $0x3a0] sm:$0xff]  }
  0x27   : > { %293 = vst [vmem:[%s25365_s7 + $0xb0] sm:$0xff] %v292_v22   ;;  %v476_v5 = vld [vmem:[%s25360_s6 + $0x3a8] sm:$0xff]   ;;  %v480_v6 = vld [vmem:[%s25360_s6 + $0x3b0] sm:$0xff]   ;;  %v484_v7 = vld [vmem:[%s25360_s6 + $0x3b8] sm:$0xff]  }
  0x28   : > { %297 = vst [vmem:[%s25365_s7 + $0xb8] sm:$0xff] %v296_v23   ;;  %v488_v8 = vld [vmem:[%s25360_s6 + $0x3c0] sm:$0xff]   ;;  %v492_v9 = vld [vmem:[%s25360_s6 + $0x3c8] sm:$0xff]   ;;  %v496_v10 = vld [vmem:[%s25360_s6 + $0x3d0] sm:$0xf] }
  0x29   : > { %301 = vst [vmem:[%s25365_s7 + $0xc0] sm:$0xf] %v300_v24  ;;  %v498_v11 = vld [vmem:[%s25360_s6 + $0x498] sm:$0xff]   ;;  %v502_v12 = vld [vmem:[%s25360_s6 + $0x4a0] sm:$0xff]   ;;  %v506_v13 = vld [vmem:[%s25360_s6 + $0x4a8] sm:$0xff]  }
  0x2a   : > { %303 = vst [vmem:[%s25365_s7 + $0xc4] sm:$0xff] %v302_v25   ;;  %v510_v14 = vld [vmem:[%s25360_s6 + $0x4b0] sm:$0xff]   ;;  %v514_v15 = vld [vmem:[%s25360_s6 + $0x4b8] sm:$0xff]   ;;  %v518_v16 = vld [vmem:[%s25360_s6 + $0x4c0] sm:$0xff]  }
  0x2b   : > { %307 = vst [vmem:[%s25365_s7 + $0xcc] sm:$0xff] %v306_v26   ;;  %v522_v17 = vld [vmem:[%s25360_s6 + $0x4c8] sm:$0xff]   ;;  %v526_v18 = vld [vmem:[%s25360_s6 + $0x4d0] sm:$0xff]   ;;  %v530_v19 = vld [vmem:[%s25360_s6 + $0x4d8] sm:$0xff]  }
  0x2c   : > { %311 = vst [vmem:[%s25365_s7 + $0xd4] sm:$0xff] %v310_v27   ;;  %v534_v20 = vld [vmem:[%s25360_s6 + $0x4e0] sm:$0xff]   ;;  %v538_v21 = vld [vmem:[%s25360_s6 + $0x4e8] sm:$0xff]   ;;  %v542_v22 = vld [vmem:[%s25360_s6 + $0x4f0] sm:$0xff]  }
  0x2d   : > { %315 = vst [vmem:[%s25365_s7 + $0xdc] sm:$0xff] %v314_v28   ;;  %v546_v23 = vld [vmem:[%s25360_s6 + $0x4f8] sm:$0xff]   ;;  %v550_v24 = vld [vmem:[%s25360_s6 + $0x500] sm:$0xff]   ;;  %v554_v25 = vld [vmem:[%s25360_s6 + $0x508] sm:$0xff]  }
  0x2e   : > { %319 = vst [vmem:[%s25365_s7 + $0xe4] sm:$0xff] %v318_v29   ;;  %v558_v26 = vld [vmem:[%s25360_s6 + $0x510] sm:$0xff]   ;;  %v562_v27 = vld [vmem:[%s25360_s6 + $0x518] sm:$0xff]   ;;  %v566_v28 = vld [vmem:[%s25360_s6 + $0x520] sm:$0xff]  }
  0x2f   : > { %323 = vst [vmem:[%s25365_s7 + $0xec] sm:$0xff] %v322_v30   ;;  %v570_v29 = vld [vmem:[%s25360_s6 + $0x528] sm:$0xff]   ;;  %v574_v30 = vld [vmem:[%s25360_s6 + $0x530] sm:$0xff]  }
  0x30   : > { %327 = vst [vmem:[%s25365_s7 + $0xf4] sm:$0xff] %v326_v31   ;;  %v578_v31 = vld [vmem:[%s25360_s6 + $0x538] sm:$0xff]  }
  0x31   : > { %331 = vst [vmem:[%s25365_s7 + $0xfc] sm:$0xff] %v330_v32   ;;  %v582_v32 = vld [vmem:[%s25360_s6 + $0x540] sm:$0xff]  }
  0x32   : > { %335 = vst [vmem:[%s25365_s7 + $0x104] sm:$0xff] %v334_v33   ;;  %v586_v33 = vld [vmem:[%s25360_s6 + $0x548] sm:$0xff]  }
  0x33   : > { %339 = vst [vmem:[%s25365_s7 + $0x10c] sm:$0xff] %v338_v34   ;;  %v590_v34 = vld [vmem:[%s25360_s6 + $0x550] sm:$0xff]  }
  0x34   : > { %343 = vst [vmem:[%s25365_s7 + $0x114] sm:$0xff] %v342_v35   ;;  %v594_v35 = vld [vmem:[%s25360_s6 + $0x558] sm:$0xf] }
  0x35   : > { %347 = vst [vmem:[%s25365_s7 + $0x11c] sm:$0xff] %v346_v36  }
  0x36   : > { %351 = vst [vmem:[%s25365_s7 + $0x124] sm:$0xff] %v350_v37  }
  0x37   : > { %355 = vst [vmem:[%s25365_s7 + $0x12c] sm:$0xff] %v354_v38  }
  0x38   : > { %359 = vst [vmem:[%s25365_s7 + $0x134] sm:$0xff] %v358_v39  }
  0x39   : > { %363 = vst [vmem:[%s25365_s7 + $0x13c] sm:$0xff] %v362_v40  }
  0x3a   : > { %367 = vst [vmem:[%s25365_s7 + $0x144] sm:$0xff] %v366_v41  }
  0x3b   : > { %371 = vst [vmem:[%s25365_s7 + $0x14c] sm:$0xff] %v370_v42  }
  0x3c   : > { %375 = vst [vmem:[%s25365_s7 + $0x154] sm:$0xff] %v374_v43  }
  0x3d   : > { %379 = vst [vmem:[%s25365_s7 + $0x15c] sm:$0xff] %v378_v44  }
  0x3e   : > { %383 = vst [vmem:[%s25365_s7 + $0x164] sm:$0xff] %v382_v45  }
  0x3f   : > { %387 = vst [vmem:[%s25365_s7 + $0x16c] sm:$0xff] %v386_v46  }
  0x40   : > { %391 = vst [vmem:[%s25365_s7 + $0x174] sm:$0xff] %v390_v47  }
  0x41   : > { %395 = vst [vmem:[%s25365_s7 + $0x17c] sm:$0xff] %v394_v48  }
  0x42   : > { %399 = vst [vmem:[%s25365_s7 + $0x184] sm:$0xf] %v398_v49 }
  0x43   : > { %401 = vst [vmem:[%s25365_s7 + $0x188] sm:$0xff] %v400_v50  }
  0x44   : > { %405 = vst [vmem:[%s25365_s7 + $0x190] sm:$0xff] %v404_v51  }
  0x45   : > { %409 = vst [vmem:[%s25365_s7 + $0x198] sm:$0xff] %v408_v52  }
  0x46   : > { %413 = vst [vmem:[%s25365_s7 + $0x1a0] sm:$0xff] %v412_v53  }
  0x47   : > { %417 = vst [vmem:[%s25365_s7 + $0x1a8] sm:$0xff] %v416_v54  }
  0x48   : > { %421 = vst [vmem:[%s25365_s7 + $0x1b0] sm:$0xff] %v420_v55  }
  0x49   : > { %425 = vst [vmem:[%s25365_s7 + $0x1b8] sm:$0xff] %v424_v56  }
  0x4a   : > { %429 = vst [vmem:[%s25365_s7 + $0x1c0] sm:$0xff] %v428_v57  }
  0x4b   : > { %433 = vst [vmem:[%s25365_s7 + $0x1c8] sm:$0xff] %v432_v58  }
  0x4c   : > { %437 = vst [vmem:[%s25365_s7 + $0x1d0] sm:$0xff] %v436_v59  }
  0x4d   : > { %441 = vst [vmem:[%s25365_s7 + $0x1d8] sm:$0xff] %v440_v60  }
  0x4e   : > { %445 = vst [vmem:[%s25365_s7 + $0x1e0] sm:$0xff] %v444_v61  }
  0x4f   : > { %449 = vst [vmem:[%s25365_s7 + $0x1e8] sm:$0xff] %v448_v62  }
  0x50   : > { %453 = vst [vmem:[%s25365_s7 + $0x1f0] sm:$0xff] %v452_v63  }
  0x51   : > { %457 = vst [vmem:[%s25365_s7 + $0x1f8] sm:$0xff] %v456_v0  }
  0x52   : > { %461 = vst [vmem:[%s25365_s7 + $0x200] sm:$0xff] %v460_v1  }
  0x53   : > { %465 = vst [vmem:[%s25365_s7 + $0x208] sm:$0xff] %v464_v2  }
  0x54   : > { %469 = vst [vmem:[%s25365_s7 + $0x210] sm:$0xff] %v468_v3  }
  0x55   : > { %473 = vst [vmem:[%s25365_s7 + $0x218] sm:$0xff] %v472_v4  }
  0x56   : > { %477 = vst [vmem:[%s25365_s7 + $0x220] sm:$0xff] %v476_v5  }
  0x57   : > { %481 = vst [vmem:[%s25365_s7 + $0x228] sm:$0xff] %v480_v6  }
  0x58   : > { %485 = vst [vmem:[%s25365_s7 + $0x230] sm:$0xff] %v484_v7  }
  0x59   : > { %489 = vst [vmem:[%s25365_s7 + $0x238] sm:$0xff] %v488_v8  }
  0x5a   : > { %493 = vst [vmem:[%s25365_s7 + $0x240] sm:$0xff] %v492_v9  }
  0x5b   : > { %497 = vst [vmem:[%s25365_s7 + $0x248] sm:$0xf] %v496_v10 }
  0x5c   : > { %499 = vst [vmem:[%s25365_s7 + $0x24c] sm:$0xff] %v498_v11  }
  0x5d   : > { %503 = vst [vmem:[%s25365_s7 + $0x254] sm:$0xff] %v502_v12  }
  0x5e   : > { %507 = vst [vmem:[%s25365_s7 + $0x25c] sm:$0xff] %v506_v13  }
  0x5f   : > { %511 = vst [vmem:[%s25365_s7 + $0x264] sm:$0xff] %v510_v14  }
  0x60   : > { %515 = vst [vmem:[%s25365_s7 + $0x26c] sm:$0xff] %v514_v15  }
  0x61   : > { %519 = vst [vmem:[%s25365_s7 + $0x274] sm:$0xff] %v518_v16  }
  0x62   : > { %523 = vst [vmem:[%s25365_s7 + $0x27c] sm:$0xff] %v522_v17  }
  0x63   : > { %527 = vst [vmem:[%s25365_s7 + $0x284] sm:$0xff] %v526_v18  }
  0x64   : > { %531 = vst [vmem:[%s25365_s7 + $0x28c] sm:$0xff] %v530_v19  }
  0x65   : > { %535 = vst [vmem:[%s25365_s7 + $0x294] sm:$0xff] %v534_v20  }
  0x66   : > { %539 = vst [vmem:[%s25365_s7 + $0x29c] sm:$0xff] %v538_v21  }
  0x67   : > { %543 = vst [vmem:[%s25365_s7 + $0x2a4] sm:$0xff] %v542_v22  }
  0x68   : > { %547 = vst [vmem:[%s25365_s7 + $0x2ac] sm:$0xff] %v546_v23  }
  0x69   : > { %551 = vst [vmem:[%s25365_s7 + $0x2b4] sm:$0xff] %v550_v24  }
  0x6a   : > { %555 = vst [vmem:[%s25365_s7 + $0x2bc] sm:$0xff] %v554_v25  }
  0x6b   : > { %559 = vst [vmem:[%s25365_s7 + $0x2c4] sm:$0xff] %v558_v26  }
  0x6c   : > { %563 = vst [vmem:[%s25365_s7 + $0x2cc] sm:$0xff] %v562_v27  }
  0x6d   : > { %567 = vst [vmem:[%s25365_s7 + $0x2d4] sm:$0xff] %v566_v28  }
  0x6e   : > { %571 = vst [vmem:[%s25365_s7 + $0x2dc] sm:$0xff] %v570_v29  }
  0x6f   : > { %575 = vst [vmem:[%s25365_s7 + $0x2e4] sm:$0xff] %v574_v30  }
  0x70   : > { %579 = vst [vmem:[%s25365_s7 + $0x2ec] sm:$0xff] %v578_v31  }
  0x71   : > { %583 = vst [vmem:[%s25365_s7 + $0x2f4] sm:$0xff] %v582_v32  }
  0x72   : > { %587 = vst [vmem:[%s25365_s7 + $0x2fc] sm:$0xff] %v586_v33  }
  0x73   : > { %591 = vst [vmem:[%s25365_s7 + $0x304] sm:$0xff] %v590_v34  }
  0x74   : > { %595 = vst [vmem:[%s25365_s7 + $0x30c] sm:$0xf] %v594_v35 }
  0x75 PF: > { %p16928_p5 = scmp.ge.s32.totalorder %s25291_s20, 1  ;;  %p1010_p6 = scmp.lt.s32.totalorder %s25291_s20, 3 }
  0x77   : > { %p1011_p7 = pnand %p16928_p5, %p1010_p6 }
  0x79   : > { %1014 = sbr.rel (%p1011_p7) target bundleno = 2483 (0x9b3), region = 77 }
  0x7e   : > { %v17045_v36 = vld [vmem:[%s31040_s1 + $0x20] sm:$0xf]  ;;  %v23934_v37 = vld [vmem:[%s31040_s1 + $0x20] sm:$0x30]  ;;  %vm1341_vm0 = vcmask 1044480   ;;  %vm1342_vm1 = vcmask 1045504  }
  0x7f   : > { %v17046_v38 = vor.u32 %v23934_v37, %v17045_v36  ;;  %v25293_v39 = vmov 65535   ;;  %v23933_v43 = vld [vmem:[%s31040_s1 + $0x18] sm:$0xff]  ;;  %v23932_v44 = vld [vmem:[%s31040_s1 + $0x10] sm:$0xff]  ;;  %s1017_s16 = sand.u32 1, %s25283_s18   ;;  %v23931_v45 = vld [vmem:[%s31040_s1 + $0x8] sm:$0xff]  ;;  %vm1265_vm2 = vcmask 613376  }
  0x80   : > { %v1343_v40 = vsel %vm1341_vm0, 4294967295, %v25293_v39  ;;  %s25212_s24 = smul.u32 784, %s1017_s16  ;;  %v23930_v46 = vld [vmem:[%s31040_s1] sm:$0xff]  ;;  %v24054_v59 = vld [vmem:[%s31042_s3 + $0xb8] sm:$0xff]  ;;  %v24053_v11 = vld [vmem:[%s31042_s3 + $0xb0] sm:$0xff]  ;;  %s25294_s23 = smov 64  }
  0x81   : > { %v1344_v41 = vsel %vm1342_vm1, %v1343_v40, 0  ;;  %v24038_v60 = vld [vmem:[%s31042_s3 + $0x38] sm:$0xff]  ;;  %v24037_v16 = vld [vmem:[%s31042_s3 + $0x30] sm:$0xff]  ;;  %v25687_v37 = vld [vmem:[%s31041_s2] ss:$0 sm:$0xff]  ;;  %vm2995_vm4 = vcmask 523264  }
  0x82   : > { %v1346_v42 = vand.u32 %v17046_v38, %v1344_v41  ;;  %s25586_s28 = scalar_lea.vmem [#allocation3], %s25212_s24  ;;  %v24062_v61 = vld [vmem:[%s31042_s3 + $0xf8] sm:$0xff]  ;;  %v24061_v17 = vld [vmem:[%s31042_s3 + $0xf0] sm:$0xff]  ;;  %vm2956_vm3 = vsmask.f32 7424  ;;  %vm3146_vm5 = vcmask 1042432  }
  0x83   : > { %v23935_v47 = vld [vmem:[%s25586_s28] sm:$0xff]  ;;  %v23983_v49 = vld [vmem:[%s25586_s28 + $0x188] sm:$0xff]  ;;  %v23984_v53 = vld [vmem:[%s25586_s28 + $0x190] sm:$0xff]  ;;  %vm3147_vm6 = vcmask 1046532   ;;  %vm3039_vm8 = vcmask 1040384   ;;  %vm3541_vm11 = vcmask 1046528  }
  0x84   : > { %1351 = vmatpush.bf16.msra.mxu0 %v1346_v42  ;;  %1732 = vmatpush.bf16.msra.mxu1 %v1346_v42  ;;  %v23959_v48 = vld [vmem:[%s25586_s28 + $0xc4] sm:$0xff]  ;;  %v24007_v50 = vld [vmem:[%s25586_s28 + $0x24c] sm:$0xff]  ;;  %v24008_v54 = vld [vmem:[%s25586_s28 + $0x254] sm:$0xff]  ;;  %vm3040_vm9 = vsmask.f32 256  ;;  %vm3287_vm13 = vcmask 1041408  }
  0x85   : > { %2162 = vmatpush.bf16.msra.mxu2 %v1346_v42  ;;  %2592 = vmatpush.bf16.msra.mxu3 %v1346_v42  ;;  %v23936_v51 = vld [vmem:[%s25586_s28 + $0x8] sm:$0xff]  ;;  %v23937_v55 = vld [vmem:[%s25586_s28 + $0x10] sm:$0xff]  ;;  %v23985_v57 = vld [vmem:[%s25586_s28 + $0x198] sm:$0xff]  ;;  %vm3611_vm12 = vsmask.f32 4352  ;;  %vm3288_vm14 = vcmask 1045508  }
  0x86   : > { %v23960_v52 = vld [vmem:[%s25586_s28 + $0xcc] sm:$0xff]  ;;  %v23961_v56 = vld [vmem:[%s25586_s28 + $0xd4] sm:$0xff]  ;;  %v24009_v58 = vld [vmem:[%s25586_s28 + $0x25c] sm:$0xff]  ;;  %vm3795_vm1 = vsmask.f32 3328  ;;  %s16929_s8 = sshll.u32 %s16923_s21, 1 }
  0x87   : > { %v24046_v62 = vld [vmem:[%s31042_s3 + $0x78] sm:$0xff]  ;;  %v23986_v1 = vld [vmem:[%s25586_s28 + $0x1a0] sm:$0xff]  ;;  %v23988_v9 = vld [vmem:[%s25586_s28 + $0x1b0] sm:$0xff]  ;;  %p1047_p8 = scmp.lt.s32.totalorder %s16929_s8, 3 }
  0x88   : > { %1352 = vmatpush.bf16.msra.mxu0 %v23933_v43  ;;  %1733 = vmatpush.bf16.msra.mxu1 %v23933_v43  ;;  %v23938_v63 = vld [vmem:[%s25586_s28 + $0x18] sm:$0xff]  ;;  %v24010_v2 = vld [vmem:[%s25586_s28 + $0x264] sm:$0xff]  ;;  %v24011_v6 = vld [vmem:[%s25586_s28 + $0x26c] sm:$0xff] }
  0x89   : > { %2163 = vmatpush.bf16.msra.mxu2 %v23933_v43  ;;  %2593 = vmatpush.bf16.msra.mxu3 %v23933_v43  ;;  %v23962_v0 = vld [vmem:[%s25586_s28 + $0xdc] sm:$0xff]  ;;  %v23963_v4 = vld [vmem:[%s25586_s28 + $0xe4] sm:$0xff]  ;;  %v23964_v8 = vld [vmem:[%s25586_s28 + $0xec] sm:$0xff]  ;;  %s31478_s8 = smov (!%p1047_p8, %s16929_s8), 3 }
  0x8a   : > { %v23939_v3 = vld [vmem:[%s25586_s28 + $0x20] sm:$0xff]  ;;  %v23987_v5 = vld [vmem:[%s25586_s28 + $0x1a8] sm:$0xff]  ;;  %v24012_v10 = vld [vmem:[%s25586_s28 + $0x274] sm:$0xff]  ;;  %s25213_s10 = smul.u32 40, %s31478_s8 }
  0x8b   : > { %v23940_v7 = vld [vmem:[%s25586_s28 + $0x28] sm:$0xff]  ;;  %v23941_v12 = vld [vmem:[%s25586_s28 + $0x30] sm:$0xff]  ;;  %v23989_v14 = vld [vmem:[%s25586_s28 + $0x1b8] sm:$0xff] }
  0x8c   : > { %1353 = vmatpush.bf16.msra.mxu0 %v23932_v44  ;;  %1734 = vmatpush.bf16.msra.mxu1 %v23932_v44  ;;  %v23965_v13 = vld [vmem:[%s25586_s28 + $0xf4] sm:$0xff]  ;;  %v24013_v15 = vld [vmem:[%s25586_s28 + $0x27c] sm:$0xff]  ;;  %v24014_v22 = vld [vmem:[%s25586_s28 + $0x284] sm:$0xff]  ;;  %s29091_s13 = scalar_lea.vmem %s31044_s5, %s25213_s10 }
  0x8d   : > { %2164 = vmatpush.bf16.msra.mxu2 %v23932_v44  ;;  %2594 = vmatpush.bf16.msra.mxu3 %v23932_v44  ;;  %v24045_v18 = vld [vmem:[%s31042_s3 + $0x70] sm:$0xff]  ;;  %v23942_v19 = vld [vmem:[%s25586_s28 + $0x38] sm:$0xff]  ;;  %v23991_v27 = vld [vmem:[%s25586_s28 + $0x1c8] sm:$0xff] }
  0x8e   : > { %v23966_v20 = vld [vmem:[%s25586_s28 + $0xfc] sm:$0xff]  ;;  %v23967_v24 = vld [vmem:[%s25586_s28 + $0x104] sm:$0xff]  ;;  %v24015_v28 = vld [vmem:[%s25586_s28 + $0x28c] sm:$0xff] }
  0x8f   : > { %v23990_v21 = vld [vmem:[%s25586_s28 + $0x1c0] sm:$0xff]  ;;  %v23944_v41 = vld [vmem:[%s25586_s28 + $0x48] sm:$0xff]  ;;  %vm26051_vm7 = vmor %vm3146_vm5, %vm3147_vm6  ;;  %vm10167_vm6 = vcmask 522240  }
  0x90   : > { %1354 = vmatpush.bf16.msra.mxu0 %v23931_v45  ;;  %1735 = vmatpush.bf16.msra.mxu1 %v23931_v45  ;;  %v23943_v23 = vld [vmem:[%s25586_s28 + $0x40] sm:$0xff]  ;;  %v23968_v42 = vld [vmem:[%s25586_s28 + $0x10c] sm:$0xff]  ;;  %vm26158_vm10 = vmand %vm3039_vm8, %vm3040_vm9 }
  0x91   : > { %2165 = vmatpush.bf16.msra.mxu2 %v23931_v45  ;;  %2595 = vmatpush.bf16.msra.mxu3 %v23931_v45  ;;  %vm26465_vm15 = vmor %vm3287_vm13, %vm3288_vm14 }
  0x94   : > { %1355 = vmatpush.bf16.msra.mxu0 %v23930_v46  ;;  %1736 = vmatpush.bf16.msra.mxu1 %v23930_v46 }
  0x95   : > { %2166 = vmatpush.bf16.msra.mxu2 %v23930_v46  ;;  %2596 = vmatpush.bf16.msra.mxu3 %v23930_v46  ;;  %v23992_v46 = vld [vmem:[%s25586_s28 + $0x1d0] sm:$0xff] }
  0x97   : > { %17047 = vmatmul.msk.bf16.vlgmr.msra.gmra.mxu0 %vm1265_vm2, %v23935_v47  ;;  %17217 = vmatmul.msk.bf16.vlgmr.msra.gmra.mxu1 %vm1265_vm2, %v23959_v48  ;;  %v24016_v47 = vld [vmem:[%s25586_s28 + $0x294] sm:$0xff] }
  0x98   : > { %17387 = vmatmul.msk.bf16.vlgmr.msra.gmra.mxu2 %vm1265_vm2, %v23983_v49  ;;  %17557 = vmatmul.msk.bf16.vlgmr.msra.gmra.mxu3 %vm1265_vm2, %v24007_v50 }
  0x99   : > { %5064 = vmatpush.bf16.msrb.mxu2 %v24054_v59  ;;  %5018 = vmatpush.bf16.msrb.mxu0 %v24038_v60 }
  0x9a   : > { %5087 = vmatpush.bf16.msrb.mxu3 %v24062_v61  ;;  %5041 = vmatpush.bf16.msrb.mxu1 %v24046_v62 }
  0x9d   : > { %5065 = vmatpush.bf16.msrb.mxu2 %v24053_v11  ;;  %5019 = vmatpush.bf16.msrb.mxu0 %v24037_v16 }
  0x9e   : > { %5088 = vmatpush.bf16.msrb.mxu3 %v24061_v17  ;;  %5042 = vmatpush.bf16.msrb.mxu1 %v24045_v18 }
  0xa7   : > { %17048 = vmatmul.msk.bf16.gmra.mxu0 %vm1265_vm2, %v23936_v51  ;;  %17218 = vmatmul.msk.bf16.gmra.mxu1 %vm1265_vm2, %v23960_v52 }
  0xa8   : > { %17388 = vmatmul.msk.bf16.gmra.mxu2 %vm1265_vm2, %v23984_v53  ;;  %17558 = vmatmul.msk.bf16.gmra.mxu3 %vm1265_vm2, %v24008_v54 }
  0xb7   : > { %17049 = vmatmul.msk.bf16.gmra.mxu0 %vm1265_vm2, %v23937_v55  ;;  %17219 = vmatmul.msk.bf16.gmra.mxu1 %vm1265_vm2, %v23961_v56 }
  0xb8   : > { %17389 = vmatmul.msk.bf16.gmra.mxu2 %vm1265_vm2, %v23985_v57  ;;  %17559 = vmatmul.msk.bf16.gmra.mxu3 %vm1265_vm2, %v24009_v58 }
  0xc7   : > { %17050 = vmatmul.msk.bf16.gmra.mxu0 %vm1265_vm2, %v23938_v63  ;;  %17220 = vmatmul.msk.bf16.gmra.mxu1 %vm1265_vm2, %v23962_v0  ;;  %v24052_v0 = vld [vmem:[%s31042_s3 + $0xa8] sm:$0xff] }
  0xc8   : > { %17390 = vmatmul.msk.bf16.gmra.mxu2 %vm1265_vm2, %v23986_v1  ;;  %17560 = vmatmul.msk.bf16.gmra.mxu3 %vm1265_vm2, %v24010_v2  ;;  %v24036_v1 = vld [vmem:[%s31042_s3 + $0x28] sm:$0xff] }
  0xc9   : > { %v24060_v2 = vld [vmem:[%s31042_s3 + $0xe8] sm:$0xff]  ;;  %5066 = vmatpush.bf16.msrb.mxu2 %v24052_v0  ;;  %5020 = vmatpush.bf16.msrb.mxu0 %v24036_v1 }
  0xca   : > { %5089 = vmatpush.bf16.msrb.mxu3 %v24060_v2  ;;  %v23995_v2 = vld [vmem:[%s25586_s28 + $0x1e8] sm:$0xff] }
  0xd7   : > { %17051 = vmatmul.msk.bf16.gmra.mxu0 %vm1265_vm2, %v23939_v3  ;;  %17221 = vmatmul.msk.bf16.gmra.mxu1 %vm1265_vm2, %v23963_v4  ;;  %v24044_v3 = vld [vmem:[%s31042_s3 + $0x68] sm:$0xff] }
  0xd8   : > { %17391 = vmatmul.msk.bf16.gmra.mxu2 %vm1265_vm2, %v23987_v5  ;;  %17561 = vmatmul.msk.bf16.gmra.mxu3 %vm1265_vm2, %v24011_v6 }
  0xd9   : > { %5043 = vmatpush.bf16.msrb.mxu1 %v24044_v3  ;;  %v24019_v3 = vld [vmem:[%s25586_s28 + $0x2ac] sm:$0xff] }
  0xe7   : > { %17052 = vmatmul.msk.bf16.gmra.mxu0 %vm1265_vm2, %v23940_v7  ;;  %17222 = vmatmul.msk.bf16.gmra.mxu1 %vm1265_vm2, %v23964_v8  ;;  %v23945_v8 = vld [vmem:[%s25586_s28 + $0x50] sm:$0xff] }
  0xe8   : > { %17392 = vmatmul.msk.bf16.gmra.mxu2 %vm1265_vm2, %v23988_v9  ;;  %17562 = vmatmul.msk.bf16.gmra.mxu3 %vm1265_vm2, %v24012_v10  ;;  %v23969_v9 = vld [vmem:[%s25586_s28 + $0x114] sm:$0xff] }
  0xf7   : > { %17053 = vmatmul.msk.bf16.gmra.mxu0 %vm1265_vm2, %v23941_v12  ;;  %17223 = vmatmul.msk.bf16.gmra.mxu1 %vm1265_vm2, %v23965_v13  ;;  %v23993_v13 = vld [vmem:[%s25586_s28 + $0x1d8] sm:$0xff] }
  0xf8   : > { %17393 = vmatmul.msk.bf16.gmra.mxu2 %vm1265_vm2, %v23989_v14  ;;  %17563 = vmatmul.msk.bf16.gmra.mxu3 %vm1265_vm2, %v24013_v15  ;;  %v24017_v14 = vld [vmem:[%s25586_s28 + $0x29c] sm:$0xff] }
 0x107   : > { %17054 = vmatmul.msk.bf16.gmra.mxu0 %vm1265_vm2, %v23942_v19  ;;  %17224 = vmatmul.msk.bf16.gmra.mxu1 %vm1265_vm2, %v23966_v20 }
 0x108   : > { %17394 = vmatmul.msk.bf16.gmra.mxu2 %vm1265_vm2, %v23990_v21  ;;  %17564 = vmatmul.msk.bf16.gmra.mxu3 %vm1265_vm2, %v24014_v22 }
 0x114   : > { %v1357_v25 = vpop.f32.mrf.mxu0  ;;  %v1738_v26 = vpop.f32.mrf.mxu1 }
 0x115   : > { %v1862_v29 = vmax.f32 %v1357_v25, %v1738_v26 }
 0x117   : > { %17055 = vmatmul.msk.bf16.gmra.mxu0 %vm1265_vm2, %v23943_v23  ;;  %17225 = vmatmul.msk.bf16.gmra.mxu1 %vm1265_vm2, %v23967_v24 }
 0x118   : > { %17395 = vmatmul.msk.bf16.gmra.mxu2 %vm1265_vm2, %v23991_v27  ;;  %17565 = vmatmul.msk.bf16.gmra.mxu3 %vm1265_vm2, %v24015_v28 }
 0x11b   : > { %v2168_v30 = vpop.f32.mrf.mxu2  ;;  %v2598_v31 = vpop.f32.mrf.mxu3 }
 0x11c   : > { %v2292_v32 = vmax.f32 %v1862_v29, %v2168_v30  ;;  %v1359_v33 = vpop.f32.mrf.mxu0  ;;  %v1740_v34 = vpop.f32.mrf.mxu1 }
 0x11d   : > { %v1863_v35 = vmax.f32 %v1359_v33, %v1740_v34 }
 0x11e   : > { %v2722_v36 = vmax.f32 %v2292_v32, %v2598_v31 }
 0x120   : > { %v2775_v38 = vadd.f32 %v25687_v37, %v2722_v36  ;;  %v23970_v36 = vld [vmem:[%s25586_s28 + $0x11c] sm:$0xff] }
 0x122   : > { %v2824_v49 = vmax.f32 %v2775_v38, 0.0 }
 0x123   : > { %v2170_v39 = vpop.f32.mrf.mxu2  ;;  %v2600_v40 = vpop.f32.mrf.mxu3 }
 0x124   : > { %v2293_v43 = vmax.f32 %v1863_v35, %v2170_v39  ;;  %v1362_v44 = vpop.f32.mrf.mxu0  ;;  %v1743_v45 = vpop.f32.mrf.mxu1  ;;  %v2873_v52 = vpack.c.bf16 %v2824_v49, %v2824_v49  ;;  %v23946_v35 = vld [vmem:[%s25586_s28 + $0x58] sm:$0xff] }
 0x125   : > { %v1864_v48 = vmax.f32 %v1362_v44, %v1743_v45 }
 0x126   : > { %v2723_v50 = vmax.f32 %v2293_v43, %v2600_v40  ;;  %v2929_v61 = vunpack.c.l.b16 %v2873_v52 }
 0x127   : > { %17056 = vmatmul.msk.bf16.gmra.mxu0 %vm1265_vm2, %v23944_v41  ;;  %17226 = vmatmul.msk.bf16.gmra.mxu1 %vm1265_vm2, %v23968_v42  ;;  %v23994_v41 = vld [vmem:[%s25586_s28 + $0x1e0] sm:$0xff] }
 0x128   : > { %v2776_v51 = vadd.f32 %v25687_v37, %v2723_v50  ;;  %17396 = vmatmul.msk.bf16.gmra.mxu2 %vm1265_vm2, %v23992_v46  ;;  %17566 = vmatmul.msk.bf16.gmra.mxu3 %vm1265_vm2, %v24016_v47  ;;  %v24018_v42 = vld [vmem:[%s25586_s28 + $0x2a4] sm:$0xff] }
 0x12a   : > { %v2825_v53 = vmax.f32 %v2776_v51, 0.0 }
 0x12b   : > { %v2173_v54 = vpop.f32.mrf.mxu2  ;;  %v2603_v55 = vpop.f32.mrf.mxu3 }
 0x12c   : > { %v2874_v56 = vpack.c.bf16 %v2825_v53, %v2825_v53  ;;  %v2294_v57 = vmax.f32 %v1864_v48, %v2173_v54  ;;  %v1364_v58 = vpop.f32.mrf.mxu0  ;;  %v1745_v59 = vpop.f32.mrf.mxu1 }
 0x12d   : > { %v1865_v60 = vmax.f32 %v1364_v58, %v1745_v59 }
 0x12e   : > { %v2930_v62 = vunpack.c.l.b16 %v2874_v56  ;;  %v2724_v63 = vmax.f32 %v2294_v57, %v2603_v55 }
 0x130   : > { %v25711_v4 = vpack.c.b16 %v2930_v62, %v2929_v61  ;;  %v2777_v5 = vadd.f32 %v25687_v37, %v2724_v63  ;;  %v23947_v61 = vld [vmem:[%s25586_s28 + $0x60] sm:$0xff] }
 0x131   : > { %v23971_v62 = vld [vmem:[%s25586_s28 + $0x124] sm:$0xff] }
 0x132   : > { %v2826_v16 = vmax.f32 %v2777_v5, 0.0 }
 0x133   : > { %v2175_v6 = vpop.f32.mrf.mxu2  ;;  %v2605_v7 = vpop.f32.mrf.mxu3 }
 0x134   : > { %v2295_v10 = vmax.f32 %v1865_v60, %v2175_v6  ;;  %v1367_v11 = vpop.f32.mrf.mxu0  ;;  %v1748_v12 = vpop.f32.mrf.mxu1  ;;  %v2875_v19 = vpack.c.bf16 %v2826_v16, %v2826_v16 }
 0x135   : > { %v1866_v15 = vmax.f32 %v1367_v11, %v1748_v12 }
 0x136   : > { %v2725_v17 = vmax.f32 %v2295_v10, %v2605_v7  ;;  %v2931_v28 = vunpack.c.l.b16 %v2875_v19  ;;  %v24051_v19 = vld [vmem:[%s31042_s3 + $0xa0] sm:$0xff] }
 0x137   : > { %17057 = vmatmul.msk.bf16.gmra.mxu0 %vm1265_vm2, %v23945_v8  ;;  %17227 = vmatmul.msk.bf16.gmra.mxu1 %vm1265_vm2, %v23969_v9 }
 0x138   : > { %v2778_v18 = vadd.f32 %v25687_v37, %v2725_v17  ;;  %17397 = vmatmul.msk.bf16.gmra.mxu2 %vm1265_vm2, %v23993_v13  ;;  %17567 = vmatmul.msk.bf16.gmra.mxu3 %vm1265_vm2, %v24017_v14 }
 0x139   : > { %5067 = vmatpush.bf16.msrb.mxu2 %v24051_v19 }
 0x13a   : > { %v2827_v20 = vmax.f32 %v2778_v18, 0.0 }
 0x13b   : > { %v2178_v21 = vpop.f32.mrf.mxu2  ;;  %v2608_v22 = vpop.f32.mrf.mxu3 }
 0x13c   : > { %v2876_v23 = vpack.c.bf16 %v2827_v20, %v2827_v20  ;;  %v2296_v24 = vmax.f32 %v1866_v15, %v2178_v21  ;;  %v1369_v25 = vpop.f32.mrf.mxu0  ;;  %v1750_v26 = vpop.f32.mrf.mxu1  ;;  %v24035_v20 = vld [vmem:[%s31042_s3 + $0x20] sm:$0xff] }
 0x13d   : > { %v1867_v27 = vmax.f32 %v1369_v25, %v1750_v26  ;;  %v24059_v21 = vld [vmem:[%s31042_s3 + $0xe0] sm:$0xff]  ;;  %5021 = vmatpush.bf16.msrb.mxu0 %v24035_v20 }
 0x13e   : > { %v2932_v29 = vunpack.c.l.b16 %v2876_v23  ;;  %v2726_v30 = vmax.f32 %v2296_v24, %v2608_v22  ;;  %5090 = vmatpush.bf16.msrb.mxu3 %v24059_v21 }
 0x140   : > { %v25723_v31 = vpack.c.b16 %v2932_v29, %v2931_v28  ;;  %v2779_v32 = vadd.f32 %v25687_v37, %v2726_v30  ;;  %v23972_v28 = vld [vmem:[%s25586_s28 + $0x12c] sm:$0xff] }
 0x142   : > { %v2828_v43 = vmax.f32 %v2779_v32, 0.0 }
 0x143   : > { %v2180_v33 = vpop.f32.mrf.mxu2  ;;  %v2610_v34 = vpop.f32.mrf.mxu3 }
 0x144   : > { %v2297_v38 = vmax.f32 %v1867_v27, %v2180_v33  ;;  %v1372_v39 = vpop.f32.mrf.mxu0  ;;  %v1753_v40 = vpop.f32.mrf.mxu1  ;;  %v2877_v46 = vpack.c.bf16 %v2828_v43, %v2828_v43  ;;  %v23948_v27 = vld [vmem:[%s25586_s28 + $0x68] sm:$0xff]  ;;  %v24043_v43 = vld [vmem:[%s31042_s3 + $0x60] sm:$0xff] }
 0x145   : > { %v1868_v55 = vmax.f32 %v1372_v39, %v1753_v40  ;;  %5044 = vmatpush.bf16.msrb.mxu1 %v24043_v43 }
 0x146   : > { %v2727_v44 = vmax.f32 %v2297_v38, %v2610_v34  ;;  %v2933_v53 = vunpack.c.l.b16 %v2877_v46  ;;  %v23996_v34 = vld [vmem:[%s25586_s28 + $0x1f0] sm:$0xff] }
 0x147   : > { %17058 = vmatmul.msk.bf16.gmra.mxu0 %vm1265_vm2, %v23946_v35  ;;  %17228 = vmatmul.msk.bf16.gmra.mxu1 %vm1265_vm2, %v23970_v36  ;;  %v24020_v35 = vld [vmem:[%s25586_s28 + $0x2b4] sm:$0xff] }
 0x148   : > { %v2780_v45 = vadd.f32 %v25687_v37, %v2727_v44  ;;  %17398 = vmatmul.msk.bf16.gmra.mxu2 %vm1265_vm2, %v23994_v41  ;;  %17568 = vmatmul.msk.bf16.gmra.mxu3 %vm1265_vm2, %v24018_v42 }
 0x14a   : > { %v2829_v47 = vmax.f32 %v2780_v45, 0.0 }
 0x14b   : > { %v2183_v48 = vpop.f32.mrf.mxu2  ;;  %v2613_v49 = vpop.f32.mrf.mxu3 }
 0x14c   : > { %v2878_v50 = vpack.c.bf16 %v2829_v47, %v2829_v47  ;;  %v1374_v51 = vpop.f32.mrf.mxu0  ;;  %v1755_v52 = vpop.f32.mrf.mxu1  ;;  %v2298_v57 = vmax.f32 %v1868_v55, %v2183_v48 }
 0x14d   : > { %v1869_v58 = vmax.f32 %v1374_v51, %v1755_v52 }
 0x14e   : > { %v2934_v54 = vunpack.c.l.b16 %v2878_v50  ;;  %v2728_v5 = vmax.f32 %v2298_v57, %v2613_v49 }
 0x150   : > { %v25735_v56 = vpack.c.b16 %v2934_v54, %v2933_v53  ;;  %v2781_v9 = vadd.f32 %v25687_v37, %v2728_v5 }
 0x152   : > { %v2830_v16 = vmax.f32 %v2781_v9, 0.0  ;;  %v24021_v9 = vld [vmem:[%s25586_s28 + $0x2bc] sm:$0xff] }
 0x153   : > { %v2185_v59 = vpop.f32.mrf.mxu2  ;;  %v2615_v60 = vpop.f32.mrf.mxu3 }
 0x154   : > { %v2299_v63 = vmax.f32 %v1869_v58, %v2185_v59  ;;  %v1377_v0 = vpop.f32.mrf.mxu0  ;;  %v1758_v1 = vpop.f32.mrf.mxu1  ;;  %v2879_v22 = vpack.c.bf16 %v2830_v16, %v2830_v16 }
 0x155   : > { %v1870_v8 = vmax.f32 %v1377_v0, %v1758_v1  ;;  %v23949_v1 = vld [vmem:[%s25586_s28 + $0x70] sm:$0xff] }
 0x156   : > { %v2729_v6 = vmax.f32 %v2299_v63, %v2615_v60  ;;  %v25761_v36 = vunpack.c.l.b16 %v2879_v22 }
 0x157   : > { %17059 = vmatmul.msk.bf16.gmra.mxu0 %vm1265_vm2, %v23947_v61  ;;  %17229 = vmatmul.msk.bf16.gmra.mxu1 %vm1265_vm2, %v23971_v62 }
 0x158   : > { %v2782_v7 = vadd.f32 %v25687_v37, %v2729_v6  ;;  %17399 = vmatmul.msk.bf16.gmra.mxu2 %vm1265_vm2, %v23995_v2  ;;  %17569 = vmatmul.msk.bf16.gmra.mxu3 %vm1265_vm2, %v24019_v3 }
 0x15a   : > { %v2831_v12 = vmax.f32 %v2782_v7, 0.0 }
 0x15b   : > { %v2188_v10 = vpop.f32.mrf.mxu2  ;;  %v2618_v11 = vpop.f32.mrf.mxu3 }
 0x15c   : > { %v2300_v13 = vmax.f32 %v1870_v8, %v2188_v10  ;;  %v1379_v14 = vpop.f32.mrf.mxu0  ;;  %v1760_v15 = vpop.f32.mrf.mxu1  ;;  %v2880_v18 = vpack.c.bf16 %v2831_v12, %v2831_v12  ;;  %v23997_v8 = vld [vmem:[%s25586_s28 + $0x1f8] sm:$0xff] }
 0x15d   : > { %v1871_v24 = vmax.f32 %v1379_v14, %v1760_v15 }
 0x15e   : > { %v2730_v17 = vmax.f32 %v2300_v13, %v2618_v11  ;;  %v2946_v29 = vunpack.c.l.b16 %v2880_v18  ;;  %v23973_v11 = vld [vmem:[%s25586_s28 + $0x134] sm:$0xff] }
 0x160   : > { %v2783_v23 = vadd.f32 %v25687_v37, %v2730_v17  ;;  %v2952_v40 = vpack.c.b16 %v2946_v29, %v25761_v36 }
 0x162   : > { %v2832_v38 = vmax.f32 %v2783_v23, 0.0  ;;  %v2960_v52 = vshll.u32 %v2952_v40, 16  ;;  %v2958_v61 = vshrl.u32 %v2952_v40, 16 }
 0x163   : > { %v2190_v25 = vpop.f32.mrf.mxu2  ;;  %v2620_v26 = vpop.f32.mrf.mxu3 }
 0x164   : > { %v2301_v30 = vmax.f32 %v1871_v24, %v2190_v25  ;;  %v1382_v32 = vpop.f32.mrf.mxu0  ;;  %v1763_v33 = vpop.f32.mrf.mxu1  ;;  %v2881_v44 = vpack.c.bf16 %v2832_v38, %v2832_v38  ;;  %v2962_v58 = vrot.slane %v2960_v52, 1 }
 0x165   : > { %v1872_v42 = vmax.f32 %v1382_v32, %v1763_v33 }
 0x166   : > { %v2731_v39 = vmax.f32 %v2301_v30, %v2620_v26  ;;  %v2947_v53 = vunpack.c.l.b16 %v2881_v44  ;;  %v2963_v6 = vor.u32 %v2962_v58, %v2958_v61  ;;  %v23998_v44 = vld [vmem:[%s25586_s28 + $0x200] sm:$0xff] }
 0x167   : > { %17060 = vmatmul.msk.bf16.gmra.mxu0 %vm1265_vm2, %v23948_v27  ;;  %17230 = vmatmul.msk.bf16.gmra.mxu1 %vm1265_vm2, %v23972_v28 }
 0x168   : > { %v2784_v41 = vadd.f32 %v25687_v37, %v2731_v39  ;;  %17400 = vmatmul.msk.bf16.gmra.mxu2 %vm1265_vm2, %v23996_v34  ;;  %17570 = vmatmul.msk.bf16.gmra.mxu3 %vm1265_vm2, %v24020_v35  ;;  %v23950_v39 = vld [vmem:[%s25586_s28 + $0x78] sm:$0xff] }
 0x16a   : > { %v2833_v45 = vmax.f32 %v2784_v41, 0.0 }
 0x16b   : > { %v2193_v46 = vpop.f32.mrf.mxu2  ;;  %v2623_v47 = vpop.f32.mrf.mxu3 }
 0x16c   : > { %v2882_v48 = vpack.c.bf16 %v2833_v45, %v2833_v45  ;;  %v2302_v49 = vmax.f32 %v1872_v42, %v2193_v46  ;;  %v1384_v50 = vpop.f32.mrf.mxu0  ;;  %v1765_v51 = vpop.f32.mrf.mxu1  ;;  %v24022_v45 = vld [vmem:[%s25586_s28 + $0x2c4] sm:$0xff] }
 0x16d   : > { %v1873_v60 = vmax.f32 %v1384_v50, %v1765_v51 }
 0x16e   : > { %v2948_v54 = vunpack.c.l.b16 %v2882_v48  ;;  %v2732_v55 = vmax.f32 %v2302_v49, %v2623_v47  ;;  %v23974_v48 = vld [vmem:[%s25586_s28 + $0x13c] sm:$0xff] }
 0x170   : > { %v2953_v57 = vpack.c.b16 %v2948_v54, %v2947_v53  ;;  %v2785_v59 = vadd.f32 %v25687_v37, %v2732_v55 }
 0x172   : > { %v2965_v62 = vshll.u32 %v2953_v57, 16  ;;  %v2969_v10 = vshrl.u32 %v2953_v57, 16  ;;  %v2834_v12 = vmax.f32 %v2785_v59, 0.0 }
 0x173   : > { %v2195_v63 = vpop.f32.mrf.mxu2  ;;  %v2625_v0 = vpop.f32.mrf.mxu3 }
 0x174   : > { %v2303_v2 = vmax.f32 %v1873_v60, %v2195_v63  ;;  %v1387_v3 = vpop.f32.mrf.mxu0  ;;  %v1768_v5 = vpop.f32.mrf.mxu1  ;;  %v2967_v7 = vrot.slane %v2965_v62, 1  ;;  %v2883_v18 = vpack.c.bf16 %v2834_v12, %v2834_v12  ;;  %v23951_v12 = vld [vmem:[%s25586_s28 + $0x80] sm:$0xff] }
 0x175   : > { %v1874_v17 = vmax.f32 %v1387_v3, %v1768_v5 }
 0x176   : > { %v2733_v13 = vmax.f32 %v2303_v2, %v2625_v0  ;;  %v2968_v14 = vsel %vm2956_vm3, %v2963_v6, %v2967_v7  ;;  %v2971_v15 = vor.u32 %v2969_v10, %v2967_v7  ;;  %v2949_v27 = vunpack.c.l.b16 %v2883_v18  ;;  %v24050_v7 = vld [vmem:[%s31042_s3 + $0x98] sm:$0xff] }
 0x177   : > { %2987 = vrot.lane.b32.xlu0 %v2968_v14, %s25294_s23  ;;  %17061 = vmatmul.msk.bf16.gmra.mxu0 %vm1265_vm2, %v23949_v1 }
 0x178   : > { %v2786_v16 = vadd.f32 %v25687_v37, %v2733_v13  ;;  %17401 = vmatmul.msk.bf16.gmra.mxu2 %vm1265_vm2, %v23997_v8  ;;  %17571 = vmatmul.msk.bf16.gmra.mxu3 %vm1265_vm2, %v24021_v9 }
 0x179   : > { %17231 = vmatmul.msk.bf16.gmra.mxu1 %vm1265_vm2, %v23973_v11  ;;  %5068 = vmatpush.bf16.msrb.mxu2 %v24050_v7 }
 0x17a   : > { %v2835_v19 = vmax.f32 %v2786_v16, 0.0  ;;  %v23999_v16 = vld [vmem:[%s25586_s28 + $0x208] sm:$0xff] }
 0x17b   : > { %v2198_v20 = vpop.f32.mrf.mxu2  ;;  %v2628_v21 = vpop.f32.mrf.mxu3 }
 0x17c   : > { %v2884_v22 = vpack.c.bf16 %v2835_v19, %v2835_v19  ;;  %v2304_v23 = vmax.f32 %v1874_v17, %v2198_v20  ;;  %v1389_v24 = vpop.f32.mrf.mxu0  ;;  %v1770_v25 = vpop.f32.mrf.mxu1  ;;  %v24023_v17 = vld [vmem:[%s25586_s28 + $0x2cc] sm:$0xff]  ;;  %v23975_v19 = vld [vmem:[%s25586_s28 + $0x144] sm:$0xff] }
 0x17d   : > { %v1875_v26 = vmax.f32 %v1389_v24, %v1770_v25  ;;  %v24058_v24 = vld [vmem:[%s31042_s3 + $0xd8] sm:$0xff] }
 0x17e   : > { %v2950_v28 = vunpack.c.l.b16 %v2884_v22  ;;  %v2734_v29 = vmax.f32 %v2304_v23, %v2628_v21  ;;  %v24034_v23 = vld [vmem:[%s31042_s3 + $0x18] sm:$0xff]  ;;  %5091 = vmatpush.bf16.msrb.mxu3 %v24058_v24 }
 0x17f   : > { %v24042_v25 = vld [vmem:[%s31042_s3 + $0x58] sm:$0xff]  ;;  %5022 = vmatpush.bf16.msrb.mxu0 %v24034_v23 }
 0x180   : > { %v2954_v30 = vpack.c.b16 %v2950_v28, %v2949_v27  ;;  %v2787_v32 = vadd.f32 %v25687_v37, %v2734_v29  ;;  %5045 = vmatpush.bf16.msrb.mxu1 %v24042_v25 }
 0x182   : > { %v2836_v33 = vmax.f32 %v2787_v32, 0.0  ;;  %v2973_v34 = vshll.u32 %v2954_v30, 16  ;;  %v2977_v55 = vshrl.u32 %v2954_v30, 16 }
 0x183   : > { %v2200_v35 = vpop.f32.mrf.mxu2  ;;  %v2630_v38 = vpop.f32.mrf.mxu3 }
 0x184   : > { %v2885_v40 = vpack.c.bf16 %v2836_v33, %v2836_v33  ;;  %v2305_v41 = vmax.f32 %v1875_v26, %v2200_v35  ;;  %v1392_v42 = vpop.f32.mrf.mxu0  ;;  %v1773_v43 = vpop.f32.mrf.mxu1  ;;  %v2975_v46 = vrot.slane %v2973_v34, 1 }
 0x185   : > { %v1876_v47 = vmax.f32 %v1392_v42, %v1773_v43 }
 0x186   : > { %v2951_v49 = vunpack.c.l.b16 %v2885_v40  ;;  %v2735_v50 = vmax.f32 %v2305_v41, %v2630_v38  ;;  %v25790_v51 = vsel %vm2956_vm3, %v2971_v15, %v2975_v46  ;;  %v2979_v0 = vor.u32 %v2977_v55, %v2975_v46 }
 0x187   : > { %17062 = vmatmul.msk.bf16.gmra.mxu0 %vm1265_vm2, %v23950_v39 }
 0x188   : > { %v25793_v52 = vpack.c.b16 %v2951_v49, %v2951_v49  ;;  %v2788_v53 = vadd.f32 %v25687_v37, %v2735_v50  ;;  %17402 = vmatmul.msk.bf16.gmra.mxu2 %vm1265_vm2, %v23998_v44  ;;  %17572 = vmatmul.msk.bf16.gmra.mxu3 %vm1265_vm2, %v24022_v45  ;;  %v23952_v45 = vld [vmem:[%s25586_s28 + $0x88] sm:$0xff]  ;;  %v24024_v50 = vld [vmem:[%s25586_s28 + $0x2d4] sm:$0xff] }
 0x189   : > { %17232 = vmatmul.msk.bf16.gmra.mxu1 %vm1265_vm2, %v23974_v48 }
 0x18a   : > { %v2837_v54 = vmax.f32 %v2788_v53, 0.0  ;;  %v2981_v57 = vshll.u32 %v25793_v52, 16  ;;  %v23976_v53 = vld [vmem:[%s25586_s28 + $0x14c] sm:$0xff] }
 0x18b   : > { %v2203_v58 = vpop.f32.mrf.mxu2  ;;  %v2633_v59 = vpop.f32.mrf.mxu3 }
 0x18c   : > { %v2886_v60 = vpack.c.bf16 %v2837_v54, %v2837_v54  ;;  %v2306_v61 = vmax.f32 %v1876_v47, %v2203_v58  ;;  %v1394_v62 = vpop.f32.mrf.mxu0  ;;  %v1775_v63 = vpop.f32.mrf.mxu1  ;;  %v2983_v1 = vrot.slane %v2981_v57, 1 }
 0x18d   : > { %v1877_v2 = vmax.f32 %v1394_v62, %v1775_v63 }
 0x18e   : > { %v3051_v3 = vunpack.c.l.b16 %v2886_v60  ;;  %v2736_v5 = vmax.f32 %v2306_v61, %v2633_v59  ;;  %v2984_v6 = vsel %vm2956_vm3, %v2979_v0, %v2983_v1 }
 0x18f   : > { %2991 = vrot.lane.b32.xlu2 %v2984_v6, %s25294_s23 }
 0x190   : > { %v25805_v8 = vpack.c.b16 %v3051_v3, %v2951_v49  ;;  %v2789_v9 = vadd.f32 %v25687_v37, %v2736_v5  ;;  %v24000_v49 = vld [vmem:[%s25586_s28 + $0x210] sm:$0xff] }
 0x192   : > { %v2838_v20 = vmax.f32 %v2789_v9, 0.0 }
 0x193   : > { %v2205_v10 = vpop.f32.mrf.mxu2  ;;  %v2635_v11 = vpop.f32.mrf.mxu3 }
 0x194   : > { %v2307_v13 = vmax.f32 %v1877_v2, %v2205_v10  ;;  %v1397_v14 = vpop.f32.mrf.mxu0  ;;  %v1778_v15 = vpop.f32.mrf.mxu1  ;;  %v2887_v26 = vpack.c.bf16 %v2838_v20, %v2838_v20 }
 0x195   : > { %v1878_v18 = vmax.f32 %v1397_v14, %v1778_v15  ;;  %v24001_v15 = vld [vmem:[%s25586_s28 + $0x218] sm:$0xff] }
 0x196   : > { %v2737_v21 = vmax.f32 %v2307_v13, %v2635_v11  ;;  %v3052_v38 = vunpack.c.l.b16 %v2887_v26  ;;  %v23953_v11 = vld [vmem:[%s25586_s28 + $0x90] sm:$0xff] }
 0x197   : > { %17063 = vmatmul.msk.bf16.gmra.mxu0 %vm1265_vm2, %v23951_v12 }
 0x198   : > { %v2790_v22 = vadd.f32 %v25687_v37, %v2737_v21  ;;  %17403 = vmatmul.msk.bf16.gmra.mxu2 %vm1265_vm2, %v23999_v16  ;;  %17573 = vmatmul.msk.bf16.gmra.mxu3 %vm1265_vm2, %v24023_v17  ;;  %v24025_v16 = vld [vmem:[%s25586_s28 + $0x2dc] sm:$0xff]  ;;  %v23977_v17 = vld [vmem:[%s25586_s28 + $0x154] sm:$0xff] }
 0x199   : > { %17233 = vmatmul.msk.bf16.gmra.mxu1 %vm1265_vm2, %v23975_v19 }
 0x19a   : > { %v2839_v27 = vmax.f32 %v2790_v22, 0.0 }
 0x19b   : > { %v2208_v28 = vpop.f32.mrf.mxu2  ;;  %v2638_v29 = vpop.f32.mrf.mxu3 }
 0x19c   : > { %v2888_v30 = vpack.c.bf16 %v2839_v27, %v2839_v27  ;;  %v2308_v32 = vmax.f32 %v1878_v18, %v2208_v28  ;;  %v1399_v33 = vpop.f32.mrf.mxu0  ;;  %v1780_v34 = vpop.f32.mrf.mxu1 }
 0x19d   : > { %v1879_v35 = vmax.f32 %v1399_v33, %v1780_v34  ;;  %v24049_v33 = vld [vmem:[%s31042_s3 + $0x90] sm:$0xff] }
 0x19e   : > { %v3053_v39 = vunpack.c.l.b16 %v2888_v30  ;;  %v2738_v40 = vmax.f32 %v2308_v32, %v2638_v29  ;;  %5069 = vmatpush.bf16.msrb.mxu2 %v24049_v33 }
 0x1a0   : > { %v25826_v41 = vpack.c.b16 %v3053_v39, %v3052_v38  ;;  %v2791_v42 = vadd.f32 %v25687_v37, %v2738_v40 }
 0x1a2   : > { %v2840_v54 = vmax.f32 %v2791_v42, 0.0  ;;  %v23954_v42 = vld [vmem:[%s25586_s28 + $0x98] sm:$0xff] }
 0x1a3   : > { %v2210_v43 = vpop.f32.mrf.mxu2  ;;  %v2640_v44 = vpop.f32.mrf.mxu3 }
 0x1a4   : > { %v2309_v46 = vmax.f32 %v1879_v35, %v2210_v43  ;;  %v1402_v47 = vpop.f32.mrf.mxu0  ;;  %v1783_v48 = vpop.f32.mrf.mxu1  ;;  %v2889_v58 = vpack.c.bf16 %v2840_v54, %v2840_v54 }
 0x1a5   : > { %v1880_v3 = vmax.f32 %v1402_v47, %v1783_v48  ;;  %v24002_v47 = vld [vmem:[%s25586_s28 + $0x220] sm:$0xff] }
 0x1a6   : > { %v2739_v55 = vmax.f32 %v2309_v46, %v2640_v44  ;;  %v3054_v1 = vunpack.c.l.b16 %v2889_v58  ;;  %v24026_v48 = vld [vmem:[%s25586_s28 + $0x2e4] sm:$0xff] }
 0x1a7   : > { %17064 = vmatmul.msk.bf16.gmra.mxu0 %vm1265_vm2, %v23952_v45 }
 0x1a8   : > { %v2792_v57 = vadd.f32 %v25687_v37, %v2739_v55  ;;  %17404 = vmatmul.msk.bf16.gmra.mxu2 %vm1265_vm2, %v24000_v49  ;;  %17574 = vmatmul.msk.bf16.gmra.mxu3 %vm1265_vm2, %v24024_v50  ;;  %v23978_v49 = vld [vmem:[%s25586_s28 + $0x15c] sm:$0xff] }
 0x1a9   : > { %17234 = vmatmul.msk.bf16.gmra.mxu1 %vm1265_vm2, %v23976_v53 }
 0x1aa   : > { %v2841_v59 = vmax.f32 %v2792_v57, 0.0 }
 0x1ab   : > { %v2213_v60 = vpop.f32.mrf.mxu2  ;;  %v2643_v61 = vpop.f32.mrf.mxu3 }
 0x1ac   : > { %v2890_v62 = vpack.c.bf16 %v2841_v59, %v2841_v59  ;;  %v1404_v63 = vpop.f32.mrf.mxu0  ;;  %v1785_v0 = vpop.f32.mrf.mxu1  ;;  %v2310_v6 = vmax.f32 %v1880_v3, %v2213_v60  ;;  %v24033_v59 = vld [vmem:[%s31042_s3 + $0x10] sm:$0xff] }
 0x1ad   : > { %v1881_v7 = vmax.f32 %v1404_v63, %v1785_v0  ;;  %v24057_v60 = vld [vmem:[%s31042_s3 + $0xd0] sm:$0xff]  ;;  %5023 = vmatpush.bf16.msrb.mxu0 %v24033_v59 }
 0x1ae   : > { %v3055_v2 = vunpack.c.l.b16 %v2890_v62  ;;  %v2740_v18 = vmax.f32 %v2310_v6, %v2643_v61  ;;  %v24041_v61 = vld [vmem:[%s31042_s3 + $0x50] sm:$0xff]  ;;  %5092 = vmatpush.bf16.msrb.mxu3 %v24057_v60 }
 0x1af   : > { %5046 = vmatpush.bf16.msrb.mxu1 %v24041_v61 }
 0x1b0   : > { %v25838_v5 = vpack.c.b16 %v3055_v2, %v3054_v1  ;;  %v2793_v22 = vadd.f32 %v25687_v37, %v2740_v18 }
 0x1b2   : > { %v2842_v29 = vmax.f32 %v2793_v22, 0.0 }
 0x1b3   : > { %v2215_v9 = vpop.f32.mrf.mxu2  ;;  %v2645_v10 = vpop.f32.mrf.mxu3 }
 0x1b4   : > { %v2311_v12 = vmax.f32 %v1881_v7, %v2215_v9  ;;  %v1407_v13 = vpop.f32.mrf.mxu0  ;;  %v1788_v14 = vpop.f32.mrf.mxu1  ;;  %v2891_v34 = vpack.c.bf16 %v2842_v29, %v2842_v29  ;;  %v23979_v29 = vld [vmem:[%s25586_s28 + $0x164] sm:$0xff] }
 0x1b5   : > { %v1882_v21 = vmax.f32 %v1407_v13, %v1788_v14 }
 0x1b6   : > { %v2741_v19 = vmax.f32 %v2311_v12, %v2645_v10  ;;  %v25858_v50 = vunpack.c.l.b16 %v2891_v34 }
 0x1b7   : > { %17065 = vmatmul.msk.bf16.gmra.mxu0 %vm1265_vm2, %v23953_v11 }
 0x1b8   : > { %v2794_v20 = vadd.f32 %v25687_v37, %v2741_v19  ;;  %17405 = vmatmul.msk.bf16.gmra.mxu2 %vm1265_vm2, %v24001_v15  ;;  %17575 = vmatmul.msk.bf16.gmra.mxu3 %vm1265_vm2, %v24025_v16 }
 0x1b9   : > { %17235 = vmatmul.msk.bf16.gmra.mxu1 %vm1265_vm2, %v23977_v17 }
 0x1ba   : > { %v2843_v25 = vmax.f32 %v2794_v20, 0.0 }
 0x1bb   : > { %v2218_v23 = vpop.f32.mrf.mxu2  ;;  %v2648_v24 = vpop.f32.mrf.mxu3 }
 0x1bc   : > { %v2312_v26 = vmax.f32 %v1882_v21, %v2218_v23  ;;  %v1409_v27 = vpop.f32.mrf.mxu0  ;;  %v1790_v28 = vpop.f32.mrf.mxu1  ;;  %v2892_v32 = vpack.c.bf16 %v2843_v25, %v2843_v25  ;;  %v23955_v21 = vld [vmem:[%s25586_s28 + $0xa0] sm:$0xff] }
 0x1bd   : > { %v1883_v38 = vmax.f32 %v1409_v27, %v1790_v28  ;;  %v24027_v28 = vld [vmem:[%s25586_s28 + $0x2ec] sm:$0xff] }
 0x1be   : > { %v2742_v30 = vmax.f32 %v2312_v26, %v2648_v24  ;;  %v3067_v43 = vunpack.c.l.b16 %v2892_v32  ;;  %v24003_v26 = vld [vmem:[%s25586_s28 + $0x228] sm:$0xff] }
 0x1c0   : > { %v2795_v35 = vadd.f32 %v25687_v37, %v2742_v30  ;;  %v3073_v55 = vpack.c.b16 %v3067_v43, %v25858_v50 }
 0x1c2   : > { %v2844_v53 = vmax.f32 %v2795_v35, 0.0  ;;  %v3080_v9 = vshll.u32 %v3073_v55, 16  ;;  %v3078_v17 = vshrl.u32 %v3073_v55, 16 }
 0x1c3   : > { %v2220_v39 = vpop.f32.mrf.mxu2  ;;  %v2650_v40 = vpop.f32.mrf.mxu3 }
 0x1c4   : > { %v2313_v44 = vmax.f32 %v1883_v38, %v2220_v39  ;;  %v1412_v45 = vpop.f32.mrf.mxu0  ;;  %v1793_v46 = vpop.f32.mrf.mxu1  ;;  %v2893_v62 = vpack.c.bf16 %v2844_v53, %v2844_v53  ;;  %v3082_v14 = vrot.slane %v3080_v9, 1  ;;  %v24028_v9 = vld [vmem:[%s25586_s28 + $0x2f4] sm:$0xff] }
 0x1c5   : > { %v1884_v58 = vmax.f32 %v1412_v45, %v1793_v46 }
 0x1c6   : > { %v2743_v54 = vmax.f32 %v2313_v44, %v2650_v40  ;;  %v3068_v10 = vunpack.c.l.b16 %v2893_v62  ;;  %v3083_v24 = vor.u32 %v3082_v14, %v3078_v17  ;;  %v23956_v62 = vld [vmem:[%s25586_s28 + $0xa8] sm:$0xff] }
 0x1c7   : > { %17066 = vmatmul.msk.bf16.gmra.mxu0 %vm1265_vm2, %v23954_v42 }
 0x1c8   : > { %v2796_v57 = vadd.f32 %v25687_v37, %v2743_v54  ;;  %17406 = vmatmul.msk.bf16.gmra.mxu2 %vm1265_vm2, %v24002_v47  ;;  %17576 = vmatmul.msk.bf16.gmra.mxu3 %vm1265_vm2, %v24026_v48 }
 0x1c9   : > { %17236 = vmatmul.msk.bf16.gmra.mxu1 %vm1265_vm2, %v23978_v49 }
 0x1ca   : > { %v2845_v63 = vmax.f32 %v2796_v57, 0.0 }
 0x1cb   : > { %v2223_v0 = vpop.f32.mrf.mxu2  ;;  %v2653_v1 = vpop.f32.mrf.mxu3 }
 0x1cc   : > { %v2894_v2 = vpack.c.bf16 %v2845_v63, %v2845_v63  ;;  %v2314_v3 = vmax.f32 %v1884_v58, %v2223_v0  ;;  %v1414_v6 = vpop.f32.mrf.mxu0  ;;  %v1795_v7 = vpop.f32.mrf.mxu1 }
 0x1cd   : > { %v1885_v16 = vmax.f32 %v1414_v6, %v1795_v7  ;;  %v24004_v6 = vld [vmem:[%s25586_s28 + $0x230] sm:$0xff] }
 0x1ce   : > { %v3069_v11 = vunpack.c.l.b16 %v2894_v2  ;;  %v2744_v12 = vmax.f32 %v2314_v3, %v2653_v1 }
 0x1d0   : > { %v3074_v13 = vpack.c.b16 %v3069_v11, %v3068_v10  ;;  %v2797_v15 = vadd.f32 %v25687_v37, %v2744_v12  ;;  %v23980_v11 = vld [vmem:[%s25586_s28 + $0x16c] sm:$0xff] }
 0x1d2   : > { %v3085_v18 = vshll.u32 %v3074_v13, 16  ;;  %v2846_v30 = vmax.f32 %v2797_v15, 0.0  ;;  %v3089_v58 = vshrl.u32 %v3074_v13, 16 }
 0x1d3   : > { %v2225_v19 = vpop.f32.mrf.mxu2  ;;  %v2655_v20 = vpop.f32.mrf.mxu3 }
 0x1d4   : > { %v2315_v22 = vmax.f32 %v1885_v16, %v2225_v19  ;;  %v1417_v23 = vpop.f32.mrf.mxu0  ;;  %v3087_v25 = vrot.slane %v3085_v18, 1  ;;  %v1798_v27 = vpop.f32.mrf.mxu1  ;;  %v2895_v38 = vpack.c.bf16 %v2846_v30, %v2846_v30 }
 0x1d5   : > { %v1886_v35 = vmax.f32 %v1417_v23, %v1798_v27 }
 0x1d6   : > { %v2745_v32 = vmax.f32 %v2315_v22, %v2655_v20  ;;  %v3088_v33 = vsel %vm2956_vm3, %v3083_v24, %v3087_v25  ;;  %v3070_v48 = vunpack.c.l.b16 %v2895_v38  ;;  %v3091_v2 = vor.u32 %v3089_v58, %v3087_v25  ;;  %v23981_v58 = vld [vmem:[%s25586_s28 + $0x174] sm:$0xff] }
 0x1d7   : > { %3108 = vrot.lane.b32.xlu0 %v3088_v33, %s25294_s23  ;;  %17067 = vmatmul.msk.bf16.gmra.mxu0 %vm1265_vm2, %v23955_v21 }
 0x1d8   : > { %v2798_v34 = vadd.f32 %v25687_v37, %v2745_v32  ;;  %17407 = vmatmul.msk.bf16.gmra.mxu2 %vm1265_vm2, %v24003_v26  ;;  %17577 = vmatmul.msk.bf16.gmra.mxu3 %vm1265_vm2, %v24027_v28 }
 0x1d9   : > { %17237 = vmatmul.msk.bf16.gmra.mxu1 %vm1265_vm2, %v23979_v29 }
 0x1da   : > { %v2847_v39 = vmax.f32 %v2798_v34, 0.0 }
 0x1db   : > { %v2228_v40 = vpop.f32.mrf.mxu2  ;;  %v2658_v42 = vpop.f32.mrf.mxu3 }
 0x1dc   : > { %v2896_v43 = vpack.c.bf16 %v2847_v39, %v2847_v39  ;;  %v2316_v44 = vmax.f32 %v1886_v35, %v2228_v40  ;;  %v1419_v45 = vpop.f32.mrf.mxu0  ;;  %v1800_v46 = vpop.f32.mrf.mxu1 }
 0x1dd   : > { %v1887_v47 = vmax.f32 %v1419_v45, %v1800_v46 }
 0x1de   : > { %v3071_v49 = vunpack.c.l.b16 %v2896_v43  ;;  %v2746_v53 = vmax.f32 %v2316_v44, %v2658_v42 }
 0x1e0   : > { %v3075_v54 = vpack.c.b16 %v3071_v49, %v3070_v48  ;;  %v2799_v55 = vadd.f32 %v25687_v37, %v2746_v53  ;;  %v23957_v49 = vld [vmem:[%s25586_s28 + $0xb0] sm:$0xff] }
 0x1e2   : > { %v2848_v57 = vmax.f32 %v2799_v55, 0.0  ;;  %v3093_v59 = vshll.u32 %v3075_v54, 16  ;;  %v3097_v13 = vshrl.u32 %v3075_v54, 16  ;;  %v24005_v54 = vld [vmem:[%s25586_s28 + $0x238] sm:$0xff] }
 0x1e3   : > { %v2230_v60 = vpop.f32.mrf.mxu2  ;;  %v2660_v61 = vpop.f32.mrf.mxu3  ;;  %v24029_v55 = vld [vmem:[%s25586_s28 + $0x2fc] sm:$0xff] }
 0x1e4   : > { %v2897_v63 = vpack.c.bf16 %v2848_v57, %v2848_v57  ;;  %v2317_v0 = vmax.f32 %v1887_v47, %v2230_v60  ;;  %v1422_v1 = vpop.f32.mrf.mxu0  ;;  %v3095_v3 = vrot.slane %v3093_v59, 1  ;;  %v1803_v7 = vpop.f32.mrf.mxu1  ;;  %v2985_v57 = vshrl.u32 %v25793_v52, 16  ;;  %v24048_v60 = vld [vmem:[%s31042_s3 + $0x88] sm:$0xff] }
 0x1e5   : > { %v1888_v10 = vmax.f32 %v1422_v1, %v1803_v7  ;;  %v24056_v52 = vld [vmem:[%s31042_s3 + $0xc8] sm:$0xff]  ;;  %5070 = vmatpush.bf16.msrb.mxu2 %v24048_v60 }
 0x1e6   : > { %v3072_v12 = vunpack.c.l.b16 %v2897_v63  ;;  %v2747_v14 = vmax.f32 %v2317_v0, %v2660_v61  ;;  %v3096_v15 = vsel %vm2956_vm3, %v3091_v2, %v3095_v3  ;;  %v3099_v20 = vor.u32 %v3097_v13, %v3095_v3  ;;  %v24032_v61 = vld [vmem:[%s31042_s3 + $0x8] sm:$0xff]  ;;  %5093 = vmatpush.bf16.msrb.mxu3 %v24056_v52 }
 0x1e7   : > { %3110 = vrot.lane.b32.xlu1 %v3096_v15, %s25294_s23  ;;  %17068 = vmatmul.msk.bf16.gmra.mxu0 %vm1265_vm2, %v23956_v62  ;;  %v24040_v62 = vld [vmem:[%s31042_s3 + $0x48] sm:$0xff] }
 0x1e8   : > { %v3076_v16 = vpack.c.b16 %v3072_v12, %v3072_v12  ;;  %v2800_v17 = vadd.f32 %v25687_v37, %v2747_v14  ;;  %17408 = vmatmul.msk.bf16.gmra.mxu2 %vm1265_vm2, %v24004_v6  ;;  %17578 = vmatmul.msk.bf16.gmra.mxu3 %vm1265_vm2, %v24028_v9  ;;  %v24030_v14 = vld [vmem:[%s25586_s28 + $0x304] sm:$0xff]  ;;  %v23982_v15 = vld [vmem:[%s25586_s28 + $0x17c] sm:$0xff] }
 0x1e9   : > { %v2988_v18 = vpop.permute.xlu0 %2987  ;;  %v2992_v19 = vpop.permute.xlu2 %2991  ;;  %17238 = vmatmul.msk.bf16.gmra.mxu1 %vm1265_vm2, %v23980_v11  ;;  %5024 = vmatpush.bf16.msrb.mxu0 %v24032_v61 }
 0x1ea   : > { %v2849_v21 = vmax.f32 %v2800_v17, 0.0  ;;  %v2998_v22 = vsel %vm2995_vm4, %v25711_v4, %v2988_v18  ;;  %v3004_v23 = vsel %vm2995_vm4, %v25735_v56, %v2992_v19  ;;  %v3101_v24 = vshll.u32 %v3076_v16, 16  ;;  %5047 = vmatpush.bf16.msrb.mxu1 %v24040_v62 }
 0x1eb   : > { %v3012_v25 = vunpack.c.l.b16 %v2998_v22  ;;  %v3013_v26 = vunpack.c.h.b16 %v2998_v22  ;;  %v3016_v37 = vunpack.c.l.b16 %v3004_v23  ;;  %v3017_v27 = vunpack.c.h.b16 %v3004_v23  ;;  %v2233_v28 = vpop.f32.mrf.mxu2  ;;  %v25903_v29 = vpop.f32.mrf.mxu3  ;;  %v17290_v22 = vld [vmem:[%s25586_s28 + $0x248] sm:$0xf]  ;;  %v17460_v23 = vld [vmem:[%s25586_s28 + $0x30c] sm:$0xf] }
 0x1ec   : > { %v2898_v30 = vpack.c.bf16 %v2849_v21, %v2849_v21  ;;  %v25905_v32 = vmax.f32 %v1888_v10, %v2233_v28  ;;  %v25907_v33 = vpop.f32.mrf.mxu0  ;;  %v3103_v34 = vrot.slane %v3101_v24, 1  ;;  %v3105_v35 = vshrl.u32 %v3076_v16, 16  ;;  %v25909_v38 = vpop.f32.mrf.mxu1  ;;  %v23958_v10 = vld [vmem:[%s25586_s28 + $0xb8] sm:$0xff]  ;;  %v24031_v16 = vld [vmem:[%s31042_s3] sm:$0xff] }
 0x1ed   : > { %v3019_v4 = vpack.c.b16 %v3012_v25, %v3012_v25  ;;  %v3020_v39 = vpack.c.b16 %v3013_v26, %v3013_v26  ;;  %v3023_v56 = vpack.c.b16 %v3016_v37, %v3016_v37  ;;  %v3024_v40 = vpack.c.b16 %v3017_v27, %v3017_v27  ;;  %5025 = vmatpush.bf16.msrb.mxu0 %v24031_v16  ;;  %v1112_v21 = vld [vmem:[%s25586_s28 + $0xc0] sm:$0xf]  ;;  %v17120_v37 = vld [vmem:[%s25586_s28 + $0x184] sm:$0xf] }
 0x1ee   : > { %v3192_v42 = vunpack.c.l.b16 %v2898_v30  ;;  %v2748_v43 = vmax.f32 %v25905_v32, %v25903_v29  ;;  %v3104_v44 = vsel %vm2956_vm3, %v3099_v20, %v3103_v34  ;;  %v3107_v45 = vor.u32 %v3105_v35, %v3103_v34 }
 0x1ef   : > { %3033 = vst [vmem:[#allocation2] sm:$0xf] %v3019_v4  ;;  %2989 = vrot.lane.b32.xlu1 %v25790_v51, %s25294_s23  ;;  %3112 = vrot.lane.b32.xlu2 %v3104_v44, %s25294_s23  ;;  %v1889_v24 = vmax.f32 %v25907_v33, %v25909_v38  ;;  %v1210_v27 = vunpack.c.l.b16 %v1112_v21  ;;  %v2058_v30 = vunpack.c.l.b16 %v17290_v22  ;;  %v2488_v34 = vunpack.c.l.b16 %v17460_v23  ;;  %v25979_v38 = vld [vmem:[%s31041_s2] ss:$0 sm:$0xff] }
 0x1f0   : > { %3034 = vst [vmem:[#allocation2 + $0x4] sm:$0xf] %v3020_v39  ;;  %3114 = vrot.lane.b32.xlu0 %v3107_v45, %s25294_s23  ;;  %v25918_v46 = vpack.c.b16 %v3192_v42, %v3072_v12  ;;  %v24006_v12 = vld [vmem:[%s25586_s28 + $0x240] sm:$0xff]  ;;  %v1628_v35 = vunpack.c.l.b16 %v17120_v37 }
 0x1f1   : > { %3037 = vst [vmem:[#allocation2 + $0x10] sm:$0xf] %v3023_v56  ;;  %v1235_v42 = vpack.c.b16 %v1210_v27, %v1210_v27 }
 0x1f2   : > { %3038 = vst [vmem:[#allocation2 + $0x14] sm:$0xf] %v3024_v40 }
 0x1f3   : > { %v2235_v47 = vpop.f32.mrf.mxu2  ;;  %v25920_v48 = vpop.f32.mrf.mxu3 }
 0x1f4   : > { %v1427_v53 = vpop.f32.mrf.mxu0  ;;  %v2319_v4 = vmax.f32 %v1889_v24, %v2235_v47 }
 0x1f6   : > { %v1808_v51 = vpop.f32.mrf.mxu1  ;;  %v2749_v33 = vmax.f32 %v2319_v4, %v25920_v48  ;;  %v2801_v48 = vadd.f32 %v25979_v38, %v2748_v43 }
 0x1f7   : > { %2993 = vrot.lane.b32.xlu1 %v2985_v57, %s25294_s23  ;;  %17069 = vmatmul.msk.bf16.gmra.mxu0 %vm1265_vm2, %v23957_v49  ;;  %v1890_v59 = vmax.f32 %v1427_v53, %v1808_v51  ;;  %v2083_v49 = vpack.c.b16 %v2058_v30, %v2058_v30  ;;  %v2513_v53 = vpack.c.b16 %v2488_v34, %v2488_v34 }
 0x1f8   : > { %17409 = vmatmul.msk.bf16.gmra.mxu2 %vm1265_vm2, %v24005_v54  ;;  %17579 = vmatmul.msk.bf16.gmra.mxu3 %vm1265_vm2, %v24029_v55  ;;  %v1653_v54 = vpack.c.b16 %v1628_v35, %v1628_v35 }
 0x1f9   : > { %17239 = vmatmul.msk.bf16.gmra.mxu1 %vm1265_vm2, %v23981_v58 }
 0x1fb   : > { %v2238_v63 = vpop.f32.mrf.mxu2  ;;  %v25944_v0 = vpop.f32.mrf.mxu3 }
 0x1fc   : > { %v25946_v1 = vmax.f32 %v1890_v59, %v2238_v63  ;;  %v25948_v2 = vpop.f32.mrf.mxu0  ;;  %v2802_v59 = vadd.f32 %v25979_v38, %v2749_v33 }
 0x1fe   : > { %v25952_v6 = vpop.f32.mrf.mxu1 }
 0x203   : > { %v25954_v7 = vpop.f32.mrf.mxu2  ;;  %v25956_v9 = vpop.f32.mrf.mxu3 }
 0x204   : > { %v1432_v11 = vpop.f32.mrf.mxu0 }
 0x206   : > { %v1813_v13 = vpop.f32.mrf.mxu1 }
 0x207   : > { %17070 = vmatmul.msk.bf16.gmra.mxu0 %vm1265_vm2, %v23958_v10  ;;  %v1892_v17 = vmax.f32 %v1432_v11, %v1813_v13  ;;  %v2850_v11 = vmax.f32 %v2801_v48, 0.0 }
 0x208   : > { %17410 = vmatmul.msk.bf16.gmra.mxu2 %vm1265_vm2, %v24006_v12  ;;  %17580 = vmatmul.msk.bf16.gmra.mxu3 %vm1265_vm2, %v24030_v14  ;;  %v2851_v12 = vmax.f32 %v2802_v59, 0.0 }
 0x209   : > { %17240 = vmatmul.msk.bf16.gmra.mxu1 %vm1265_vm2, %v23982_v15  ;;  %v2899_v43 = vpack.c.bf16 %v2850_v11, %v2850_v11 }
 0x20b   : > { %v2243_v18 = vpop.f32.mrf.mxu2  ;;  %v2673_v19 = vpop.f32.mrf.mxu3 }
 0x20c   : > { %v1434_v20 = vpop.f32.mrf.mxu0  ;;  %v2322_v25 = vmax.f32 %v1892_v17, %v2243_v18  ;;  %v2900_v17 = vpack.c.bf16 %v2851_v12, %v2851_v12 }
 0x20e   : > { %v1815_v26 = vpop.f32.mrf.mxu1  ;;  %v2752_v39 = vmax.f32 %v2322_v25, %v2673_v19  ;;  %v3193_v25 = vunpack.c.l.b16 %v2899_v43 }
 0x20f   : > { %v1893_v28 = vmax.f32 %v1434_v20, %v1815_v26  ;;  %v3194_v26 = vunpack.c.l.b16 %v2900_v17 }
 0x210   : > { %v2805_v55 = vadd.f32 %v25979_v38, %v2752_v39  ;;  %v24047_v39 = vld [vmem:[%s31042_s3 + $0x80] sm:$0xff] }
 0x211   : > { %5071 = vmatpush.bf16.msrb.mxu2 %v24047_v39 }
 0x212   : > { %v2854_v60 = vmax.f32 %v2805_v55, 0.0 }
 0x213   : > { %v2245_v56 = vpop.f32.mrf.mxu2  ;;  %v2675_v40 = vpop.f32.mrf.mxu3 }
 0x214   : > { %v2323_v44 = vmax.f32 %v1893_v28, %v2245_v56  ;;  %v1437_v45 = vpop.f32.mrf.mxu0  ;;  %v2903_v14 = vpack.c.bf16 %v2854_v60, %v2854_v60  ;;  %v25996_v28 = vld [vmem:[#allocation2] sm:$0xff]  }
 0x215   : > { %v24055_v56 = vld [vmem:[%s31042_s3 + $0xc0] sm:$0xff] }
 0x216   : > { %v2753_v57 = vmax.f32 %v2323_v44, %v2675_v40  ;;  %v1818_v47 = vpop.f32.mrf.mxu1  ;;  %v25993_v18 = vunpack.c.l.b16 %v2903_v14  ;;  %v24039_v40 = vld [vmem:[%s31042_s3 + $0x40] sm:$0xff]  ;;  %5094 = vmatpush.bf16.msrb.mxu3 %v24055_v56 }
 0x217   : > { %17071 = vmatmul.msk.bf16.gmra.mxu0 %vm1265_vm2, %v1235_v42  ;;  %v1894_v51 = vmax.f32 %v1437_v45, %v1818_v47  ;;  %v26009_v45 = vpack.c.b16 %v3194_v26, %v3193_v25  ;;  %5048 = vmatpush.bf16.msrb.mxu1 %v24039_v40 }
 0x218   : > { %v2806_v58 = vadd.f32 %v25979_v38, %v2753_v57  ;;  %17411 = vmatmul.msk.bf16.gmra.mxu2 %vm1265_vm2, %v2083_v49  ;;  %17581 = vmatmul.msk.bf16.gmra.mxu3 %vm1265_vm2, %v2513_v53  ;;  %31209 = vst [vmem:[#allocation4_spill] sm:$0xff] %v25993_v18 }
 0x219   : > { %17241 = vmatmul.msk.bf16.gmra.mxu1 %vm1265_vm2, %v1653_v54  ;;  %vm3428_vm2 = vcmask 1044484  }
 0x21a   : > { %v2855_v61 = vmax.f32 %v2806_v58, 0.0  ;;  %vm26979_vm5 = vmor %vm3039_vm8, %vm3428_vm2 }
 0x21b   : > { %v2248_v52 = vpop.f32.mrf.mxu2  ;;  %v2678_v62 = vpop.f32.mrf.mxu3 }
 0x21c   : > { %v2324_v63 = vmax.f32 %v1894_v51, %v2248_v52  ;;  %v1439_v10 = vpop.f32.mrf.mxu0  ;;  %v2904_v15 = vpack.c.bf16 %v2855_v61, %v2855_v61 }
 0x21e   : > { %v2754_v13 = vmax.f32 %v2324_v63, %v2678_v62  ;;  %v1820_v16 = vpop.f32.mrf.mxu1  ;;  %v3208_v19 = vunpack.c.l.b16 %v2904_v15 }
 0x21f   : > { %v1895_v32 = vmax.f32 %v1439_v10, %v1820_v16 }
 0x220   : > { %v2807_v29 = vadd.f32 %v25979_v38, %v2754_v13  ;;  %v3214_v37 = vpack.c.b16 %v3208_v19, %v25993_v18 }
 0x222   : > { %v2856_v22 = vmax.f32 %v2807_v29, 0.0  ;;  %v3221_v44 = vshll.u32 %v3214_v37, 16  ;;  %v3219_v48 = vshrl.u32 %v3214_v37, 16 }
 0x223   : > { %v2250_v20 = vpop.f32.mrf.mxu2  ;;  %v2680_v21 = vpop.f32.mrf.mxu3 }
 0x224   : > { %v2325_v23 = vmax.f32 %v1895_v32, %v2250_v20  ;;  %v1442_v24 = vpop.f32.mrf.mxu0  ;;  %v2905_v34 = vpack.c.bf16 %v2856_v22, %v2856_v22  ;;  %v3223_v59 = vrot.slane %v3221_v44, 1 }
 0x226   : > { %v2755_v27 = vmax.f32 %v2325_v23, %v2680_v21  ;;  %v1823_v30 = vpop.f32.mrf.mxu1  ;;  %v3209_v54 = vunpack.c.l.b16 %v2905_v34  ;;  %v3224_v62 = vor.u32 %v3223_v59, %v3219_v48 }
 0x227   : > { %5026 = vmatmul.bf16.vlgmr.msrb.gmra.mxu0 %v25996_v28  ;;  %v1896_v4 = vmax.f32 %v1442_v24, %v1823_v30 }
 0x228   : > { %v2808_v35 = vadd.f32 %v25979_v38, %v2755_v27 }
 0x22a   : > { %v2857_v42 = vmax.f32 %v2808_v35, 0.0 }
 0x22b   : > { %v2253_v49 = vpop.f32.mrf.mxu2  ;;  %v2683_v53 = vpop.f32.mrf.mxu3 }
 0x22c   : > { %v2906_v33 = vpack.c.bf16 %v2857_v42, %v2857_v42  ;;  %v2326_v55 = vmax.f32 %v1896_v4, %v2253_v49  ;;  %v1444_v57 = vpop.f32.mrf.mxu0 }
 0x22e   : > { %v3210_v47 = vunpack.c.l.b16 %v2906_v33  ;;  %v2756_v58 = vmax.f32 %v2326_v55, %v2683_v53  ;;  %v1825_v51 = vpop.f32.mrf.mxu1 }
 0x22f   : > { %v1897_v52 = vmax.f32 %v1444_v57, %v1825_v51 }
 0x230   : > { %v3215_v60 = vpack.c.b16 %v3210_v47, %v3209_v54  ;;  %v2809_v61 = vadd.f32 %v25979_v38, %v2756_v58 }
 0x232   : > { %v3226_v63 = vshll.u32 %v3215_v60, 16  ;;  %v2858_v12 = vmax.f32 %v2809_v61, 0.0  ;;  %v3230_v34 = vshrl.u32 %v3215_v60, 16 }
 0x233   : > { %v2255_v10 = vpop.f32.mrf.mxu2  ;;  %v2685_v11 = vpop.f32.mrf.mxu3 }
 0x234   : > { %v2327_v14 = vmax.f32 %v1897_v52, %v2255_v10  ;;  %v1447_v15 = vpop.f32.mrf.mxu0  ;;  %v3228_v13 = vrot.slane %v3226_v63, 1  ;;  %v2907_v43 = vpack.c.bf16 %v2858_v12, %v2858_v12 }
 0x236   : > { %v2757_v16 = vmax.f32 %v2327_v14, %v2685_v11  ;;  %v3229_v29 = vsel %vm2956_vm3, %v3224_v62, %v3228_v13  ;;  %v1828_v32 = vpop.f32.mrf.mxu1  ;;  %v3211_v23 = vunpack.c.l.b16 %v2907_v43  ;;  %v3232_v56 = vor.u32 %v3230_v34, %v3228_v13  ;;  %v24070_v34 = vld [vmem:[%s31042_s3 + $0x138] sm:$0xff] }
 0x237   : > { %3249 = vrot.lane.b32.xlu2 %v3229_v29, %s25294_s23  ;;  %v1898_v19 = vmax.f32 %v1447_v15, %v1828_v32  ;;  %5110 = vmatpush.bf16.msra.mxu0 %v24070_v34 }
 0x238   : > { %v2810_v17 = vadd.f32 %v25979_v38, %v2757_v16 }
 0x23a   : > { %v2859_v20 = vmax.f32 %v2810_v17, 0.0 }
 0x23b   : > { %v2258_v21 = vpop.f32.mrf.mxu2  ;;  %v2688_v22 = vpop.f32.mrf.mxu3 }
 0x23c   : > { %v2908_v24 = vpack.c.bf16 %v2859_v20, %v2859_v20  ;;  %v2328_v25 = vmax.f32 %v1898_v19, %v2258_v21  ;;  %v26015_v26 = vpop.f32.mrf.mxu0 }
 0x23d   : > { %31210 = vst [vmem:[#allocation5_spill] sm:$0xff] %v26015_v26 }
 0x23e   : > { %v3212_v37 = vunpack.c.l.b16 %v2908_v24  ;;  %v2758_v27 = vmax.f32 %v2328_v25, %v2688_v22  ;;  %v26017_v30 = vpop.f32.mrf.mxu1 }
 0x23f   : > { %31211 = vst [vmem:[#allocation6_spill] sm:$0xff] %v26017_v30 }
 0x240   : > { %v3216_v35 = vpack.c.b16 %v3212_v37, %v3211_v23  ;;  %v2811_v4 = vadd.f32 %v25979_v38, %v2758_v27 }
 0x242   : > { %v2860_v39 = vmax.f32 %v2811_v4, 0.0  ;;  %v3234_v40 = vshll.u32 %v3216_v35, 16  ;;  %v3238_v47 = vshrl.u32 %v3216_v35, 16 }
 0x243   : > { %v26020_v42 = vpop.f32.mrf.mxu2  ;;  %v26022_v44 = vpop.f32.mrf.mxu3 }
 0x244   : > { %31212 = vst [vmem:[#allocation7_spill] sm:$0xff] %v26020_v42  ;;  %v2909_v49 = vpack.c.bf16 %v2860_v39, %v2860_v39  ;;  %v1452_v53 = vpop.f32.mrf.mxu0  ;;  %v3236_v54 = vrot.slane %v3234_v40, 1  ;;  %v24069_v40 = vld [vmem:[%s31042_s3 + $0x130] sm:$0xff]  ;;  %v24100_v42 = vld [vmem:[%s31042_s3 + $0x228] sm:$0xff] }
 0x245   : > { %31213 = vst [vmem:[#allocation8_spill] sm:$0xff] %v26022_v44  ;;  %5111 = vmatpush.bf16.msra.mxu0 %v24069_v40 }
 0x246   : > { %v26024_v33 = vunpack.c.l.b16 %v2909_v49  ;;  %v3237_v55 = vsel %vm2956_vm3, %v3232_v56, %v3236_v54  ;;  %v1833_v57 = vpop.f32.mrf.mxu1  ;;  %v3240_v52 = vor.u32 %v3238_v47, %v3236_v54  ;;  %v24086_v54 = vld [vmem:[%s31042_s3 + $0x1b8] sm:$0xff]  ;;  %v24068_v47 = vld [vmem:[%s31042_s3 + $0x128] sm:$0xff] }
 0x247   : > { %3251 = vrot.lane.b32.xlu0 %v3237_v55, %s25294_s23  ;;  %v1900_v58 = vmax.f32 %v1452_v53, %v1833_v57  ;;  %v24094_v55 = vld [vmem:[%s31042_s3 + $0x1f8] sm:$0xff]  ;;  %5156 = vmatpush.bf16.msra.mxu2 %v24086_v54 }
 0x248   : > { %31214 = vst [vmem:[#allocation9_spill] sm:$0xff] %v26024_v33  ;;  %v26030_v51 = vpack.c.b16 %v26024_v33, %v26024_v33  ;;  %5179 = vmatpush.bf16.msra.mxu3 %v24094_v55 }
 0x249   : > { %v3109_v48 = vpop.permute.xlu0 %3108  ;;  %v3113_v59 = vpop.permute.xlu2 %3112  ;;  %5112 = vmatpush.bf16.msra.mxu0 %v24068_v47 }
 0x24a   : > { %v3118_v60 = vsel %vm2995_vm4, %v25805_v8, %v3109_v48  ;;  %v3124_v61 = vsel %vm2995_vm4, %v25838_v5, %v3113_v59  ;;  %v3242_v62 = vshll.u32 %v26030_v51, 16 }
 0x24b   : > { %v3132_v63 = vunpack.c.l.b16 %v3118_v60  ;;  %v3133_v10 = vunpack.c.h.b16 %v3118_v60  ;;  %v3136_v11 = vunpack.c.l.b16 %v3124_v61  ;;  %v3137_v12 = vunpack.c.h.b16 %v3124_v61  ;;  %v2263_v14 = vpop.f32.mrf.mxu2  ;;  %v26037_v15 = vpop.f32.mrf.mxu3 }
 0x24c   : > { %31215 = vst [vmem:[#allocation10_spill] sm:$0xff] %v26037_v15  ;;  %v26039_v13 = vmax.f32 %v1900_v58, %v2263_v14  ;;  %v26041_v16 = vpop.f32.mrf.mxu0  ;;  %v26043_v29 = vrot.slane %v3242_v62, 1 }
 0x24d   : > { %v3139_v8 = vpack.c.b16 %v3132_v63, %v3132_v63  ;;  %v3140_v32 = vpack.c.b16 %v3133_v10, %v3133_v10  ;;  %v26045_v43 = vpack.c.b16 %v3136_v11, %v3136_v11  ;;  %v26047_v5 = vpack.c.b16 %v3137_v12, %v3137_v12  ;;  %v24067_v11 = vld [vmem:[%s31042_s3 + $0x120] sm:$0xff] }
 0x24e   : > { %31216 = vst [vmem:[#allocation11_spill] sm:$0xff] %v26039_v13  ;;  %v3245_v20 = vsel %vm2956_vm3, %v3240_v52, %v26043_v29  ;;  %v26059_v21 = vpop.f32.mrf.mxu1  ;;  %5113 = vmatpush.bf16.msra.mxu0 %v24067_v11 }
 0x24f   : > { %v17582_v22 = vrot.slane %v3139_v8, 9  ;;  %v3151_v23 = vrot.slane %v3140_v32, 5  ;;  %v3160_v24 = vrot.slane %v26045_v43, 5  ;;  %3253 = vrot.lane.b32.xlu0 %v3245_v20, %s25294_s23  ;;  %v3163_v27 = vrot.slane %v26047_v5, 5  ;;  %v24078_v43 = vld [vmem:[%s31042_s3 + $0x178] sm:$0xff]  ;;  %v24085_v20 = vld [vmem:[%s31042_s3 + $0x1b0] sm:$0xff] }
 0x250   : > { %5133 = vmatpush.bf16.msra.mxu1 %v24078_v43  ;;  %5157 = vmatpush.bf16.msra.mxu2 %v24085_v20  ;;  %v24065_v43 = vld [vmem:[%s31042_s3 + $0x110] sm:$0xff]  ;;  %v2939_v20 = vpack.c.b16 %v25761_v36, %v25761_v36  ;;  %v31226_v36 = vmov 0  ;;  %v24064_v5 = vld [vmem:[%s31042_s3 + $0x108] sm:$0xff] }
 0x251   : > { %v3152_v25 = vsel %vm26051_vm7, %v17582_v22, %v3151_v23  ;;  %v3162_v37 = vrot.slane %v3160_v24, 4  ;;  %v3153_v14 = vrot.slane %v3151_v23, 4  ;;  %v24093_v22 = vld [vmem:[%s31042_s3 + $0x1f0] sm:$0xff]  ;;  %v31227_v36 = vsel %vm26158_vm10, 4294967295, %v31226_v36 }
 0x252   : > { %3177 = vst [vmem:[#allocation2 + $0x1c] sm:$0xf] %v3152_v25  ;;  %5180 = vmatpush.bf16.msra.mxu3 %v24093_v22 }
 0x253   : > { %v3164_v35 = vsel %vm26051_vm7, %v3162_v37, %v3163_v27  ;;  %v26073_v4 = vpop.f32.mrf.mxu2  ;;  %v26075_v39 = vpop.f32.mrf.mxu3  ;;  %31228 = vst [vmem:[#allocation19_spill] sm:$0xff] %v31227_v36 }
 0x254   : > { %31219 = vst [vmem:[#allocation12_spill] sm:$0xff] %v26075_v39  ;;  %v1457_v56 = vpop.f32.mrf.mxu0 }
 0x255   : > { %3181 = vst [vmem:[#allocation2 + $0x2c] sm:$0xf] %v3164_v35  ;;  %v3060_v35 = vpack.c.b16 %v25858_v50, %v25858_v50 }
 0x256   : > { %v1838_v49 = vpop.f32.mrf.mxu1 }
 0x257   : > { %v1902_v53 = vmax.f32 %v1457_v56, %v1838_v49  ;;  %v24077_v49 = vld [vmem:[%s31042_s3 + $0x170] sm:$0xff] }
 0x258   : > { %5134 = vmatpush.bf16.msra.mxu1 %v24077_v49  ;;  %v3183_v49 = vld [vmem:[#allocation2 + $0x34] sm:$0x1] }
 0x259   : > { %v3111_v57 = vpop.permute.xlu1 %3110 }
 0x25a   : > { %v3121_v58 = vsel %vm2995_vm4, %v25826_v41, %v3111_v57 }
 0x25b   : > { %v3134_v48 = vunpack.c.l.b16 %v3121_v58  ;;  %v3135_v59 = vunpack.c.h.b16 %v3121_v58  ;;  %v2268_v60 = vpop.f32.mrf.mxu2  ;;  %v26091_v61 = vpop.f32.mrf.mxu3 }
 0x25c   : > { %31220 = vst [vmem:[#allocation13_spill] sm:$0xff] %v26091_v61  ;;  %v26093_v52 = vmax.f32 %v1902_v53, %v2268_v60  ;;  %v26095_v62 = vpop.f32.mrf.mxu0  ;;  %v24066_v53 = vld [vmem:[%s31042_s3 + $0x118] sm:$0xff] }
 0x25d   : > { %31222 = vst [vmem:[#allocation15_spill] sm:$0xff] %v26095_v62  ;;  %v3141_v63 = vpack.c.b16 %v3134_v48, %v3134_v48  ;;  %v3142_v10 = vpack.c.b16 %v3135_v59, %v3135_v59  ;;  %5114 = vmatpush.bf16.msra.mxu0 %v24066_v53 }
 0x25e   : > { %31221 = vst [vmem:[#allocation14_spill] sm:$0xff] %v26093_v52  ;;  %v26102_v12 = vpop.f32.mrf.mxu1  ;;  %v3485_v52 = vld [vmem:[#allocation2 + $0x1c] sm:$0x8] }
 0x25f   : > { %31223 = vst [vmem:[#allocation16_spill] sm:$0xff] %v26102_v12  ;;  %v3154_v8 = vrot.slane %v3141_v63, 5  ;;  %v3157_v32 = vrot.slane %v3142_v10, 5  ;;  %v3473_v10 = vld [vmem:[#allocation2] sm:$0xe] }
 0x261   : > { %v3155_v25 = vsel %vm26051_vm7, %v3153_v14, %v3154_v8  ;;  %v3156_v37 = vrot.slane %v3154_v8, 4  ;;  %v3159_v23 = vrot.slane %v3157_v32, 4  ;;  %v2990_v34 = vpop.permute.xlu1 %2989  ;;  %v24092_v14 = vld [vmem:[%s31042_s3 + $0x1e8] sm:$0xff]  ;;  %5115 = vmatpush.bf16.msra.mxu0 %v24065_v43 }
 0x262   : > { %3178 = vst [vmem:[#allocation2 + $0x20] sm:$0xf] %v3155_v25  ;;  %v3001_v56 = vsel %vm2995_vm4, %v25723_v31, %v2990_v34  ;;  %v3115_v40 = vpop.permute.xlu0 %3114  ;;  %v24076_v8 = vld [vmem:[%s31042_s3 + $0x168] sm:$0xff]  ;;  %v26149_v25 = vunpack.c.h.b16 %v25996_v28  ;;  %5181 = vmatpush.bf16.msra.mxu3 %v24092_v14  ;;  %v3165_v34 = vrot.slane %v3163_v27, 4 }
 0x263   : > { %v3158_v54 = vsel %vm26051_vm7, %v3156_v37, %v3157_v32  ;;  %v3161_v50 = vsel %vm26051_vm7, %v3159_v23, %v3160_v24  ;;  %v3014_v55 = vunpack.c.l.b16 %v3001_v56  ;;  %v3015_v57 = vunpack.c.h.b16 %v3001_v56  ;;  %v26129_v31 = vpop.f32.mrf.mxu2  ;;  %v26131_v47 = vpop.f32.mrf.mxu3  ;;  %v24084_v24 = vld [vmem:[%s31042_s3 + $0x1a8] sm:$0xff]  ;;  %v24083_v23 = vld [vmem:[%s31042_s3 + $0x1a0] sm:$0xff]  ;;  %5135 = vmatpush.bf16.msra.mxu1 %v24076_v8 }
 0x264   : > { %31224 = vst [vmem:[#allocation17_spill] sm:$0xff] %v26129_v31  ;;  %v3127_v58 = vsel %vm2995_vm4, %v3060_v35, %v3115_v40  ;;  %v1462_v48 = vpop.f32.mrf.mxu0  ;;  %v3537_v37 = vunpack.c.l.b16 %v3473_v10  ;;  %5158 = vmatpush.bf16.msra.mxu2 %v24084_v24  ;;  %v3475_v40 = vld [vmem:[#allocation2 + $0x1c] sm:$0xf] }
 0x265   : > { %31225 = vst [vmem:[#allocation18_spill] sm:$0xff] %v26131_v47  ;;  %v3021_v59 = vpack.c.b16 %v3014_v55, %v3014_v55  ;;  %v3022_v60 = vpack.c.b16 %v3015_v57, %v3015_v57  ;;  %v3138_v63 = vunpack.c.l.b16 %v3127_v58  ;;  %v3555_v14 = vunpack.c.l.b16 %v3475_v40  ;;  %5116 = vmatpush.bf16.msra.mxu0 %v24064_v5  ;;  %v24091_v5 = vld [vmem:[%s31042_s3 + $0x1e0] sm:$0xff] }
 0x266   : > { %3179 = vst [vmem:[#allocation2 + $0x24] sm:$0xf] %v3158_v54  ;;  %v1843_v11 = vpop.f32.mrf.mxu1  ;;  %v3513_v54 = vshll.u32 %v25996_v28, 16  ;;  %v3539_v17 = vpack.c.b16 %v26149_v25, %v3537_v37  ;;  %5182 = vmatpush.bf16.msra.mxu3 %v24091_v5 }
 0x267   : > { %3180 = vst [vmem:[#allocation2 + $0x28] sm:$0xf] %v3161_v50  ;;  %v3145_v32 = vpack.c.b16 %v3138_v63, %v3138_v63  ;;  %v1904_v22 = vmax.f32 %v1462_v48, %v1843_v11  ;;  %v3042_v63 = vld [vmem:[#allocation2 + $0x18] sm:$0x1] }
 0x268   : > { %3035 = vst [vmem:[#allocation2 + $0x8] sm:$0xf] %v3021_v59  ;;  %v3511_v59 = vshrl.u32 %v25996_v28, 16  ;;  %5159 = vmatpush.bf16.msra.mxu2 %v24083_v23  ;;  %v24063_v23 = vld [vmem:[%s31042_s3 + $0x100] sm:$0xff] }
 0x269   : > { %3036 = vst [vmem:[#allocation2 + $0xc] sm:$0xf] %v3022_v60  ;;  %v3166_v35 = vrot.slane %v3145_v32, 5  ;;  %v2994_v56 = vpop.permute.xlu1 %2993  ;;  %v3482_v60 = vld [vmem:[#allocation2] sm:$0x8]  ;;  %v26178_v32 = vld [vmem:[#allocation2 + $0x10] sm:$0xff]   ;;  %5117 = vmatpush.bf16.msra.mxu0 %v24063_v23 }
 0x26a   : > { %v3007_v53 = vsel %vm2995_vm4, %v2939_v20, %v2994_v56  ;;  %31229 = vst [vmem:[#allocation20_spill] sm:$0xff] %v26178_v32  ;;  %v3472_v56 = vld [vmem:[#allocation2 + $0x10] sm:$0x1]  ;;  %v3607_v40 = vunpack.c.l.b16 %v3482_v60  ;;  %v3491_v18 = vld [vmem:[#allocation2 + $0x20] sm:$0x8] }
 0x26b   : > { %v3167_v27 = vsel %vm26051_vm7, %v3165_v34, %v3166_v35  ;;  %v3168_v50 = vrot.slane %v3166_v35, 4  ;;  %v3018_v55 = vunpack.c.l.b16 %v3007_v53  ;;  %v2273_v57 = vpop.f32.mrf.mxu2  ;;  %v2703_v58 = vpop.f32.mrf.mxu3  ;;  %v3515_v35 = vrot.slane %v3513_v54, 1 }
 0x26c   : > { %3182 = vst [vmem:[#allocation2 + $0x30] sm:$0xf] %v3167_v27  ;;  %v2334_v10 = vmax.f32 %v1904_v22, %v2273_v57  ;;  %v1464_v11 = vpop.f32.mrf.mxu0  ;;  %v3474_v27 = vld [vmem:[#allocation2 + $0x10] sm:$0x3] }
 0x26d   : > { %v26169_v48 = vld [vmem:[#allocation2 + $0x20] sm:$0xff]   ;;  %v3184_v43 = vsel %vm26158_vm10, %v3168_v50, %v3183_v49  ;;  %v3025_v28 = vpack.c.b16 %v3018_v55, %v3018_v55  ;;  %v3735_v50 = vunpack.c.h.b16 %v26178_v32  ;;  %v3542_v55 = vrot.slane %v3539_v17, 1 }
 0x26e   : > { %v26173_v24 = vunpack.c.l.b16 %v26169_v48  ;;  %v26176_v8 = vld [vmem:[#allocation2 + $0x28] sm:$0xff]   ;;  %3185 = vst [vmem:[#allocation2 + $0x34] sm:$0x1] %v3184_v43  ;;  %v1845_v37 = vpop.f32.mrf.mxu1  ;;  %v3503_v43 = vunpack.c.l.b16 %v3472_v56 }
 0x26f   : > { %v3558_v20 = vunpack.c.l.b16 %v26176_v8  ;;  %v26184_v22 = vunpack.c.h.b16 %v26176_v8  ;;  %v3043_v53 = vsel %vm26158_vm10, %v3025_v28, %v3042_v63  ;;  %v1905_v54 = vmax.f32 %v1464_v11, %v1845_v37  ;;  %v24075_v63 = vld [vmem:[%s31042_s3 + $0x160] sm:$0xff]  ;;  %v24082_v28 = vld [vmem:[%s31042_s3 + $0x198] sm:$0xff] }
 0x270   : > { %v26187_v34 = vpack.c.b16 %v26173_v24, %v3555_v14  ;;  %v26192_v49 = vld [vmem:[#allocation2 + $0x8] sm:$0xff]   ;;  %3044 = vst [vmem:[#allocation2 + $0x18] sm:$0x1] %v3043_v53  ;;  %v2764_v14 = vmax.f32 %v2334_v10, %v2703_v58  ;;  %v24090_v11 = vld [vmem:[%s31042_s3 + $0x1d8] sm:$0xff]  ;;  %v3516_v37 = vor.u32 %v3515_v35, %v3511_v59  ;;  %v3538_v10 = vunpack.c.l.b16 %v3474_v27  ;;  %5136 = vmatpush.bf16.msra.mxu1 %v24075_v63 }
 0x271   : > { %5031 = vmatmul.bf16.gmra.mxu0 %v26192_v49  ;;  %v31046_v57 = vrot.slane %v26192_v49, 1  ;;  %v31045_v60 = vshll.u32 %v26192_v49, 16  ;;  %v26223_v53 = vpack.c.b16 %v3735_v50, %v3735_v50  ;;  %5160 = vmatpush.bf16.msra.mxu2 %v24082_v28  ;;  %v3609_v59 = vpack.c.b16 %v26149_v25, %v3607_v40  ;;  %v24081_v40 = vld [vmem:[%s31042_s3 + $0x190] sm:$0xff]  ;;  %v26241_v28 = vld [vmem:[#allocation2 + $0x4] sm:$0x8] }
 0x272   : > { %31230 = vst [vmem:[#allocation21_spill] sm:$0xff] %v26187_v34  ;;  %5095 = vmatmul.bf16.vlgmr.msrb.gmra.mxu3 %v26187_v34  ;;  %v2817_v35 = vadd.f32 %v25979_v38, %v2764_v14  ;;  %v31051_v27 = vunpack.c.h.b16 %v26169_v48  ;;  %v26233_v50 = vpack.c.b16 %v3503_v43, %v3503_v43  ;;  %v24089_v14 = vld [vmem:[%s31042_s3 + $0x1d0] sm:$0xff] }
 0x273   : > { %v26216_v17 = vsel %vm3541_vm11, %v3542_v55, %v31046_v57  ;;  %v26220_v58 = vrot.slane %v31045_v60, 1  ;;  %v2275_v56 = vpop.f32.mrf.mxu2  ;;  %v2705_v23 = vpop.f32.mrf.mxu3  ;;  %31232 = vst [vmem:[#allocation23_spill] sm:$0xff] %v26223_v53  ;;  %5183 = vmatpush.bf16.msra.mxu3 %v24090_v11  ;;  %v3760_v11 = vshrl.u32 %v26223_v53, 16  ;;  %v3763_v43 = vshll.u32 %v26223_v53, 16 }
 0x274   : > { %31231 = vst [vmem:[#allocation22_spill] sm:$0xff] %v26216_v17  ;;  %5072 = vmatmul.bf16.vlgmr.msrb.gmra.mxu2 %v26216_v17  ;;  %v2335_v5 = vmax.f32 %v1905_v54, %v2275_v56  ;;  %v1467_v55 = vpop.f32.mrf.mxu0  ;;  %v3540_v54 = vpack.c.b16 %v3538_v10, %v3538_v10  ;;  %v2866_v3 = vmax.f32 %v2817_v35, 0.0  ;;  %v26253_v60 = vpack.c.b16 %v3558_v20, %v31051_v27 }
 0x275   : > { %v26227_v41 = vsel %vm2956_vm3, %v3516_v37, %v26220_v58  ;;  %31234 = vst [vmem:[#allocation25_spill] sm:$0xff] %v26233_v50  ;;  %v24074_v37 = vld [vmem:[%s31042_s3 + $0x158] sm:$0xff]  ;;  %5161 = vmatpush.bf16.msra.mxu2 %v24081_v40  ;;  %v3246_v40 = vshrl.u32 %v26030_v51, 16  ;;  %v24080_v51 = vld [vmem:[%s31042_s3 + $0x188] sm:$0xff] }
 0x276   : > { %31233 = vst [vmem:[#allocation24_spill] sm:$0xff] %v26227_v41  ;;  %5049 = vmatmul.bf16.vlgmr.msrb.gmra.mxu1 %v26227_v41  ;;  %v2765_v63 = vmax.f32 %v2335_v5, %v2705_v23  ;;  %v1848_v19 = vpop.f32.mrf.mxu1  ;;  %v3613_v23 = vshrl.u32 %v3609_v59, 16  ;;  %v3616_v5 = vshll.u32 %v3609_v59, 16  ;;  %v26256_v41 = vrot.slane %v3540_v54, 1  ;;  %v24088_v54 = vld [vmem:[%s31042_s3 + $0x1c8] sm:$0xff] }
 0x277   : > { %v1906_v56 = vmax.f32 %v1467_v55, %v1848_v19  ;;  %5137 = vmatpush.bf16.msra.mxu1 %v24074_v37  ;;  %5184 = vmatpush.bf16.msra.mxu3 %v24089_v14  ;;  %v26260_v19 = vshrl.u32 %v26233_v50, 16  ;;  %v24073_v55 = vld [vmem:[%s31042_s3 + $0x150] sm:$0xff]  ;;  %v3479_v37 = vld [vmem:[#allocation2 + $0x2c] sm:$0x1]  ;;  %v26271_v14 = vrot.slane %v3760_v11, 3  ;;  %v26280_v59 = vunpack.c.l.b16 %v26178_v32  ;;  %v24087_v32 = vld [vmem:[%s31042_s3 + $0x1c0] sm:$0xff] }
 0x278   : > { %v2818_v10 = vadd.f32 %v25979_v38, %v2765_v63  ;;  %31235 = vst [vmem:[#allocation26_spill] sm:$0xff] %v26256_v41  ;;  %v3526_v63 = vshll.u32 %v26233_v50, 16  ;;  %v26275_v36 = vrot.slane %v3613_v23, 3  ;;  %v26277_v61 = vrot.slane %v3616_v5, 4 }
 0x279   : > { %31236 = vst [vmem:[#allocation27_spill] sm:$0xff] %v26260_v19  ;;  %v2915_v47 = vpack.c.bf16 %v2866_v3, %v2866_v3  ;;  %v26286_v11 = vshrl.u32 %v26253_v60, 16  ;;  %v3559_v3 = vunpack.c.l.b16 %v3479_v37  ;;  %5162 = vmatpush.bf16.msra.mxu2 %v24080_v51  ;;  %v24079_v51 = vld [vmem:[%s31042_s3 + $0x180] sm:$0xff] }
 0x27a   : > { %v2867_v17 = vmax.f32 %v2818_v10, 0.0  ;;  %31237 = vst [vmem:[#allocation28_spill] sm:$0xff] %v26271_v14  ;;  %v26273_v10 = vrot.slane %v3763_v43, 4  ;;  %v26288_v43 = vld [vmem:[#allocation2 + $0x1c] sm:$0xe] }
 0x27b   : > { %v2278_v20 = vpop.f32.mrf.mxu2  ;;  %v2708_v35 = vpop.f32.mrf.mxu3  ;;  %5138 = vmatpush.bf16.msra.mxu1 %v24073_v55  ;;  %5185 = vmatpush.bf16.msra.mxu3 %v24088_v54  ;;  %v31061_v55 = vshrl.u32 %v26192_v49, 16  ;;  %v24072_v54 = vld [vmem:[%s31042_s3 + $0x148] sm:$0xff]  ;;  %v26316_v31 = vunpack.c.l.b16 %v2915_v47 }
 0x27c   : > { %v2336_v27 = vmax.f32 %v1906_v56, %v2278_v20  ;;  %v1469_v57 = vpop.f32.mrf.mxu0  ;;  %v2916_v33 = vpack.c.bf16 %v2867_v17, %v2867_v17  ;;  %v26291_v56 = vor.u32 %v3246_v40, %v26043_v29  ;;  %v3528_v20 = vrot.slane %v3526_v63, 1 }
 0x27d   : > { %v26295_v17 = vshll.u32 %v26253_v60, 16  ;;  %v25190_v29 = vunpack.c.h.b16 %v26192_v49  ;;  %v3524_v40 = vor.u32 %v31061_v55, %v26220_v58  ;;  %31238 = vst [vmem:[#allocation29_spill] sm:$0xff] %v26316_v31  ;;  %v26327_v55 = vpack.c.b16 %v3559_v3, %v3559_v3  ;;  %5163 = vmatpush.bf16.msra.mxu2 %v24079_v51 }
 0x27e   : > { %v2766_v23 = vmax.f32 %v2336_v27, %v2708_v35  ;;  %v1850_v5 = vpop.f32.mrf.mxu1  ;;  %v3671_v27 = vunpack.c.l.b16 %v3485_v52  ;;  %v3593_v52 = vunpack.c.l.b16 %v26288_v43  ;;  %v3349_v35 = vunpack.c.l.b16 %v2916_v33 }
 0x27f   : > { %v1907_v37 = vmax.f32 %v1469_v57, %v1850_v5  ;;  %5139 = vmatpush.bf16.msra.mxu1 %v24072_v54  ;;  %5186 = vmatpush.bf16.msra.mxu3 %v24087_v32  ;;  %v31239_v57 = vrot.slane %v26192_v49, 1  ;;  %v3569_v5 = vshll.u32 %v26187_v34, 16  ;;  %v24071_v32 = vld [vmem:[%s31042_s3 + $0x140] sm:$0xff]  ;;  %v26334_v43 = vpack.c.b16 %v26280_v59, %v25190_v29  ;;  %v24102_v29 = vld [vmem:[%s31042_s3 + $0x238] sm:$0xff] }
 0x280   : > { %v2819_v63 = vadd.f32 %v25979_v38, %v2766_v23  ;;  %v3673_v23 = vpack.c.b16 %v26173_v24, %v3671_v27  ;;  %v26338_v12 = vsel %vm2956_vm3, %v3524_v40, %v3528_v20  ;;  %v26342_v44 = vpack.c.b16 %v3349_v35, %v26316_v31  ;;  %5202 = vmatpush.bf16.msrb.mxu0 %v24102_v29 }
 0x281   : > { %5036 = vmatmul.bf16.gmra.mxu0 %v26233_v50  ;;  %v3683_v50 = vrot.slane %v26286_v11, 3  ;;  %v26324_v58 = vsel %vm3541_vm11, %v31239_v57, %v26256_v41  ;;  %v3684_v57 = vrot.slane %v26295_v17, 4  ;;  %31241 = vst [vmem:[#allocation31_spill] sm:$0xff] %v26338_v12  ;;  %v3571_v40 = vrot.slane %v3569_v5, 1 }
 0x282   : > { %5100 = vmatmul.bf16.gmra.mxu3 %v26253_v60  ;;  %31240 = vst [vmem:[#allocation30_spill] sm:$0xff] %v26324_v58  ;;  %v3676_v54 = vshrl.u32 %v3673_v23, 16  ;;  %v3679_v27 = vshll.u32 %v3673_v23, 16  ;;  %v2868_v62 = vmax.f32 %v2819_v63, 0.0  ;;  %v3567_v35 = vshrl.u32 %v26187_v34, 16 }
 0x283   : > { %v2280_v33 = vpop.f32.mrf.mxu2  ;;  %v2710_v47 = vpop.f32.mrf.mxu3  ;;  %v26348_v63 = vor.u32 %v3684_v57, %v3683_v50  ;;  %5140 = vmatpush.bf16.msra.mxu1 %v24071_v32  ;;  %v3576_v53 = vrot.slane %v26295_v17, 1  ;;  %v3362_v5 = vshll.u32 %v26342_v44, 16  ;;  %v26359_v32 = vpack.c.b16 %v26173_v24, %v3593_v52  ;;  %v24101_v24 = vld [vmem:[%s31042_s3 + $0x230] sm:$0xff] }
 0x284   : > { %5077 = vmatmul.bf16.gmra.mxu2 %v26324_v58  ;;  %v2337_v3 = vmax.f32 %v1907_v37, %v2280_v33  ;;  %v1472_v58 = vpop.f32.mrf.mxu0  ;;  %v3678_v23 = vrot.slane %v3676_v54, 3  ;;  %v3681_v15 = vrot.slane %v3679_v27, 4  ;;  %v3779_v33 = vunpack.c.l.b16 %v3491_v18  ;;  %5203 = vmatpush.bf16.msrb.mxu0 %v24101_v24 }
 0x285   : > { %v2917_v13 = vpack.c.bf16 %v2868_v62, %v2868_v62  ;;  %v31242_v27 = vunpack.c.l.b16 %v26241_v28 }
 0x286   : > { %5054 = vmatmul.bf16.gmra.mxu1 %v26338_v12  ;;  %v2767_v37 = vmax.f32 %v2337_v3, %v2710_v47  ;;  %v1853_v20 = vpop.f32.mrf.mxu1  ;;  %v31073_v12 = vshrl.u32 %v26334_v43, 16  ;;  %v3682_v31 = vor.u32 %v3681_v15, %v3678_v23  ;;  %v3674_v47 = vpack.c.b16 %v26184_v22, %v26184_v22  ;;  %v24118_v3 = vld [vmem:[%s31042_s3 + $0x2b8] sm:$0xff] }
 0x287   : > { %v1908_v50 = vmax.f32 %v1472_v58, %v1853_v20  ;;  %v31243_v15 = vunpack.c.l.b16 %v26192_v49  ;;  %v3572_v58 = vor.u32 %v3571_v40, %v3567_v35  ;;  %v26383_v20 = vor.u32 %v26286_v11, %v3576_v53  ;;  %v24110_v40 = vld [vmem:[%s31042_s3 + $0x278] sm:$0xff]  ;;  %5248 = vmatpush.bf16.msrb.mxu2 %v24118_v3 }
 0x288   : > { %v2820_v54 = vadd.f32 %v25979_v38, %v2767_v37  ;;  %v26363_v18 = vsel %vm3611_vm12, %v3682_v31, %v26348_v63  ;;  %v24126_v31 = vld [vmem:[%s31042_s3 + $0x2f8] sm:$0xff]  ;;  %v3688_v52 = vshrl.u32 %v3674_v47, 16  ;;  %v3360_v37 = vshrl.u32 %v26342_v44, 16  ;;  %5225 = vmatpush.bf16.msrb.mxu1 %v24110_v40  ;;  %5204 = vmatpush.bf16.msrb.mxu0 %v24100_v42  ;;  %v24116_v42 = vld [vmem:[%s31042_s3 + $0x2a8] sm:$0xff] }
 0x289   : > { %v26369_v62 = vpack.c.b16 %v31243_v15, %v31242_v27  ;;  %v3755_v35 = vrot.slane %v31073_v12, 3  ;;  %v3350_v27 = vunpack.c.l.b16 %v2917_v13  ;;  %v3364_v44 = vrot.slane %v3362_v5, 1  ;;  %5271 = vmatpush.bf16.msrb.mxu3 %v24126_v31  ;;  %v24117_v12 = vld [vmem:[%s31042_s3 + $0x2b0] sm:$0xff] }
 0x28a   : > { %v2869_v57 = vmax.f32 %v2820_v54, 0.0  ;;  %v3691_v54 = vshll.u32 %v3674_v47, 16  ;;  %v26390_v34 = vrot.slane %v3688_v52, 3  ;;  %v31244_v13 = vunpack.c.h.b16 %v26169_v48  ;;  %v24125_v31 = vld [vmem:[%s31042_s3 + $0x2f0] sm:$0xff] }
 0x28b   : > { %v2283_v29 = vpop.f32.mrf.mxu2  ;;  %v2713_v23 = vpop.f32.mrf.mxu3  ;;  %v24109_v52 = vld [vmem:[%s31042_s3 + $0x270] sm:$0xff]  ;;  %v31245_v40 = vshll.u32 %v26334_v43, 16  ;;  %5249 = vmatpush.bf16.msrb.mxu2 %v24117_v12  ;;  %v24124_v12 = vld [vmem:[%s31042_s3 + $0x2e8] sm:$0xff] }
 0x28c   : > { %v2918_v15 = vpack.c.bf16 %v2869_v57, %v2869_v57  ;;  %v2338_v51 = vmax.f32 %v1908_v50, %v2283_v29  ;;  %v1474_v28 = vpop.f32.mrf.mxu0  ;;  %v3693_v47 = vrot.slane %v3691_v54, 4  ;;  %v26400_v50 = vpack.c.b16 %v31244_v13, %v3779_v33  ;;  %5226 = vmatpush.bf16.msrb.mxu1 %v24109_v52 }
 0x28d   : > { %v3748_v57 = vshrl.u32 %v26369_v62, 16  ;;  %v3751_v29 = vshll.u32 %v26369_v62, 16  ;;  %v3756_v54 = vrot.slane %v31245_v40, 4  ;;  %v26413_v33 = vsel %vm2956_vm3, %v3572_v58, %v3576_v53  ;;  %v24099_v53 = vld [vmem:[%s31042_s3 + $0x220] sm:$0xff]  ;;  %5272 = vmatpush.bf16.msrb.mxu3 %v24125_v31 }
 0x28e   : > { %v3351_v3 = vunpack.c.l.b16 %v2918_v15  ;;  %v2768_v24 = vmax.f32 %v2338_v51, %v2713_v23  ;;  %v1855_v5 = vpop.f32.mrf.mxu1  ;;  %31246 = vst [vmem:[#allocation32_spill] sm:$0xff] %v26413_v33  ;;  %v3694_v51 = vor.u32 %v3693_v47, %v26390_v34  ;;  %v31074_v58 = vshrl.u32 %v26176_v8, 16  ;;  %5205 = vmatpush.bf16.msrb.mxu0 %v24099_v53  ;;  %v24115_v53 = vld [vmem:[%s31042_s3 + $0x2a0] sm:$0xff] }
 0x28f   : > { %v1909_v13 = vmax.f32 %v1474_v28, %v1855_v5  ;;  %v3750_v23 = vrot.slane %v3748_v57, 3  ;;  %v3753_v26 = vrot.slane %v3751_v29, 4  ;;  %v3757_v30 = vor.u32 %v3756_v54, %v3755_v35  ;;  %v3492_v5 = vld [vmem:[#allocation2 + $0x30] sm:$0xf]  ;;  %5250 = vmatpush.bf16.msrb.mxu2 %v24116_v42  ;;  %v24107_v42 = vld [vmem:[%s31042_s3 + $0x260] sm:$0xff] }
 0x290   : > { %v26416_v15 = vpack.c.b16 %v3351_v3, %v3350_v27  ;;  %v2821_v39 = vadd.f32 %v25979_v38, %v2768_v24  ;;  %v26427_v38 = vsel %vm3611_vm12, %v26348_v63, %v3694_v51  ;;  %v3365_v27 = vor.u32 %v3364_v44, %v3360_v37  ;;  %v24108_v44 = vld [vmem:[%s31042_s3 + $0x268] sm:$0xff] }
 0x291   : > { %5118 = vmatmul.bf16.vlgmr.msra.gmra.mxu0 %v26413_v33  ;;  %v3250_v40 = vpop.permute.xlu2 %3249  ;;  %v3814_v47 = vshrl.u32 %v26400_v50, 16  ;;  %v3754_v24 = vor.u32 %v3753_v26, %v3750_v23  ;;  %v31081_v54 = vshll.u32 %v26176_v8, 16  ;;  %v31249_v26 = vshll.u32 %v26327_v55, 16  ;;  %5273 = vmatpush.bf16.msrb.mxu3 %v24124_v12 }
 0x292   : > { %5105 = vmatmul.bf16.gmra.mxu3 %v26327_v55  ;;  %v3259_v28 = vsel %vm2995_vm4, %v25918_v46, %v3250_v40  ;;  %v3367_v35 = vshll.u32 %v26416_v15, 16  ;;  %v2870_v63 = vmax.f32 %v2821_v39, 0.0  ;;  %v31247_v39 = vor.u32 %v26273_v10, %v26271_v14  ;;  %5227 = vmatpush.bf16.msrb.mxu1 %v24108_v44  ;;  %v31309_v10 = vld [vmem:[#allocation20_spill] sm:$0xff] }
 0x293   : > { %v3273_v57 = vunpack.c.l.b16 %v3259_v28  ;;  %v3274_v3 = vunpack.c.h.b16 %v3259_v28  ;;  %v2285_v46 = vpop.f32.mrf.mxu2  ;;  %v2715_v37 = vpop.f32.mrf.mxu3  ;;  %v3584_v23 = vrot.slane %v31249_v26, 1  ;;  %v3816_v12 = vrot.slane %v3814_v47, 3  ;;  %v26489_v26 = vld [vmem:[%s31041_s2] ss:$0 sm:$0xff]  ;;  %5251 = vmatpush.bf16.msrb.mxu2 %v24115_v53 }
 0x294   : > { %5082 = vmatmul.bf16.gmra.mxu2 %v26256_v41  ;;  %v2339_v31 = vmax.f32 %v1909_v13, %v2285_v46  ;;  %v1477_v52 = vpop.f32.mrf.mxu0  ;;  %v26443_v29 = vrot.slane %v3367_v35, 1  ;;  %v26450_v51 = vsel %vm3611_vm12, %v3757_v30, %v31247_v39  ;;  %v24098_v13 = vld [vmem:[%s31042_s3 + $0x218] sm:$0xff]  ;;  %v26461_v35 = vsel %vm3611_vm12, %v3754_v24, %v3757_v30  ;;  %v24123_v30 = vld [vmem:[%s31042_s3 + $0x2e0] sm:$0xff] }
 0x295   : > { %31248 = vst [vmem:[#allocation33_spill] sm:$0xff] %v26450_v51  ;;  %v3280_v40 = vpack.c.b16 %v3273_v57, %v3273_v57  ;;  %v26452_v28 = vpack.c.b16 %v3274_v3, %v3274_v3  ;;  %v3821_v24 = vrot.slane %v31074_v58, 3  ;;  %v26479_v39 = vunpack.c.l.b16 %v3492_v5  ;;  %5206 = vmatpush.bf16.msrb.mxu0 %v24098_v13  ;;  %5274 = vmatpush.bf16.msrb.mxu3 %v24123_v30 }
 0x296   : > { %5059 = vmatmul.bf16.gmra.mxu1 %v26260_v19  ;;  %31250 = vst [vmem:[#allocation34_spill] sm:$0xff] %v26461_v35  ;;  %v2769_v57 = vmax.f32 %v2339_v31, %v2715_v37  ;;  %v3370_v3 = vsel %vm2956_vm3, %v3365_v27, %v26443_v29  ;;  %v1858_v46 = vpop.f32.mrf.mxu1  ;;  %v2919_v37 = vpack.c.bf16 %v2870_v63, %v2870_v63  ;;  %v3817_v63 = vshll.u32 %v26400_v50, 16 }
 0x297   : > { %v17583_v31 = vrot.slane %v3280_v40, 10  ;;  %3390 = vrot.lane.b32.xlu1 %v3370_v3, %s25294_s23  ;;  %v1910_v58 = vmax.f32 %v1477_v52, %v1858_v46  ;;  %v3822_v40 = vrot.slane %v31081_v54, 4  ;;  %v31253_v44 = vshll.u32 %v26192_v49, 16  ;;  %v24097_v52 = vld [vmem:[%s31042_s3 + $0x210] sm:$0xff]  ;;  %5228 = vmatpush.bf16.msrb.mxu1 %v24107_v42 }
 0x298   : > { %v2822_v5 = vadd.f32 %v26489_v26, %v2769_v57  ;;  %v31254_v27 = vshrl.u32 %v26192_v49, 16  ;;  %v31255_v47 = vrot.slane %v26452_v28, 6  ;;  %v3796_v19 = vrot.slane %v26286_v11, 4 }
 0x299   : > { %v3621_v3 = vrot.slane %v31253_v44, 4  ;;  %v26509_v46 = vsel %vm2956_vm3, %v26383_v20, %v3584_v23  ;;  %v26511_v44 = vor.u32 %v3822_v40, %v3821_v24  ;;  %v3352_v54 = vunpack.c.l.b16 %v2919_v37  ;;  %v3493_v37 = vld [vmem:[#allocation2 + $0x34] sm:$0x1]  ;;  %5207 = vmatpush.bf16.msrb.mxu0 %v24097_v52 }
 0x29a   : > { %v3620_v41 = vrot.slane %v31254_v27, 3  ;;  %v3293_v33 = vsel %vm26465_vm15, %v17583_v31, %v31255_v47  ;;  %v2871_v57 = vmax.f32 %v2822_v5, 0.0  ;;  %v3819_v27 = vrot.slane %v3817_v63, 4 }
 0x29b   : > { %3318 = vst [vmem:[#allocation2 + $0x38] sm:$0xf] %v3293_v33  ;;  %v2288_v31 = vpop.f32.mrf.mxu2  ;;  %v2718_v47 = vpop.f32.mrf.mxu3  ;;  %v31256_v11 = vunpack.c.l.b16 %v26192_v49  ;;  %v3597_v33 = vrot.slane %v26359_v32, 1  ;;  %v3793_v20 = vpack.c.b16 %v26479_v39, %v26184_v22  ;;  %v3797_v24 = vrot.slane %v26295_v17, 5 }
 0x29c   : > { %v2920_v23 = vpack.c.bf16 %v2871_v57, %v2871_v57  ;;  %v2340_v53 = vmax.f32 %v1910_v58, %v2288_v31  ;;  %v1479_v30 = vpop.f32.mrf.mxu0  ;;  %v3820_v5 = vor.u32 %v3819_v27, %v3816_v12  ;;  %v26522_v63 = vor.u32 %v3621_v3, %v3620_v41 }
 0x29d   : > { %v26516_v13 = vpack.c.b16 %v31256_v11, %v26149_v25  ;;  %v3371_v40 = vshrl.u32 %v26416_v15, 16  ;;  %v24096_v25 = vld [vmem:[%s31042_s3 + $0x208] sm:$0xff]  ;;  %v3800_v49 = vshrl.u32 %v3793_v20, 16  ;;  %v3803_v32 = vshll.u32 %v3793_v20, 16 }
 0x29e   : > { %v3353_v42 = vunpack.c.l.b16 %v2920_v23  ;;  %v2770_v22 = vmax.f32 %v2340_v53, %v2718_v47  ;;  %v1860_v57 = vpop.f32.mrf.mxu1  ;;  %v26530_v58 = vsel %vm3611_vm12, %v3820_v5, %v26511_v44  ;;  %v3798_v17 = vor.u32 %v3797_v24, %v3796_v19  ;;  %5208 = vmatpush.bf16.msrb.mxu0 %v24096_v25 }
 0x29f   : > { %31257 = vst [vmem:[#allocation35_spill] sm:$0xff] %v26530_v58  ;;  %v31082_v41 = vrot.slane %v26253_v60, 1  ;;  %v3802_v12 = vrot.slane %v3800_v49, 4  ;;  %v3805_v3 = vrot.slane %v3803_v32, 5  ;;  %v3792_v15 = vunpack.c.l.b16 %v3493_v37  ;;  %v24106_v57 = vld [vmem:[%s31042_s3 + $0x258] sm:$0xff] }
 0x2a0   : > { %v3357_v52 = vpack.c.b16 %v3353_v42, %v3352_v54  ;;  %v2823_v27 = vadd.f32 %v26489_v26, %v2770_v22  ;;  %v3619_v31 = vor.u32 %v26277_v61, %v26275_v36  ;;  %v3826_v11 = vshrl.u32 %v3798_v17, 16  ;;  %5229 = vmatpush.bf16.msrb.mxu1 %v24106_v57  ;;  %v24121_v57 = vld [vmem:[%s31042_s3 + $0x2d0] sm:$0xff] }
 0x2a1   : > { %5123 = vmatmul.bf16.gmra.mxu0 %v26509_v46  ;;  %v3806_v47 = vor.u32 %v3805_v3, %v3802_v12  ;;  %v3829_v19 = vshll.u32 %v3798_v17, 16  ;;  %v3794_v20 = vpack.c.b16 %v3792_v15, %v3792_v15  ;;  %v3373_v54 = vor.u32 %v3371_v40, %v26443_v29  ;;  %v24114_v29 = vld [vmem:[%s31042_s3 + $0x298] sm:$0xff]  ;;  %v24095_v40 = vld [vmem:[%s31042_s3 + $0x200] sm:$0xff] }
 0x2a2   : > { %5187 = vmatmul.bf16.vlgmr.msra.gmra.mxu3 %v26516_v13  ;;  %v2872_v23 = vmax.f32 %v2823_v27, 0.0  ;;  %v26540_v53 = vsel %vm3611_vm12, %v3619_v31, %v26522_v63  ;;  %v3375_v30 = vshll.u32 %v3357_v52, 16  ;;  %v26547_v61 = vsel %vm3541_vm11, %v3597_v33, %v31082_v41  ;;  %v24122_v33 = vld [vmem:[%s31042_s3 + $0x2d8] sm:$0xff]  ;;  %v3481_v31 = vld [vmem:[#allocation2 + $0x2c] sm:$0x3]  ;;  %5252 = vmatpush.bf16.msrb.mxu2 %v24114_v29 }
 0x2a3   : > { %31258 = vst [vmem:[#allocation36_spill] sm:$0xff] %v26540_v53  ;;  %v3610_v36 = vpack.c.b16 %v26280_v59, %v26280_v59  ;;  %v2290_v5 = vpop.f32.mrf.mxu2  ;;  %v2720_v24 = vpop.f32.mrf.mxu3  ;;  %v3807_v37 = vsel %vm3795_vm1, %v3798_v17, %v3806_v47  ;;  %v3809_v25 = vshll.u32 %v3794_v20, 16  ;;  %v3379_v22 = vshrl.u32 %v3357_v52, 16  ;;  %5209 = vmatpush.bf16.msrb.mxu0 %v24095_v40  ;;  %v24113_v20 = vld [vmem:[%s31042_s3 + $0x290] sm:$0xff]  ;;  %5275 = vmatpush.bf16.msrb.mxu3 %v24122_v33 }
 0x2a4   : > { %5164 = vmatmul.bf16.vlgmr.msra.gmra.mxu2 %v26540_v53  ;;  %v2921_v49 = vpack.c.bf16 %v2872_v23, %v2872_v23  ;;  %v3377_v32 = vrot.slane %v3375_v30, 1  ;;  %v3834_v59 = vshrl.u32 %v3807_v37, 16  ;;  %v3837_v42 = vshll.u32 %v3807_v37, 16 }
 0x2a5   : > { %v3828_v17 = vrot.slane %v3826_v11, 3  ;;  %v3831_v12 = vrot.slane %v3829_v19, 4  ;;  %v3811_v3 = vrot.slane %v3809_v25, 5  ;;  %v31259_v52 = vmax.f32 %v25948_v2, %v25952_v6 }
 0x2a6   : > { %5141 = vmatmul.bf16.vlgmr.msra.gmra.mxu1 %v26547_v61  ;;  %v3354_v15 = vunpack.c.l.b16 %v2921_v49  ;;  %v3378_v27 = vsel %vm2956_vm3, %v3373_v54, %v3377_v32  ;;  %v3836_v23 = vrot.slane %v3834_v59, 3  ;;  %v3625_v11 = vshrl.u32 %v3610_v36, 16  ;;  %5253 = vmatpush.bf16.msrb.mxu2 %v24113_v20 }
 0x2a7   : > { %v2321_v30 = vmax.f32 %v31259_v52, %v25954_v7  ;;  %3392 = vrot.lane.b32.xlu2 %v3378_v27, %s25294_s23  ;;  %v3839_v19 = vrot.slane %v3837_v42, 4  ;;  %v3812_v54 = vsel %vm3795_vm1, %v3806_v47, %v3811_v3  ;;  %v3628_v24 = vshll.u32 %v3610_v36, 16  ;;  %5276 = vmatpush.bf16.msrb.mxu3 %v24121_v57  ;;  %v24104_v52 = vld [vmem:[%s31042_s3 + $0x248] sm:$0xff] }
 0x2a8   : > { %v3358_v5 = vpack.c.b16 %v3354_v15, %v3354_v15  ;;  %v3852_v37 = vshrl.u32 %v3812_v54, 16  ;;  %v3855_v25 = vshll.u32 %v3812_v54, 16  ;;  %v3381_v49 = vor.u32 %v3379_v22, %v3377_v32 }
 0x2a9   : > { %v3594_v29 = vunpack.c.l.b16 %v3481_v31  ;;  %v3832_v40 = vor.u32 %v3831_v12, %v3828_v17  ;;  %v3840_v59 = vor.u32 %v3839_v19, %v3836_v23  ;;  %v2751_v7 = vmax.f32 %v2321_v30, %v25956_v9  ;;  %v24134_v30 = vld [vmem:[%s31042_s3 + $0x338] sm:$0xff] }
 0x2aa   : > { %v3383_v41 = vshll.u32 %v3358_v5, 16  ;;  %v3387_v53 = vshrl.u32 %v3358_v5, 16  ;;  %v26575_v2 = vrot.slane %v3852_v37, 3  ;;  %v3857_v6 = vrot.slane %v3855_v25, 4  ;;  %v24111_v5 = vld [vmem:[%s31042_s3 + $0x280] sm:$0xff]  ;;  %v24150_v37 = vld [vmem:[%s31042_s3 + $0x3b8] sm:$0xff]  ;;  %5294 = vmatpush.bf16.msra.mxu0 %v24134_v30 }
 0x2ab   : > { %v26579_v33 = vsel %vm3611_vm12, %v3832_v40, %v3840_v59  ;;  %v26581_v36 = vrot.slane %v3625_v11, 3  ;;  %v3630_v42 = vrot.slane %v3628_v24, 4  ;;  %v3596_v22 = vpack.c.b16 %v3594_v29, %v3594_v29  ;;  %v24119_v24 = vld [vmem:[%s31042_s3 + $0x2c0] sm:$0xff]  ;;  %v24133_v25 = vld [vmem:[%s31042_s3 + $0x330] sm:$0xff] }
 0x2ac   : > { %31260 = vst [vmem:[#allocation37_spill] sm:$0xff] %v26575_v2  ;;  %v3385_v47 = vrot.slane %v3383_v41, 1  ;;  %v3858_v32 = vor.u32 %v3857_v6, %v26575_v2  ;;  %v26588_v17 = vshrl.u32 %v26327_v55, 16  ;;  %v31262_v41 = vmax.f32 %v25946_v1, %v25944_v0  ;;  %v24112_v0 = vld [vmem:[%s31042_s3 + $0x288] sm:$0xff]  ;;  %v3484_v40 = vld [vmem:[#allocation2 + $0x14] sm:$0x1] }
 0x2ad   : > { %31261 = vst [vmem:[#allocation38_spill] sm:$0xff] %v26579_v33  ;;  %v2804_v27 = vadd.f32 %v26489_v26, %v2751_v7  ;;  %v24120_v1 = vld [vmem:[%s31042_s3 + $0x2c8] sm:$0xff]  ;;  %v26619_v20 = vrot.slane %v3596_v22, 1  ;;  %v3647_v23 = vshll.u32 %v26516_v13, 16  ;;  %5254 = vmatpush.bf16.msrb.mxu2 %v24112_v0  ;;  %v24149_v22 = vld [vmem:[%s31042_s3 + $0x3b0] sm:$0xff] }
 0x2ae   : > { %v3386_v12 = vsel %vm2956_vm3, %v3381_v49, %v3385_v47  ;;  %v3389_v9 = vor.u32 %v3387_v53, %v3385_v47  ;;  %v26592_v3 = vsel %vm3611_vm12, %v3840_v59, %v3858_v32  ;;  %v2803_v15 = vadd.f32 %v26489_v26, %v31262_v41  ;;  %5277 = vmatpush.bf16.msrb.mxu3 %v24120_v1  ;;  %v24158_v49 = vld [vmem:[%s31042_s3 + $0x3f8] sm:$0xff]  ;;  %v24103_v59 = vld [vmem:[%s31042_s3 + $0x240] sm:$0xff]  ;;  %v24157_v41 = vld [vmem:[%s31042_s3 + $0x3f0] sm:$0xff] }
 0x2af   : > { %3255 = vrot.lane.b32.xlu2 %v26291_v56, %s25294_s23  ;;  %3394 = vrot.lane.b32.xlu1 %v3386_v12, %s25294_s23  ;;  %v3631_v53 = vor.u32 %v3630_v42, %v26581_v36  ;;  %v24105_v56 = vld [vmem:[%s31042_s3 + $0x250] sm:$0xff]  ;;  %v2853_v19 = vmax.f32 %v2804_v27, 0.0  ;;  %v3649_v29 = vrot.slane %v3647_v23, 1  ;;  %v24142_v47 = vld [vmem:[%s31042_s3 + $0x378] sm:$0xff]  ;;  %v3645_v32 = vshrl.u32 %v26516_v13, 16 }
 0x2b0   : > { %3396 = vrot.lane.b32.xlu0 %v3389_v9, %s25294_s23  ;;  %5230 = vmatpush.bf16.msrb.mxu1 %v24105_v56  ;;  %v2852_v11 = vmax.f32 %v2803_v15, 0.0  ;;  %v3637_v12 = vunpack.c.l.b16 %v3484_v40  ;;  %v24132_v9 = vld [vmem:[%s31042_s3 + $0x328] sm:$0xff]  ;;  %v31264_v23 = vshll.u32 %v26334_v43, 16  ;;  %v24141_v30 = vld [vmem:[%s31042_s3 + $0x370] sm:$0xff] }
 0x2b1   : > { %5128 = vmatmul.bf16.gmra.mxu0 %v26588_v17  ;;  %v26617_v31 = vsel %vm3611_vm12, %v26522_v63, %v3631_v53  ;;  %v31263_v63 = vrot.slane %v26253_v60, 1  ;;  %v2902_v7 = vpack.c.bf16 %v2853_v19, %v2853_v19  ;;  %5255 = vmatpush.bf16.msrb.mxu2 %v24111_v5  ;;  %v3650_v53 = vor.u32 %v3649_v29, %v3645_v32  ;;  %v24156_v29 = vld [vmem:[%s31042_s3 + $0x3e8] sm:$0xff] }
 0x2b2   : > { %5192 = vmatmul.bf16.gmra.mxu3 %v26334_v43  ;;  %v2901_v6 = vpack.c.bf16 %v2852_v11, %v2852_v11  ;;  %5295 = vmatpush.bf16.msra.mxu0 %v24133_v25  ;;  %v24148_v11 = vld [vmem:[%s31042_s3 + $0x3a8] sm:$0xff]  ;;  %v26677_v19 = vpack.c.b16 %v3637_v12, %v3637_v12  ;;  %v31265_v5 = vrot.slane %v26452_v28, 6 }
 0x2b3   : > { %v26633_v54 = vsel %vm3541_vm11, %v31263_v63, %v26619_v20  ;;  %5278 = vmatpush.bf16.msrb.mxu3 %v24119_v24  ;;  %v3196_v0 = vunpack.c.l.b16 %v2902_v7  ;;  %v24131_v63 = vld [vmem:[%s31042_s3 + $0x320] sm:$0xff] }
 0x2b4   : > { %5169 = vmatmul.bf16.gmra.mxu2 %v26617_v31  ;;  %5231 = vmatpush.bf16.msrb.mxu1 %v24104_v52  ;;  %v3195_v56 = vunpack.c.l.b16 %v2901_v6  ;;  %v3654_v52 = vrot.slane %v31264_v23, 1  ;;  %v3294_v24 = vrot.slane %v31265_v5, 4  ;;  %v24128_v5 = vld [vmem:[%s31042_s3 + $0x308] sm:$0xff] }
 0x2b5   : > { %5340 = vmatpush.bf16.msra.mxu2 %v24150_v37 }
 0x2b6   : > { %5146 = vmatmul.bf16.gmra.mxu1 %v26633_v54  ;;  %5296 = vmatpush.bf16.msra.mxu0 %v24132_v9  ;;  %v26685_v25 = vsel %vm2956_vm3, %v3650_v53, %v3654_v52  ;;  %v24129_v53 = vld [vmem:[%s31042_s3 + $0x310] sm:$0xff] }
 0x2b7   : > { %5363 = vmatpush.bf16.msra.mxu3 %v24158_v49  ;;  %v3200_v49 = vpack.c.b16 %v3196_v0, %v3195_v56  ;;  %v24139_v56 = vld [vmem:[%s31042_s3 + $0x360] sm:$0xff] }
 0x2b8   : > { %5232 = vmatpush.bf16.msrb.mxu1 %v24103_v59 }
 0x2b9   : > { %v3252_v42 = vpop.permute.xlu0 %3251  ;;  %5341 = vmatpush.bf16.msra.mxu2 %v24149_v22 }
 0x2ba   : > { %v3262_v57 = vsel %vm2995_vm4, %v26009_v45, %v3252_v42  ;;  %5297 = vmatpush.bf16.msra.mxu0 %v24131_v63 }
 0x2bb   : > { %v3275_v15 = vunpack.c.l.b16 %v3262_v57  ;;  %v3276_v27 = vunpack.c.h.b16 %v3262_v57  ;;  %5364 = vmatpush.bf16.msra.mxu3 %v24157_v41  ;;  %v24140_v57 = vld [vmem:[%s31042_s3 + $0x368] sm:$0xff]  ;;  %v3710_v41 = vshll.u32 %v26169_v48, 16 }
 0x2bc   : > { %5317 = vmatpush.bf16.msra.mxu1 %v24142_v47  ;;  %v24130_v47 = vld [vmem:[%s31042_s3 + $0x318] sm:$0xff] }
 0x2bd   : > { %v3282_v1 = vpack.c.b16 %v3275_v15, %v3275_v15  ;;  %v3283_v45 = vpack.c.b16 %v3276_v27, %v3276_v27  ;;  %5342 = vmatpush.bf16.msra.mxu2 %v24148_v11  ;;  %v24147_v15 = vld [vmem:[%s31042_s3 + $0x3a0] sm:$0xff]  ;;  %v3712_v63 = vrot.slane %v3710_v41, 1  ;;  %v24145_v41 = vld [vmem:[%s31042_s3 + $0x390] sm:$0xff] }
 0x2be   : > { %v24155_v27 = vld [vmem:[%s31042_s3 + $0x3e0] sm:$0xff]  ;;  %5298 = vmatpush.bf16.msra.mxu0 %v24130_v47 }
 0x2bf   : > { %v3295_v37 = vrot.slane %v3282_v1, 6  ;;  %v3298_v6 = vrot.slane %v3283_v45, 6  ;;  %5365 = vmatpush.bf16.msra.mxu3 %v24156_v29  ;;  %v24146_v1 = vld [vmem:[%s31042_s3 + $0x398] sm:$0xff]  ;;  %v3660_v45 = vshll.u32 %v26677_v19, 16  ;;  %v25245_v29 = vld [vmem:[#allocation2 + $0x20] sm:$0xff]  }
 0x2c0   : > { %5318 = vmatpush.bf16.msra.mxu1 %v24141_v30 }
 0x2c1   : > { %5210 = vmatmul.bf16.vlgmr.msrb.gmra.mxu0 %v26685_v25  ;;  %v3296_v40 = vsel %vm26465_vm15, %v3294_v24, %v3295_v37  ;;  %v3297_v59 = vrot.slane %v3295_v37, 4  ;;  %v3254_v28 = vpop.permute.xlu0 %3253  ;;  %v3300_v0 = vrot.slane %v3298_v6, 4  ;;  %5343 = vmatpush.bf16.msra.mxu2 %v24147_v15  ;;  %v31266_v37 = vshrl.u32 %v26334_v43, 16 }
 0x2c2   : > { %5197 = vmatmul.bf16.gmra.mxu3 %v26677_v19  ;;  %3319 = vst [vmem:[#allocation2 + $0x3c] sm:$0xf] %v3296_v40  ;;  %v3265_v7 = vsel %vm2995_vm4, %v3200_v49, %v3254_v28  ;;  %5299 = vmatpush.bf16.msra.mxu0 %v24129_v53  ;;  %v3708_v40 = vshrl.u32 %v25245_v29, 16  ;;  %v3487_v28 = vld [vmem:[#allocation2 + $0x30] sm:$0x1] }
 0x2c3   : > { %v3299_v42 = vsel %vm26465_vm15, %v3297_v59, %v3298_v6  ;;  %v3277_v32 = vunpack.c.l.b16 %v3265_v7  ;;  %v3278_v22 = vunpack.c.h.b16 %v3265_v7  ;;  %5366 = vmatpush.bf16.msra.mxu3 %v24155_v27  ;;  %v3658_v49 = vor.u32 %v31266_v37, %v3654_v52  ;;  %v24127_v52 = vld [vmem:[%s31042_s3 + $0x300] sm:$0xff]  ;;  %v24153_v27 = vld [vmem:[%s31042_s3 + $0x3d0] sm:$0xff] }
 0x2c4   : > { %5174 = vmatmul.bf16.gmra.mxu2 %v26581_v36  ;;  %3320 = vst [vmem:[#allocation2 + $0x40] sm:$0xf] %v3299_v42  ;;  %5319 = vmatpush.bf16.msra.mxu1 %v24140_v57  ;;  %v31267_v59 = vshll.u32 %v26176_v8, 16  ;;  %v3662_v7 = vrot.slane %v3660_v45, 1  ;;  %v3713_v47 = vor.u32 %v3712_v63, %v3708_v40  ;;  %v24154_v42 = vld [vmem:[%s31042_s3 + $0x3d8] sm:$0xff]  ;;  %v24137_v53 = vld [vmem:[%s31042_s3 + $0x350] sm:$0xff] }
 0x2c5   : > { %v3284_v12 = vpack.c.b16 %v3277_v32, %v3277_v32  ;;  %v26704_v9 = vpack.c.b16 %v3278_v22, %v3278_v22  ;;  %5344 = vmatpush.bf16.msra.mxu2 %v24146_v1  ;;  %v24138_v32 = vld [vmem:[%s31042_s3 + $0x358] sm:$0xff]  ;;  %v26774_v1 = vpop.f32.mrf.mxu0  ;;  %v31271_v63 = vshrl.u32 %v26176_v8, 16  ;;  %v26787_v37 = vshrl.u32 %v26677_v19, 16  ;;  %v24151_v40 = vld [vmem:[%s31042_s3 + $0x3c0] sm:$0xff] }
 0x2c6   : > { %5151 = vmatmul.bf16.gmra.mxu1 %v26619_v20  ;;  %v3717_v6 = vrot.slane %v31267_v59, 1  ;;  %5300 = vmatpush.bf16.msra.mxu0 %v24128_v5  ;;  %v26748_v22 = vsel %vm2956_vm3, %v3658_v49, %v3662_v7  ;;  %v24135_v59 = vld [vmem:[%s31042_s3 + $0x340] sm:$0xff] }
 0x2c7   : > { %v3301_v48 = vrot.slane %v3284_v12, 6  ;;  %v31088_v11 = vrot.slane %v26704_v9, 6  ;;  %v3700_v12 = vunpack.c.l.b16 %v3487_v28  ;;  %5367 = vmatpush.bf16.msra.mxu3 %v24154_v42 }
 0x2c8   : > { %5320 = vmatpush.bf16.msra.mxu1 %v24139_v56  ;;  %v26751_v57 = vsel %vm2956_vm3, %v3713_v47, %v3717_v6  ;;  %v3721_v5 = vor.u32 %v31271_v63, %v3717_v6  ;;  %v24166_v6 = vld [vmem:[%s31042_s3 + $0x438] sm:$0xff]  ;;  %v3739_v63 = vrot.slane %v26369_v62, 3 }
 0x2c9   : > { %v3302_v23 = vsel %vm26465_vm15, %v3300_v0, %v3301_v48  ;;  %v3303_v30 = vrot.slane %v3301_v48, 4  ;;  %31268 = vst [vmem:[#allocation39_spill] sm:$0xff] %v26751_v57  ;;  %5345 = vmatpush.bf16.msra.mxu2 %v24145_v41  ;;  %v26758_v15 = vpack.c.b16 %v3700_v12, %v3700_v12  ;;  %v24144_v0 = vld [vmem:[%s31042_s3 + $0x388] sm:$0xff]  ;;  %v10189_v47 = vld [vmem:[#allocation2 + $0x3c] sm:$0x8] }
 0x2ca   : > { %3321 = vst [vmem:[#allocation2 + $0x44] sm:$0xf] %v3302_v23  ;;  %5301 = vmatpush.bf16.msra.mxu0 %v24127_v52  ;;  %v24152_v48 = vld [vmem:[%s31042_s3 + $0x3c8] sm:$0xff]  ;;  %v1901_v52 = vmax.f32 %v26041_v16, %v26059_v21  ;;  %v10433_v12 = vunpack.c.l.b16 %v10189_v47  ;;  %v24182_v47 = vld [vmem:[%s31042_s3 + $0x4b8] sm:$0xff] }
 0x2cb   : > { %v3305_v24 = vsel %vm26465_vm15, %v3303_v30, %v31088_v11  ;;  %31269 = vst [vmem:[#allocation40_spill] sm:$0xff] %v26758_v15  ;;  %5368 = vmatpush.bf16.msra.mxu3 %v24153_v27  ;;  %v3723_v56 = vshll.u32 %v26758_v15, 16  ;;  %v24136_v23 = vld [vmem:[%s31042_s3 + $0x348] sm:$0xff]  ;;  %v24190_v62 = vld [vmem:[%s31042_s3 + $0x4f8] sm:$0xff] }
 0x2cc   : > { %3322 = vst [vmem:[#allocation2 + $0x48] sm:$0xf] %v3305_v24  ;;  %5321 = vmatpush.bf16.msra.mxu1 %v24138_v32  ;;  %v24143_v24 = vld [vmem:[%s31042_s3 + $0x380] sm:$0xff] }
 0x2cd   : > { %5346 = vmatpush.bf16.msra.mxu2 %v24144_v0  ;;  %v3725_v45 = vrot.slane %v3723_v56, 1  ;;  %v26813_v41 = vpop.f32.mrf.mxu0 }
 0x2ce   : > { %5386 = vmatpush.bf16.msrb.mxu0 %v24166_v6 }
 0x2cf   : > { %5369 = vmatpush.bf16.msra.mxu3 %v24152_v48  ;;  %v2331_v48 = vmax.f32 %v1901_v52, %v26073_v4  ;;  %v24165_v52 = vld [vmem:[%s31042_s3 + $0x430] sm:$0xff] }
 0x2d0   : > { %5322 = vmatpush.bf16.msra.mxu1 %v24137_v53 }
 0x2d1   : > { %5215 = vmatmul.bf16.gmra.mxu0 %v26748_v22  ;;  %v26779_v30 = vld [vmem:[#allocation2 + $0x40] sm:$0xff]   ;;  %5347 = vmatpush.bf16.msra.mxu2 %v24143_v24 }
 0x2d2   : > { %5279 = vmatmul.bf16.vlgmr.msrb.gmra.mxu3 %v26751_v57  ;;  %31270 = vst [vmem:[#allocation41_spill] sm:$0xff] %v26779_v30  ;;  %v25202_v28 = vunpack.c.h.b16 %v26779_v30  ;;  %v31087_v42 = vunpack.c.l.b16 %v26779_v30  ;;  %5387 = vmatpush.bf16.msrb.mxu0 %v24165_v52 }
 0x2d3   : > { %v10184_v49 = vld [vmem:[#allocation2 + $0x48] sm:$0xf]  ;;  %5370 = vmatpush.bf16.msra.mxu3 %v24151_v40  ;;  %v31277_v40 = vld [vmem:[#allocation6_spill] sm:$0xff] }
 0x2d4   : > { %5256 = vmatmul.bf16.vlgmr.msrb.gmra.mxu2 %v25245_v29  ;;  %5323 = vmatpush.bf16.msra.mxu1 %v24136_v23  ;;  %v26790_v29 = vsel %vm2956_vm3, %v3721_v5, %v3725_v45  ;;  %v26804_v7 = vunpack.c.l.b16 %v10184_v49  ;;  %v26820_v56 = vpack.c.b16 %v31087_v42, %v10433_v12  ;;  %v31089_v5 = vrot.slane %v26334_v43, 3 }
 0x2d5   : > { %31272 = vst [vmem:[#allocation42_spill] sm:$0xff] %v26790_v29  ;;  %6585 = vmatpush.bf16.msrb.mxu2 %v24182_v47  ;;  %v31285_v47 = vld [vmem:[#allocation10_spill] sm:$0xff] }
 0x2d6   : > { %5233 = vmatmul.bf16.vlgmr.msrb.gmra.mxu1 %v26363_v18  ;;  %31273 = vst [vmem:[#allocation43_spill] sm:$0xff] %v26804_v7  ;;  %v26808_v32 = vpack.c.b16 %v26804_v7, %v25202_v28  ;;  %v10446_v16 = vshrl.u32 %v26820_v56, 16  ;;  %v10449_v21 = vshll.u32 %v26820_v56, 16  ;;  %v31279_v28 = vld [vmem:[#allocation12_spill] sm:$0xff] }
 0x2d7   : > { %31275 = vst [vmem:[#allocation45_spill] sm:$0xff] %v26820_v56  ;;  %v2761_v4 = vmax.f32 %v2331_v48, %v31279_v28  ;;  %v26851_v48 = vshrl.u32 %v26758_v15, 16  ;;  %6608 = vmatpush.bf16.msrb.mxu3 %v24190_v62  ;;  %v31284_v28 = vld [vmem:[#allocation11_spill] sm:$0xff] }
 0x2d8   : > { %5324 = vmatpush.bf16.msra.mxu1 %v24135_v59  ;;  %31274 = vst [vmem:[#allocation44_spill] sm:$0xff] %v26808_v32  ;;  %v31086_v27 = vshll.u32 %v26808_v32, 16  ;;  %v31085_v53 = vshrl.u32 %v26808_v32, 16  ;;  %v10448_v23 = vrot.slane %v10446_v16, 3  ;;  %v10451_v24 = vrot.slane %v10449_v21, 4  ;;  %v31278_v59 = vld [vmem:[#allocation5_spill] sm:$0xff] }
 0x2d9   : > { %v1899_v6 = vmax.f32 %v31278_v59, %v31277_v40  ;;  %31280 = vst [vmem:[#allocation6_spill] sm:$0xff] %v26851_v48  ;;  %v24164_v21 = vld [vmem:[%s31042_s3 + $0x428] sm:$0xff]  ;;  %v26862_v40 = vsel %vm1341_vm0, %v3739_v63, %v31089_v5  ;;  %v31286_v52 = vmax.f32 %v31284_v28, %v31285_v47 }
 0x2da   : > { %v10453_v0 = vrot.slane %v31085_v53, 3  ;;  %v10454_v45 = vrot.slane %v31086_v27, 4  ;;  %v10452_v16 = vor.u32 %v10451_v24, %v10448_v23  ;;  %31281 = vst [vmem:[#allocation5_spill] sm:$0xff] %v26862_v40  ;;  %v31283_v24 = vld [vmem:[#allocation7_spill] sm:$0xff]  ;;  %v2814_v27 = vadd.f32 %v26489_v26, %v2761_v4  ;;  %5388 = vmatpush.bf16.msrb.mxu0 %v24164_v21  ;;  %v24189_v4 = vld [vmem:[%s31042_s3 + $0x4f0] sm:$0xff]  ;;  %v24163_v21 = vld [vmem:[%s31042_s3 + $0x420] sm:$0xff] }
 0x2db   : > { %v2329_v59 = vmax.f32 %v1899_v6, %v31283_v24  ;;  %v2813_v53 = vadd.f32 %v26489_v26, %v31286_v52  ;;  %6609 = vmatpush.bf16.msrb.mxu3 %v24189_v4  ;;  %v24188_v52 = vld [vmem:[%s31042_s3 + $0x4e8] sm:$0xff]  ;;  %v24179_v4 = vld [vmem:[%s31042_s3 + $0x4a0] sm:$0xff] }
 0x2dc   : > { %v26831_v49 = vor.u32 %v10454_v45, %v10453_v0  ;;  %v24174_v0 = vld [vmem:[%s31042_s3 + $0x478] sm:$0xff]  ;;  %v24181_v45 = vld [vmem:[%s31042_s3 + $0x4b0] sm:$0xff]  ;;  %v2863_v24 = vmax.f32 %v2814_v27, 0.0  ;;  %v26958_v56 = vld [vmem:[#allocation2 + $0x8] sm:$0xff]  }
 0x2dd   : > { %5409 = vmatpush.bf16.msrb.mxu1 %v24174_v0  ;;  %6586 = vmatpush.bf16.msrb.mxu2 %v24181_v45  ;;  %v31287_v0 = vld [vmem:[#allocation8_spill] sm:$0xff]  ;;  %v2862_v6 = vmax.f32 %v2813_v53, 0.0 }
 0x2de   : > { %31276 = vst [vmem:[#allocation46_spill] sm:$0xff] %v26831_v49  ;;  %v26866_v23 = vsel %vm3611_vm12, %v10452_v16, %v26831_v49  ;;  %v2759_v16 = vmax.f32 %v2329_v59, %v31287_v0  ;;  %v24173_v45 = vld [vmem:[%s31042_s3 + $0x470] sm:$0xff]  ;;  %5389 = vmatpush.bf16.msrb.mxu0 %v24163_v21  ;;  %v24162_v59 = vld [vmem:[%s31042_s3 + $0x418] sm:$0xff]  ;;  %v2912_v42 = vpack.c.bf16 %v2863_v24, %v2863_v24 }
 0x2df   : > { %31282 = vst [vmem:[#allocation12_spill] sm:$0xff] %v26866_v23  ;;  %v2911_v0 = vpack.c.bf16 %v2862_v6, %v2862_v6  ;;  %6610 = vmatpush.bf16.msrb.mxu3 %v24188_v52  ;;  %v24161_v24 = vld [vmem:[%s31042_s3 + $0x410] sm:$0xff]  ;;  %v24178_v52 = vld [vmem:[%s31042_s3 + $0x498] sm:$0xff] }
 0x2e1   : > { %5220 = vmatmul.bf16.gmra.mxu0 %v26787_v37  ;;  %5410 = vmatpush.bf16.msrb.mxu1 %v24173_v45  ;;  %v24187_v45 = vld [vmem:[%s31042_s3 + $0x4e0] sm:$0xff] }
 0x2e2   : > { %5284 = vmatmul.bf16.gmra.mxu3 %v26790_v29  ;;  %5390 = vmatpush.bf16.msrb.mxu0 %v24162_v59  ;;  %v24171_v59 = vld [vmem:[%s31042_s3 + $0x460] sm:$0xff] }
 0x2e3   : > { %6611 = vmatpush.bf16.msrb.mxu3 %v24187_v45 }
 0x2e4   : > { %5261 = vmatmul.bf16.gmra.mxu2 %v26176_v8 }
 0x2e6   : > { %5238 = vmatmul.bf16.gmra.mxu1 %v26427_v38  ;;  %5391 = vmatpush.bf16.msrb.mxu0 %v24161_v24 }
 0x2ee   : > { %v26845_v12 = vpop.f32.mrf.mxu0 }
 0x2f1   : > { %5302 = vmatmul.bf16.vlgmr.msra.gmra.mxu0 %v26862_v40 }
 0x2f2   : > { %5289 = vmatmul.bf16.gmra.mxu3 %v26851_v48 }
 0x2f3   : > { %v5050_v63 = vpop.f32.mrf.mxu1 }
 0x2f4   : > { %5266 = vmatmul.bf16.gmra.mxu2 %v26758_v15  ;;  %v5051_v28 = vadd.f32 %v5050_v63, %v26774_v1  ;;  %v24180_v1 = vld [vmem:[%s31042_s3 + $0x4a8] sm:$0xff]  ;;  %v2812_v63 = vadd.f32 %v26489_v26, %v2759_v16  ;;  %v3783_v16 = vrot.slane %v26400_v50, 3 }
 0x2f5   : > { %v5096_v62 = vpop.f32.mrf.mxu3  ;;  %6587 = vmatpush.bf16.msrb.mxu2 %v24180_v1  ;;  %v3334_v1 = vunpack.c.l.b16 %v2911_v0  ;;  %v31288_v50 = vld [vmem:[#allocation23_spill] sm:$0xff]  ;;  %v31292_v0 = vrot.slane %v26176_v8, 3 }
 0x2f6   : > { %v26879_v47 = vpop.f32.mrf.mxu0  ;;  %5243 = vmatmul.bf16.gmra.mxu1 %v26390_v34 }
 0x2f7   : > { %v5073_v53 = vpop.f32.mrf.mxu2 }
 0x2f8   : > { %v5074_v27 = vadd.f32 %v5073_v53, %v5051_v28  ;;  %v24172_v28 = vld [vmem:[%s31042_s3 + $0x468] sm:$0xff] }
 0x2f9   : > { %5411 = vmatpush.bf16.msrb.mxu1 %v24172_v28  ;;  %6588 = vmatpush.bf16.msrb.mxu2 %v24179_v4  ;;  %v26938_v28 = vsel %vm1341_vm0, %v3783_v16, %v31292_v0  ;;  %v24160_v4 = vld [vmem:[%s31042_s3 + $0x408] sm:$0xff]  ;;  %v24177_v16 = vld [vmem:[%s31042_s3 + $0x490] sm:$0xff] }
 0x2fa   : > { %v26907_v21 = vadd.f32 %v5096_v62, %v5074_v27  ;;  %v2861_v62 = vmax.f32 %v2812_v63, 0.0  ;;  %v3335_v27 = vunpack.c.l.b16 %v2912_v42  ;;  %v31290_v42 = vrot.slane %v26334_v43, 3  ;;  %31293 = vst [vmem:[#allocation10_spill] sm:$0xff] %v26938_v28  ;;  %5392 = vmatpush.bf16.msrb.mxu0 %v24160_v4 }
 0x2fb   : > { %v5052_v53 = vpop.f32.mrf.mxu1  ;;  %v26973_v4 = vpack.c.b16 %v26479_v39, %v26479_v39 }
 0x2fc   : > { %v5053_v11 = vadd.f32 %v5052_v53, %v26813_v41  ;;  %v26921_v53 = vrot.slane %v31288_v50, 3  ;;  %v2910_v50 = vpack.c.bf16 %v2861_v62, %v2861_v62  ;;  %v24170_v62 = vld [vmem:[%s31042_s3 + $0x458] sm:$0xff] }
 0x2fd   : > { %v5098_v5 = vpop.f32.mrf.mxu3  ;;  %5412 = vmatpush.bf16.msrb.mxu1 %v24171_v59  ;;  %6589 = vmatpush.bf16.msrb.mxu2 %v24178_v52  ;;  %v31294_v52 = vld [vmem:[#allocation16_spill] sm:$0xff] }
 0x2fe   : > { %v26918_v41 = vpop.f32.mrf.mxu0  ;;  %31289 = vst [vmem:[#allocation7_spill] sm:$0xff] %v26921_v53  ;;  %v26933_v63 = vsel %vm1341_vm0, %v31290_v42, %v26921_v53  ;;  %v3333_v59 = vunpack.c.l.b16 %v2910_v50 }
 0x2ff   : > { %v5075_v6 = vpop.f32.mrf.mxu2  ;;  %31291 = vst [vmem:[#allocation11_spill] sm:$0xff] %v26933_v63 }
 0x300   : > { %v5076_v49 = vadd.f32 %v5075_v6, %v5053_v11  ;;  %v3340_v11 = vpack.c.b16 %v3335_v27, %v3334_v1  ;;  %v24186_v6 = vld [vmem:[%s31042_s3 + $0x4d8] sm:$0xff] }
 0x301   : > { %5307 = vmatmul.bf16.gmra.mxu0 %v26933_v63  ;;  %v3393_v42 = vpop.permute.xlu2 %3392  ;;  %6612 = vmatpush.bf16.msrb.mxu3 %v24186_v6  ;;  %v31296_v6 = vld [vmem:[#allocation4_spill] sm:$0xff] }
 0x302   : > { %5371 = vmatmul.bf16.vlgmr.msra.gmra.mxu3 %v26938_v28  ;;  %v26948_v23 = vadd.f32 %v5098_v5, %v5076_v49  ;;  %v3403_v45 = vsel %vm2995_vm4, %v3340_v11, %v3393_v42  ;;  %v24159_v49 = vld [vmem:[%s31042_s3 + $0x400] sm:$0xff]  ;;  %v31295_v11 = vld [vmem:[#allocation15_spill] sm:$0xff]  ;;  %6590 = vmatpush.bf16.msrb.mxu2 %v24177_v16 }
 0x303   : > { %v5055_v24 = vpop.f32.mrf.mxu1  ;;  %v3416_v27 = vunpack.c.l.b16 %v3403_v45  ;;  %v3417_v0 = vunpack.c.h.b16 %v3403_v45  ;;  %v1903_v42 = vmax.f32 %v31295_v11, %v31294_v52  ;;  %5413 = vmatpush.bf16.msrb.mxu1 %v24170_v62  ;;  %5393 = vmatpush.bf16.msrb.mxu0 %v24159_v49  ;;  %v31299_v52 = vld [vmem:[#allocation17_spill] sm:$0xff] }
 0x304   : > { %v5056_v1 = vadd.f32 %v5055_v24, %v26845_v12  ;;  %5348 = vmatmul.bf16.vlgmr.msra.gmra.mxu2 %v26958_v56  ;;  %v31300_v11 = vld [vmem:[#allocation9_spill] sm:$0xff] }
 0x305   : > { %v5101_v5 = vpop.f32.mrf.mxu3  ;;  %v26966_v32 = vpack.c.b16 %v3416_v27, %v3416_v27  ;;  %v26968_v12 = vpack.c.b16 %v3417_v0, %v3417_v0  ;;  %v3201_v27 = vpack.c.b16 %v31296_v6, %v31296_v6  ;;  %v2333_v16 = vmax.f32 %v1903_v42, %v31299_v52  ;;  %v24191_v0 = vld [vmem:[%s31042_s3 + $0x500] sm:$0xff] }
 0x306   : > { %v5039_v24 = vpop.f32.mrf.mxu0  ;;  %5325 = vmatmul.bf16.vlgmr.msra.gmra.mxu1 %v26461_v35  ;;  %v26991_v6 = vrot.slane %v26973_v4, 3 }
 0x307   : > { %v5078_v45 = vpop.f32.mrf.mxu2  ;;  %v3435_v50 = vrot.slane %v26966_v32, 7  ;;  %v3339_v24 = vpack.c.b16 %v3333_v59, %v31300_v11  ;;  %v31108_v39 = vrot.slane %v26968_v12, 7 }
 0x308   : > { %v5079_v7 = vadd.f32 %v5078_v45, %v5056_v1  ;;  %31301 = vst [vmem:[#allocation8_spill] sm:$0xff] %v26991_v6 }
 0x309   : > { %v3437_v30 = vrot.slane %v3435_v50, 4  ;;  %v3391_v62 = vpop.permute.xlu1 %3390  ;;  %v3256_v28 = vpop.permute.xlu2 %3255 }
 0x30a   : > { %v26986_v32 = vadd.f32 %v5101_v5, %v5079_v7  ;;  %v3400_v49 = vsel %vm2995_vm4, %v3339_v24, %v3391_v62  ;;  %v3268_v45 = vsel %vm2995_vm4, %v3201_v27, %v3256_v28  ;;  %v31302_v7 = vld [vmem:[#allocation18_spill] sm:$0xff]  ;;  %v24185_v28 = vld [vmem:[%s31042_s3 + $0x4d0] sm:$0xff] }
 0x30b   : > { %v5057_v1 = vpop.f32.mrf.mxu1  ;;  %v3439_v59 = vsel %vm26979_vm5, %v3437_v30, %v31108_v39  ;;  %v3414_v52 = vunpack.c.l.b16 %v3400_v49  ;;  %v3415_v11 = vunpack.c.h.b16 %v3400_v49  ;;  %v2763_v5 = vmax.f32 %v2333_v16, %v31302_v7  ;;  %6613 = vmatpush.bf16.msrb.mxu3 %v24185_v28  ;;  %v24176_v16 = vld [vmem:[%s31042_s3 + $0x488] sm:$0xff] }
 0x30c   : > { %v5058_v42 = vadd.f32 %v5057_v1, %v26879_v47  ;;  %3460 = vst [vmem:[#allocation2 + $0x5c] sm:$0xf] %v3439_v59  ;;  %v3279_v29 = vunpack.c.l.b16 %v3268_v45  ;;  %v24169_v47 = vld [vmem:[%s31042_s3 + $0x450] sm:$0xff]  ;;  %v24184_v1 = vld [vmem:[%s31042_s3 + $0x4c8] sm:$0xff]  ;;  %v31308_v39 = vrot.slane %v26704_v9, 6  ;;  %6591 = vmatpush.bf16.msrb.mxu2 %v24176_v16 }
 0x30d   : > { %v5103_v48 = vpop.f32.mrf.mxu3  ;;  %v3421_v27 = vpack.c.b16 %v3414_v52, %v3414_v52  ;;  %v3422_v24 = vpack.c.b16 %v3415_v11, %v3415_v11  ;;  %v31305_v52 = vld [vmem:[#allocation14_spill] sm:$0xff]  ;;  %v31306_v11 = vld [vmem:[#allocation13_spill] sm:$0xff]  ;;  %5414 = vmatpush.bf16.msrb.mxu1 %v24169_v47 }
 0x30e   : > { %v5119_v62 = vpop.f32.mrf.mxu0  ;;  %v3286_v63 = vpack.c.b16 %v3279_v29, %v3279_v29  ;;  %v31307_v7 = vmax.f32 %v31305_v52, %v31306_v11  ;;  %v3306_v57 = vrot.slane %v31308_v39, 4 }
 0x30f   : > { %v27003_v15 = vadd.f32 %v5119_v62, %v26907_v21  ;;  %v5080_v30 = vpop.f32.mrf.mxu2  ;;  %v17584_v49 = vrot.slane %v3421_v27, 11  ;;  %v3432_v45 = vrot.slane %v3422_v24, 7  ;;  %v31303_v21 = vrot.slane %v26176_v8, 3  ;;  %6614 = vmatpush.bf16.msrb.mxu3 %v24184_v1 }
 0x310   : > { %v5081_v29 = vadd.f32 %v5080_v30, %v5058_v42  ;;  %v2815_v28 = vadd.f32 %v26489_v26, %v31307_v7  ;;  %v2816_v62 = vadd.f32 %v26489_v26, %v2763_v5  ;;  %v3307_v40 = vrot.slane %v3286_v63, 6  ;;  %v24198_v42 = vld [vmem:[%s31042_s3 + $0x538] sm:$0xff]  ;;  %v3324_v30 = vld [vmem:[#allocation2 + $0x50] sm:$0x1]  ;;  %v24175_v26 = vld [vmem:[%s31042_s3 + $0x480] sm:$0xff] }
 0x311   : > { %v27018_v59 = vsel %vm1341_vm0, %v31303_v21, %v26991_v6  ;;  %5312 = vmatmul.bf16.gmra.mxu0 %v26921_v53  ;;  %v3433_v27 = vsel %vm26979_vm5, %v17584_v49, %v3432_v45  ;;  %v3434_v24 = vrot.slane %v3432_v45, 4  ;;  %v24168_v5 = vld [vmem:[%s31042_s3 + $0x448] sm:$0xff]  ;;  %6592 = vmatpush.bf16.msrb.mxu2 %v24175_v26  ;;  %v24202_v45 = vld [vmem:[%s31042_s3 + $0x558] sm:$0xff] }
 0x312   : > { %31304 = vst [vmem:[#allocation23_spill] sm:$0xff] %v27018_v59  ;;  %5376 = vmatmul.bf16.gmra.mxu3 %v27018_v59  ;;  %v27034_v21 = vadd.f32 %v5103_v48, %v5081_v29  ;;  %v3308_v9 = vsel %vm26465_vm15, %v3306_v57, %v3307_v40  ;;  %v3309_v63 = vrot.slane %v3307_v40, 4  ;;  %v24183_v48 = vld [vmem:[%s31042_s3 + $0x4c0] sm:$0xff]  ;;  %6631 = vmatpush.bf16.msra.mxu0 %v24198_v42  ;;  %v24214_v40 = vld [vmem:[%s31042_s3 + $0x5b8] sm:$0xff]  ;;  %v2864_v1 = vmax.f32 %v2815_v28, 0.0 }
 0x313   : > { %3458 = vst [vmem:[#allocation2 + $0x54] sm:$0xf] %v3433_v27  ;;  %v5060_v39 = vpop.f32.mrf.mxu1  ;;  %v3436_v47 = vsel %vm26979_vm5, %v3434_v24, %v3435_v50  ;;  %v2865_v49 = vmax.f32 %v2816_v62, 0.0  ;;  %v24222_v50 = vld [vmem:[%s31042_s3 + $0x5f8] sm:$0xff]  ;;  %5415 = vmatpush.bf16.msrb.mxu1 %v24168_v5  ;;  %6615 = vmatpush.bf16.msrb.mxu3 %v24183_v48  ;;  %v24167_v28 = vld [vmem:[%s31042_s3 + $0x440] sm:$0xff]  ;;  %v24196_v27 = vld [vmem:[%s31042_s3 + $0x528] sm:$0xff] }
 0x314   : > { %3323 = vst [vmem:[#allocation2 + $0x4c] sm:$0xf] %v3308_v9  ;;  %v5061_v16 = vadd.f32 %v5060_v39, %v26918_v41  ;;  %5353 = vmatmul.bf16.gmra.mxu2 %v31309_v10  ;;  %v3325_v29 = vsel %vm26158_vm10, %v3309_v63, %v3324_v30  ;;  %v24197_v41 = vld [vmem:[%s31042_s3 + $0x530] sm:$0xff]  ;;  %v24206_v42 = vld [vmem:[%s31042_s3 + $0x578] sm:$0xff] }
 0x315   : > { %v5106_v57 = vpop.f32.mrf.mxu3  ;;  %3459 = vst [vmem:[#allocation2 + $0x58] sm:$0xf] %v3436_v47  ;;  %6677 = vmatpush.bf16.msra.mxu2 %v24214_v40  ;;  %v2914_v24 = vpack.c.bf16 %v2865_v49, %v2865_v49  ;;  %v24213_v30 = vld [vmem:[%s31042_s3 + $0x5b0] sm:$0xff]  ;;  %v3490_v63 = vld [vmem:[#allocation2 + $0x18] sm:$0x1]  ;;  %v24195_v49 = vld [vmem:[%s31042_s3 + $0x520] sm:$0xff] }
 0x316   : > { %3326 = vst [vmem:[#allocation2 + $0x50] sm:$0x1] %v3325_v29  ;;  %v5121_v52 = vpop.f32.mrf.mxu0  ;;  %5330 = vmatmul.bf16.gmra.mxu1 %v26450_v51  ;;  %6632 = vmatpush.bf16.msra.mxu0 %v24197_v41  ;;  %v24221_v5 = vld [vmem:[%s31042_s3 + $0x5f0] sm:$0xff]  ;;  %v3772_v40 = vunpack.c.l.b16 %v3490_v63 }
 0x317   : > { %v27064_v11 = vadd.f32 %v5121_v52, %v26948_v23  ;;  %v5083_v7 = vpop.f32.mrf.mxu2  ;;  %v2913_v23 = vpack.c.bf16 %v2864_v1, %v2864_v1  ;;  %6700 = vmatpush.bf16.msra.mxu3 %v24222_v50  ;;  %5416 = vmatpush.bf16.msrb.mxu1 %v24167_v28  ;;  %v3337_v47 = vunpack.c.l.b16 %v2914_v24  ;;  %v24205_v29 = vld [vmem:[%s31042_s3 + $0x570] sm:$0xff]  ;;  %v24212_v52 = vld [vmem:[%s31042_s3 + $0x5a8] sm:$0xff]  ;;  %v24194_v28 = vld [vmem:[%s31042_s3 + $0x518] sm:$0xff]  ;;  %v3843_v24 = vshrl.u32 %v26973_v4, 16 }
 0x318   : > { %v5084_v62 = vadd.f32 %v5083_v7, %v5061_v16  ;;  %v27100_v7 = vpack.c.b16 %v3772_v40, %v3772_v40 }
 0x319   : > { %v3336_v48 = vunpack.c.l.b16 %v2913_v23  ;;  %6678 = vmatpush.bf16.msra.mxu2 %v24213_v30  ;;  %v3846_v30 = vshll.u32 %v26973_v4, 16 }
 0x31a   : > { %v27078_v26 = vadd.f32 %v5106_v57, %v5084_v62  ;;  %6633 = vmatpush.bf16.msra.mxu0 %v24196_v27  ;;  %31311 = vst [vmem:[#allocation16_spill] sm:$0xff] %v27100_v7  ;;  %v31312_v62 = vld [vmem:[#allocation29_spill] sm:$0xff] }
 0x31b   : > { %v5062_v9 = vpop.f32.mrf.mxu1  ;;  %6654 = vmatpush.bf16.msra.mxu1 %v24206_v42  ;;  %6701 = vmatpush.bf16.msra.mxu3 %v24221_v5  ;;  %v3341_v41 = vpack.c.b16 %v3337_v47, %v3336_v48  ;;  %v3342_v42 = vpack.c.b16 %v31312_v62, %v31312_v62  ;;  %v24204_v47 = vld [vmem:[%s31042_s3 + $0x568] sm:$0xff]  ;;  %v24193_v62 = vld [vmem:[%s31042_s3 + $0x510] sm:$0xff] }
 0x31d   : > { %v5108_v39 = vpop.f32.mrf.mxu3  ;;  %6679 = vmatpush.bf16.msra.mxu2 %v24212_v52 }
 0x31e   : > { %v5124_v16 = vpop.f32.mrf.mxu0  ;;  %6634 = vmatpush.bf16.msra.mxu0 %v24195_v49 }
 0x31f   : > { %v27084_v1 = vadd.f32 %v5124_v16, %v26986_v32  ;;  %v5085_v57 = vpop.f32.mrf.mxu2  ;;  %v24220_v32 = vld [vmem:[%s31042_s3 + $0x5e8] sm:$0xff]  ;;  %6655 = vmatpush.bf16.msra.mxu1 %v24205_v29 }
 0x320   : > { %6702 = vmatpush.bf16.msra.mxu3 %v24220_v32  ;;  %v27122_v32 = vrot.slane %v3843_v24, 3  ;;  %v24203_v24 = vld [vmem:[%s31042_s3 + $0x560] sm:$0xff] }
 0x321   : > { %5394 = vmatmul.bf16.vlgmr.msrb.gmra.mxu0 %v26530_v58  ;;  %v3395_v50 = vpop.permute.xlu1 %3394 }
 0x322   : > { %5381 = vmatmul.bf16.gmra.mxu3 %v26991_v6  ;;  %v3406_v23 = vsel %vm2995_vm4, %v3341_v41, %v3395_v50  ;;  %v3397_v5 = vpop.permute.xlu0 %3396  ;;  %6635 = vmatpush.bf16.msra.mxu0 %v24194_v28  ;;  %31314 = vst [vmem:[#allocation15_spill] sm:$0xff] %v27122_v32  ;;  %v3848_v50 = vrot.slane %v3846_v30, 4 }
 0x323   : > { %v5142_v27 = vpop.f32.mrf.mxu1  ;;  %v3418_v63 = vunpack.c.l.b16 %v3406_v23  ;;  %v3419_v39 = vunpack.c.h.b16 %v3406_v23  ;;  %v3409_v16 = vsel %vm2995_vm4, %v3342_v42, %v3397_v5  ;;  %6656 = vmatpush.bf16.msra.mxu1 %v24204_v47  ;;  %v24211_v42 = vld [vmem:[%s31042_s3 + $0x5a0] sm:$0xff]  ;;  %v3464_v47 = vld [vmem:[#allocation2 + $0x6c] sm:$0x1] }
 0x324   : > { %v5143_v9 = vadd.f32 %v5142_v27, %v27003_v15  ;;  %5358 = vmatmul.bf16.gmra.mxu2 %v27100_v7  ;;  %v3420_v49 = vunpack.c.l.b16 %v3409_v16  ;;  %v31313_v15 = vrot.slane %v26968_v12, 7 }
 0x325   : > { %v5188_v48 = vpop.f32.mrf.mxu3  ;;  %v3425_v40 = vpack.c.b16 %v3418_v63, %v3418_v63  ;;  %v3426_v57 = vpack.c.b16 %v3419_v39, %v3419_v39  ;;  %6680 = vmatpush.bf16.msra.mxu2 %v24211_v42 }
 0x326   : > { %v5126_v4 = vpop.f32.mrf.mxu0  ;;  %5335 = vmatmul.bf16.gmra.mxu1 %v26271_v14  ;;  %v3440_v29 = vrot.slane %v31313_v15, 4  ;;  %v3427_v12 = vpack.c.b16 %v3420_v49, %v3420_v49  ;;  %6636 = vmatpush.bf16.msra.mxu0 %v24193_v62  ;;  %v24210_v49 = vld [vmem:[%s31042_s3 + $0x598] sm:$0xff] }
 0x327   : > { %v27120_v52 = vadd.f32 %v5126_v4, %v27034_v21  ;;  %v5165_v41 = vpop.f32.mrf.mxu2  ;;  %v3441_v28 = vrot.slane %v3425_v40, 7  ;;  %v3444_v27 = vrot.slane %v3426_v57, 7  ;;  %v24219_v21 = vld [vmem:[%s31042_s3 + $0x5e0] sm:$0xff]  ;;  %v3849_v40 = vor.u32 %v3848_v50, %v27122_v32  ;;  %6657 = vmatpush.bf16.msra.mxu1 %v24203_v24 }
 0x328   : > { %v5166_v23 = vadd.f32 %v5165_v41, %v5143_v9  ;;  %v3447_v5 = vrot.slane %v3427_v12, 7  ;;  %6703 = vmatpush.bf16.msra.mxu3 %v24219_v21  ;;  %v24192_v9 = vld [vmem:[%s31042_s3 + $0x508] sm:$0xff] }
 0x329   : > { %v3442_v30 = vsel %vm26979_vm5, %v3440_v29, %v3441_v28  ;;  %v3443_v63 = vrot.slane %v3441_v28, 4  ;;  %v3446_v39 = vrot.slane %v3444_v27, 4  ;;  %6681 = vmatpush.bf16.msra.mxu2 %v24210_v49  ;;  %v27166_v12 = vsel %vm3611_vm12, %v26511_v44, %v3849_v40  ;;  %v24216_v49 = vld [vmem:[%s31042_s3 + $0x5c8] sm:$0xff] }
 0x32a   : > { %3461 = vst [vmem:[#allocation2 + $0x60] sm:$0xf] %v3442_v30  ;;  %v5189_v57 = vadd.f32 %v5188_v48, %v5166_v23  ;;  %v3449_v29 = vrot.slane %v3447_v5, 4  ;;  %6637 = vmatpush.bf16.msra.mxu0 %v24192_v9  ;;  %v24209_v23 = vld [vmem:[%s31042_s3 + $0x590] sm:$0xff]  ;;  %v25210_v9 = vld [vmem:[#allocation2 + $0x58] sm:$0xff]  }
 0x32b   : > { %v5144_v16 = vpop.f32.mrf.mxu1  ;;  %v3445_v4 = vsel %vm26979_vm5, %v3443_v63, %v3444_v27  ;;  %v3448_v15 = vsel %vm26979_vm5, %v3446_v39, %v3447_v5  ;;  %31315 = vst [vmem:[#allocation4_spill] sm:$0xff] %v27166_v12  ;;  %6658 = vmatpush.bf16.msra.mxu1 %v24202_v45  ;;  %v25247_v63 = vld [vmem:[#allocation2] sm:$0xff]   ;;  %v24217_v39 = vld [vmem:[%s31042_s3 + $0x5d0] sm:$0xff] }
 0x32c   : > { %v5145_v41 = vadd.f32 %v5144_v16, %v27064_v11  ;;  %3462 = vst [vmem:[#allocation2 + $0x64] sm:$0xf] %v3445_v4  ;;  %v3465_v48 = vsel %vm26158_vm10, %v3449_v29, %v3464_v47  ;;  %v24218_v11 = vld [vmem:[%s31042_s3 + $0x5d8] sm:$0xff]  ;;  %v24201_v16 = vld [vmem:[%s31042_s3 + $0x550] sm:$0xff] }
 0x32d   : > { %v5190_v62 = vpop.f32.mrf.mxu3  ;;  %3463 = vst [vmem:[#allocation2 + $0x68] sm:$0xf] %v3448_v15  ;;  %6704 = vmatpush.bf16.msra.mxu3 %v24218_v11  ;;  %6682 = vmatpush.bf16.msra.mxu2 %v24209_v23  ;;  %v10186_v4 = vld [vmem:[#allocation2 + $0x54] sm:$0x8]  ;;  %v27189_v15 = vunpack.c.l.b16 %v25210_v9 }
 0x32e   : > { %v5129_v50 = vpop.f32.mrf.mxu0  ;;  %3466 = vst [vmem:[#allocation2 + $0x6c] sm:$0x1] %v3465_v48  ;;  %6638 = vmatpush.bf16.msra.mxu0 %v24191_v0  ;;  %v10192_v0 = vld [vmem:[#allocation2 + $0x58] sm:$0x8] }
 0x32f   : > { %v27153_v42 = vadd.f32 %v5129_v50, %v27078_v26  ;;  %v5167_v28 = vpop.f32.mrf.mxu2  ;;  %v31316_v26 = vld [vmem:[#allocation24_spill] sm:$0xff]  ;;  %6659 = vmatpush.bf16.msra.mxu1 %v24201_v16  ;;  %31317 = vst [vmem:[#allocation17_spill] sm:$0xff] %v27189_v15  ;;  %v24230_v16 = vld [vmem:[%s31042_s3 + $0x638] sm:$0xff] }
 0x330   : > { %v5168_v27 = vadd.f32 %v5167_v28, %v5145_v41  ;;  %v24200_v28 = vld [vmem:[%s31042_s3 + $0x548] sm:$0xff] }
 0x331   : > { %5399 = vmatmul.bf16.gmra.mxu0 %v27166_v12  ;;  %6705 = vmatpush.bf16.msra.mxu3 %v24217_v39  ;;  %v24215_v39 = vld [vmem:[%s31042_s3 + $0x5c0] sm:$0xff] }
 0x332   : > { %6616 = vmatmul.bf16.vlgmr.msrb.gmra.mxu3 %v31316_v26  ;;  %v27173_v21 = vadd.f32 %v5190_v62, %v5168_v27  ;;  %v10370_v62 = vunpack.c.l.b16 %v10186_v4  ;;  %6723 = vmatpush.bf16.msrb.mxu0 %v24230_v16 }
 0x333   : > { %v5147_v24 = vpop.f32.mrf.mxu1  ;;  %6660 = vmatpush.bf16.msra.mxu1 %v24200_v28 }
 0x334   : > { %v5148_v30 = vadd.f32 %v5147_v24, %v27084_v1  ;;  %6593 = vmatmul.bf16.vlgmr.msrb.gmra.mxu2 %v25247_v63  ;;  %v24208_v1 = vld [vmem:[%s31042_s3 + $0x588] sm:$0xff]  ;;  %v10372_v11 = vpack.c.b16 %v27189_v15, %v10370_v62  ;;  %v24207_v24 = vld [vmem:[%s31042_s3 + $0x580] sm:$0xff] }
 0x335   : > { %v5193_v44 = vpop.f32.mrf.mxu3  ;;  %6683 = vmatpush.bf16.msra.mxu2 %v24208_v1  ;;  %6706 = vmatpush.bf16.msra.mxu3 %v24216_v49  ;;  %v27203_v63 = vld [vmem:[#allocation2 + $0x60] sm:$0xff]   ;;  %v10194_v6 = vld [vmem:[#allocation2 + $0x6c] sm:$0x1] }
 0x336   : > { %v5131_v5 = vpop.f32.mrf.mxu0  ;;  %5417 = vmatmul.bf16.vlgmr.msrb.gmra.mxu1 %v26579_v33  ;;  %31318 = vst [vmem:[#allocation9_spill] sm:$0xff] %v27203_v63  ;;  %v10378_v4 = vshll.u32 %v10372_v11, 16 }
 0x337   : > { %v5170_v47 = vpop.f32.mrf.mxu2  ;;  %v10258_v5 = vunpack.c.l.b16 %v27203_v63 }
 0x338   : > { %v5171_v40 = vadd.f32 %v5170_v47, %v5148_v30  ;;  %v25206_v30 = vunpack.c.h.b16 %v25210_v9  ;;  %v27210_v47 = vunpack.c.h.b16 %v27203_v63  ;;  %v24199_v9 = vld [vmem:[%s31042_s3 + $0x540] sm:$0xff] }
 0x339   : > { %6684 = vmatpush.bf16.msra.mxu2 %v24207_v24  ;;  %6707 = vmatpush.bf16.msra.mxu3 %v24215_v39  ;;  %v10380_v24 = vrot.slane %v10378_v4, 4  ;;  %v24228_v4 = vld [vmem:[%s31042_s3 + $0x628] sm:$0xff] }
 0x33a   : > { %v27191_v29 = vadd.f32 %v5193_v44, %v5171_v40  ;;  %v10375_v40 = vshrl.u32 %v10372_v11, 16  ;;  %v27222_v49 = vpack.c.b16 %v10258_v5, %v25206_v30  ;;  %6661 = vmatpush.bf16.msra.mxu1 %v24199_v9 }
 0x33b   : > { %v5149_v41 = vpop.f32.mrf.mxu1 }
 0x33c   : > { %v5150_v48 = vadd.f32 %v5149_v41, %v27120_v52  ;;  %v10477_v52 = vunpack.c.l.b16 %v10192_v0  ;;  %31320 = vst [vmem:[#allocation18_spill] sm:$0xff] %v27222_v49  ;;  %v27232_v0 = vshll.u32 %v27222_v49, 16  ;;  %v10377_v11 = vrot.slane %v10375_v40, 3  ;;  %v24238_v40 = vld [vmem:[%s31042_s3 + $0x678] sm:$0xff] }
 0x33d   : > { %v5195_v50 = vpop.f32.mrf.mxu3 }
 0x33e   : > { %v5211_v45 = vpop.f32.mrf.mxu0  ;;  %v27224_v62 = vpack.c.b16 %v25206_v30, %v10477_v52  ;;  %31322 = vst [vmem:[#allocation13_spill] sm:$0xff] %v27232_v0  ;;  %v10193_v52 = vld [vmem:[#allocation2 + $0x68] sm:$0xf]  ;;  %6746 = vmatpush.bf16.msrb.mxu1 %v24238_v40  ;;  %v10490_v40 = vunpack.c.l.b16 %v10194_v6 }
 0x33f   : > { %v27198_v27 = vadd.f32 %v5211_v45, %v5189_v57  ;;  %v5172_v23 = vpop.f32.mrf.mxu2  ;;  %v31319_v57 = vld [vmem:[#allocation31_spill] sm:$0xff]  ;;  %v27235_v45 = vshrl.u32 %v27222_v49, 16 }
 0x340   : > { %v5173_v44 = vadd.f32 %v5172_v23, %v5150_v48  ;;  %31321 = vst [vmem:[#allocation14_spill] sm:$0xff] %v27224_v62  ;;  %v10511_v5 = vshrl.u32 %v27224_v62, 16  ;;  %v10514_v9 = vshll.u32 %v27224_v62, 16  ;;  %v24244_v6 = vld [vmem:[%s31042_s3 + $0x6a8] sm:$0xff] }
 0x341   : > { %5404 = vmatmul.bf16.gmra.mxu0 %v27122_v32  ;;  %31323 = vst [vmem:[#allocation20_spill] sm:$0xff] %v27235_v45  ;;  %v10382_v30 = vrot.slane %v27235_v45, 3 }
 0x342   : > { %6621 = vmatmul.bf16.gmra.mxu3 %v31319_v57  ;;  %v27220_v1 = vadd.f32 %v5195_v50, %v5173_v44  ;;  %v24246_v50 = vld [vmem:[%s31042_s3 + $0x6b8] sm:$0xff]  ;;  %v10513_v26 = vrot.slane %v10511_v5, 3 }
 0x343   : > { %v5152_v41 = vpop.f32.mrf.mxu1  ;;  %6769 = vmatpush.bf16.msrb.mxu2 %v24246_v50  ;;  %v10516_v50 = vrot.slane %v10514_v9, 4 }
 0x344   : > { %v5153_v48 = vadd.f32 %v5152_v41, %v27153_v42  ;;  %6598 = vmatmul.bf16.gmra.mxu2 %v26958_v56  ;;  %v24229_v56 = vld [vmem:[%s31042_s3 + $0x630] sm:$0xff]  ;;  %v24254_v42 = vld [vmem:[%s31042_s3 + $0x6f8] sm:$0xff]  ;;  %v10383_v41 = vrot.slane %v27232_v0, 4 }
 0x345   : > { %v5198_v28 = vpop.f32.mrf.mxu3  ;;  %6724 = vmatpush.bf16.msrb.mxu0 %v24229_v56  ;;  %6792 = vmatpush.bf16.msrb.mxu3 %v24254_v42  ;;  %v27264_v56 = vunpack.c.l.b16 %v10193_v52  ;;  %v24253_v52 = vld [vmem:[%s31042_s3 + $0x6f0] sm:$0xff] }
 0x346   : > { %v5213_v23 = vpop.f32.mrf.mxu0  ;;  %5422 = vmatmul.bf16.gmra.mxu1 %v26592_v3  ;;  %v10384_v62 = vor.u32 %v10383_v41, %v10382_v30  ;;  %v24227_v41 = vld [vmem:[%s31042_s3 + $0x620] sm:$0xff] }
 0x347   : > { %v27246_v44 = vadd.f32 %v5213_v23, %v27173_v21  ;;  %v5175_v39 = vpop.f32.mrf.mxu2  ;;  %v24245_v21 = vld [vmem:[%s31042_s3 + $0x6b0] sm:$0xff]  ;;  %v10373_v23 = vpack.c.b16 %v27210_v47, %v27210_v47  ;;  %31324 = vst [vmem:[#allocation19_spill] sm:$0xff] %v27264_v56  ;;  %v10491_v5 = vpack.c.b16 %v27264_v56, %v27210_v47  ;;  %v10494_v47 = vrot.slane %v27232_v0, 5 }
 0x348   : > { %v5176_v16 = vadd.f32 %v5175_v39, %v5153_v48  ;;  %v31122_v48 = vshrl.u32 %v27203_v63, 16  ;;  %6770 = vmatpush.bf16.msrb.mxu2 %v24245_v21  ;;  %v10381_v39 = vor.u32 %v10380_v24, %v10377_v11  ;;  %v10493_v11 = vrot.slane %v27235_v45, 4  ;;  %v24341_v45 = vld [vmem:[%s31042_s3 + $0x9b0] sm:$0xff] }
 0x349   : > { %v10387_v57 = vshrl.u32 %v10373_v23, 16  ;;  %6725 = vmatpush.bf16.msrb.mxu0 %v24228_v4  ;;  %v31327_v24 = vshll.u32 %v27203_v63, 16  ;;  %6793 = vmatpush.bf16.msrb.mxu3 %v24253_v52  ;;  %v10497_v52 = vshrl.u32 %v10491_v5, 16  ;;  %v31348_v63 = vld [vmem:[#allocation42_spill] sm:$0xff] }
 0x34a   : > { %v27266_v42 = vadd.f32 %v5198_v28, %v5176_v16  ;;  %v10518_v15 = vrot.slane %v31122_v48, 3  ;;  %v27274_v28 = vsel %vm3611_vm12, %v10381_v39, %v10384_v62  ;;  %v10390_v16 = vshll.u32 %v10373_v23, 16 }
 0x34b   : > { %v5154_v49 = vpop.f32.mrf.mxu1  ;;  %31325 = vst [vmem:[#allocation29_spill] sm:$0xff] %v27274_v28  ;;  %v10519_v30 = vrot.slane %v31327_v24, 4  ;;  %v10517_v23 = vor.u32 %v10516_v50, %v10513_v26  ;;  %v31330_v24 = vld [vmem:[#allocation27_spill] sm:$0xff]  ;;  %v10500_v50 = vshll.u32 %v10491_v5, 16  ;;  %v10492_v48 = vpack.c.b16 %v10490_v40, %v10490_v40  ;;  %v31333_v5 = vld [vmem:[#allocation25_spill] sm:$0xff] }
 0x34c   : > { %v27277_v49 = vrot.slane %v10387_v57, 3  ;;  %v10392_v9 = vrot.slane %v10390_v16, 4  ;;  %v24237_v57 = vld [vmem:[%s31042_s3 + $0x670] sm:$0xff]  ;;  %v31329_v16 = vld [vmem:[#allocation22_spill] sm:$0xff]  ;;  %6771 = vmatpush.bf16.msrb.mxu2 %v24244_v6 }
 0x34d   : > { %v5200_v32 = vpop.f32.mrf.mxu3  ;;  %v27292_v39 = vor.u32 %v10519_v30, %v10518_v15  ;;  %v10495_v15 = vor.u32 %v10494_v47, %v10493_v11  ;;  %6726 = vmatpush.bf16.msrb.mxu0 %v24227_v41  ;;  %6747 = vmatpush.bf16.msrb.mxu1 %v24237_v57  ;;  %v24226_v30 = vld [vmem:[%s31042_s3 + $0x618] sm:$0xff]  ;;  %v24236_v57 = vld [vmem:[%s31042_s3 + $0x668] sm:$0xff]  ;;  %v10506_v47 = vshll.u32 %v10492_v48, 16  ;;  %v24243_v48 = vld [vmem:[%s31042_s3 + $0x6a0] sm:$0xff] }
 0x34e   : > { %31326 = vst [vmem:[#allocation47_spill] sm:$0xff] %v27277_v49  ;;  %v5216_v32 = vpop.f32.mrf.mxu0 }
 0x34f   : > { %v27284_v4 = vadd.f32 %v5216_v32, %v27191_v29  ;;  %v5177_v21 = vpop.f32.mrf.mxu2  ;;  %31328 = vst [vmem:[#allocation48_spill] sm:$0xff] %v27292_v39  ;;  %v10393_v29 = vor.u32 %v10392_v9, %v27277_v49  ;;  %v24252_v32 = vld [vmem:[%s31042_s3 + $0x6e8] sm:$0xff]  ;;  %v27306_v26 = vsel %vm3611_vm12, %v10517_v23, %v27292_v39  ;;  %v10502_v49 = vrot.slane %v10500_v50, 5 }
 0x350   : > { %31331 = vst [vmem:[#allocation22_spill] sm:$0xff] %v27306_v26  ;;  %v10499_v21 = vrot.slane %v10497_v52, 4  ;;  %6794 = vmatpush.bf16.msrb.mxu3 %v24252_v32  ;;  %v10523_v28 = vshrl.u32 %v10495_v15, 16  ;;  %v10526_v23 = vshll.u32 %v10495_v15, 16  ;;  %v10508_v52 = vrot.slane %v10506_v47, 5  ;;  %6772 = vmatpush.bf16.msrb.mxu2 %v24243_v48 }
 0x351   : > { %6639 = vmatmul.bf16.vlgmr.msra.gmra.mxu0 %v31329_v16  ;;  %v27312_v9 = vsel %vm3611_vm12, %v10384_v62, %v10393_v29  ;;  %6748 = vmatpush.bf16.msrb.mxu1 %v24236_v57 }
 0x352   : > { %6626 = vmatmul.bf16.gmra.mxu3 %v31330_v24  ;;  %31332 = vst [vmem:[#allocation27_spill] sm:$0xff] %v27312_v9  ;;  %v10503_v62 = vor.u32 %v10502_v49, %v10499_v21  ;;  %6727 = vmatpush.bf16.msrb.mxu0 %v24226_v30  ;;  %v10525_v40 = vrot.slane %v10523_v28, 3  ;;  %v10528_v6 = vrot.slane %v10526_v23, 4  ;;  %v24251_v28 = vld [vmem:[%s31042_s3 + $0x6e0] sm:$0xff] }
 0x353   : > { %v5234_v56 = vpop.f32.mrf.mxu1 }
 0x354   : > { %v5235_v11 = vadd.f32 %v5234_v56, %v27198_v27  ;;  %6603 = vmatmul.bf16.gmra.mxu2 %v31333_v5  ;;  %v24225_v56 = vld [vmem:[%s31042_s3 + $0x610] sm:$0xff]  ;;  %v10504_v49 = vsel %vm3795_vm1, %v10495_v15, %v10503_v62  ;;  %v10509_v23 = vsel %vm3795_vm1, %v10503_v62, %v10508_v52  ;;  %6795 = vmatpush.bf16.msrb.mxu3 %v24251_v28  ;;  %v24224_v15 = vld [vmem:[%s31042_s3 + $0x608] sm:$0xff] }
 0x355   : > { %v5280_v41 = vpop.f32.mrf.mxu3  ;;  %v10531_v30 = vshrl.u32 %v10504_v49, 16  ;;  %v10534_v21 = vshll.u32 %v10504_v49, 16  ;;  %v10549_v57 = vshrl.u32 %v10509_v23, 16  ;;  %v10552_v47 = vshll.u32 %v10509_v23, 16  ;;  %v24242_v49 = vld [vmem:[%s31042_s3 + $0x698] sm:$0xff]  ;;  %v31337_v23 = vld [vmem:[#allocation30_spill] sm:$0xff] }
 0x356   : > { %v5218_v29 = vpop.f32.mrf.mxu0  ;;  %5427 = vmatmul.bf16.gmra.mxu1 %v26575_v2  ;;  %6728 = vmatpush.bf16.msrb.mxu0 %v24225_v56 }
 0x357   : > { %v27321_v32 = vadd.f32 %v5218_v29, %v27220_v1  ;;  %v5257_v27 = vpop.f32.mrf.mxu2  ;;  %v24235_v1 = vld [vmem:[%s31042_s3 + $0x660] sm:$0xff]  ;;  %v10536_v39 = vrot.slane %v10534_v21, 4  ;;  %v27343_v62 = vrot.slane %v10549_v57, 3  ;;  %v10554_v52 = vrot.slane %v10552_v47, 4  ;;  %6773 = vmatpush.bf16.msrb.mxu2 %v24242_v49  ;;  %v24249_v49 = vld [vmem:[%s31042_s3 + $0x6d0] sm:$0xff] }
 0x358   : > { %v5258_v50 = vadd.f32 %v5257_v27, %v5235_v11  ;;  %v10529_v11 = vor.u32 %v10528_v6, %v10525_v40  ;;  %v10533_v27 = vrot.slane %v10531_v30, 3  ;;  %6749 = vmatpush.bf16.msrb.mxu1 %v24235_v1  ;;  %v24223_v30 = vld [vmem:[%s31042_s3 + $0x600] sm:$0xff] }
 0x359   : > { %31334 = vst [vmem:[#allocation25_spill] sm:$0xff] %v27343_v62 }
 0x35a   : > { %v5281_v29 = vadd.f32 %v5280_v41, %v5258_v50  ;;  %v10537_v48 = vor.u32 %v10536_v39, %v10533_v27  ;;  %v10555_v50 = vor.u32 %v10554_v52, %v27343_v62  ;;  %6729 = vmatpush.bf16.msrb.mxu0 %v24224_v15  ;;  %v24234_v39 = vld [vmem:[%s31042_s3 + $0x658] sm:$0xff] }
 0x35b   : > { %v5236_v26 = vpop.f32.mrf.mxu1 }
 0x35c   : > { %v5237_v41 = vadd.f32 %v5236_v26, %v27246_v44  ;;  %v27348_v40 = vsel %vm3611_vm12, %v10529_v11, %v10537_v48  ;;  %v24250_v44 = vld [vmem:[%s31042_s3 + $0x6d8] sm:$0xff]  ;;  %v27361_v26 = vsel %vm3611_vm12, %v10537_v48, %v10555_v50  ;;  %6750 = vmatpush.bf16.msrb.mxu1 %v24234_v39  ;;  %v31338_v11 = vld [vmem:[#allocation32_spill] sm:$0xff] }
 0x35d   : > { %v5282_v56 = vpop.f32.mrf.mxu3  ;;  %31335 = vst [vmem:[#allocation49_spill] sm:$0xff] %v27348_v40  ;;  %6796 = vmatpush.bf16.msrb.mxu3 %v24250_v44  ;;  %v24303_v40 = vld [vmem:[%s31042_s3 + $0x880] sm:$0xff] }
 0x35e   : > { %v5221_v28 = vpop.f32.mrf.mxu0  ;;  %31336 = vst [vmem:[#allocation50_spill] sm:$0xff] %v27361_v26  ;;  %6730 = vmatpush.bf16.msrb.mxu0 %v24223_v30 }
 0x35f   : > { %v5222_v6 = vadd.f32 %v5221_v28, %v27266_v42  ;;  %v5259_v1 = vpop.f32.mrf.mxu2  ;;  %v24241_v42 = vld [vmem:[%s31042_s3 + $0x690] sm:$0xff]  ;;  %v24248_v28 = vld [vmem:[%s31042_s3 + $0x6c8] sm:$0xff] }
 0x360   : > { %v5260_v21 = vadd.f32 %v5259_v1, %v5237_v41  ;;  %6774 = vmatpush.bf16.msrb.mxu2 %v24241_v42  ;;  %v31339_v41 = vld [vmem:[#allocation21_spill] sm:$0xff] }
 0x361   : > { %6644 = vmatmul.bf16.gmra.mxu0 %v31337_v23  ;;  %6797 = vmatpush.bf16.msrb.mxu3 %v24249_v49  ;;  %v24239_v49 = vld [vmem:[%s31042_s3 + $0x680] sm:$0xff] }
 0x362   : > { %6708 = vmatmul.bf16.vlgmr.msra.gmra.mxu3 %v26547_v61  ;;  %v5283_v57 = vadd.f32 %v5282_v56, %v5260_v21  ;;  %v24233_v56 = vld [vmem:[%s31042_s3 + $0x650] sm:$0xff]  ;;  %v24232_v21 = vld [vmem:[%s31042_s3 + $0x648] sm:$0xff] }
 0x363   : > { %v5239_v47 = vpop.f32.mrf.mxu1  ;;  %6751 = vmatpush.bf16.msrb.mxu1 %v24233_v56 }
 0x364   : > { %v5240_v15 = vadd.f32 %v5239_v47, %v27284_v4  ;;  %6685 = vmatmul.bf16.vlgmr.msra.gmra.mxu2 %v31338_v11  ;;  %v24240_v4 = vld [vmem:[%s31042_s3 + $0x688] sm:$0xff] }
 0x365   : > { %v5285_v27 = vpop.f32.mrf.mxu3  ;;  %6775 = vmatpush.bf16.msrb.mxu2 %v24240_v4  ;;  %6798 = vmatpush.bf16.msrb.mxu3 %v24248_v28 }
 0x366   : > { %v5223_v52 = vpop.f32.mrf.mxu0  ;;  %6662 = vmatmul.bf16.vlgmr.msra.gmra.mxu1 %v31339_v41 }
 0x367   : > { %v5262_v48 = vpop.f32.mrf.mxu2  ;;  %6752 = vmatpush.bf16.msrb.mxu1 %v24232_v21  ;;  %v24286_v21 = vld [vmem:[%s31042_s3 + $0x7f8] sm:$0xff] }
 0x368   : > { %v5263_v50 = vadd.f32 %v5262_v48, %v5240_v15  ;;  %v31340_v48 = vld [vmem:[#allocation26_spill] sm:$0xff] }
 0x369   : > { %6776 = vmatpush.bf16.msrb.mxu2 %v24239_v49  ;;  %v24270_v49 = vld [vmem:[%s31042_s3 + $0x778] sm:$0xff] }
 0x36a   : > { %v5286_v1 = vadd.f32 %v5285_v27, %v5263_v50  ;;  %v24247_v27 = vld [vmem:[%s31042_s3 + $0x6c0] sm:$0xff] }
 0x36b   : > { %v5241_v30 = vpop.f32.mrf.mxu1  ;;  %6799 = vmatpush.bf16.msrb.mxu3 %v24247_v27  ;;  %v24277_v27 = vld [vmem:[%s31042_s3 + $0x7b0] sm:$0xff] }
 0x36c   : > { %v5242_v44 = vadd.f32 %v5241_v30, %v27321_v32  ;;  %v24231_v32 = vld [vmem:[%s31042_s3 + $0x640] sm:$0xff]  ;;  %v24278_v30 = vld [vmem:[%s31042_s3 + $0x7b8] sm:$0xff] }
 0x36d   : > { %v5287_v39 = vpop.f32.mrf.mxu3  ;;  %6753 = vmatpush.bf16.msrb.mxu1 %v24231_v32  ;;  %6861 = vmatpush.bf16.msra.mxu2 %v24278_v30 }
 0x36e   : > { %v5303_v42 = vpop.f32.mrf.mxu0 }
 0x36f   : > { %v5304_v47 = vadd.f32 %v5303_v42, %v5281_v29  ;;  %v5264_v15 = vpop.f32.mrf.mxu2  ;;  %v24262_v29 = vld [vmem:[%s31042_s3 + $0x738] sm:$0xff]  ;;  %6884 = vmatpush.bf16.msra.mxu3 %v24286_v21  ;;  %v24276_v21 = vld [vmem:[%s31042_s3 + $0x7a8] sm:$0xff] }
 0x370   : > { %v5265_v52 = vadd.f32 %v5264_v15, %v5242_v44  ;;  %6815 = vmatpush.bf16.msra.mxu0 %v24262_v29 }
 0x371   : > { %6649 = vmatmul.bf16.gmra.mxu0 %v31340_v48  ;;  %6838 = vmatpush.bf16.msra.mxu1 %v24270_v49 }
 0x372   : > { %6713 = vmatmul.bf16.gmra.mxu3 %v26633_v54  ;;  %v5288_v56 = vadd.f32 %v5287_v39, %v5265_v52  ;;  %v24261_v39 = vld [vmem:[%s31042_s3 + $0x730] sm:$0xff]  ;;  %v24260_v52 = vld [vmem:[%s31042_s3 + $0x728] sm:$0xff]  ;;  %6862 = vmatpush.bf16.msra.mxu2 %v24277_v27 }
 0x373   : > { %v5244_v50 = vpop.f32.mrf.mxu1 }
 0x374   : > { %v5245_v4 = vadd.f32 %v5244_v50, %v5222_v6  ;;  %6690 = vmatmul.bf16.gmra.mxu2 %v26509_v46  ;;  %6816 = vmatpush.bf16.msra.mxu0 %v24261_v39  ;;  %v24285_v50 = vld [vmem:[%s31042_s3 + $0x7f0] sm:$0xff]  ;;  %v24259_v39 = vld [vmem:[%s31042_s3 + $0x720] sm:$0xff] }
 0x375   : > { %v5290_v28 = vpop.f32.mrf.mxu3  ;;  %6885 = vmatpush.bf16.msra.mxu3 %v24285_v50 }
 0x376   : > { %v5305_v44 = vpop.f32.mrf.mxu0  ;;  %6667 = vmatmul.bf16.gmra.mxu1 %v26253_v60  ;;  %6863 = vmatpush.bf16.msra.mxu2 %v24276_v21  ;;  %v24267_v21 = vld [vmem:[%s31042_s3 + $0x760] sm:$0xff] }
 0x377   : > { %v5306_v6 = vadd.f32 %v5305_v44, %v5283_v57  ;;  %v5267_v42 = vpop.f32.mrf.mxu2 }
 0x378   : > { %v5268_v15 = vadd.f32 %v5267_v42, %v5245_v4  ;;  %6817 = vmatpush.bf16.msra.mxu0 %v24260_v52  ;;  %v31341_v42 = vld [vmem:[#allocation36_spill] sm:$0xff] }
 0x37a   : > { %v5291_v32 = vadd.f32 %v5290_v28, %v5268_v15  ;;  %v24269_v28 = vld [vmem:[%s31042_s3 + $0x770] sm:$0xff]  ;;  %v24258_v15 = vld [vmem:[%s31042_s3 + $0x718] sm:$0xff] }
 0x37b   : > { %v5246_v57 = vpop.f32.mrf.mxu1  ;;  %6839 = vmatpush.bf16.msra.mxu1 %v24269_v28  ;;  %v24283_v28 = vld [vmem:[%s31042_s3 + $0x7e0] sm:$0xff] }
 0x37c   : > { %6818 = vmatpush.bf16.msra.mxu0 %v24259_v39  ;;  %v24268_v57 = vld [vmem:[%s31042_s3 + $0x768] sm:$0xff] }
 0x37d   : > { %v5292_v29 = vpop.f32.mrf.mxu3 }
 0x37e   : > { %v5308_v4 = vpop.f32.mrf.mxu0 }
 0x37f   : > { %v5309_v30 = vadd.f32 %v5308_v4, %v5286_v1  ;;  %v5269_v44 = vpop.f32.mrf.mxu2  ;;  %v24284_v1 = vld [vmem:[%s31042_s3 + $0x7e8] sm:$0xff]  ;;  %6840 = vmatpush.bf16.msra.mxu1 %v24268_v57 }
 0x380   : > { %6886 = vmatpush.bf16.msra.mxu3 %v24284_v1  ;;  %6819 = vmatpush.bf16.msra.mxu0 %v24258_v15  ;;  %v24257_v44 = vld [vmem:[%s31042_s3 + $0x710] sm:$0xff]  ;;  %v24256_v1 = vld [vmem:[%s31042_s3 + $0x708] sm:$0xff] }
 0x381   : > { %6731 = vmatmul.bf16.vlgmr.msrb.gmra.mxu0 %v31341_v42 }
 0x382   : > { %6718 = vmatmul.bf16.gmra.mxu3 %v26619_v20 }
 0x383   : > { %v5326_v49 = vpop.f32.mrf.mxu1  ;;  %6841 = vmatpush.bf16.msra.mxu1 %v24267_v21 }
 0x384   : > { %v5327_v52 = vadd.f32 %v5326_v49, %v5304_v47  ;;  %6695 = vmatmul.bf16.gmra.mxu2 %v26588_v17  ;;  %v24275_v47 = vld [vmem:[%s31042_s3 + $0x7a0] sm:$0xff]  ;;  %6820 = vmatpush.bf16.msra.mxu0 %v24257_v44  ;;  %v24274_v49 = vld [vmem:[%s31042_s3 + $0x798] sm:$0xff] }
 0x385   : > { %v5372_v27 = vpop.f32.mrf.mxu3  ;;  %6864 = vmatpush.bf16.msra.mxu2 %v24275_v47  ;;  %6887 = vmatpush.bf16.msra.mxu3 %v24283_v28  ;;  %v24282_v44 = vld [vmem:[%s31042_s3 + $0x7d8] sm:$0xff] }
 0x386   : > { %v5310_v29 = vpop.f32.mrf.mxu0  ;;  %6672 = vmatmul.bf16.gmra.mxu1 %v26327_v55 }
 0x387   : > { %v5311_v50 = vadd.f32 %v5310_v29, %v5288_v56  ;;  %v5349_v4 = vpop.f32.mrf.mxu2 }
 0x388   : > { %v5350_v39 = vadd.f32 %v5349_v4, %v5327_v52  ;;  %6821 = vmatpush.bf16.msra.mxu0 %v24256_v1 }
 0x389   : > { %6865 = vmatpush.bf16.msra.mxu2 %v24274_v49  ;;  %6888 = vmatpush.bf16.msra.mxu3 %v24282_v44  ;;  %v24281_v49 = vld [vmem:[%s31042_s3 + $0x7d0] sm:$0xff] }
 0x38a   : > { %v5373_v56 = vadd.f32 %v5372_v27, %v5350_v39  ;;  %v24255_v27 = vld [vmem:[%s31042_s3 + $0x700] sm:$0xff]  ;;  %v24266_v39 = vld [vmem:[%s31042_s3 + $0x758] sm:$0xff] }
 0x38b   : > { %v5328_v15 = vpop.f32.mrf.mxu1  ;;  %6842 = vmatpush.bf16.msra.mxu1 %v24266_v39 }
 0x38c   : > { %v5329_v52 = vadd.f32 %v5328_v15, %v5306_v6  ;;  %v24273_v6 = vld [vmem:[%s31042_s3 + $0x790] sm:$0xff]  ;;  %6822 = vmatpush.bf16.msra.mxu0 %v24255_v27  ;;  %v24280_v27 = vld [vmem:[%s31042_s3 + $0x7c8] sm:$0xff] }
 0x38d   : > { %v5374_v57 = vpop.f32.mrf.mxu3  ;;  %6866 = vmatpush.bf16.msra.mxu2 %v24273_v6  ;;  %6889 = vmatpush.bf16.msra.mxu3 %v24281_v49 }
 0x38e   : > { %v5313_v29 = vpop.f32.mrf.mxu0 }
 0x38f   : > { %v5314_v4 = vadd.f32 %v5313_v29, %v5291_v32  ;;  %v5351_v47 = vpop.f32.mrf.mxu2 }
 0x390   : > { %v5352_v28 = vadd.f32 %v5351_v47, %v5329_v52 }
 0x391   : > { %6736 = vmatmul.bf16.gmra.mxu0 %v26617_v31  ;;  %6890 = vmatpush.bf16.msra.mxu3 %v24280_v27 }
 0x392   : > { %6800 = vmatmul.bf16.vlgmr.msrb.gmra.mxu3 %v26363_v18  ;;  %v5375_v32 = vadd.f32 %v5374_v57, %v5352_v28  ;;  %v24265_v57 = vld [vmem:[%s31042_s3 + $0x750] sm:$0xff] }
 0x393   : > { %v5331_v21 = vpop.f32.mrf.mxu1  ;;  %6843 = vmatpush.bf16.msra.mxu1 %v24265_v57 }
 0x394   : > { %v5332_v1 = vadd.f32 %v5331_v21, %v5309_v30  ;;  %6777 = vmatmul.bf16.vlgmr.msrb.gmra.mxu2 %v26685_v25  ;;  %v24272_v30 = vld [vmem:[%s31042_s3 + $0x788] sm:$0xff] }
 0x395   : > { %v5377_v15 = vpop.f32.mrf.mxu3  ;;  %6867 = vmatpush.bf16.msra.mxu2 %v24272_v30  ;;  %v24264_v21 = vld [vmem:[%s31042_s3 + $0x748] sm:$0xff] }
 0x396   : > { %v5315_v52 = vpop.f32.mrf.mxu0  ;;  %6754 = vmatmul.bf16.vlgmr.msrb.gmra.mxu1 %v26516_v13 }
 0x397   : > { %v5354_v29 = vpop.f32.mrf.mxu2  ;;  %6844 = vmatpush.bf16.msra.mxu1 %v24264_v21 }
 0x398   : > { %v5355_v47 = vadd.f32 %v5354_v29, %v5332_v1  ;;  %v24271_v29 = vld [vmem:[%s31042_s3 + $0x780] sm:$0xff] }
 0x399   : > { %6868 = vmatpush.bf16.msra.mxu2 %v24271_v29  ;;  %v24292_v29 = vld [vmem:[%s31042_s3 + $0x828] sm:$0xff] }
 0x39a   : > { %v5378_v44 = vadd.f32 %v5377_v15, %v5355_v47  ;;  %v24279_v15 = vld [vmem:[%s31042_s3 + $0x7c0] sm:$0xff] }
 0x39b   : > { %v5333_v39 = vpop.f32.mrf.mxu1  ;;  %6891 = vmatpush.bf16.msra.mxu3 %v24279_v15  ;;  %v24309_v15 = vld [vmem:[%s31042_s3 + $0x8b0] sm:$0xff] }
 0x39c   : > { %v5334_v28 = vadd.f32 %v5333_v39, %v5311_v50  ;;  %v24263_v50 = vld [vmem:[%s31042_s3 + $0x740] sm:$0xff]  ;;  %v24310_v39 = vld [vmem:[%s31042_s3 + $0x8b8] sm:$0xff] }
 0x39d   : > { %v5379_v6 = vpop.f32.mrf.mxu3  ;;  %6845 = vmatpush.bf16.msra.mxu1 %v24263_v50  ;;  %6953 = vmatpush.bf16.msrb.mxu2 %v24310_v39 }
 0x39e   : > { %v5395_v1 = vpop.f32.mrf.mxu0 }
 0x39f   : > { %v5396_v49 = vadd.f32 %v5395_v1, %v5373_v56  ;;  %v5356_v52 = vpop.f32.mrf.mxu2  ;;  %v24294_v56 = vld [vmem:[%s31042_s3 + $0x838] sm:$0xff] }
 0x3a0   : > { %v5357_v62 = vadd.f32 %v5356_v52, %v5334_v28  ;;  %6907 = vmatpush.bf16.msrb.mxu0 %v24294_v56  ;;  %v24302_v52 = vld [vmem:[%s31042_s3 + $0x878] sm:$0xff] }
 0x3a1   : > { %6741 = vmatmul.bf16.gmra.mxu0 %v26581_v36  ;;  %6930 = vmatpush.bf16.msrb.mxu1 %v24302_v52 }
 0x3a2   : > { %6805 = vmatmul.bf16.gmra.mxu3 %v26427_v38  ;;  %v5380_v57 = vadd.f32 %v5379_v6, %v5357_v62  ;;  %v24293_v62 = vld [vmem:[%s31042_s3 + $0x830] sm:$0xff]  ;;  %v24318_v6 = vld [vmem:[%s31042_s3 + $0x8f8] sm:$0xff]  ;;  %6954 = vmatpush.bf16.msrb.mxu2 %v24309_v15 }
 0x3a3   : > { %v5336_v47 = vpop.f32.mrf.mxu1  ;;  %6976 = vmatpush.bf16.msrb.mxu3 %v24318_v6  ;;  %v24308_v6 = vld [vmem:[%s31042_s3 + $0x8a8] sm:$0xff] }
 0x3a4   : > { %v5337_v30 = vadd.f32 %v5336_v47, %v5314_v4  ;;  %6782 = vmatmul.bf16.gmra.mxu2 %v26748_v22  ;;  %6908 = vmatpush.bf16.msrb.mxu0 %v24293_v62  ;;  %v24317_v47 = vld [vmem:[%s31042_s3 + $0x8f0] sm:$0xff]  ;;  %v24291_v62 = vld [vmem:[%s31042_s3 + $0x820] sm:$0xff] }
 0x3a5   : > { %v5382_v27 = vpop.f32.mrf.mxu3 }
 0x3a6   : > { %v5397_v28 = vpop.f32.mrf.mxu0  ;;  %6759 = vmatmul.bf16.gmra.mxu1 %v26334_v43  ;;  %6955 = vmatpush.bf16.msrb.mxu2 %v24308_v6  ;;  %v24299_v6 = vld [vmem:[%s31042_s3 + $0x860] sm:$0xff] }
 0x3a7   : > { %v5398_v4 = vadd.f32 %v5397_v28, %v5375_v32  ;;  %v5359_v21 = vpop.f32.mrf.mxu2  ;;  %6977 = vmatpush.bf16.msrb.mxu3 %v24317_v47 }
 0x3a8   : > { %v5360_v1 = vadd.f32 %v5359_v21, %v5337_v30  ;;  %6909 = vmatpush.bf16.msrb.mxu0 %v24292_v29  ;;  %v25248_v21 = vld [vmem:[#allocation2 + $0x20] sm:$0xff]  }
 0x3aa   : > { %v5383_v50 = vadd.f32 %v5382_v27, %v5360_v1  ;;  %v24301_v27 = vld [vmem:[%s31042_s3 + $0x870] sm:$0xff]  ;;  %v24290_v1 = vld [vmem:[%s31042_s3 + $0x818] sm:$0xff] }
 0x3ab   : > { %v5338_v32 = vpop.f32.mrf.mxu1  ;;  %6931 = vmatpush.bf16.msrb.mxu1 %v24301_v27  ;;  %v24315_v27 = vld [vmem:[%s31042_s3 + $0x8e0] sm:$0xff] }
 0x3ac   : > { %6910 = vmatpush.bf16.msrb.mxu0 %v24291_v62  ;;  %v24300_v32 = vld [vmem:[%s31042_s3 + $0x868] sm:$0xff] }
 0x3ad   : > { %v5384_v56 = vpop.f32.mrf.mxu3 }
 0x3ae   : > { %v5400_v30 = vpop.f32.mrf.mxu0 }
 0x3af   : > { %v5401_v39 = vadd.f32 %v5400_v30, %v5378_v44  ;;  %v5361_v28 = vpop.f32.mrf.mxu2  ;;  %v24316_v44 = vld [vmem:[%s31042_s3 + $0x8e8] sm:$0xff]  ;;  %6932 = vmatpush.bf16.msrb.mxu1 %v24300_v32 }
 0x3b0   : > { %6978 = vmatpush.bf16.msrb.mxu3 %v24316_v44  ;;  %6911 = vmatpush.bf16.msrb.mxu0 %v24290_v1  ;;  %v24289_v28 = vld [vmem:[%s31042_s3 + $0x810] sm:$0xff]  ;;  %v24306_v44 = vld [vmem:[%s31042_s3 + $0x898] sm:$0xff] }
 0x3b1   : > { %6823 = vmatmul.bf16.vlgmr.msra.gmra.mxu0 %v25248_v21 }
 0x3b2   : > { %6810 = vmatmul.bf16.gmra.mxu3 %v26390_v34 }
 0x3b3   : > { %v5418_v52 = vpop.f32.mrf.mxu1  ;;  %6933 = vmatpush.bf16.msrb.mxu1 %v24299_v6 }
 0x3b4   : > { %v27548_v29 = vadd.f32 %v5418_v52, %v5396_v49  ;;  %6787 = vmatmul.bf16.gmra.mxu2 %v26787_v37  ;;  %v24307_v49 = vld [vmem:[%s31042_s3 + $0x8a0] sm:$0xff]  ;;  %6912 = vmatpush.bf16.msrb.mxu0 %v24289_v28  ;;  %v24314_v28 = vld [vmem:[%s31042_s3 + $0x8d8] sm:$0xff] }
 0x3b5   : > { %v6617_v15 = vpop.f32.mrf.mxu3  ;;  %6956 = vmatpush.bf16.msrb.mxu2 %v24307_v49  ;;  %6979 = vmatpush.bf16.msrb.mxu3 %v24315_v27  ;;  %v24298_v49 = vld [vmem:[%s31042_s3 + $0x858] sm:$0xff] }
 0x3b6   : > { %v5402_v56 = vpop.f32.mrf.mxu0  ;;  %6764 = vmatmul.bf16.gmra.mxu1 %v26677_v19 }
 0x3b7   : > { %v5403_v47 = vadd.f32 %v5402_v56, %v5380_v57  ;;  %v6594_v30 = vpop.f32.mrf.mxu2  ;;  %v24288_v57 = vld [vmem:[%s31042_s3 + $0x808] sm:$0xff]  ;;  %6934 = vmatpush.bf16.msrb.mxu1 %v24298_v49 }
 0x3b8   : > { %v6618_v62 = vadd.f32 %v6617_v15, %v6594_v30  ;;  %6913 = vmatpush.bf16.msrb.mxu0 %v24288_v57  ;;  %v24287_v30 = vld [vmem:[%s31042_s3 + $0x800] sm:$0xff]  ;;  %v31342_v57 = vld [vmem:[#allocation5_spill] sm:$0xff]  ;;  %v24312_v49 = vld [vmem:[%s31042_s3 + $0x8c8] sm:$0xff] }
 0x3b9   : > { %6957 = vmatpush.bf16.msrb.mxu2 %v24306_v44  ;;  %6980 = vmatpush.bf16.msrb.mxu3 %v24314_v28  ;;  %v24313_v44 = vld [vmem:[%s31042_s3 + $0x8d0] sm:$0xff] }
 0x3bb   : > { %v5420_v21 = vpop.f32.mrf.mxu1 }
 0x3bc   : > { %v27573_v1 = vadd.f32 %v5420_v21, %v5398_v4  ;;  %6914 = vmatpush.bf16.msrb.mxu0 %v24287_v30  ;;  %v24297_v30 = vld [vmem:[%s31042_s3 + $0x850] sm:$0xff] }
 0x3bd   : > { %v6619_v52 = vpop.f32.mrf.mxu3  ;;  %6981 = vmatpush.bf16.msrb.mxu3 %v24313_v44  ;;  %6935 = vmatpush.bf16.msrb.mxu1 %v24297_v30  ;;  %v24311_v30 = vld [vmem:[%s31042_s3 + $0x8c0] sm:$0xff] }
 0x3be   : > { %v5405_v15 = vpop.f32.mrf.mxu0 }
 0x3bf   : > { %v5406_v32 = vadd.f32 %v5405_v15, %v5383_v50  ;;  %v6596_v56 = vpop.f32.mrf.mxu2  ;;  %v24305_v50 = vld [vmem:[%s31042_s3 + $0x890] sm:$0xff]  ;;  %v31343_v15 = vld [vmem:[#allocation39_spill] sm:$0xff] }
 0x3c0   : > { %v6620_v4 = vadd.f32 %v6619_v52, %v6596_v56  ;;  %6958 = vmatpush.bf16.msrb.mxu2 %v24305_v50 }
 0x3c1   : > { %6828 = vmatmul.bf16.gmra.mxu0 %v26176_v8  ;;  %6982 = vmatpush.bf16.msrb.mxu3 %v24312_v49 }
 0x3c2   : > { %6892 = vmatmul.bf16.vlgmr.msra.gmra.mxu3 %v26461_v35 }
 0x3c3   : > { %v5423_v27 = vpop.f32.mrf.mxu1 }
 0x3c4   : > { %v27589_v6 = vadd.f32 %v5423_v27, %v5401_v39  ;;  %6869 = vmatmul.bf16.vlgmr.msra.gmra.mxu2 %v31342_v57  ;;  %v24304_v39 = vld [vmem:[%s31042_s3 + $0x888] sm:$0xff] }
 0x3c5   : > { %v6622_v21 = vpop.f32.mrf.mxu3  ;;  %6959 = vmatpush.bf16.msrb.mxu2 %v24304_v39  ;;  %v24295_v39 = vld [vmem:[%s31042_s3 + $0x840] sm:$0xff]  ;;  %6983 = vmatpush.bf16.msrb.mxu3 %v24311_v30 }
 0x3c6   : > { %v5407_v52 = vpop.f32.mrf.mxu0  ;;  %6846 = vmatmul.bf16.vlgmr.msra.gmra.mxu1 %v31343_v15 }
 0x3c7   : > { %v6599_v56 = vpop.f32.mrf.mxu2  ;;  %v24296_v52 = vld [vmem:[%s31042_s3 + $0x848] sm:$0xff] }
 0x3c8   : > { %v6623_v28 = vadd.f32 %v6622_v21, %v6599_v56  ;;  %6936 = vmatpush.bf16.msrb.mxu1 %v24296_v52  ;;  %v24342_v52 = vld [vmem:[%s31042_s3 + $0x9b8] sm:$0xff] }
 0x3c9   : > { %6960 = vmatpush.bf16.msrb.mxu2 %v24303_v40  ;;  %v24325_v40 = vld [vmem:[%s31042_s3 + $0x930] sm:$0xff] }
 0x3cb   : > { %v5425_v50 = vpop.f32.mrf.mxu1 }
 0x3cc   : > { %v27605_v27 = vadd.f32 %v5425_v50, %v5403_v47  ;;  %v31345_v47 = vld [vmem:[#allocation40_spill] sm:$0xff]  ;;  %6937 = vmatpush.bf16.msrb.mxu1 %v24295_v39  ;;  %v31347_v50 = vld [vmem:[#allocation11_spill] sm:$0xff] }
 0x3cd   : > { %v6624_v44 = vpop.f32.mrf.mxu3  ;;  %8203 = vmatpush.bf16.msra.mxu2 %v24342_v52  ;;  %v24324_v52 = vld [vmem:[%s31042_s3 + $0x928] sm:$0xff] }
 0x3ce   : > { %31344 = vst [vmem:[#allocation30_spill] sm:$0xff] %v27605_v27  ;;  %v6640_v21 = vpop.f32.mrf.mxu0 }
 0x3cf   : > { %v6641_v56 = vadd.f32 %v6640_v21, %v6618_v62  ;;  %v6601_v26 = vpop.f32.mrf.mxu2  ;;  %v24326_v62 = vld [vmem:[%s31042_s3 + $0x938] sm:$0xff] }
 0x3d0   : > { %v6625_v9 = vadd.f32 %v6624_v44, %v6601_v26  ;;  %8157 = vmatpush.bf16.msra.mxu0 %v24326_v62 }
 0x3d1   : > { %6833 = vmatmul.bf16.gmra.mxu0 %v31345_v47  ;;  %8204 = vmatpush.bf16.msra.mxu2 %v24341_v45  ;;  %v27658_v45 = vld [vmem:[#allocation2 + $0x8] sm:$0xff]  }
 0x3d2   : > { %6897 = vmatmul.bf16.gmra.mxu3 %v26450_v51  ;;  %v31349_v51 = vld [vmem:[#allocation6_spill] sm:$0xff] }
 0x3d3   : > { %v5428_v49 = vpop.f32.mrf.mxu1 }
 0x3d4   : > { %v27624_v26 = vadd.f32 %v5428_v49, %v5406_v32  ;;  %6874 = vmatmul.bf16.gmra.mxu2 %v31347_v50  ;;  %v24350_v32 = vld [vmem:[%s31042_s3 + $0x9f8] sm:$0xff]  ;;  %8158 = vmatpush.bf16.msra.mxu0 %v24325_v40 }
 0x3d5   : > { %v6627_v44 = vpop.f32.mrf.mxu3  ;;  %8226 = vmatpush.bf16.msra.mxu3 %v24350_v32  ;;  %v24334_v49 = vld [vmem:[%s31042_s3 + $0x978] sm:$0xff] }
 0x3d6   : > { %31346 = vst [vmem:[#allocation32_spill] sm:$0xff] %v27624_v26  ;;  %v6642_v21 = vpop.f32.mrf.mxu0  ;;  %6851 = vmatmul.bf16.gmra.mxu1 %v31348_v63 }
 0x3d7   : > { %v6643_v30 = vadd.f32 %v6642_v21, %v6620_v4  ;;  %v6604_v39 = vpop.f32.mrf.mxu2  ;;  %8180 = vmatpush.bf16.msra.mxu1 %v24334_v49  ;;  %v24333_v49 = vld [vmem:[%s31042_s3 + $0x970] sm:$0xff] }
 0x3d8   : > { %v6628_v62 = vadd.f32 %v6627_v44, %v6604_v39  ;;  %8159 = vmatpush.bf16.msra.mxu0 %v24324_v52  ;;  %v24349_v44 = vld [vmem:[%s31042_s3 + $0x9f0] sm:$0xff]  ;;  %v24323_v39 = vld [vmem:[%s31042_s3 + $0x920] sm:$0xff]  ;;  %v24322_v52 = vld [vmem:[%s31042_s3 + $0x918] sm:$0xff] }
 0x3d9   : > { %8227 = vmatpush.bf16.msra.mxu3 %v24349_v44 }
 0x3db   : > { %v5430_v0 = vpop.f32.mrf.mxu1  ;;  %8181 = vmatpush.bf16.msra.mxu1 %v24333_v49 }
 0x3dc   : > { %v24340_v0 = vld [vmem:[%s31042_s3 + $0x9a8] sm:$0xff]  ;;  %8160 = vmatpush.bf16.msra.mxu0 %v24323_v39 }
 0x3dd   : > { %v6629_v4 = vpop.f32.mrf.mxu3  ;;  %8205 = vmatpush.bf16.msra.mxu2 %v24340_v0  ;;  %v24321_v0 = vld [vmem:[%s31042_s3 + $0x910] sm:$0xff] }
 0x3de   : > { %v6645_v21 = vpop.f32.mrf.mxu0 }
 0x3df   : > { %v6646_v40 = vadd.f32 %v6645_v21, %v6623_v28  ;;  %v6606_v32 = vpop.f32.mrf.mxu2  ;;  %v24348_v28 = vld [vmem:[%s31042_s3 + $0x9e8] sm:$0xff] }
 0x3e0   : > { %8228 = vmatpush.bf16.msra.mxu3 %v24348_v28  ;;  %v24332_v32 = vld [vmem:[%s31042_s3 + $0x968] sm:$0xff]  ;;  %8161 = vmatpush.bf16.msra.mxu0 %v24322_v52  ;;  %v24331_v52 = vld [vmem:[%s31042_s3 + $0x960] sm:$0xff] }
 0x3e1   : > { %6915 = vmatmul.bf16.vlgmr.msrb.gmra.mxu0 %v27658_v45  ;;  %8182 = vmatpush.bf16.msra.mxu1 %v24332_v32 }
 0x3e2   : > { %6902 = vmatmul.bf16.gmra.mxu3 %v26271_v14 }
 0x3e3   : > { %v6663_v4 = vpop.f32.mrf.mxu1 }
 0x3e4   : > { %v6664_v44 = vadd.f32 %v6663_v4, %v6641_v56  ;;  %6879 = vmatmul.bf16.gmra.mxu2 %v26921_v53  ;;  %v24339_v56 = vld [vmem:[%s31042_s3 + $0x9a0] sm:$0xff]  ;;  %8162 = vmatpush.bf16.msra.mxu0 %v24321_v0  ;;  %v24346_v0 = vld [vmem:[%s31042_s3 + $0x9d8] sm:$0xff] }
 0x3e5   : > { %v6709_v21 = vpop.f32.mrf.mxu3  ;;  %v24347_v4 = vld [vmem:[%s31042_s3 + $0x9e0] sm:$0xff]  ;;  %8206 = vmatpush.bf16.msra.mxu2 %v24339_v56  ;;  %8183 = vmatpush.bf16.msra.mxu1 %v24331_v52 }
 0x3e6   : > { %v6647_v14 = vpop.f32.mrf.mxu0  ;;  %6856 = vmatmul.bf16.gmra.mxu1 %v31349_v51  ;;  %8229 = vmatpush.bf16.msra.mxu3 %v24347_v4 }
 0x3e7   : > { %v6648_v39 = vadd.f32 %v6647_v14, %v6625_v9  ;;  %v6686_v49 = vpop.f32.mrf.mxu2  ;;  %v24320_v9 = vld [vmem:[%s31042_s3 + $0x908] sm:$0xff] }
 0x3e8   : > { %v6687_v28 = vadd.f32 %v6686_v49, %v6664_v44  ;;  %v24338_v44 = vld [vmem:[%s31042_s3 + $0x998] sm:$0xff]  ;;  %8163 = vmatpush.bf16.msra.mxu0 %v24320_v9 }
 0x3e9   : > { %8207 = vmatpush.bf16.msra.mxu2 %v24338_v44 }
 0x3ea   : > { %v6710_v14 = vadd.f32 %v6709_v21, %v6687_v28  ;;  %v24319_v21 = vld [vmem:[%s31042_s3 + $0x900] sm:$0xff]  ;;  %v24330_v28 = vld [vmem:[%s31042_s3 + $0x958] sm:$0xff]  ;;  %8230 = vmatpush.bf16.msra.mxu3 %v24346_v0  ;;  %v24344_v0 = vld [vmem:[%s31042_s3 + $0x9c8] sm:$0xff] }
 0x3eb   : > { %v6665_v32 = vpop.f32.mrf.mxu1  ;;  %8184 = vmatpush.bf16.msra.mxu1 %v24330_v28 }
 0x3ec   : > { %v6666_v49 = vadd.f32 %v6665_v32, %v6643_v30  ;;  %8164 = vmatpush.bf16.msra.mxu0 %v24319_v21  ;;  %v24345_v32 = vld [vmem:[%s31042_s3 + $0x9d0] sm:$0xff] }
 0x3ed   : > { %v6711_v53 = vpop.f32.mrf.mxu3 }
 0x3ee   : > { %v6650_v35 = vpop.f32.mrf.mxu0  ;;  %8231 = vmatpush.bf16.msra.mxu3 %v24345_v32  ;;  %v24328_v32 = vld [vmem:[%s31042_s3 + $0x948] sm:$0xff] }
 0x3ef   : > { %v6651_v50 = vadd.f32 %v6650_v35, %v6628_v62  ;;  %v6688_v56 = vpop.f32.mrf.mxu2  ;;  %v24337_v35 = vld [vmem:[%s31042_s3 + $0x990] sm:$0xff] }
 0x3f0   : > { %v6689_v4 = vadd.f32 %v6688_v56, %v6666_v49  ;;  %8208 = vmatpush.bf16.msra.mxu2 %v24337_v35  ;;  %v31350_v49 = vld [vmem:[#allocation10_spill] sm:$0xff] }
 0x3f1   : > { %6920 = vmatmul.bf16.gmra.mxu0 %v31309_v10 }
 0x3f2   : > { %6984 = vmatmul.bf16.vlgmr.msrb.gmra.mxu3 %v26579_v33  ;;  %v6712_v30 = vadd.f32 %v6711_v53, %v6689_v4  ;;  %v24329_v53 = vld [vmem:[%s31042_s3 + $0x950] sm:$0xff]  ;;  %v24335_v33 = vld [vmem:[%s31042_s3 + $0x980] sm:$0xff] }
 0x3f3   : > { %v6668_v62 = vpop.f32.mrf.mxu1  ;;  %8185 = vmatpush.bf16.msra.mxu1 %v24329_v53  ;;  %8232 = vmatpush.bf16.msra.mxu3 %v24344_v0 }
 0x3f4   : > { %v6669_v52 = vadd.f32 %v6668_v62, %v6646_v40  ;;  %6961 = vmatmul.bf16.vlgmr.msrb.gmra.mxu2 %v26530_v58  ;;  %v24336_v40 = vld [vmem:[%s31042_s3 + $0x988] sm:$0xff] }
 0x3f5   : > { %v6714_v9 = vpop.f32.mrf.mxu3  ;;  %8209 = vmatpush.bf16.msra.mxu2 %v24336_v40 }
 0x3f6   : > { %v6652_v44 = vpop.f32.mrf.mxu0  ;;  %6938 = vmatmul.bf16.vlgmr.msrb.gmra.mxu1 %v31350_v49 }
 0x3f7   : > { %v6691_v56 = vpop.f32.mrf.mxu2  ;;  %8186 = vmatpush.bf16.msra.mxu1 %v24328_v32 }
 0x3f8   : > { %v6692_v21 = vadd.f32 %v6691_v56, %v6669_v52 }
 0x3f9   : > { %8210 = vmatpush.bf16.msra.mxu2 %v24335_v33  ;;  %v24382_v33 = vld [vmem:[%s31042_s3 + $0xaf8] sm:$0xff] }
 0x3fa   : > { %v6715_v28 = vadd.f32 %v6714_v9, %v6692_v21  ;;  %v24343_v9 = vld [vmem:[%s31042_s3 + $0x9c0] sm:$0xff] }
 0x3fb   : > { %v6670_v4 = vpop.f32.mrf.mxu1  ;;  %8233 = vmatpush.bf16.msra.mxu3 %v24343_v9  ;;  %v24373_v9 = vld [vmem:[%s31042_s3 + $0xab0] sm:$0xff] }
 0x3fc   : > { %v6671_v35 = vadd.f32 %v6670_v4, %v6648_v39  ;;  %v24327_v39 = vld [vmem:[%s31042_s3 + $0x940] sm:$0xff]  ;;  %v24374_v4 = vld [vmem:[%s31042_s3 + $0xab8] sm:$0xff] }
 0x3fd   : > { %v6716_v62 = vpop.f32.mrf.mxu3  ;;  %8187 = vmatpush.bf16.msra.mxu1 %v24327_v39  ;;  %8295 = vmatpush.bf16.msrb.mxu2 %v24374_v4 }
 0x3fe   : > { %v6732_v52 = vpop.f32.mrf.mxu0 }
 0x3ff   : > { %v6733_v44 = vadd.f32 %v6732_v52, %v6710_v14  ;;  %v6693_v56 = vpop.f32.mrf.mxu2  ;;  %v24358_v14 = vld [vmem:[%s31042_s3 + $0xa38] sm:$0xff]  ;;  %8318 = vmatpush.bf16.msrb.mxu3 %v24382_v33  ;;  %v24372_v33 = vld [vmem:[%s31042_s3 + $0xaa8] sm:$0xff] }
 0x400   : > { %v6694_v58 = vadd.f32 %v6693_v56, %v6671_v35  ;;  %8249 = vmatpush.bf16.msrb.mxu0 %v24358_v14  ;;  %v24366_v52 = vld [vmem:[%s31042_s3 + $0xa78] sm:$0xff]  ;;  %v24356_v56 = vld [vmem:[%s31042_s3 + $0xa28] sm:$0xff] }
 0x401   : > { %6925 = vmatmul.bf16.gmra.mxu0 %v27100_v7  ;;  %8272 = vmatpush.bf16.msrb.mxu1 %v24366_v52 }
 0x402   : > { %6989 = vmatmul.bf16.gmra.mxu3 %v26592_v3  ;;  %v6717_v53 = vadd.f32 %v6716_v62, %v6694_v58  ;;  %v24357_v58 = vld [vmem:[%s31042_s3 + $0xa30] sm:$0xff]  ;;  %8296 = vmatpush.bf16.msrb.mxu2 %v24373_v9  ;;  %v31351_v9 = vld [vmem:[#allocation15_spill] sm:$0xff] }
 0x403   : > { %v6673_v21 = vpop.f32.mrf.mxu1 }
 0x404   : > { %v6674_v40 = vadd.f32 %v6673_v21, %v6651_v50  ;;  %6966 = vmatmul.bf16.gmra.mxu2 %v27166_v12  ;;  %8250 = vmatpush.bf16.msrb.mxu0 %v24357_v58  ;;  %v24381_v21 = vld [vmem:[%s31042_s3 + $0xaf0] sm:$0xff]  ;;  %v24355_v58 = vld [vmem:[%s31042_s3 + $0xa20] sm:$0xff] }
 0x405   : > { %v6719_v0 = vpop.f32.mrf.mxu3  ;;  %8319 = vmatpush.bf16.msrb.mxu3 %v24381_v21 }
 0x406   : > { %v6734_v35 = vpop.f32.mrf.mxu0  ;;  %6943 = vmatmul.bf16.gmra.mxu1 %v27018_v59  ;;  %8297 = vmatpush.bf16.msrb.mxu2 %v24372_v33 }
 0x407   : > { %v6735_v50 = vadd.f32 %v6734_v35, %v6712_v30  ;;  %v6696_v62 = vpop.f32.mrf.mxu2 }
 0x408   : > { %v6697_v32 = vadd.f32 %v6696_v62, %v6674_v40  ;;  %8251 = vmatpush.bf16.msrb.mxu0 %v24356_v56  ;;  %v25250_v62 = vld [vmem:[#allocation2] sm:$0xff]  }
 0x40a   : > { %v6720_v39 = vadd.f32 %v6719_v0, %v6697_v32  ;;  %v24365_v0 = vld [vmem:[%s31042_s3 + $0xa70] sm:$0xff]  ;;  %v24354_v32 = vld [vmem:[%s31042_s3 + $0xa18] sm:$0xff] }
 0x40b   : > { %v6675_v30 = vpop.f32.mrf.mxu1  ;;  %8273 = vmatpush.bf16.msrb.mxu1 %v24365_v0  ;;  %v24353_v0 = vld [vmem:[%s31042_s3 + $0xa10] sm:$0xff] }
 0x40c   : > { %8252 = vmatpush.bf16.msrb.mxu0 %v24355_v58 }
 0x40d   : > { %v6721_v14 = vpop.f32.mrf.mxu3 }
 0x40e   : > { %v6737_v40 = vpop.f32.mrf.mxu0  ;;  %v24364_v14 = vld [vmem:[%s31042_s3 + $0xa68] sm:$0xff] }
 0x40f   : > { %v6738_v4 = vadd.f32 %v6737_v40, %v6715_v28  ;;  %v6698_v35 = vpop.f32.mrf.mxu2  ;;  %v24380_v28 = vld [vmem:[%s31042_s3 + $0xae8] sm:$0xff]  ;;  %v31352_v40 = vld [vmem:[#allocation8_spill] sm:$0xff]  ;;  %8274 = vmatpush.bf16.msrb.mxu1 %v24364_v14 }
 0x410   : > { %8320 = vmatpush.bf16.msrb.mxu3 %v24380_v28  ;;  %8253 = vmatpush.bf16.msrb.mxu0 %v24354_v32  ;;  %v24363_v28 = vld [vmem:[%s31042_s3 + $0xa60] sm:$0xff]  ;;  %v24352_v32 = vld [vmem:[%s31042_s3 + $0xa08] sm:$0xff] }
 0x411   : > { %8165 = vmatmul.bf16.vlgmr.msra.gmra.mxu0 %v25250_v62  ;;  %v24379_v62 = vld [vmem:[%s31042_s3 + $0xae0] sm:$0xff] }
 0x412   : > { %6994 = vmatmul.bf16.gmra.mxu3 %v26575_v2 }
 0x413   : > { %v6755_v52 = vpop.f32.mrf.mxu1  ;;  %8275 = vmatpush.bf16.msrb.mxu1 %v24363_v28 }
 0x414   : > { %v6756_v56 = vadd.f32 %v6755_v52, %v6733_v44  ;;  %6971 = vmatmul.bf16.gmra.mxu2 %v31351_v9  ;;  %v24371_v44 = vld [vmem:[%s31042_s3 + $0xaa0] sm:$0xff]  ;;  %8254 = vmatpush.bf16.msrb.mxu0 %v24353_v0  ;;  %v24378_v0 = vld [vmem:[%s31042_s3 + $0xad8] sm:$0xff] }
 0x415   : > { %v6801_v30 = vpop.f32.mrf.mxu3  ;;  %8298 = vmatpush.bf16.msrb.mxu2 %v24371_v44  ;;  %8321 = vmatpush.bf16.msrb.mxu3 %v24379_v62 }
 0x416   : > { %v6739_v21 = vpop.f32.mrf.mxu0  ;;  %6948 = vmatmul.bf16.gmra.mxu1 %v31352_v40 }
 0x417   : > { %v6740_v35 = vadd.f32 %v6739_v21, %v6717_v53  ;;  %v6778_v58 = vpop.f32.mrf.mxu2 }
 0x418   : > { %v6779_v33 = vadd.f32 %v6778_v58, %v6756_v56  ;;  %v24370_v56 = vld [vmem:[%s31042_s3 + $0xa98] sm:$0xff]  ;;  %8255 = vmatpush.bf16.msrb.mxu0 %v24352_v32 }
 0x419   : > { %8299 = vmatpush.bf16.msrb.mxu2 %v24370_v56  ;;  %8322 = vmatpush.bf16.msrb.mxu3 %v24378_v0 }
 0x41a   : > { %v6802_v53 = vadd.f32 %v6801_v30, %v6779_v33  ;;  %v24351_v30 = vld [vmem:[%s31042_s3 + $0xa00] sm:$0xff]  ;;  %v24362_v33 = vld [vmem:[%s31042_s3 + $0xa58] sm:$0xff] }
 0x41b   : > { %v6757_v52 = vpop.f32.mrf.mxu1  ;;  %8276 = vmatpush.bf16.msrb.mxu1 %v24362_v33 }
 0x41c   : > { %v6758_v14 = vadd.f32 %v6757_v52, %v6735_v50  ;;  %v24369_v50 = vld [vmem:[%s31042_s3 + $0xa90] sm:$0xff]  ;;  %8256 = vmatpush.bf16.msrb.mxu0 %v24351_v30  ;;  %v24376_v30 = vld [vmem:[%s31042_s3 + $0xac8] sm:$0xff] }
 0x41d   : > { %v6803_v21 = vpop.f32.mrf.mxu3  ;;  %8300 = vmatpush.bf16.msrb.mxu2 %v24369_v50 }
 0x41e   : > { %v6742_v58 = vpop.f32.mrf.mxu0 }
 0x41f   : > { %v6743_v2 = vadd.f32 %v6742_v58, %v6720_v39  ;;  %v6780_v44 = vpop.f32.mrf.mxu2 }
 0x420   : > { %v6781_v62 = vadd.f32 %v6780_v44, %v6758_v14  ;;  %v31353_v14 = vld [vmem:[#allocation24_spill] sm:$0xff] }
 0x421   : > { %8170 = vmatmul.bf16.gmra.mxu0 %v27658_v45  ;;  %v24377_v45 = vld [vmem:[%s31042_s3 + $0xad0] sm:$0xff] }
 0x422   : > { %8234 = vmatmul.bf16.vlgmr.msra.gmra.mxu3 %v31339_v41  ;;  %v6804_v39 = vadd.f32 %v6803_v21, %v6781_v62  ;;  %v24361_v21 = vld [vmem:[%s31042_s3 + $0xa50] sm:$0xff] }
 0x423   : > { %v6760_v28 = vpop.f32.mrf.mxu1  ;;  %8323 = vmatpush.bf16.msrb.mxu3 %v24377_v45  ;;  %8277 = vmatpush.bf16.msrb.mxu1 %v24361_v21 }
 0x424   : > { %v6761_v32 = vadd.f32 %v6760_v28, %v6738_v4  ;;  %8211 = vmatmul.bf16.vlgmr.msra.gmra.mxu2 %v31329_v16  ;;  %v24368_v4 = vld [vmem:[%s31042_s3 + $0xa88] sm:$0xff] }
 0x425   : > { %v6806_v52 = vpop.f32.mrf.mxu3  ;;  %8301 = vmatpush.bf16.msrb.mxu2 %v24368_v4  ;;  %v24360_v28 = vld [vmem:[%s31042_s3 + $0xa48] sm:$0xff] }
 0x426   : > { %v6744_v56 = vpop.f32.mrf.mxu0  ;;  %8188 = vmatmul.bf16.vlgmr.msra.gmra.mxu1 %v31353_v14 }
 0x427   : > { %v6783_v58 = vpop.f32.mrf.mxu2  ;;  %8324 = vmatpush.bf16.msrb.mxu3 %v24376_v30  ;;  %8278 = vmatpush.bf16.msrb.mxu1 %v24360_v28  ;;  %v31354_v28 = vld [vmem:[#allocation31_spill] sm:$0xff] }
 0x428   : > { %v6784_v44 = vadd.f32 %v6783_v58, %v6761_v32  ;;  %v24367_v58 = vld [vmem:[%s31042_s3 + $0xa80] sm:$0xff] }
 0x429   : > { %8302 = vmatpush.bf16.msrb.mxu2 %v24367_v58  ;;  %v24398_v58 = vld [vmem:[%s31042_s3 + $0xb78] sm:$0xff] }
 0x42a   : > { %v6807_v0 = vadd.f32 %v6806_v52, %v6784_v44  ;;  %v24375_v52 = vld [vmem:[%s31042_s3 + $0xac0] sm:$0xff] }
 0x42b   : > { %v6762_v33 = vpop.f32.mrf.mxu1  ;;  %8325 = vmatpush.bf16.msrb.mxu3 %v24375_v52  ;;  %v24388_v52 = vld [vmem:[%s31042_s3 + $0xb28] sm:$0xff] }
 0x42c   : > { %v6763_v62 = vadd.f32 %v6762_v33, %v6740_v35  ;;  %v24359_v35 = vld [vmem:[%s31042_s3 + $0xa40] sm:$0xff]  ;;  %v24406_v33 = vld [vmem:[%s31042_s3 + $0xbb8] sm:$0xff] }
 0x42d   : > { %v6808_v50 = vpop.f32.mrf.mxu3  ;;  %8279 = vmatpush.bf16.msrb.mxu1 %v24359_v35  ;;  %8387 = vmatpush.bf16.msra.mxu2 %v24406_v33  ;;  %v24405_v35 = vld [vmem:[%s31042_s3 + $0xbb0] sm:$0xff] }
 0x42e   : > { %v6824_v32 = vpop.f32.mrf.mxu0 }
 0x42f   : > { %v6825_v45 = vadd.f32 %v6824_v32, %v6802_v53  ;;  %v6785_v56 = vpop.f32.mrf.mxu2  ;;  %v24390_v53 = vld [vmem:[%s31042_s3 + $0xb38] sm:$0xff] }
 0x430   : > { %v6786_v41 = vadd.f32 %v6785_v56, %v6763_v62  ;;  %8341 = vmatpush.bf16.msra.mxu0 %v24390_v53 }
 0x431   : > { %8175 = vmatmul.bf16.gmra.mxu0 %v31333_v5  ;;  %8364 = vmatpush.bf16.msra.mxu1 %v24398_v58 }
 0x432   : > { %8239 = vmatmul.bf16.gmra.mxu3 %v26253_v60  ;;  %v6809_v21 = vadd.f32 %v6808_v50, %v6786_v41  ;;  %v24389_v41 = vld [vmem:[%s31042_s3 + $0xb30] sm:$0xff]  ;;  %v24414_v50 = vld [vmem:[%s31042_s3 + $0xbf8] sm:$0xff]  ;;  %8388 = vmatpush.bf16.msra.mxu2 %v24405_v35 }
 0x433   : > { %v6765_v44 = vpop.f32.mrf.mxu1  ;;  %8410 = vmatpush.bf16.msra.mxu3 %v24414_v50  ;;  %v24387_v50 = vld [vmem:[%s31042_s3 + $0xb20] sm:$0xff] }
 0x434   : > { %v6766_v4 = vadd.f32 %v6765_v44, %v6743_v2  ;;  %8216 = vmatmul.bf16.gmra.mxu2 %v31337_v23  ;;  %8342 = vmatpush.bf16.msra.mxu0 %v24389_v41 }
 0x435   : > { %v6811_v30 = vpop.f32.mrf.mxu3 }
 0x436   : > { %v6826_v62 = vpop.f32.mrf.mxu0  ;;  %8193 = vmatmul.bf16.gmra.mxu1 %v31354_v28 }
 0x437   : > { %v6827_v2 = vadd.f32 %v6826_v62, %v6804_v39  ;;  %v6788_v32 = vpop.f32.mrf.mxu2 }
 0x438   : > { %v6789_v56 = vadd.f32 %v6788_v32, %v6766_v4  ;;  %8343 = vmatpush.bf16.msra.mxu0 %v24388_v52  ;;  %v24413_v4 = vld [vmem:[%s31042_s3 + $0xbf0] sm:$0xff]  ;;  %v24404_v32 = vld [vmem:[%s31042_s3 + $0xba8] sm:$0xff] }
 0x439   : > { %8411 = vmatpush.bf16.msra.mxu3 %v24413_v4  ;;  %8389 = vmatpush.bf16.msra.mxu2 %v24404_v32  ;;  %v24395_v32 = vld [vmem:[%s31042_s3 + $0xb60] sm:$0xff] }
 0x43a   : > { %v6812_v53 = vadd.f32 %v6811_v30, %v6789_v56  ;;  %v24397_v30 = vld [vmem:[%s31042_s3 + $0xb70] sm:$0xff]  ;;  %v24386_v56 = vld [vmem:[%s31042_s3 + $0xb18] sm:$0xff] }
 0x43b   : > { %v6767_v39 = vpop.f32.mrf.mxu1  ;;  %8365 = vmatpush.bf16.msra.mxu1 %v24397_v30  ;;  %v24411_v30 = vld [vmem:[%s31042_s3 + $0xbe0] sm:$0xff] }
 0x43c   : > { %8344 = vmatpush.bf16.msra.mxu0 %v24387_v50  ;;  %v24396_v39 = vld [vmem:[%s31042_s3 + $0xb68] sm:$0xff] }
 0x43d   : > { %v6813_v44 = vpop.f32.mrf.mxu3 }
 0x43e   : > { %v6829_v33 = vpop.f32.mrf.mxu0 }
 0x43f   : > { %v6830_v62 = vadd.f32 %v6829_v33, %v6807_v0  ;;  %v6790_v41 = vpop.f32.mrf.mxu2  ;;  %v24412_v0 = vld [vmem:[%s31042_s3 + $0xbe8] sm:$0xff]  ;;  %8366 = vmatpush.bf16.msra.mxu1 %v24396_v39 }
 0x440   : > { %8412 = vmatpush.bf16.msra.mxu3 %v24412_v0  ;;  %8345 = vmatpush.bf16.msra.mxu0 %v24386_v56  ;;  %v24385_v41 = vld [vmem:[%s31042_s3 + $0xb10] sm:$0xff]  ;;  %v24384_v0 = vld [vmem:[%s31042_s3 + $0xb08] sm:$0xff] }
 0x441   : > { %8257 = vmatmul.bf16.vlgmr.msrb.gmra.mxu0 %v31338_v11 }
 0x442   : > { %8244 = vmatmul.bf16.gmra.mxu3 %v26327_v55 }
 0x443   : > { %v6847_v58 = vpop.f32.mrf.mxu1  ;;  %8367 = vmatpush.bf16.msra.mxu1 %v24395_v32 }
 0x444   : > { %v6848_v52 = vadd.f32 %v6847_v58, %v6825_v45  ;;  %8221 = vmatmul.bf16.gmra.mxu2 %v31340_v48  ;;  %v24403_v45 = vld [vmem:[%s31042_s3 + $0xba0] sm:$0xff]  ;;  %8346 = vmatpush.bf16.msra.mxu0 %v24385_v41  ;;  %v24402_v58 = vld [vmem:[%s31042_s3 + $0xb98] sm:$0xff] }
 0x445   : > { %v6893_v35 = vpop.f32.mrf.mxu3  ;;  %8390 = vmatpush.bf16.msra.mxu2 %v24403_v45  ;;  %8413 = vmatpush.bf16.msra.mxu3 %v24411_v30  ;;  %v24410_v41 = vld [vmem:[%s31042_s3 + $0xbd8] sm:$0xff] }
 0x446   : > { %v6831_v44 = vpop.f32.mrf.mxu0  ;;  %8198 = vmatmul.bf16.gmra.mxu1 %v31330_v24 }
 0x447   : > { %v6832_v4 = vadd.f32 %v6831_v44, %v6809_v21  ;;  %v6870_v33 = vpop.f32.mrf.mxu2 }
 0x448   : > { %v6871_v50 = vadd.f32 %v6870_v33, %v6848_v52  ;;  %8347 = vmatpush.bf16.msra.mxu0 %v24384_v0 }
 0x449   : > { %8391 = vmatpush.bf16.msra.mxu2 %v24402_v58  ;;  %8414 = vmatpush.bf16.msra.mxu3 %v24410_v41  ;;  %v24409_v58 = vld [vmem:[%s31042_s3 + $0xbd0] sm:$0xff]  ;;  %v24408_v41 = vld [vmem:[%s31042_s3 + $0xbc8] sm:$0xff] }
 0x44a   : > { %v6894_v21 = vadd.f32 %v6893_v35, %v6871_v50  ;;  %v24383_v35 = vld [vmem:[%s31042_s3 + $0xb00] sm:$0xff]  ;;  %v24394_v50 = vld [vmem:[%s31042_s3 + $0xb58] sm:$0xff] }
 0x44b   : > { %v6849_v56 = vpop.f32.mrf.mxu1  ;;  %8368 = vmatpush.bf16.msra.mxu1 %v24394_v50 }
 0x44c   : > { %v6850_v52 = vadd.f32 %v6849_v56, %v6827_v2  ;;  %v24401_v2 = vld [vmem:[%s31042_s3 + $0xb90] sm:$0xff]  ;;  %8348 = vmatpush.bf16.msra.mxu0 %v24383_v35 }
 0x44d   : > { %v6895_v39 = vpop.f32.mrf.mxu3  ;;  %8392 = vmatpush.bf16.msra.mxu2 %v24401_v2  ;;  %8415 = vmatpush.bf16.msra.mxu3 %v24409_v58 }
 0x44e   : > { %v6834_v44 = vpop.f32.mrf.mxu0 }
 0x44f   : > { %v6835_v33 = vadd.f32 %v6834_v44, %v6812_v53  ;;  %v6872_v45 = vpop.f32.mrf.mxu2 }
 0x450   : > { %v6873_v30 = vadd.f32 %v6872_v45, %v6850_v52 }
 0x451   : > { %8262 = vmatmul.bf16.gmra.mxu0 %v26509_v46  ;;  %8416 = vmatpush.bf16.msra.mxu3 %v24408_v41 }
 0x452   : > { %8326 = vmatmul.bf16.vlgmr.msrb.gmra.mxu3 %v26516_v13  ;;  %v6896_v53 = vadd.f32 %v6895_v39, %v6873_v30  ;;  %v24393_v39 = vld [vmem:[%s31042_s3 + $0xb50] sm:$0xff] }
 0x453   : > { %v6852_v32 = vpop.f32.mrf.mxu1  ;;  %8369 = vmatpush.bf16.msra.mxu1 %v24393_v39  ;;  %v24407_v39 = vld [vmem:[%s31042_s3 + $0xbc0] sm:$0xff] }
 0x454   : > { %v6853_v0 = vadd.f32 %v6852_v32, %v6830_v62  ;;  %8303 = vmatmul.bf16.vlgmr.msrb.gmra.mxu2 %v31341_v42  ;;  %v24400_v62 = vld [vmem:[%s31042_s3 + $0xb88] sm:$0xff] }
 0x455   : > { %v6898_v56 = vpop.f32.mrf.mxu3  ;;  %8393 = vmatpush.bf16.msra.mxu2 %v24400_v62  ;;  %v24392_v32 = vld [vmem:[%s31042_s3 + $0xb48] sm:$0xff]  ;;  %8417 = vmatpush.bf16.msra.mxu3 %v24407_v39  ;;  %v24430_v39 = vld [vmem:[%s31042_s3 + $0xc78] sm:$0xff] }
 0x456   : > { %v6836_v52 = vpop.f32.mrf.mxu0  ;;  %8280 = vmatmul.bf16.vlgmr.msrb.gmra.mxu1 %v26547_v61 }
 0x457   : > { %v6875_v44 = vpop.f32.mrf.mxu2  ;;  %8370 = vmatpush.bf16.msra.mxu1 %v24392_v32  ;;  %v24399_v52 = vld [vmem:[%s31042_s3 + $0xb80] sm:$0xff]  ;;  %v24421_v32 = vld [vmem:[%s31042_s3 + $0xc30] sm:$0xff] }
 0x458   : > { %v6876_v45 = vadd.f32 %v6875_v44, %v6853_v0 }
 0x459   : > { %8394 = vmatpush.bf16.msra.mxu2 %v24399_v52 }
 0x45a   : > { %v6899_v35 = vadd.f32 %v6898_v56, %v6876_v45  ;;  %v24422_v45 = vld [vmem:[%s31042_s3 + $0xc38] sm:$0xff] }
 0x45b   : > { %v6854_v50 = vpop.f32.mrf.mxu1  ;;  %8433 = vmatpush.bf16.msrb.mxu0 %v24422_v45  ;;  %v24437_v45 = vld [vmem:[%s31042_s3 + $0xcb0] sm:$0xff] }
 0x45c   : > { %v6855_v30 = vadd.f32 %v6854_v50, %v6832_v4 }
 0x45d   : > { %v6900_v2 = vpop.f32.mrf.mxu3 }
 0x45e   : > { %v6916_v0 = vpop.f32.mrf.mxu0 }
 0x45f   : > { %v6917_v56 = vadd.f32 %v6916_v0, %v6894_v21  ;;  %v6877_v58 = vpop.f32.mrf.mxu2  ;;  %v24391_v21 = vld [vmem:[%s31042_s3 + $0xb40] sm:$0xff]  ;;  %8434 = vmatpush.bf16.msrb.mxu0 %v24421_v32 }
 0x460   : > { %v6878_v44 = vadd.f32 %v6877_v58, %v6855_v30  ;;  %v24438_v30 = vld [vmem:[%s31042_s3 + $0xcb8] sm:$0xff]  ;;  %8371 = vmatpush.bf16.msra.mxu1 %v24391_v21  ;;  %v24420_v21 = vld [vmem:[%s31042_s3 + $0xc28] sm:$0xff] }
 0x461   : > { %8267 = vmatmul.bf16.gmra.mxu0 %v26588_v17  ;;  %8479 = vmatpush.bf16.msrb.mxu2 %v24438_v30 }
 0x462   : > { %8331 = vmatmul.bf16.gmra.mxu3 %v26334_v43  ;;  %v6901_v4 = vadd.f32 %v6900_v2, %v6878_v44 }
 0x463   : > { %v6857_v62 = vpop.f32.mrf.mxu1  ;;  %8435 = vmatpush.bf16.msrb.mxu0 %v24420_v21 }
 0x464   : > { %v6858_v41 = vadd.f32 %v6857_v62, %v6835_v33  ;;  %8308 = vmatmul.bf16.gmra.mxu2 %v26617_v31  ;;  %v24446_v33 = vld [vmem:[%s31042_s3 + $0xcf8] sm:$0xff]  ;;  %8456 = vmatpush.bf16.msrb.mxu1 %v24430_v39  ;;  %v24444_v39 = vld [vmem:[%s31042_s3 + $0xce8] sm:$0xff] }
 0x465   : > { %v6903_v50 = vpop.f32.mrf.mxu3  ;;  %8502 = vmatpush.bf16.msrb.mxu3 %v24446_v33  ;;  %8480 = vmatpush.bf16.msrb.mxu2 %v24437_v45 }
 0x466   : > { %v6918_v2 = vpop.f32.mrf.mxu0  ;;  %8285 = vmatmul.bf16.gmra.mxu1 %v26633_v54 }
 0x467   : > { %v6919_v0 = vadd.f32 %v6918_v2, %v6896_v53  ;;  %v6880_v58 = vpop.f32.mrf.mxu2  ;;  %v24445_v53 = vld [vmem:[%s31042_s3 + $0xcf0] sm:$0xff] }
 0x468   : > { %v6881_v52 = vadd.f32 %v6880_v58, %v6858_v41  ;;  %v24429_v2 = vld [vmem:[%s31042_s3 + $0xc70] sm:$0xff]  ;;  %v24436_v58 = vld [vmem:[%s31042_s3 + $0xca8] sm:$0xff] }
 0x469   : > { %8503 = vmatpush.bf16.msrb.mxu3 %v24445_v53  ;;  %8457 = vmatpush.bf16.msrb.mxu1 %v24429_v2  ;;  %v24417_v53 = vld [vmem:[%s31042_s3 + $0xc10] sm:$0xff] }
 0x46a   : > { %v6904_v44 = vadd.f32 %v6903_v50, %v6881_v52  ;;  %v24419_v50 = vld [vmem:[%s31042_s3 + $0xc20] sm:$0xff]  ;;  %v24418_v52 = vld [vmem:[%s31042_s3 + $0xc18] sm:$0xff]  ;;  %8481 = vmatpush.bf16.msrb.mxu2 %v24436_v58 }
 0x46b   : > { %v6859_v62 = vpop.f32.mrf.mxu1  ;;  %8436 = vmatpush.bf16.msrb.mxu0 %v24419_v50  ;;  %v24443_v58 = vld [vmem:[%s31042_s3 + $0xce0] sm:$0xff] }
 0x46c   : > { %v24428_v62 = vld [vmem:[%s31042_s3 + $0xc68] sm:$0xff] }
 0x46d   : > { %v6905_v30 = vpop.f32.mrf.mxu3  ;;  %8504 = vmatpush.bf16.msrb.mxu3 %v24444_v39  ;;  %8458 = vmatpush.bf16.msrb.mxu1 %v24428_v62  ;;  %v24427_v39 = vld [vmem:[%s31042_s3 + $0xc60] sm:$0xff] }
 0x46e   : > { %v6921_v41 = vpop.f32.mrf.mxu0 }
 0x46f   : > { %v6922_v32 = vadd.f32 %v6921_v41, %v6899_v35  ;;  %v6882_v33 = vpop.f32.mrf.mxu2  ;;  %8437 = vmatpush.bf16.msrb.mxu0 %v24418_v52  ;;  %v24416_v52 = vld [vmem:[%s31042_s3 + $0xc08] sm:$0xff] }
 0x471   : > { %8349 = vmatmul.bf16.vlgmr.msra.gmra.mxu0 %v26685_v25  ;;  %8505 = vmatpush.bf16.msrb.mxu3 %v24443_v58  ;;  %v24433_v58 = vld [vmem:[%s31042_s3 + $0xc90] sm:$0xff] }
 0x472   : > { %8336 = vmatmul.bf16.gmra.mxu3 %v26677_v19  ;;  %8459 = vmatpush.bf16.msrb.mxu1 %v24427_v39 }
 0x473   : > { %v6939_v35 = vpop.f32.mrf.mxu1  ;;  %8438 = vmatpush.bf16.msrb.mxu0 %v24417_v53  ;;  %v24442_v53 = vld [vmem:[%s31042_s3 + $0xcd8] sm:$0xff] }
 0x474   : > { %v6940_v21 = vadd.f32 %v6939_v35, %v6917_v56  ;;  %8313 = vmatmul.bf16.gmra.mxu2 %v26581_v36  ;;  %v24435_v56 = vld [vmem:[%s31042_s3 + $0xca0] sm:$0xff]  ;;  %v24434_v35 = vld [vmem:[%s31042_s3 + $0xc98] sm:$0xff] }
 0x475   : > { %v6985_v45 = vpop.f32.mrf.mxu3  ;;  %8482 = vmatpush.bf16.msrb.mxu2 %v24435_v56  ;;  %8506 = vmatpush.bf16.msrb.mxu3 %v24442_v53 }
 0x476   : > { %v6923_v30 = vpop.f32.mrf.mxu0  ;;  %8290 = vmatmul.bf16.gmra.mxu1 %v26619_v20 }
 0x477   : > { %v6924_v41 = vadd.f32 %v6923_v30, %v6901_v4  ;;  %v6962_v50 = vpop.f32.mrf.mxu2  ;;  %8439 = vmatpush.bf16.msrb.mxu0 %v24416_v52  ;;  %v24415_v30 = vld [vmem:[%s31042_s3 + $0xc00] sm:$0xff] }
 0x478   : > { %v6963_v2 = vadd.f32 %v6962_v50, %v6940_v21 }
 0x479   : > { %8483 = vmatpush.bf16.msrb.mxu2 %v24434_v35 }
 0x47a   : > { %v28002_v33 = vadd.f32 %v6985_v45, %v6963_v2 }
 0x47b   : > { %v6941_v4 = vpop.f32.mrf.mxu1  ;;  %8440 = vmatpush.bf16.msrb.mxu0 %v24415_v30 }
 0x47c   : > { %v6942_v21 = vadd.f32 %v6941_v4, %v6919_v0  ;;  %v24426_v0 = vld [vmem:[%s31042_s3 + $0xc58] sm:$0xff]  ;;  %v25251_v4 = vld [vmem:[#allocation2 + $0x20] sm:$0xff]  }
 0x47d   : > { %v6987_v45 = vpop.f32.mrf.mxu3  ;;  %8460 = vmatpush.bf16.msrb.mxu1 %v24426_v0  ;;  %8484 = vmatpush.bf16.msrb.mxu2 %v24433_v58  ;;  %v24440_v0 = vld [vmem:[%s31042_s3 + $0xcc8] sm:$0xff] }
 0x47e   : > { %v6926_v62 = vpop.f32.mrf.mxu0 }
 0x47f   : > { %v6927_v56 = vadd.f32 %v6926_v62, %v6904_v44  ;;  %v6964_v50 = vpop.f32.mrf.mxu2 }
 0x480   : > { %v6965_v2 = vadd.f32 %v6964_v50, %v6942_v21  ;;  %v24441_v21 = vld [vmem:[%s31042_s3 + $0xcd0] sm:$0xff]  ;;  %v24432_v50 = vld [vmem:[%s31042_s3 + $0xc88] sm:$0xff] }
 0x481   : > { %8354 = vmatmul.bf16.gmra.mxu0 %v26748_v22  ;;  %8507 = vmatpush.bf16.msrb.mxu3 %v24441_v21 }
 0x482   : > { %8418 = vmatmul.bf16.vlgmr.msra.gmra.mxu3 %v31343_v15  ;;  %v28030_v52 = vadd.f32 %v6987_v45, %v6965_v2  ;;  %v24425_v45 = vld [vmem:[%s31042_s3 + $0xc50] sm:$0xff]  ;;  %8485 = vmatpush.bf16.msrb.mxu2 %v24432_v50  ;;  %v24454_v50 = vld [vmem:[%s31042_s3 + $0xd38] sm:$0xff] }
 0x483   : > { %v6944_v44 = vpop.f32.mrf.mxu1  ;;  %8461 = vmatpush.bf16.msrb.mxu1 %v24425_v45  ;;  %8525 = vmatpush.bf16.msra.mxu0 %v24454_v50  ;;  %v24462_v50 = vld [vmem:[%s31042_s3 + $0xd78] sm:$0xff] }
 0x484   : > { %v6945_v39 = vadd.f32 %v6944_v44, %v6922_v32  ;;  %8395 = vmatmul.bf16.vlgmr.msra.gmra.mxu2 %v25251_v4 }
 0x485   : > { %v6990_v35 = vpop.f32.mrf.mxu3  ;;  %8508 = vmatpush.bf16.msrb.mxu3 %v24440_v0 }
 0x486   : > { %v6928_v62 = vpop.f32.mrf.mxu0  ;;  %8372 = vmatmul.bf16.vlgmr.msra.gmra.mxu1 %v26363_v18 }
 0x487   : > { %v6967_v53 = vpop.f32.mrf.mxu2  ;;  %v24431_v62 = vld [vmem:[%s31042_s3 + $0xc80] sm:$0xff] }
 0x488   : > { %v6968_v32 = vadd.f32 %v6967_v53, %v6945_v39  ;;  %v24424_v39 = vld [vmem:[%s31042_s3 + $0xc48] sm:$0xff]  ;;  %8486 = vmatpush.bf16.msrb.mxu2 %v24431_v62  ;;  %v24470_v62 = vld [vmem:[%s31042_s3 + $0xdb8] sm:$0xff] }
 0x489   : > { %8462 = vmatpush.bf16.msrb.mxu1 %v24424_v39 }
 0x48a   : > { %v28047_v2 = vadd.f32 %v6990_v35, %v6968_v32  ;;  %v24423_v32 = vld [vmem:[%s31042_s3 + $0xc40] sm:$0xff] }
 0x48b   : > { %v6946_v58 = vpop.f32.mrf.mxu1 }
 0x48c   : > { %v6947_v44 = vadd.f32 %v6946_v58, %v6924_v41  ;;  %v24439_v41 = vld [vmem:[%s31042_s3 + $0xcc0] sm:$0xff]  ;;  %9729 = vmatpush.bf16.msra.mxu2 %v24470_v62  ;;  %v24469_v62 = vld [vmem:[%s31042_s3 + $0xdb0] sm:$0xff] }
 0x48d   : > { %v6992_v4 = vpop.f32.mrf.mxu3  ;;  %8509 = vmatpush.bf16.msrb.mxu3 %v24439_v41  ;;  %8463 = vmatpush.bf16.msrb.mxu1 %v24423_v32 }
 0x48e   : > { %v8166_v21 = vpop.f32.mrf.mxu0 }
 0x48f   : > { %v6969_v35 = vpop.f32.mrf.mxu2 }
 0x490   : > { %v6970_v53 = vadd.f32 %v6969_v35, %v6947_v44  ;;  %9730 = vmatpush.bf16.msra.mxu2 %v24469_v62 }
 0x491   : > { %8359 = vmatmul.bf16.gmra.mxu0 %v26787_v37  ;;  %8548 = vmatpush.bf16.msra.mxu1 %v24462_v50  ;;  %v24450_v50 = vld [vmem:[%s31042_s3 + $0xd18] sm:$0xff] }
 0x492   : > { %8423 = vmatmul.bf16.gmra.mxu3 %v31348_v63  ;;  %v28068_v0 = vadd.f32 %v6992_v4, %v6970_v53  ;;  %v24453_v4 = vld [vmem:[%s31042_s3 + $0xd30] sm:$0xff]  ;;  %v24478_v53 = vld [vmem:[%s31042_s3 + $0xdf8] sm:$0xff] }
 0x493   : > { %v6949_v58 = vpop.f32.mrf.mxu1  ;;  %8526 = vmatpush.bf16.msra.mxu0 %v24453_v4  ;;  %9752 = vmatpush.bf16.msra.mxu3 %v24478_v53  ;;  %v24477_v4 = vld [vmem:[%s31042_s3 + $0xdf0] sm:$0xff] }
 0x494   : > { %31355 = vst [vmem:[#allocation26_spill] sm:$0xff] %v28068_v0  ;;  %v6950_v44 = vadd.f32 %v6949_v58, %v6927_v56  ;;  %8400 = vmatmul.bf16.gmra.mxu2 %v26176_v8  ;;  %v24452_v58 = vld [vmem:[%s31042_s3 + $0xd28] sm:$0xff]  ;;  %v24463_v0 = vld [vmem:[%s31042_s3 + $0xd80] sm:$0xff] }
 0x495   : > { %v6995_v39 = vpop.f32.mrf.mxu3 }
 0x496   : > { %v8168_v35 = vpop.f32.mrf.mxu0  ;;  %8377 = vmatmul.bf16.gmra.mxu1 %v26427_v38 }
 0x497   : > { %v6972_v41 = vpop.f32.mrf.mxu2  ;;  %8527 = vmatpush.bf16.msra.mxu0 %v24452_v58  ;;  %9753 = vmatpush.bf16.msra.mxu3 %v24477_v4  ;;  %v24460_v4 = vld [vmem:[%s31042_s3 + $0xd68] sm:$0xff] }
 0x498   : > { %v6973_v32 = vadd.f32 %v6972_v41, %v6950_v44 }
 0x49a   : > { %v28092_v45 = vadd.f32 %v6995_v39, %v6973_v32  ;;  %v24451_v39 = vld [vmem:[%s31042_s3 + $0xd20] sm:$0xff]  ;;  %v24468_v32 = vld [vmem:[%s31042_s3 + $0xda8] sm:$0xff] }
 0x49b   : > { %v6951_v56 = vpop.f32.mrf.mxu1  ;;  %8528 = vmatpush.bf16.msra.mxu0 %v24451_v39  ;;  %9731 = vmatpush.bf16.msra.mxu2 %v24468_v32  ;;  %v24467_v32 = vld [vmem:[%s31042_s3 + $0xda0] sm:$0xff] }
 0x49c   : > { %31356 = vst [vmem:[#allocation36_spill] sm:$0xff] %v28092_v45  ;;  %v24461_v56 = vld [vmem:[%s31042_s3 + $0xd70] sm:$0xff] }
 0x49d   : > { %v6997_v44 = vpop.f32.mrf.mxu3  ;;  %8549 = vmatpush.bf16.msra.mxu1 %v24461_v56 }
 0x49e   : > { %v8171_v53 = vpop.f32.mrf.mxu0 }
 0x49f   : > { %v6974_v30 = vpop.f32.mrf.mxu2  ;;  %8529 = vmatpush.bf16.msra.mxu0 %v24450_v50  ;;  %v24459_v50 = vld [vmem:[%s31042_s3 + $0xd60] sm:$0xff]  ;;  %9732 = vmatpush.bf16.msra.mxu2 %v24467_v32  ;;  %v24458_v32 = vld [vmem:[%s31042_s3 + $0xd58] sm:$0xff] }
 0x4a0   : > { %v24476_v30 = vld [vmem:[%s31042_s3 + $0xde8] sm:$0xff] }
 0x4a1   : > { %8441 = vmatmul.bf16.vlgmr.msrb.gmra.mxu0 %v31342_v57  ;;  %9754 = vmatpush.bf16.msra.mxu3 %v24476_v30 }
 0x4a2   : > { %8428 = vmatmul.bf16.gmra.mxu3 %v31349_v51  ;;  %8550 = vmatpush.bf16.msra.mxu1 %v24460_v4  ;;  %v24448_v4 = vld [vmem:[%s31042_s3 + $0xd08] sm:$0xff] }
 0x4a3   : > { %v8189_v58 = vpop.f32.mrf.mxu1 }
 0x4a4   : > { %v8190_v62 = vadd.f32 %v8189_v58, %v8166_v21  ;;  %8405 = vmatmul.bf16.gmra.mxu2 %v31345_v47  ;;  %v24449_v21 = vld [vmem:[%s31042_s3 + $0xd10] sm:$0xff]  ;;  %v24475_v58 = vld [vmem:[%s31042_s3 + $0xde0] sm:$0xff] }
 0x4a5   : > { %v8235_v44 = vpop.f32.mrf.mxu3  ;;  %8530 = vmatpush.bf16.msra.mxu0 %v24449_v21  ;;  %9755 = vmatpush.bf16.msra.mxu3 %v24475_v58  ;;  %v24474_v21 = vld [vmem:[%s31042_s3 + $0xdd8] sm:$0xff]  ;;  %v31357_v58 = vld [vmem:[#allocation11_spill] sm:$0xff] }
 0x4a6   : > { %v8173_v41 = vpop.f32.mrf.mxu0  ;;  %8382 = vmatmul.bf16.gmra.mxu1 %v26390_v34 }
 0x4a7   : > { %v8212_v56 = vpop.f32.mrf.mxu2  ;;  %8551 = vmatpush.bf16.msra.mxu1 %v24459_v50 }
 0x4a8   : > { %v8213_v30 = vadd.f32 %v8212_v56, %v8190_v62  ;;  %v24466_v62 = vld [vmem:[%s31042_s3 + $0xd98] sm:$0xff] }
 0x4a9   : > { %9733 = vmatpush.bf16.msra.mxu2 %v24466_v62  ;;  %8531 = vmatpush.bf16.msra.mxu0 %v24448_v4  ;;  %v28155_v62 = vld [vmem:[#allocation2 + $0x8] sm:$0xff]  }
 0x4aa   : > { %v8236_v39 = vadd.f32 %v8235_v44, %v8213_v30  ;;  %v24447_v44 = vld [vmem:[%s31042_s3 + $0xd00] sm:$0xff]  ;;  %9756 = vmatpush.bf16.msra.mxu3 %v24474_v21 }
 0x4ab   : > { %v8191_v51 = vpop.f32.mrf.mxu1  ;;  %8552 = vmatpush.bf16.msra.mxu1 %v24458_v32  ;;  %v24472_v32 = vld [vmem:[%s31042_s3 + $0xdc8] sm:$0xff] }
 0x4ac   : > { %v8192_v56 = vadd.f32 %v8191_v51, %v8168_v35  ;;  %v24465_v51 = vld [vmem:[%s31042_s3 + $0xd90] sm:$0xff] }
 0x4ad   : > { %v8237_v63 = vpop.f32.mrf.mxu3  ;;  %8532 = vmatpush.bf16.msra.mxu0 %v24447_v44  ;;  %9734 = vmatpush.bf16.msra.mxu2 %v24465_v51  ;;  %v24457_v44 = vld [vmem:[%s31042_s3 + $0xd50] sm:$0xff] }
 0x4ae   : > { %v8176_v45 = vpop.f32.mrf.mxu0 }
 0x4af   : > { %v8214_v26 = vpop.f32.mrf.mxu2  ;;  %8553 = vmatpush.bf16.msra.mxu1 %v24457_v44  ;;  %v31359_v44 = vld [vmem:[#allocation7_spill] sm:$0xff] }
 0x4b0   : > { %v8215_v30 = vadd.f32 %v8214_v26, %v8192_v56  ;;  %v24473_v56 = vld [vmem:[%s31042_s3 + $0xdd0] sm:$0xff] }
 0x4b1   : > { %8446 = vmatmul.bf16.gmra.mxu0 %v31357_v58  ;;  %v31358_v58 = vld [vmem:[#allocation34_spill] sm:$0xff]  ;;  %9757 = vmatpush.bf16.msra.mxu3 %v24473_v56  ;;  %v24456_v56 = vld [vmem:[%s31042_s3 + $0xd48] sm:$0xff] }
 0x4b2   : > { %8510 = vmatmul.bf16.vlgmr.msrb.gmra.mxu3 %v31350_v49  ;;  %v8238_v35 = vadd.f32 %v8237_v63, %v8215_v30 }
 0x4b3   : > { %v8194_v50 = vpop.f32.mrf.mxu1  ;;  %8554 = vmatpush.bf16.msra.mxu1 %v24456_v56  ;;  %v31360_v56 = vld [vmem:[#allocation33_spill] sm:$0xff] }
 0x4b4   : > { %v8195_v4 = vadd.f32 %v8194_v50, %v8171_v53  ;;  %8487 = vmatmul.bf16.vlgmr.msrb.gmra.mxu2 %v28155_v62  ;;  %v24464_v53 = vld [vmem:[%s31042_s3 + $0xd88] sm:$0xff] }
 0x4b5   : > { %v8240_v26 = vpop.f32.mrf.mxu3  ;;  %9735 = vmatpush.bf16.msra.mxu2 %v24464_v53  ;;  %9758 = vmatpush.bf16.msra.mxu3 %v24472_v32 }
 0x4b6   : > { %v8178_v49 = vpop.f32.mrf.mxu0  ;;  %8464 = vmatmul.bf16.vlgmr.msrb.gmra.mxu1 %v31358_v58 }
 0x4b7   : > { %v8217_v63 = vpop.f32.mrf.mxu2 }
 0x4b8   : > { %v8218_v21 = vadd.f32 %v8217_v63, %v8195_v4 }
 0x4b9   : > { %9736 = vmatpush.bf16.msra.mxu2 %v24463_v0  ;;  %v24510_v0 = vld [vmem:[%s31042_s3 + $0xef8] sm:$0xff] }
 0x4ba   : > { %v8241_v30 = vadd.f32 %v8240_v26, %v8218_v21  ;;  %v24471_v26 = vld [vmem:[%s31042_s3 + $0xdc0] sm:$0xff] }
 0x4bb   : > { %v8196_v49 = vpop.f32.mrf.mxu1  ;;  %9759 = vmatpush.bf16.msra.mxu3 %v24471_v26  ;;  %v24494_v26 = vld [vmem:[%s31042_s3 + $0xe78] sm:$0xff] }
 0x4bc   : > { %v8197_v51 = vadd.f32 %v8196_v49, %v8173_v41  ;;  %v24455_v41 = vld [vmem:[%s31042_s3 + $0xd40] sm:$0xff]  ;;  %v24502_v49 = vld [vmem:[%s31042_s3 + $0xeb8] sm:$0xff] }
 0x4bd   : > { %v8242_v50 = vpop.f32.mrf.mxu3  ;;  %8555 = vmatpush.bf16.msra.mxu1 %v24455_v41  ;;  %9821 = vmatpush.bf16.msrb.mxu2 %v24502_v49  ;;  %v24484_v41 = vld [vmem:[%s31042_s3 + $0xe28] sm:$0xff] }
 0x4be   : > { %v8258_v4 = vpop.f32.mrf.mxu0 }
 0x4bf   : > { %v8259_v63 = vadd.f32 %v8258_v4, %v8236_v39  ;;  %v8219_v47 = vpop.f32.mrf.mxu2  ;;  %v24486_v39 = vld [vmem:[%s31042_s3 + $0xe38] sm:$0xff]  ;;  %9844 = vmatpush.bf16.msrb.mxu3 %v24510_v0 }
 0x4c0   : > { %v8220_v27 = vadd.f32 %v8219_v47, %v8197_v51  ;;  %9775 = vmatpush.bf16.msrb.mxu0 %v24486_v39  ;;  %v24501_v39 = vld [vmem:[%s31042_s3 + $0xeb0] sm:$0xff] }
 0x4c1   : > { %8451 = vmatmul.bf16.gmra.mxu0 %v31359_v44  ;;  %9798 = vmatpush.bf16.msrb.mxu1 %v24494_v26  ;;  %v31361_v26 = vld [vmem:[#allocation35_spill] sm:$0xff] }
 0x4c2   : > { %8515 = vmatmul.bf16.gmra.mxu3 %v27018_v59  ;;  %v8243_v21 = vadd.f32 %v8242_v50, %v8220_v27  ;;  %v24485_v27 = vld [vmem:[%s31042_s3 + $0xe30] sm:$0xff]  ;;  %9822 = vmatpush.bf16.msrb.mxu2 %v24501_v39 }
 0x4c3   : > { %v8199_v47 = vpop.f32.mrf.mxu1 }
 0x4c4   : > { %v8200_v53 = vadd.f32 %v8199_v47, %v8176_v45  ;;  %8492 = vmatmul.bf16.gmra.mxu2 %v31309_v10  ;;  %9776 = vmatpush.bf16.msrb.mxu0 %v24485_v27 }
 0x4c5   : > { %v8245_v32 = vpop.f32.mrf.mxu3 }
 0x4c6   : > { %v8260_v51 = vpop.f32.mrf.mxu0  ;;  %8469 = vmatmul.bf16.gmra.mxu1 %v31360_v56 }
 0x4c7   : > { %v8261_v45 = vadd.f32 %v8260_v51, %v8238_v35  ;;  %v8222_v50 = vpop.f32.mrf.mxu2 }
 0x4c8   : > { %v8223_v4 = vadd.f32 %v8222_v50, %v8200_v53  ;;  %9777 = vmatpush.bf16.msrb.mxu0 %v24484_v41  ;;  %v24509_v53 = vld [vmem:[%s31042_s3 + $0xef0] sm:$0xff]  ;;  %v24483_v50 = vld [vmem:[%s31042_s3 + $0xe20] sm:$0xff]  ;;  %v24482_v41 = vld [vmem:[%s31042_s3 + $0xe18] sm:$0xff] }
 0x4c9   : > { %9845 = vmatpush.bf16.msrb.mxu3 %v24509_v53  ;;  %v24492_v53 = vld [vmem:[%s31042_s3 + $0xe68] sm:$0xff] }
 0x4ca   : > { %v8246_v47 = vadd.f32 %v8245_v32, %v8223_v4  ;;  %v24493_v32 = vld [vmem:[%s31042_s3 + $0xe70] sm:$0xff]  ;;  %v24500_v4 = vld [vmem:[%s31042_s3 + $0xea8] sm:$0xff] }
 0x4cb   : > { %v8201_v35 = vpop.f32.mrf.mxu1  ;;  %9799 = vmatpush.bf16.msrb.mxu1 %v24493_v32  ;;  %9823 = vmatpush.bf16.msrb.mxu2 %v24500_v4  ;;  %v24481_v4 = vld [vmem:[%s31042_s3 + $0xe10] sm:$0xff] }
 0x4cc   : > { %9778 = vmatpush.bf16.msrb.mxu0 %v24483_v50 }
 0x4cd   : > { %v8247_v49 = vpop.f32.mrf.mxu3 }
 0x4ce   : > { %v8263_v51 = vpop.f32.mrf.mxu0 }
 0x4cf   : > { %v8264_v27 = vadd.f32 %v8263_v51, %v8241_v30  ;;  %v8224_v0 = vpop.f32.mrf.mxu2  ;;  %v24508_v30 = vld [vmem:[%s31042_s3 + $0xee8] sm:$0xff]  ;;  %9800 = vmatpush.bf16.msrb.mxu1 %v24492_v53 }
 0x4d0   : > { %9846 = vmatpush.bf16.msrb.mxu3 %v24508_v30  ;;  %v31362_v0 = vld [vmem:[#allocation28_spill] sm:$0xff]  ;;  %9779 = vmatpush.bf16.msrb.mxu0 %v24482_v41  ;;  %v24491_v41 = vld [vmem:[%s31042_s3 + $0xe60] sm:$0xff]  ;;  %v24480_v53 = vld [vmem:[%s31042_s3 + $0xe08] sm:$0xff] }
 0x4d1   : > { %8533 = vmatmul.bf16.vlgmr.msra.gmra.mxu0 %v31361_v26 }
 0x4d2   : > { %8520 = vmatmul.bf16.gmra.mxu3 %v31352_v40 }
 0x4d3   : > { %v8281_v39 = vpop.f32.mrf.mxu1  ;;  %9801 = vmatpush.bf16.msrb.mxu1 %v24491_v41 }
 0x4d4   : > { %v8282_v35 = vadd.f32 %v8281_v39, %v8259_v63  ;;  %8497 = vmatmul.bf16.gmra.mxu2 %v27100_v7  ;;  %v24499_v63 = vld [vmem:[%s31042_s3 + $0xea0] sm:$0xff]  ;;  %9780 = vmatpush.bf16.msrb.mxu0 %v24481_v4  ;;  %v24506_v4 = vld [vmem:[%s31042_s3 + $0xed8] sm:$0xff] }
 0x4d5   : > { %v8327_v49 = vpop.f32.mrf.mxu3  ;;  %v24507_v39 = vld [vmem:[%s31042_s3 + $0xee0] sm:$0xff]  ;;  %9824 = vmatpush.bf16.msrb.mxu2 %v24499_v63 }
 0x4d6   : > { %v8265_v51 = vpop.f32.mrf.mxu0  ;;  %8474 = vmatmul.bf16.gmra.mxu1 %v31362_v0  ;;  %9847 = vmatpush.bf16.msrb.mxu3 %v24507_v39 }
 0x4d7   : > { %v8266_v50 = vadd.f32 %v8265_v51, %v8243_v21  ;;  %v8304_v32 = vpop.f32.mrf.mxu2 }
 0x4d8   : > { %v8305_v30 = vadd.f32 %v8304_v32, %v8282_v35  ;;  %v24498_v35 = vld [vmem:[%s31042_s3 + $0xe98] sm:$0xff]  ;;  %9781 = vmatpush.bf16.msrb.mxu0 %v24480_v53  ;;  %v25253_v53 = vld [vmem:[#allocation2] sm:$0xff]  }
 0x4d9   : > { %9825 = vmatpush.bf16.msrb.mxu2 %v24498_v35  ;;  %v24505_v35 = vld [vmem:[%s31042_s3 + $0xed0] sm:$0xff] }
 0x4da   : > { %v8328_v21 = vadd.f32 %v8327_v49, %v8305_v30  ;;  %v24479_v49 = vld [vmem:[%s31042_s3 + $0xe00] sm:$0xff]  ;;  %v24490_v30 = vld [vmem:[%s31042_s3 + $0xe58] sm:$0xff]  ;;  %9848 = vmatpush.bf16.msrb.mxu3 %v24506_v4  ;;  %v24504_v4 = vld [vmem:[%s31042_s3 + $0xec8] sm:$0xff] }
 0x4db   : > { %v8283_v51 = vpop.f32.mrf.mxu1  ;;  %9802 = vmatpush.bf16.msrb.mxu1 %v24490_v30 }
 0x4dc   : > { %v8284_v32 = vadd.f32 %v8283_v51, %v8261_v45  ;;  %9782 = vmatpush.bf16.msrb.mxu0 %v24479_v49 }
 0x4dd   : > { %v8329_v40 = vpop.f32.mrf.mxu3 }
 0x4de   : > { %v8268_v59 = vpop.f32.mrf.mxu0  ;;  %9849 = vmatpush.bf16.msrb.mxu3 %v24505_v35 }
 0x4df   : > { %v8269_v7 = vadd.f32 %v8268_v59, %v8246_v47  ;;  %v8306_v63 = vpop.f32.mrf.mxu2  ;;  %v24497_v59 = vld [vmem:[%s31042_s3 + $0xe90] sm:$0xff] }
 0x4e0   : > { %v8307_v39 = vadd.f32 %v8306_v63, %v8284_v32  ;;  %9826 = vmatpush.bf16.msrb.mxu2 %v24497_v59 }
 0x4e1   : > { %8538 = vmatmul.bf16.gmra.mxu0 %v27166_v12 }
 0x4e2   : > { %9760 = vmatmul.bf16.vlgmr.msra.gmra.mxu3 %v31353_v14  ;;  %v8330_v45 = vadd.f32 %v8329_v40, %v8307_v39  ;;  %v31363_v14 = vld [vmem:[#allocation38_spill] sm:$0xff]  ;;  %v24489_v40 = vld [vmem:[%s31042_s3 + $0xe50] sm:$0xff] }
 0x4e3   : > { %v8286_v47 = vpop.f32.mrf.mxu1  ;;  %9803 = vmatpush.bf16.msrb.mxu1 %v24489_v40  ;;  %9850 = vmatpush.bf16.msrb.mxu3 %v24504_v4 }
 0x4e4   : > { %v8287_v41 = vadd.f32 %v8286_v47, %v8264_v27  ;;  %9737 = vmatmul.bf16.vlgmr.msra.gmra.mxu2 %v25253_v53  ;;  %v24496_v27 = vld [vmem:[%s31042_s3 + $0xe88] sm:$0xff] }
 0x4e5   : > { %v8332_v51 = vpop.f32.mrf.mxu3  ;;  %9827 = vmatpush.bf16.msrb.mxu2 %v24496_v27  ;;  %v24488_v53 = vld [vmem:[%s31042_s3 + $0xe48] sm:$0xff] }
 0x4e6   : > { %v8270_v32 = vpop.f32.mrf.mxu0  ;;  %8556 = vmatmul.bf16.vlgmr.msra.gmra.mxu1 %v31363_v14 }
 0x4e7   : > { %v8309_v63 = vpop.f32.mrf.mxu2  ;;  %9804 = vmatpush.bf16.msrb.mxu1 %v24488_v53  ;;  %v24526_v53 = vld [vmem:[%s31042_s3 + $0xf78] sm:$0xff] }
 0x4e8   : > { %v8310_v49 = vadd.f32 %v8309_v63, %v8287_v41  ;;  %v24495_v63 = vld [vmem:[%s31042_s3 + $0xe80] sm:$0xff] }
 0x4e9   : > { %9828 = vmatpush.bf16.msrb.mxu2 %v24495_v63 }
 0x4ea   : > { %v8333_v30 = vadd.f32 %v8332_v51, %v8310_v49  ;;  %v24503_v51 = vld [vmem:[%s31042_s3 + $0xec0] sm:$0xff] }
 0x4eb   : > { %v8288_v39 = vpop.f32.mrf.mxu1  ;;  %9851 = vmatpush.bf16.msrb.mxu3 %v24503_v51 }
 0x4ec   : > { %v8289_v59 = vadd.f32 %v8288_v39, %v8266_v50  ;;  %v24487_v50 = vld [vmem:[%s31042_s3 + $0xe40] sm:$0xff] }
 0x4ed   : > { %v8334_v47 = vpop.f32.mrf.mxu3  ;;  %9805 = vmatpush.bf16.msrb.mxu1 %v24487_v50  ;;  %v24541_v50 = vld [vmem:[%s31042_s3 + $0xff0] sm:$0xff] }
 0x4ee   : > { %v8350_v41 = vpop.f32.mrf.mxu0 }
 0x4ef   : > { %v8351_v35 = vadd.f32 %v8350_v41, %v8328_v21  ;;  %v8311_v32 = vpop.f32.mrf.mxu2  ;;  %v24518_v21 = vld [vmem:[%s31042_s3 + $0xf38] sm:$0xff]  ;;  %v24516_v41 = vld [vmem:[%s31042_s3 + $0xf28] sm:$0xff] }
 0x4f0   : > { %v8312_v12 = vadd.f32 %v8311_v32, %v8289_v59  ;;  %9867 = vmatpush.bf16.msra.mxu0 %v24518_v21  ;;  %v24542_v59 = vld [vmem:[%s31042_s3 + $0xff8] sm:$0xff]  ;;  %v24533_v32 = vld [vmem:[%s31042_s3 + $0xfb0] sm:$0xff] }
 0x4f1   : > { %8543 = vmatmul.bf16.gmra.mxu0 %v31351_v9  ;;  %9936 = vmatpush.bf16.msra.mxu3 %v24542_v59 }
 0x4f2   : > { %9765 = vmatmul.bf16.gmra.mxu3 %v31354_v28  ;;  %v8335_v40 = vadd.f32 %v8334_v47, %v8312_v12  ;;  %v24534_v28 = vld [vmem:[%s31042_s3 + $0xfb8] sm:$0xff]  ;;  %v24517_v12 = vld [vmem:[%s31042_s3 + $0xf30] sm:$0xff]  ;;  %9890 = vmatpush.bf16.msra.mxu1 %v24526_v53 }
 0x4f3   : > { %v8291_v49 = vpop.f32.mrf.mxu1  ;;  %9913 = vmatpush.bf16.msra.mxu2 %v24534_v28  ;;  %v24515_v28 = vld [vmem:[%s31042_s3 + $0xf20] sm:$0xff]  ;;  %v31364_v53 = vld [vmem:[#allocation37_spill] sm:$0xff] }
 0x4f4   : > { %v8292_v27 = vadd.f32 %v8291_v49, %v8269_v7  ;;  %9742 = vmatmul.bf16.gmra.mxu2 %v28155_v62  ;;  %9868 = vmatpush.bf16.msra.mxu0 %v24517_v12  ;;  %v24514_v12 = vld [vmem:[%s31042_s3 + $0xf18] sm:$0xff] }
 0x4f5   : > { %v8337_v4 = vpop.f32.mrf.mxu3  ;;  %9937 = vmatpush.bf16.msra.mxu3 %v24541_v50  ;;  %v24523_v50 = vld [vmem:[%s31042_s3 + $0xf60] sm:$0xff] }
 0x4f6   : > { %v8352_v39 = vpop.f32.mrf.mxu0  ;;  %8561 = vmatmul.bf16.gmra.mxu1 %v26592_v3 }
 0x4f7   : > { %v8353_v7 = vadd.f32 %v8352_v39, %v8330_v45  ;;  %v8314_v47 = vpop.f32.mrf.mxu2  ;;  %9914 = vmatpush.bf16.msra.mxu2 %v24533_v32  ;;  %v24532_v39 = vld [vmem:[%s31042_s3 + $0xfa8] sm:$0xff] }
 0x4f8   : > { %v8315_v62 = vadd.f32 %v8314_v47, %v8292_v27  ;;  %9869 = vmatpush.bf16.msra.mxu0 %v24516_v41 }
 0x4fa   : > { %v8338_v63 = vadd.f32 %v8337_v4, %v8315_v62  ;;  %v24525_v4 = vld [vmem:[%s31042_s3 + $0xf70] sm:$0xff] }
 0x4fb   : > { %v8293_v45 = vpop.f32.mrf.mxu1  ;;  %9891 = vmatpush.bf16.msra.mxu1 %v24525_v4  ;;  %9915 = vmatpush.bf16.msra.mxu2 %v24532_v39 }
 0x4fc   : > { %9870 = vmatpush.bf16.msra.mxu0 %v24515_v28  ;;  %v24513_v45 = vld [vmem:[%s31042_s3 + $0xf10] sm:$0xff]  ;;  %v24530_v28 = vld [vmem:[%s31042_s3 + $0xf98] sm:$0xff] }
 0x4fd   : > { %v8339_v51 = vpop.f32.mrf.mxu3 }
 0x4fe   : > { %v8355_v21 = vpop.f32.mrf.mxu0  ;;  %v24539_v51 = vld [vmem:[%s31042_s3 + $0xfe0] sm:$0xff] }
 0x4ff   : > { %v8356_v49 = vadd.f32 %v8355_v21, %v8333_v30  ;;  %v8316_v27 = vpop.f32.mrf.mxu2  ;;  %v24540_v30 = vld [vmem:[%s31042_s3 + $0xfe8] sm:$0xff] }
 0x500   : > { %9938 = vmatpush.bf16.msra.mxu3 %v24540_v30  ;;  %9871 = vmatpush.bf16.msra.mxu0 %v24514_v12  ;;  %v24512_v21 = vld [vmem:[%s31042_s3 + $0xf08] sm:$0xff] }
 0x501   : > { %9783 = vmatmul.bf16.vlgmr.msrb.gmra.mxu0 %v31329_v16  ;;  %v24524_v16 = vld [vmem:[%s31042_s3 + $0xf68] sm:$0xff] }
 0x502   : > { %9770 = vmatmul.bf16.gmra.mxu3 %v31330_v24  ;;  %9892 = vmatpush.bf16.msra.mxu1 %v24524_v16  ;;  %v24522_v16 = vld [vmem:[%s31042_s3 + $0xf58] sm:$0xff] }
 0x503   : > { %v8373_v59 = vpop.f32.mrf.mxu1 }
 0x504   : > { %v8374_v47 = vadd.f32 %v8373_v59, %v8351_v35  ;;  %9747 = vmatmul.bf16.gmra.mxu2 %v31333_v5  ;;  %v24531_v5 = vld [vmem:[%s31042_s3 + $0xfa0] sm:$0xff]  ;;  %9872 = vmatpush.bf16.msra.mxu0 %v24513_v45 }
 0x505   : > { %v8419_v62 = vpop.f32.mrf.mxu3  ;;  %9916 = vmatpush.bf16.msra.mxu2 %v24531_v5  ;;  %9939 = vmatpush.bf16.msra.mxu3 %v24539_v51 }
 0x506   : > { %v8357_v24 = vpop.f32.mrf.mxu0  ;;  %8566 = vmatmul.bf16.gmra.mxu1 %v31364_v53 }
 0x507   : > { %v8358_v41 = vadd.f32 %v8357_v24, %v8335_v40  ;;  %v8396_v32 = vpop.f32.mrf.mxu2  ;;  %9893 = vmatpush.bf16.msra.mxu1 %v24523_v50  ;;  %v24521_v50 = vld [vmem:[%s31042_s3 + $0xf50] sm:$0xff] }
 0x508   : > { %v8397_v35 = vadd.f32 %v8396_v32, %v8374_v47  ;;  %9873 = vmatpush.bf16.msra.mxu0 %v24512_v21  ;;  %v24511_v47 = vld [vmem:[%s31042_s3 + $0xf00] sm:$0xff] }
 0x509   : > { %9917 = vmatpush.bf16.msra.mxu2 %v24530_v28 }
 0x50a   : > { %v8420_v40 = vadd.f32 %v8419_v62, %v8397_v35  ;;  %v24538_v62 = vld [vmem:[%s31042_s3 + $0xfd8] sm:$0xff] }
 0x50b   : > { %v8375_v27 = vpop.f32.mrf.mxu1  ;;  %9940 = vmatpush.bf16.msra.mxu3 %v24538_v62  ;;  %9894 = vmatpush.bf16.msra.mxu1 %v24522_v16  ;;  %v24527_v16 = vld [vmem:[%s31042_s3 + $0xf80] sm:$0xff] }
 0x50c   : > { %v8376_v4 = vadd.f32 %v8375_v27, %v8353_v7  ;;  %v24529_v7 = vld [vmem:[%s31042_s3 + $0xf90] sm:$0xff]  ;;  %9874 = vmatpush.bf16.msra.mxu0 %v24511_v47 }
 0x50d   : > { %v8421_v39 = vpop.f32.mrf.mxu3  ;;  %9918 = vmatpush.bf16.msra.mxu2 %v24529_v7  ;;  %v24535_v7 = vld [vmem:[%s31042_s3 + $0xfc0] sm:$0xff] }
 0x50e   : > { %v8360_v30 = vpop.f32.mrf.mxu0 }
 0x50f   : > { %v8361_v12 = vadd.f32 %v8360_v30, %v8338_v63  ;;  %v8398_v59 = vpop.f32.mrf.mxu2  ;;  %9895 = vmatpush.bf16.msra.mxu1 %v24521_v50  ;;  %v24520_v30 = vld [vmem:[%s31042_s3 + $0xf48] sm:$0xff]  ;;  %v24558_v50 = vld [vmem:[%s31042_s3 + $0x1078] sm:$0xff] }
 0x510   : > { %v8399_v24 = vadd.f32 %v8398_v59, %v8376_v4 }
 0x511   : > { %9788 = vmatmul.bf16.gmra.mxu0 %v31337_v23  ;;  %v24537_v23 = vld [vmem:[%s31042_s3 + $0xfd0] sm:$0xff] }
 0x512   : > { %9852 = vmatmul.bf16.vlgmr.msrb.gmra.mxu3 %v26547_v61  ;;  %v8422_v63 = vadd.f32 %v8421_v39, %v8399_v24  ;;  %v31365_v61 = vld [vmem:[#allocation21_spill] sm:$0xff] }
 0x513   : > { %v8378_v32 = vpop.f32.mrf.mxu1  ;;  %9941 = vmatpush.bf16.msra.mxu3 %v24537_v23  ;;  %9896 = vmatpush.bf16.msra.mxu1 %v24520_v30 }
 0x514   : > { %v8379_v45 = vadd.f32 %v8378_v32, %v8356_v49  ;;  %9829 = vmatmul.bf16.vlgmr.msrb.gmra.mxu2 %v31338_v11  ;;  %v24528_v49 = vld [vmem:[%s31042_s3 + $0xf88] sm:$0xff] }
 0x515   : > { %v8424_v5 = vpop.f32.mrf.mxu3  ;;  %v24536_v11 = vld [vmem:[%s31042_s3 + $0xfc8] sm:$0xff]  ;;  %9919 = vmatpush.bf16.msra.mxu2 %v24528_v49 }
 0x516   : > { %v8362_v35 = vpop.f32.mrf.mxu0  ;;  %9806 = vmatmul.bf16.vlgmr.msrb.gmra.mxu1 %v31365_v61  ;;  %v24574_v61 = vld [vmem:[%s31042_s3 + $0x10f8] sm:$0xff] }
 0x517   : > { %v8401_v51 = vpop.f32.mrf.mxu2  ;;  %9942 = vmatpush.bf16.msra.mxu3 %v24536_v11  ;;  %v24549_v35 = vld [vmem:[%s31042_s3 + $0x1030] sm:$0xff] }
 0x518   : > { %v8402_v21 = vadd.f32 %v8401_v51, %v8379_v45 }
 0x519   : > { %9920 = vmatpush.bf16.msra.mxu2 %v24527_v16  ;;  %v24564_v16 = vld [vmem:[%s31042_s3 + $0x10a8] sm:$0xff] }
 0x51a   : > { %v8425_v27 = vadd.f32 %v8424_v5, %v8402_v21  ;;  %v24565_v21 = vld [vmem:[%s31042_s3 + $0x10b0] sm:$0xff] }
 0x51b   : > { %v8380_v28 = vpop.f32.mrf.mxu1  ;;  %9943 = vmatpush.bf16.msra.mxu3 %v24535_v7 }
 0x51c   : > { %v8381_v4 = vadd.f32 %v8380_v28, %v8358_v41  ;;  %v24519_v41 = vld [vmem:[%s31042_s3 + $0xf40] sm:$0xff]  ;;  %v24573_v28 = vld [vmem:[%s31042_s3 + $0x10f0] sm:$0xff] }
 0x51d   : > { %v8426_v39 = vpop.f32.mrf.mxu3  ;;  %9897 = vmatpush.bf16.msra.mxu1 %v24519_v41 }
 0x51e   : > { %v8442_v59 = vpop.f32.mrf.mxu0 }
 0x51f   : > { %v8443_v47 = vadd.f32 %v8442_v59, %v8420_v40  ;;  %v8403_v62 = vpop.f32.mrf.mxu2  ;;  %v24550_v40 = vld [vmem:[%s31042_s3 + $0x1038] sm:$0xff]  ;;  %10028 = vmatpush.bf16.msrb.mxu3 %v24574_v61  ;;  %v24547_v59 = vld [vmem:[%s31042_s3 + $0x1020] sm:$0xff] }
 0x520   : > { %v8404_v24 = vadd.f32 %v8403_v62, %v8381_v4  ;;  %9959 = vmatpush.bf16.msrb.mxu0 %v24550_v40  ;;  %v24557_v62 = vld [vmem:[%s31042_s3 + $0x1070] sm:$0xff]  ;;  %v24562_v61 = vld [vmem:[%s31042_s3 + $0x1098] sm:$0xff] }
 0x521   : > { %9793 = vmatmul.bf16.gmra.mxu0 %v31340_v48  ;;  %9982 = vmatpush.bf16.msrb.mxu1 %v24558_v50 }
 0x522   : > { %9857 = vmatmul.bf16.gmra.mxu3 %v26633_v54  ;;  %v8427_v32 = vadd.f32 %v8426_v39, %v8404_v24  ;;  %v24566_v54 = vld [vmem:[%s31042_s3 + $0x10b8] sm:$0xff] }
 0x523   : > { %v8383_v45 = vpop.f32.mrf.mxu1  ;;  %10005 = vmatpush.bf16.msrb.mxu2 %v24566_v54  ;;  %10029 = vmatpush.bf16.msrb.mxu3 %v24573_v28  ;;  %v24546_v24 = vld [vmem:[%s31042_s3 + $0x1018] sm:$0xff]  ;;  %v24571_v54 = vld [vmem:[%s31042_s3 + $0x10e0] sm:$0xff] }
 0x524   : > { %v8384_v5 = vadd.f32 %v8383_v45, %v8361_v12  ;;  %9834 = vmatmul.bf16.gmra.mxu2 %v26509_v46  ;;  %9960 = vmatpush.bf16.msrb.mxu0 %v24549_v35  ;;  %v24554_v28 = vld [vmem:[%s31042_s3 + $0x1058] sm:$0xff] }
 0x525   : > { %v8429_v48 = vpop.f32.mrf.mxu3  ;;  %9983 = vmatpush.bf16.msrb.mxu1 %v24557_v62 }
 0x526   : > { %v8444_v23 = vpop.f32.mrf.mxu0  ;;  %9811 = vmatmul.bf16.gmra.mxu1 %v26253_v60  ;;  %v24548_v60 = vld [vmem:[%s31042_s3 + $0x1028] sm:$0xff] }
 0x527   : > { %v8445_v12 = vadd.f32 %v8444_v23, %v8422_v63  ;;  %v8406_v51 = vpop.f32.mrf.mxu2  ;;  %10006 = vmatpush.bf16.msrb.mxu2 %v24565_v21  ;;  %v24544_v23 = vld [vmem:[%s31042_s3 + $0x1008] sm:$0xff] }
 0x528   : > { %v8407_v46 = vadd.f32 %v8406_v51, %v8384_v5  ;;  %9961 = vmatpush.bf16.msrb.mxu0 %v24548_v60 }
 0x52a   : > { %v8430_v49 = vadd.f32 %v8429_v48, %v8407_v46  ;;  %v24545_v48 = vld [vmem:[%s31042_s3 + $0x1010] sm:$0xff] }
 0x52b   : > { %v8385_v63 = vpop.f32.mrf.mxu1  ;;  %10007 = vmatpush.bf16.msrb.mxu2 %v24564_v16 }
 0x52c   : > { %9962 = vmatpush.bf16.msrb.mxu0 %v24547_v59  ;;  %v24543_v63 = vld [vmem:[%s31042_s3 + $0x1000] sm:$0xff] }
 0x52d   : > { %v8431_v11 = vpop.f32.mrf.mxu3 }
 0x52e   : > { %v8447_v4 = vpop.f32.mrf.mxu0  ;;  %v24570_v11 = vld [vmem:[%s31042_s3 + $0x10d8] sm:$0xff] }
 0x52f   : > { %v8448_v39 = vadd.f32 %v8447_v4, %v8425_v27  ;;  %v8408_v30 = vpop.f32.mrf.mxu2  ;;  %v24572_v27 = vld [vmem:[%s31042_s3 + $0x10e8] sm:$0xff] }
 0x530   : > { %10030 = vmatpush.bf16.msrb.mxu3 %v24572_v27  ;;  %9963 = vmatpush.bf16.msrb.mxu0 %v24546_v24  ;;  %v24553_v27 = vld [vmem:[%s31042_s3 + $0x1050] sm:$0xff] }
 0x531   : > { %9875 = vmatmul.bf16.vlgmr.msra.gmra.mxu0 %v31341_v42 }
 0x532   : > { %9862 = vmatmul.bf16.gmra.mxu3 %v26619_v20  ;;  %v24556_v20 = vld [vmem:[%s31042_s3 + $0x1068] sm:$0xff] }
 0x533   : > { %v8465_v7 = vpop.f32.mrf.mxu1  ;;  %9984 = vmatpush.bf16.msrb.mxu1 %v24556_v20 }
 0x534   : > { %v8466_v41 = vadd.f32 %v8465_v7, %v8443_v47  ;;  %9839 = vmatmul.bf16.gmra.mxu2 %v26588_v17  ;;  %v24563_v17 = vld [vmem:[%s31042_s3 + $0x10a0] sm:$0xff]  ;;  %9964 = vmatpush.bf16.msrb.mxu0 %v24545_v48 }
 0x535   : > { %v8511_v40 = vpop.f32.mrf.mxu3  ;;  %10008 = vmatpush.bf16.msrb.mxu2 %v24563_v17  ;;  %10031 = vmatpush.bf16.msrb.mxu3 %v24571_v54  ;;  %v24559_v17 = vld [vmem:[%s31042_s3 + $0x1080] sm:$0xff] }
 0x536   : > { %v8449_v42 = vpop.f32.mrf.mxu0  ;;  %9816 = vmatmul.bf16.gmra.mxu1 %v26327_v55  ;;  %v24555_v55 = vld [vmem:[%s31042_s3 + $0x1060] sm:$0xff] }
 0x537   : > { %v8450_v45 = vadd.f32 %v8449_v42, %v8427_v32  ;;  %v8488_v5 = vpop.f32.mrf.mxu2  ;;  %9985 = vmatpush.bf16.msrb.mxu1 %v24555_v55  ;;  %v24552_v42 = vld [vmem:[%s31042_s3 + $0x1048] sm:$0xff]  ;;  %v24567_v54 = vld [vmem:[%s31042_s3 + $0x10c0] sm:$0xff]  ;;  %v24582_v55 = vld [vmem:[%s31042_s3 + $0x1138] sm:$0xff] }
 0x538   : > { %v8489_v47 = vadd.f32 %v8488_v5, %v8466_v41  ;;  %9965 = vmatpush.bf16.msrb.mxu0 %v24544_v23 }
 0x539   : > { %10009 = vmatpush.bf16.msrb.mxu2 %v24562_v61  ;;  %10032 = vmatpush.bf16.msrb.mxu3 %v24570_v11 }
 0x53a   : > { %v8512_v32 = vadd.f32 %v8511_v40, %v8489_v47 }
 0x53b   : > { %v8467_v35 = vpop.f32.mrf.mxu1  ;;  %9986 = vmatpush.bf16.msrb.mxu1 %v24554_v28 }
 0x53c   : > { %v8468_v51 = vadd.f32 %v8467_v35, %v8445_v12  ;;  %v24561_v12 = vld [vmem:[%s31042_s3 + $0x1090] sm:$0xff]  ;;  %9966 = vmatpush.bf16.msrb.mxu0 %v24543_v63 }
 0x53d   : > { %v8513_v46 = vpop.f32.mrf.mxu3  ;;  %10010 = vmatpush.bf16.msrb.mxu2 %v24561_v12  ;;  %v24597_v63 = vld [vmem:[%s31042_s3 + $0x11b0] sm:$0xff] }
 0x53e   : > { %v8452_v50 = vpop.f32.mrf.mxu0 }
 0x53f   : > { %v8453_v60 = vadd.f32 %v8452_v50, %v8430_v49  ;;  %v8490_v21 = vpop.f32.mrf.mxu2  ;;  %9987 = vmatpush.bf16.msrb.mxu1 %v24553_v27  ;;  %v24604_v27 = vld [vmem:[%s31042_s3 + $0x11e8] sm:$0xff] }
 0x540   : > { %v8491_v4 = vadd.f32 %v8490_v21, %v8468_v51  ;;  %10051 = vmatpush.bf16.msra.mxu0 %v24582_v55  ;;  %v24581_v51 = vld [vmem:[%s31042_s3 + $0x1130] sm:$0xff]  ;;  %v24580_v21 = vld [vmem:[%s31042_s3 + $0x1128] sm:$0xff]  ;;  %v31367_v55 = vmax.f32 %v27573_v1, %v28030_v52 }
 0x541   : > { %9880 = vmatmul.bf16.gmra.mxu0 %v26617_v31  ;;  %v24593_v1 = vld [vmem:[%s31042_s3 + $0x1190] sm:$0xff] }
 0x542   : > { %9944 = vmatmul.bf16.vlgmr.msra.gmra.mxu3 %v26363_v18  ;;  %v8514_v49 = vadd.f32 %v8513_v46, %v8491_v4  ;;  %v24569_v18 = vld [vmem:[%s31042_s3 + $0x10d0] sm:$0xff]  ;;  %v24606_v46 = vld [vmem:[%s31042_s3 + $0x11f8] sm:$0xff] }
 0x543   : > { %v8470_v30 = vpop.f32.mrf.mxu1  ;;  %10033 = vmatpush.bf16.msrb.mxu3 %v24569_v18  ;;  %9988 = vmatpush.bf16.msrb.mxu1 %v24552_v42  ;;  %v24596_v18 = vld [vmem:[%s31042_s3 + $0x11a8] sm:$0xff] }
 0x544   : > { %v8471_v59 = vadd.f32 %v8470_v30, %v8448_v39  ;;  %9921 = vmatmul.bf16.vlgmr.msra.gmra.mxu2 %v26685_v25  ;;  %v24560_v39 = vld [vmem:[%s31042_s3 + $0x1088] sm:$0xff]  ;;  %10052 = vmatpush.bf16.msra.mxu0 %v24581_v51  ;;  %v24586_v51 = vld [vmem:[%s31042_s3 + $0x1158] sm:$0xff] }
 0x545   : > { %v8516_v62 = vpop.f32.mrf.mxu3  ;;  %v24568_v25 = vld [vmem:[%s31042_s3 + $0x10c8] sm:$0xff]  ;;  %10011 = vmatpush.bf16.msrb.mxu2 %v24560_v39 }
 0x546   : > { %v8454_v16 = vpop.f32.mrf.mxu0  ;;  %9898 = vmatmul.bf16.vlgmr.msra.gmra.mxu1 %v26516_v13 }
 0x547   : > { %v8493_v31 = vpop.f32.mrf.mxu2  ;;  %10034 = vmatpush.bf16.msrb.mxu3 %v24568_v25  ;;  %v24589_v16 = vld [vmem:[%s31042_s3 + $0x1170] sm:$0xff] }
 0x548   : > { %v8494_v24 = vadd.f32 %v8493_v31, %v8471_v59  ;;  %10053 = vmatpush.bf16.msra.mxu0 %v24580_v21  ;;  %v25254_v31 = vld [vmem:[#allocation2 + $0x20] sm:$0xff]  }
 0x549   : > { %10012 = vmatpush.bf16.msrb.mxu2 %v24559_v17 }
 0x54a   : > { %v8517_v13 = vadd.f32 %v8516_v62, %v8494_v24  ;;  %v24579_v62 = vld [vmem:[%s31042_s3 + $0x1120] sm:$0xff]  ;;  %v24578_v24 = vld [vmem:[%s31042_s3 + $0x1118] sm:$0xff] }
 0x54b   : > { %v8472_v7 = vpop.f32.mrf.mxu1  ;;  %10035 = vmatpush.bf16.msrb.mxu3 %v24567_v54 }
 0x54c   : > { %v8473_v41 = vadd.f32 %v8472_v7, %v8450_v45  ;;  %v24551_v45 = vld [vmem:[%s31042_s3 + $0x1040] sm:$0xff]  ;;  %10054 = vmatpush.bf16.msra.mxu0 %v24579_v62 }
 0x54d   : > { %v8518_v40 = vpop.f32.mrf.mxu3  ;;  %9989 = vmatpush.bf16.msrb.mxu1 %v24551_v45 }
 0x54e   : > { %v8534_v20 = vpop.f32.mrf.mxu0 }
 0x54f   : > { %v8535_v5 = vadd.f32 %v8534_v20, %v8512_v32  ;;  %v8495_v48 = vpop.f32.mrf.mxu2  ;;  %10120 = vmatpush.bf16.msra.mxu3 %v24606_v46 }
 0x550   : > { %v8496_v47 = vadd.f32 %v8495_v48, %v8473_v41  ;;  %10055 = vmatpush.bf16.msra.mxu0 %v24578_v24  ;;  %v24576_v48 = vld [vmem:[%s31042_s3 + $0x1108] sm:$0xff]  ;;  %v24599_v24 = vld [vmem:[%s31042_s3 + $0x11c0] sm:$0xff] }
 0x551   : > { %9885 = vmatmul.bf16.gmra.mxu0 %v26581_v36 }
 0x552   : > { %9949 = vmatmul.bf16.gmra.mxu3 %v26427_v38  ;;  %v8519_v32 = vadd.f32 %v8518_v40, %v8496_v47  ;;  %v24598_v38 = vld [vmem:[%s31042_s3 + $0x11b8] sm:$0xff]  ;;  %v24588_v40 = vld [vmem:[%s31042_s3 + $0x1168] sm:$0xff] }
 0x553   : > { %v8475_v23 = vpop.f32.mrf.mxu1  ;;  %10097 = vmatpush.bf16.msra.mxu2 %v24598_v38  ;;  %v24594_v47 = vld [vmem:[%s31042_s3 + $0x1198] sm:$0xff] }
 0x554   : > { %v8476_v35 = vadd.f32 %v8475_v23, %v8453_v60  ;;  %9926 = vmatmul.bf16.gmra.mxu2 %v26748_v22  ;;  %v24602_v38 = vld [vmem:[%s31042_s3 + $0x11d8] sm:$0xff] }
 0x555   : > { %v8521_v61 = vpop.f32.mrf.mxu3 }
 0x556   : > { %v8536_v36 = vpop.f32.mrf.mxu0  ;;  %9903 = vmatmul.bf16.gmra.mxu1 %v26334_v43  ;;  %v24590_v43 = vld [vmem:[%s31042_s3 + $0x1178] sm:$0xff] }
 0x557   : > { %v8537_v50 = vadd.f32 %v8536_v36, %v8514_v49  ;;  %v8498_v60 = vpop.f32.mrf.mxu2  ;;  %10074 = vmatpush.bf16.msra.mxu1 %v24590_v43  ;;  %10098 = vmatpush.bf16.msra.mxu2 %v24597_v63  ;;  %v24605_v49 = vld [vmem:[%s31042_s3 + $0x11f0] sm:$0xff]  ;;  %v24575_v36 = vld [vmem:[%s31042_s3 + $0x1100] sm:$0xff] }
 0x558   : > { %v8499_v22 = vadd.f32 %v8498_v60, %v8476_v35  ;;  %10121 = vmatpush.bf16.msra.mxu3 %v24605_v49  ;;  %v24585_v63 = vld [vmem:[%s31042_s3 + $0x1150] sm:$0xff]  ;;  %v31370_v49 = vld [vmem:[#allocation26_spill] sm:$0xff] }
 0x55a   : > { %v8522_v11 = vadd.f32 %v8521_v61, %v8499_v22  ;;  %v24601_v22 = vld [vmem:[%s31042_s3 + $0x11d0] sm:$0xff] }
 0x55b   : > { %v8477_v28 = vpop.f32.mrf.mxu1  ;;  %10075 = vmatpush.bf16.msra.mxu1 %v24589_v16  ;;  %10099 = vmatpush.bf16.msra.mxu2 %v24596_v18 }
 0x55c   : > { %10122 = vmatpush.bf16.msra.mxu3 %v24604_v27 }
 0x55d   : > { %v8523_v4 = vpop.f32.mrf.mxu3 }
 0x55e   : > { %v8539_v12 = vpop.f32.mrf.mxu0  ;;  %v24584_v4 = vld [vmem:[%s31042_s3 + $0x1148] sm:$0xff] }
 0x55f   : > { %v8540_v30 = vadd.f32 %v8539_v12, %v8517_v13  ;;  %v8500_v59 = vpop.f32.mrf.mxu2  ;;  %10076 = vmatpush.bf16.msra.mxu1 %v24588_v40  ;;  %v31369_v12 = vld [vmem:[#allocation30_spill] sm:$0xff]  ;;  %v31373_v40 = vld [vmem:[#allocation11_spill] sm:$0xff] }
 0x561   : > { %9967 = vmatmul.bf16.vlgmr.msrb.gmra.mxu0 %v25254_v31  ;;  %v24591_v31 = vld [vmem:[%s31042_s3 + $0x1180] sm:$0xff] }
 0x562   : > { %9954 = vmatmul.bf16.gmra.mxu3 %v26390_v34  ;;  %v31366_v34 = vmax.f32 %v27548_v29, %v28002_v33  ;;  %v24595_v29 = vld [vmem:[%s31042_s3 + $0x11a0] sm:$0xff] }
 0x563   : > { %v8557_v39 = vpop.f32.mrf.mxu1  ;;  %10100 = vmatpush.bf16.msra.mxu2 %v24595_v29 }
 0x564   : > { %v8558_v25 = vadd.f32 %v8557_v39, %v8535_v5  ;;  %9931 = vmatmul.bf16.gmra.mxu2 %v26787_v37  ;;  %v24577_v37 = vld [vmem:[%s31042_s3 + $0x1110] sm:$0xff]  ;;  %v24587_v5 = vld [vmem:[%s31042_s3 + $0x1160] sm:$0xff] }
 0x565   : > { %v9761_v13 = vpop.f32.mrf.mxu3  ;;  %10056 = vmatpush.bf16.msra.mxu0 %v24577_v37  ;;  %10077 = vmatpush.bf16.msra.mxu1 %v24587_v5  ;;  %v31372_v39 = vld [vmem:[#allocation40_spill] sm:$0xff]  ;;  %v31377_v5 = vld [vmem:[#allocation42_spill] sm:$0xff] }
 0x566   : > { %v28554_v7 = vmax.f32 %v31366_v34, %v8558_v25  ;;  %v8541_v41 = vpop.f32.mrf.mxu0  ;;  %9908 = vmatmul.bf16.gmra.mxu1 %v26677_v19  ;;  %v24603_v19 = vld [vmem:[%s31042_s3 + $0x11e0] sm:$0xff]  ;;  %v31375_v37 = vld [vmem:[#allocation36_spill] sm:$0xff] }
 0x567   : > { %v8542_v20 = vadd.f32 %v8541_v41, %v8519_v32  ;;  %v9738_v42 = vpop.f32.mrf.mxu2  ;;  %10123 = vmatpush.bf16.msra.mxu3 %v24603_v19  ;;  %10101 = vmatpush.bf16.msra.mxu2 %v24594_v47  ;;  %v24583_v25 = vld [vmem:[%s31042_s3 + $0x1140] sm:$0xff] }
 0x568   : > { %v9762_v33 = vadd.f32 %v9761_v13, %v9738_v42  ;;  %v24614_v13 = vld [vmem:[%s31042_s3 + $0x38] sm:$0xff]  ;;  %v31374_v42 = vld [vmem:[#allocation32_spill] sm:$0xff] }
 0x569   : > { %10057 = vmatpush.bf16.msra.mxu0 %v24576_v48  ;;  %10078 = vmatpush.bf16.msra.mxu1 %v24586_v51  ;;  %v31376_v29 = vmax.f32 %v31374_v42, %v31375_v37  ;;  %v24613_v48 = vld [vmem:[%s31042_s3 + $0x30] sm:$0xff] }
 0x56b   : > { %v8559_v17 = vpop.f32.mrf.mxu1  ;;  %10124 = vmatpush.bf16.msra.mxu3 %v24602_v38  ;;  %10102 = vmatpush.bf16.msra.mxu2 %v24593_v1  ;;  %v24637_v38 = vld [vmem:[%s31042_s3 + $0xf0] sm:$0xff] }
 0x56c   : > { %v8560_v54 = vadd.f32 %v8559_v17, %v8537_v50  ;;  %v24638_v17 = vld [vmem:[%s31042_s3 + $0xf8] sm:$0xff] }
 0x56d   : > { %v9763_v45 = vpop.f32.mrf.mxu3  ;;  %10058 = vmatpush.bf16.msra.mxu0 %v24575_v36  ;;  %10079 = vmatpush.bf16.msra.mxu1 %v24585_v63 }
 0x56e   : > { %v28581_v32 = vmax.f32 %v31367_v55, %v8560_v54  ;;  %v8544_v23 = vpop.f32.mrf.mxu0  ;;  %v24622_v55 = vld [vmem:[%s31042_s3 + $0x78] sm:$0xff] }
 0x56f   : > { %v8545_v35 = vadd.f32 %v8544_v23, %v8522_v11  ;;  %v9740_v61 = vpop.f32.mrf.mxu2  ;;  %10125 = vmatpush.bf16.msra.mxu3 %v24601_v22  ;;  %v24592_v11 = vld [vmem:[%s31042_s3 + $0x1188] sm:$0xff] }
 0x570   : > { %v9764_v46 = vadd.f32 %v9763_v45, %v9740_v61  ;;  %10103 = vmatpush.bf16.msra.mxu2 %v24592_v11  ;;  %v24612_v23 = vld [vmem:[%s31042_s3 + $0x28] sm:$0xff] }
 0x571   : > { %9972 = vmatmul.bf16.gmra.mxu0 %v26176_v8  ;;  %v31368_v8 = vmax.f32 %v27589_v6, %v28047_v2  ;;  %v24600_v6 = vld [vmem:[%s31042_s3 + $0x11c8] sm:$0xff]  ;;  %10080 = vmatpush.bf16.msra.mxu1 %v24584_v4 }
 0x572   : > { %10036 = vmatmul.bf16.vlgmr.msrb.gmra.mxu3 %v31358_v58  ;;  %11715 = vmatpush.bf16.msrb.mxu0 %v24614_v13  ;;  %v25255_v22 = vld [vmem:[#allocation2 + $0x8] sm:$0xff]   ;;  %v24607_v13 = vld [vmem:[%s31042_s3] sm:$0xff] }
 0x573   : > { %v8562_v52 = vpop.f32.mrf.mxu1  ;;  %10126 = vmatpush.bf16.msra.mxu3 %v24600_v6  ;;  %v31378_v6 = vld [vmem:[#allocation6_spill] sm:$0xff] }
 0x574   : > { %v8563_v50 = vadd.f32 %v8562_v52, %v8540_v30  ;;  %10013 = vmatmul.bf16.vlgmr.msrb.gmra.mxu2 %v31342_v57  ;;  %v31371_v30 = vmax.f32 %v31369_v12, %v31370_v49  ;;  %v24611_v52 = vld [vmem:[%s31042_s3 + $0x20] sm:$0xff] }
 0x575   : > { %v9766_v60 = vpop.f32.mrf.mxu3  ;;  %10104 = vmatpush.bf16.msra.mxu2 %v24591_v31  ;;  %10081 = vmatpush.bf16.msra.mxu1 %v24583_v25  ;;  %v24635_v12 = vld [vmem:[%s31042_s3 + $0xe0] sm:$0xff] }
 0x576   : > { %v28604_v58 = vmax.f32 %v31368_v8, %v8563_v50  ;;  %v8546_v43 = vpop.f32.mrf.mxu0  ;;  %9990 = vmatmul.bf16.vlgmr.msrb.gmra.mxu1 %v31343_v15  ;;  %11716 = vmatpush.bf16.msrb.mxu0 %v24613_v48  ;;  %v24621_v50 = vld [vmem:[%s31042_s3 + $0x70] sm:$0xff]  ;;  %v24636_v8 = vld [vmem:[%s31042_s3 + $0xe8] sm:$0xff]  ;;  %v24619_v49 = vld [vmem:[%s31042_s3 + $0x60] sm:$0xff] }
 0x577   : > { %v9743_v21 = vpop.f32.mrf.mxu2  ;;  %10127 = vmatpush.bf16.msra.mxu3 %v24599_v24  ;;  %v24610_v43 = vld [vmem:[%s31042_s3 + $0x18] sm:$0xff]  ;;  %v24617_v48 = vld [vmem:[%s31042_s3 + $0x50] sm:$0xff] }
 0x578   : > { %v9767_v57 = vadd.f32 %v9766_v60, %v9743_v21  ;;  %v24628_v60 = vld [vmem:[%s31042_s3 + $0xa8] sm:$0xff] }
 0x579   : > { %11738 = vmatpush.bf16.msrb.mxu1 %v24622_v55 }
 0x57a   : > { %11717 = vmatpush.bf16.msrb.mxu0 %v24612_v23 }
 0x57b   : > { %v8564_v2 = vpop.f32.mrf.mxu1  ;;  %11784 = vmatpush.bf16.msrb.mxu3 %v24638_v17 }
 0x57c   : > { %v8565_v15 = vadd.f32 %v8564_v2, %v8542_v20 }
 0x57d   : > { %v9768_v28 = vpop.f32.mrf.mxu3  ;;  %11739 = vmatpush.bf16.msrb.mxu1 %v24621_v50  ;;  %v24615_v50 = vld [vmem:[%s31042_s3 + $0x40] sm:$0xff] }
 0x57e   : > { %v28622_v59 = vmax.f32 %v31371_v30, %v8565_v15  ;;  %v9784_v62 = vpop.f32.mrf.mxu0  ;;  %11718 = vmatpush.bf16.msrb.mxu0 %v24611_v52  ;;  %v31380_v52 = vld [vmem:[#allocation16_spill] sm:$0xff] }
 0x57f   : > { %v9785_v16 = vadd.f32 %v9784_v62, %v9762_v33  ;;  %v9745_v18 = vpop.f32.mrf.mxu2  ;;  %11785 = vmatpush.bf16.msrb.mxu3 %v24637_v38  ;;  %v24608_v62 = vld [vmem:[%s31042_s3 + $0x8] sm:$0xff] }
 0x580   : > { %v9769_v27 = vadd.f32 %v9768_v28, %v9745_v18  ;;  %v24609_v28 = vld [vmem:[%s31042_s3 + $0x10] sm:$0xff]  ;;  %v24626_v18 = vld [vmem:[%s31042_s3 + $0x98] sm:$0xff] }
 0x581   : > { %9977 = vmatmul.bf16.gmra.mxu0 %v31372_v39 }
 0x582   : > { %10041 = vmatmul.bf16.gmra.mxu3 %v31360_v56  ;;  %v24630_v56 = vld [vmem:[%s31042_s3 + $0xb8] sm:$0xff]  ;;  %11719 = vmatpush.bf16.msrb.mxu0 %v24610_v43 }
 0x583   : > { %v8567_v34 = vpop.f32.mrf.mxu1  ;;  %11761 = vmatpush.bf16.msrb.mxu2 %v24630_v56  ;;  %11786 = vmatpush.bf16.msrb.mxu3 %v24636_v8 }
 0x584   : > { %v8568_v41 = vadd.f32 %v8567_v34, %v8545_v35  ;;  %10018 = vmatmul.bf16.gmra.mxu2 %v31373_v40  ;;  %v24629_v35 = vld [vmem:[%s31042_s3 + $0xb0] sm:$0xff]  ;;  %v24634_v34 = vld [vmem:[%s31042_s3 + $0xd8] sm:$0xff] }
 0x585   : > { %v9771_v20 = vpop.f32.mrf.mxu3 }
 0x586   : > { %v28645_v33 = vmax.f32 %v31376_v29, %v8568_v41  ;;  %v9786_v19 = vpop.f32.mrf.mxu0  ;;  %9995 = vmatmul.bf16.gmra.mxu1 %v31377_v5  ;;  %11720 = vmatpush.bf16.msrb.mxu0 %v24609_v28  ;;  %v24618_v41 = vld [vmem:[%s31042_s3 + $0x58] sm:$0xff] }
 0x587   : > { %v9787_v47 = vadd.f32 %v9786_v19, %v9764_v46  ;;  %v9748_v54 = vpop.f32.mrf.mxu2  ;;  %11762 = vmatpush.bf16.msrb.mxu2 %v24629_v35  ;;  %11787 = vmatpush.bf16.msrb.mxu3 %v24635_v12  ;;  %v24616_v35 = vld [vmem:[%s31042_s3 + $0x48] sm:$0xff]  ;;  %v24661_v12 = vld [vmem:[%s31042_s3 + $0x1b0] sm:$0xff] }
 0x588   : > { %v9772_v45 = vadd.f32 %v9771_v20, %v9748_v54  ;;  %v24625_v20 = vld [vmem:[%s31042_s3 + $0x90] sm:$0xff] }
 0x58a   : > { %11721 = vmatpush.bf16.msrb.mxu0 %v24608_v62 }
 0x58b   : > { %v8569_v61 = vpop.f32.mrf.mxu1  ;;  %11763 = vmatpush.bf16.msrb.mxu2 %v24628_v60  ;;  %11788 = vmatpush.bf16.msrb.mxu3 %v24634_v34  ;;  %v24646_v60 = vld [vmem:[%s31042_s3 + $0x138] sm:$0xff]  ;;  %v24668_v34 = vld [vmem:[%s31042_s3 + $0x1e8] sm:$0xff] }
 0x58d   : > { %v9773_v36 = vpop.f32.mrf.mxu3 }
 0x58e   : > { %v9789_v51 = vpop.f32.mrf.mxu0  ;;  %11722 = vmatpush.bf16.msrb.mxu0 %v24607_v13  ;;  %v24660_v13 = vld [vmem:[%s31042_s3 + $0x1a8] sm:$0xff] }
 0x58f   : > { %v9790_v46 = vadd.f32 %v9789_v51, %v9767_v57  ;;  %v9750_v1 = vpop.f32.mrf.mxu2  ;;  %v24623_v51 = vld [vmem:[%s31042_s3 + $0x80] sm:$0xff] }
 0x590   : > { %v24631_v1 = vld [vmem:[%s31042_s3 + $0xc0] sm:$0xff] }
 0x591   : > { %10059 = vmatmul.bf16.vlgmr.msra.gmra.mxu0 %v25255_v22 }
 0x592   : > { %10046 = vmatmul.bf16.gmra.mxu3 %v31362_v0  ;;  %v24620_v0 = vld [vmem:[%s31042_s3 + $0x68] sm:$0xff]  ;;  %11807 = vmatpush.bf16.msra.mxu0 %v24646_v60 }
 0x593   : > { %v9807_v21 = vpop.f32.mrf.mxu1  ;;  %11740 = vmatpush.bf16.msrb.mxu1 %v24620_v0  ;;  %v31382_v0 = vld [vmem:[#allocation23_spill] sm:$0xff] }
 0x594   : > { %v9808_v63 = vadd.f32 %v9807_v21, %v9785_v16  ;;  %10023 = vmatmul.bf16.gmra.mxu2 %v31359_v44  ;;  %v24627_v44 = vld [vmem:[%s31042_s3 + $0xa0] sm:$0xff]  ;;  %v31381_v21 = vld [vmem:[#allocation4_spill] sm:$0xff] }
 0x595   : > { %v9853_v57 = vpop.f32.mrf.mxu3  ;;  %11764 = vmatpush.bf16.msrb.mxu2 %v24627_v44  ;;  %v24654_v44 = vld [vmem:[%s31042_s3 + $0x178] sm:$0xff] }
 0x596   : > { %v9791_v11 = vpop.f32.mrf.mxu0  ;;  %10000 = vmatmul.bf16.gmra.mxu1 %v31378_v6  ;;  %v24670_v6 = vld [vmem:[%s31042_s3 + $0x1f8] sm:$0xff] }
 0x597   : > { %v9792_v2 = vadd.f32 %v9791_v11, %v9769_v27  ;;  %v9830_v15 = vpop.f32.mrf.mxu2  ;;  %11741 = vmatpush.bf16.msrb.mxu1 %v24619_v49  ;;  %v24645_v11 = vld [vmem:[%s31042_s3 + $0x130] sm:$0xff] }
 0x598   : > { %v9831_v4 = vadd.f32 %v9830_v15, %v9808_v63  ;;  %11808 = vmatpush.bf16.msra.mxu0 %v24645_v11 }
 0x599   : > { %11765 = vmatpush.bf16.msrb.mxu2 %v24626_v18 }
 0x59a   : > { %v9854_v30 = vadd.f32 %v9853_v57, %v9831_v4  ;;  %v24644_v4 = vld [vmem:[%s31042_s3 + $0x128] sm:$0xff] }
 0x59b   : > { %v9809_v16 = vpop.f32.mrf.mxu1  ;;  %11742 = vmatpush.bf16.msrb.mxu1 %v24618_v41  ;;  %v24642_v41 = vld [vmem:[%s31042_s3 + $0x118] sm:$0xff] }
 0x59c   : > { %v9810_v31 = vadd.f32 %v9809_v16, %v9787_v47  ;;  %v24624_v47 = vld [vmem:[%s31042_s3 + $0x88] sm:$0xff]  ;;  %11809 = vmatpush.bf16.msra.mxu0 %v24644_v4  ;;  %v24669_v16 = vld [vmem:[%s31042_s3 + $0x1f0] sm:$0xff] }
 0x59d   : > { %v9855_v27 = vpop.f32.mrf.mxu3  ;;  %11766 = vmatpush.bf16.msrb.mxu2 %v24625_v20 }
 0x59e   : > { %v9794_v24 = vpop.f32.mrf.mxu0 }
 0x59f   : > { %v9795_v39 = vadd.f32 %v9794_v24, %v9772_v45  ;;  %v9832_v25 = vpop.f32.mrf.mxu2  ;;  %11743 = vmatpush.bf16.msrb.mxu1 %v24617_v48  ;;  %v24643_v24 = vld [vmem:[%s31042_s3 + $0x120] sm:$0xff] }
 0x5a0   : > { %v9833_v40 = vadd.f32 %v9832_v25, %v9810_v31  ;;  %v28781_v25 = vld [vmem:[#allocation2 + $0x38] sm:$0xff]   ;;  %11810 = vmatpush.bf16.msra.mxu0 %v24643_v24  ;;  %v24667_v48 = vld [vmem:[%s31042_s3 + $0x1e0] sm:$0xff] }
 0x5a1   : > { %10064 = vmatmul.bf16.gmra.mxu0 %v31309_v10  ;;  %v24633_v10 = vld [vmem:[%s31042_s3 + $0xd0] sm:$0xff]  ;;  %11767 = vmatpush.bf16.msrb.mxu2 %v24624_v47  ;;  %v28814_v47 = vunpack.c.h.b16 %v28781_v25 }
 0x5a2   : > { %10128 = vmatmul.bf16.vlgmr.msra.gmra.mxu3 %v31363_v14  ;;  %v9856_v56 = vadd.f32 %v9855_v27, %v9833_v40  ;;  %v31379_v14 = vld [vmem:[#allocation10_spill] sm:$0xff] }
 0x5a3   : > { %v9812_v42 = vpop.f32.mrf.mxu1  ;;  %11789 = vmatpush.bf16.msrb.mxu3 %v24633_v10  ;;  %11744 = vmatpush.bf16.msrb.mxu1 %v24616_v35  ;;  %v10214_v35 = vshll.u32 %v28781_v25, 16 }
 0x5a4   : > { %v9813_v37 = vadd.f32 %v9812_v42, %v9790_v46  ;;  %10105 = vmatmul.bf16.vlgmr.msra.gmra.mxu2 %v31361_v26  ;;  %v24632_v26 = vld [vmem:[%s31042_s3 + $0xc8] sm:$0xff]  ;;  %11811 = vmatpush.bf16.msra.mxu0 %v24642_v41 }
 0x5a5   : > { %v9858_v29 = vpop.f32.mrf.mxu3  ;;  %11768 = vmatpush.bf16.msrb.mxu2 %v24623_v51 }
 0x5a6   : > { %v9796_v19 = vpop.f32.mrf.mxu0  ;;  %10082 = vmatmul.bf16.vlgmr.msra.gmra.mxu1 %v31379_v14 }
 0x5a7   : > { %v9835_v5 = vpop.f32.mrf.mxu2  ;;  %11790 = vmatpush.bf16.msrb.mxu3 %v24632_v26  ;;  %11745 = vmatpush.bf16.msrb.mxu1 %v24615_v50  ;;  %v24641_v19 = vld [vmem:[%s31042_s3 + $0x110] sm:$0xff] }
 0x5a8   : > { %v9836_v17 = vadd.f32 %v9835_v5, %v9813_v37  ;;  %v31383_v37 = vld [vmem:[#allocation8_spill] sm:$0xff]  ;;  %v10174_v5 = vld [vmem:[#allocation2 + $0x38] sm:$0xe]  ;;  %11812 = vmatpush.bf16.msra.mxu0 %v24641_v19 }
 0x5a9   : > { %v10176_v26 = vld [vmem:[#allocation2 + $0x54] sm:$0xf] }
 0x5aa   : > { %v9859_v54 = vadd.f32 %v9858_v29, %v9836_v17  ;;  %v24651_v17 = vld [vmem:[%s31042_s3 + $0x160] sm:$0xff]  ;;  %v10255_v51 = vunpack.c.l.b16 %v10176_v26 }
 0x5ab   : > { %v9814_v45 = vpop.f32.mrf.mxu1  ;;  %11791 = vmatpush.bf16.msrb.mxu3 %v24631_v1  ;;  %11830 = vmatpush.bf16.msra.mxu1 %v24654_v44  ;;  %v28826_v1 = vld [vmem:[#allocation2 + $0x40] sm:$0xff]   ;;  %v10173_v44 = vld [vmem:[#allocation2 + $0x48] sm:$0x1] }
 0x5ac   : > { %v9815_v55 = vadd.f32 %v9814_v45, %v9792_v2  ;;  %v24640_v45 = vld [vmem:[%s31042_s3 + $0x108] sm:$0xff]  ;;  %v24655_v26 = vld [vmem:[%s31042_s3 + $0x180] sm:$0xff] }
 0x5ad   : > { %v9860_v23 = vpop.f32.mrf.mxu3  ;;  %11813 = vmatpush.bf16.msra.mxu0 %v24640_v45 }
 0x5ae   : > { %v9876_v61 = vpop.f32.mrf.mxu0 }
 0x5af   : > { %v9877_v36 = vadd.f32 %v9876_v61, %v9854_v30  ;;  %v9837_v38 = vpop.f32.mrf.mxu2  ;;  %11876 = vmatpush.bf16.msra.mxu3 %v24670_v6  ;;  %v24658_v61 = vld [vmem:[%s31042_s3 + $0x198] sm:$0xff] }
 0x5b0   : > { %v9838_v46 = vadd.f32 %v9837_v38, %v9815_v55 }
 0x5b1   : > { %10069 = vmatmul.bf16.gmra.mxu0 %v31380_v52  ;;  %v10219_v52 = vshll.u32 %v28826_v1, 16 }
 0x5b2   : > { %10133 = vmatmul.bf16.gmra.mxu3 %v26592_v3  ;;  %v9861_v22 = vadd.f32 %v9860_v23, %v9838_v46  ;;  %v24662_v3 = vld [vmem:[%s31042_s3 + $0x1b8] sm:$0xff]  ;;  %v10238_v23 = vunpack.c.l.b16 %v10174_v5 }
 0x5b3   : > { %v9817_v8 = vpop.f32.mrf.mxu1  ;;  %11853 = vmatpush.bf16.msra.mxu2 %v24662_v3  ;;  %11877 = vmatpush.bf16.msra.mxu3 %v24669_v16  ;;  %v24639_v3 = vld [vmem:[%s31042_s3 + $0x100] sm:$0xff] }
 0x5b4   : > { %v9818_v43 = vadd.f32 %v9817_v8, %v9795_v39  ;;  %10110 = vmatmul.bf16.gmra.mxu2 %v31381_v21  ;;  %v24653_v39 = vld [vmem:[%s31042_s3 + $0x170] sm:$0xff]  ;;  %v10240_v46 = vpack.c.b16 %v28814_v47, %v10238_v23  ;;  %v31384_v8 = vld [vmem:[#allocation17_spill] sm:$0xff]  ;;  %v10243_v21 = vrot.slane %v28826_v1, 1  ;;  %11814 = vmatpush.bf16.msra.mxu0 %v24639_v3  ;;  %v10223_v23 = vshrl.u32 %v28826_v1, 16 }
 0x5b5   : > { %v9863_v63 = vpop.f32.mrf.mxu3  ;;  %11831 = vmatpush.bf16.msra.mxu1 %v24653_v39  ;;  %v10204_v39 = vunpack.c.l.b16 %v10173_v44  ;;  %v24694_v3 = vld [vmem:[%s31042_s3 + $0x2b8] sm:$0xff]  ;;  %v24676_v44 = vld [vmem:[%s31042_s3 + $0x228] sm:$0xff] }
 0x5b6   : > { %v9878_v57 = vpop.f32.mrf.mxu0  ;;  %10087 = vmatmul.bf16.gmra.mxu1 %v31382_v0  ;;  %v24650_v0 = vld [vmem:[%s31042_s3 + $0x158] sm:$0xff]  ;;  %v10242_v6 = vrot.slane %v10240_v46, 1 }
 0x5b7   : > { %v9879_v2 = vadd.f32 %v9878_v57, %v9856_v56  ;;  %v9840_v15 = vpop.f32.mrf.mxu2  ;;  %11854 = vmatpush.bf16.msra.mxu2 %v24661_v12  ;;  %11878 = vmatpush.bf16.msra.mxu3 %v24668_v34  ;;  %v24666_v57 = vld [vmem:[%s31042_s3 + $0x1d8] sm:$0xff] }
 0x5b8   : > { %v9841_v28 = vadd.f32 %v9840_v15, %v9818_v43  ;;  %v28832_v43 = vpack.c.b16 %v31384_v8, %v10255_v51  ;;  %v10221_v15 = vrot.slane %v10219_v52, 1 }
 0x5ba   : > { %v9864_v49 = vadd.f32 %v9863_v63, %v9841_v28  ;;  %v10216_v63 = vrot.slane %v10214_v35, 1  ;;  %v24657_v28 = vld [vmem:[%s31042_s3 + $0x190] sm:$0xff] }
 0x5bb   : > { %v9819_v30 = vpop.f32.mrf.mxu1  ;;  %11855 = vmatpush.bf16.msra.mxu2 %v24660_v13  ;;  %11879 = vmatpush.bf16.msra.mxu3 %v24667_v48 }
 0x5bd   : > { %v9865_v62 = vpop.f32.mrf.mxu3 }
 0x5be   : > { %v9881_v18 = vpop.f32.mrf.mxu0 }
 0x5bf   : > { %v28773_v31 = vadd.f32 %v9881_v18, %v9859_v54  ;;  %v9842_v27 = vpop.f32.mrf.mxu2  ;;  %11880 = vmatpush.bf16.msra.mxu3 %v24666_v57  ;;  %v10175_v18 = vld [vmem:[#allocation2 + $0x48] sm:$0x3] }
 0x5c0   : > { %v24665_v27 = vld [vmem:[%s31042_s3 + $0x1d0] sm:$0xff]  ;;  %v10239_v34 = vunpack.c.l.b16 %v10175_v18 }
 0x5c1   : > { %11723 = vmatmul.bf16.vlgmr.msrb.gmra.mxu0 %v28781_v25 }
 0x5c2   : > { %10138 = vmatmul.bf16.gmra.mxu3 %v31364_v53  ;;  %v24652_v53 = vld [vmem:[%s31042_s3 + $0x168] sm:$0xff] }
 0x5c3   : > { %v9899_v40 = vpop.f32.mrf.mxu1  ;;  %11832 = vmatpush.bf16.msra.mxu1 %v24652_v53  ;;  %11881 = vmatpush.bf16.msra.mxu3 %v24665_v27 }
 0x5c4   : > { %v9900_v20 = vadd.f32 %v9899_v40, %v9877_v36  ;;  %10115 = vmatmul.bf16.gmra.mxu2 %v31351_v9  ;;  %v24659_v9 = vld [vmem:[%s31042_s3 + $0x1a0] sm:$0xff]  ;;  %v24656_v40 = vld [vmem:[%s31042_s3 + $0x188] sm:$0xff] }
 0x5c5   : > { %v9945_v56 = vpop.f32.mrf.mxu3  ;;  %11856 = vmatpush.bf16.msra.mxu2 %v24659_v9  ;;  %v24648_v9 = vld [vmem:[%s31042_s3 + $0x148] sm:$0xff] }
 0x5c6   : > { %v9883_v42 = vpop.f32.mrf.mxu0  ;;  %10092 = vmatmul.bf16.gmra.mxu1 %v31383_v37  ;;  %v10241_v37 = vpack.c.b16 %v10239_v34, %v10239_v34  ;;  %v24701_v34 = vld [vmem:[%s31042_s3 + $0x2f0] sm:$0xff] }
 0x5c7   : > { %v28799_v29 = vadd.f32 %v9883_v42, %v9861_v22  ;;  %v9922_v10 = vpop.f32.mrf.mxu2  ;;  %11833 = vmatpush.bf16.msra.mxu1 %v24651_v17 }
 0x5c8   : > { %v9923_v14 = vadd.f32 %v9922_v10, %v9900_v20  ;;  %v24664_v20 = vld [vmem:[%s31042_s3 + $0x1c8] sm:$0xff]  ;;  %v28888_v17 = vrot.slane %v10241_v37, 1  ;;  %v24685_v37 = vld [vmem:[%s31042_s3 + $0x270] sm:$0xff] }
 0x5c9   : > { %11857 = vmatpush.bf16.msra.mxu2 %v24658_v61  ;;  %11882 = vmatpush.bf16.msra.mxu3 %v24664_v20  ;;  %v24647_v61 = vld [vmem:[%s31042_s3 + $0x140] sm:$0xff] }
 0x5ca   : > { %v28816_v54 = vadd.f32 %v9945_v56, %v9923_v14  ;;  %v28877_v56 = vpack.c.b16 %v10204_v39, %v10204_v39  ;;  %v28911_v46 = vsel %vm3541_vm11, %v10243_v21, %v28888_v17  ;;  %v10267_v39 = vshrl.u32 %v28832_v43, 16 }
 0x5cb   : > { %v9901_v55 = vpop.f32.mrf.mxu1  ;;  %11834 = vmatpush.bf16.msra.mxu1 %v24650_v0 }
 0x5cc   : > { %v9902_v36 = vadd.f32 %v9901_v55, %v9879_v2  ;;  %v10212_v2 = vshrl.u32 %v28781_v25, 16  ;;  %v10227_v14 = vshll.u32 %v28877_v56, 16  ;;  %v31385_v55 = vld [vmem:[#allocation18_spill] sm:$0xff] }
 0x5cd   : > { %v9947_v38 = vpop.f32.mrf.mxu3  ;;  %11858 = vmatpush.bf16.msra.mxu2 %v24657_v28  ;;  %v24686_v28 = vld [vmem:[%s31042_s3 + $0x278] sm:$0xff] }
 0x5ce   : > { %v9886_v50 = vpop.f32.mrf.mxu0  ;;  %v10217_v30 = vor.u32 %v10216_v63, %v10212_v2  ;;  %v10229_v35 = vrot.slane %v10227_v14, 1  ;;  %v10180_v2 = vld [vmem:[#allocation2 + $0x64] sm:$0x1]  ;;  %v24700_v14 = vld [vmem:[%s31042_s3 + $0x2e8] sm:$0xff] }
 0x5cf   : > { %v28829_v60 = vadd.f32 %v9886_v50, %v9864_v49  ;;  %v9924_v22 = vpop.f32.mrf.mxu2  ;;  %v28857_v49 = vsel %vm3541_vm11, %v10242_v6, %v10243_v21  ;;  %v10225_v50 = vor.u32 %v10223_v23, %v10221_v15  ;;  %v10269_v21 = vshll.u32 %v28832_v43, 16 }
 0x5d0   : > { %v9925_v11 = vadd.f32 %v9924_v22, %v9902_v36  ;;  %v28865_v24 = vsel %vm2956_vm3, %v10217_v30, %v10221_v15  ;;  %v24678_v36 = vld [vmem:[%s31042_s3 + $0x238] sm:$0xff]  ;;  %v10259_v18 = vunpack.c.l.b16 %v10180_v2  ;;  %v10181_v2 = vld [vmem:[#allocation2 + $0x54] sm:$0xe] }
 0x5d1   : > { %11728 = vmatmul.bf16.gmra.mxu0 %v28826_v1  ;;  %11859 = vmatpush.bf16.msra.mxu2 %v24656_v40  ;;  %v28921_v57 = vsel %vm2956_vm3, %v10225_v50, %v10229_v35  ;;  %v10271_v30 = vrot.slane %v10269_v21, 1  ;;  %v28979_v35 = vshrl.u32 %v28877_v56, 16  ;;  %v24683_v21 = vld [vmem:[%s31042_s3 + $0x260] sm:$0xff]  ;;  %v31389_v1 = vld [vmem:[#allocation41_spill] sm:$0xff] }
 0x5d2   : > { %11792 = vmatmul.bf16.vlgmr.msrb.gmra.mxu3 %v28832_v43  ;;  %v28852_v4 = vadd.f32 %v9947_v38, %v9925_v11  ;;  %11899 = vmatpush.bf16.msrb.mxu0 %v24678_v36  ;;  %v24702_v11 = vld [vmem:[%s31042_s3 + $0x2f8] sm:$0xff]  ;;  %v28951_v20 = vpack.c.b16 %v10259_v18, %v10259_v18  ;;  %v31388_v18 = vld [vmem:[#allocation20_spill] sm:$0xff] }
 0x5d3   : > { %v9904_v12 = vpop.f32.mrf.mxu1 }
 0x5d4   : > { %v9905_v62 = vadd.f32 %v9904_v12, %v28773_v31  ;;  %11769 = vmatmul.bf16.vlgmr.msrb.gmra.mxu2 %v28857_v49  ;;  %v24649_v31 = vld [vmem:[%s31042_s3 + $0x150] sm:$0xff]  ;;  %31387 = vst [vmem:[#allocation5_spill] sm:$0xff] %v28951_v20 }
 0x5d5   : > { %v9950_v16 = vpop.f32.mrf.mxu3  ;;  %11835 = vmatpush.bf16.msra.mxu1 %v24649_v31  ;;  %11860 = vmatpush.bf16.msra.mxu2 %v24655_v26  ;;  %v24693_v12 = vld [vmem:[%s31042_s3 + $0x2b0] sm:$0xff] }
 0x5d6   : > { %v9888_v25 = vpop.f32.mrf.mxu0  ;;  %11746 = vmatmul.bf16.vlgmr.msrb.gmra.mxu1 %v28865_v24 }
 0x5d7   : > { %v9927_v13 = vpop.f32.mrf.mxu2  ;;  %v31386_v25 = vld [vmem:[#allocation13_spill] sm:$0xff] }
 0x5d8   : > { %v9928_v41 = vadd.f32 %v9927_v13, %v9905_v62  ;;  %v10276_v13 = vrot.slane %v31386_v25, 1 }
 0x5d9   : > { %11836 = vmatpush.bf16.msra.mxu1 %v24648_v9  ;;  %11945 = vmatpush.bf16.msrb.mxu2 %v24694_v3  ;;  %v24692_v9 = vld [vmem:[%s31042_s3 + $0x2a8] sm:$0xff]  ;;  %v24699_v3 = vld [vmem:[%s31042_s3 + $0x2e0] sm:$0xff] }
 0x5da   : > { %v28879_v53 = vadd.f32 %v9950_v16, %v9928_v41  ;;  %v10272_v41 = vor.u32 %v10271_v30, %v10267_v39  ;;  %v24690_v30 = vld [vmem:[%s31042_s3 + $0x298] sm:$0xff] }
 0x5db   : > { %v9906_v42 = vpop.f32.mrf.mxu1 }
 0x5dc   : > { %v9907_v10 = vadd.f32 %v9906_v42, %v28799_v29  ;;  %v24663_v29 = vld [vmem:[%s31042_s3 + $0x1c0] sm:$0xff] }
 0x5dd   : > { %v9952_v19 = vpop.f32.mrf.mxu3  ;;  %11883 = vmatpush.bf16.msra.mxu3 %v24663_v29  ;;  %11837 = vmatpush.bf16.msra.mxu1 %v24647_v61  ;;  %v24675_v42 = vld [vmem:[%s31042_s3 + $0x220] sm:$0xff]  ;;  %v24684_v61 = vld [vmem:[%s31042_s3 + $0x268] sm:$0xff] }
 0x5de   : > { %v28886_v5 = vpop.f32.mrf.mxu0  ;;  %11946 = vmatpush.bf16.msrb.mxu2 %v24693_v12  ;;  %v10320_v12 = vrot.slane %v10219_v52, 4  ;;  %v31390_v52 = vunpack.c.l.b16 %v31389_v1 }
 0x5df   : > { %v9929_v48 = vpop.f32.mrf.mxu2 }
 0x5e0   : > { %v9930_v45 = vadd.f32 %v9929_v48, %v9907_v10  ;;  %v28960_v10 = vsel %vm2956_vm3, %v10272_v41, %v10276_v13  ;;  %v24674_v48 = vld [vmem:[%s31042_s3 + $0x218] sm:$0xff] }
 0x5e1   : > { %11733 = vmatmul.bf16.gmra.mxu0 %v28877_v56  ;;  %11968 = vmatpush.bf16.msrb.mxu3 %v24702_v11 }
 0x5e2   : > { %11797 = vmatmul.bf16.gmra.mxu3 %v31385_v55  ;;  %v28905_v38 = vadd.f32 %v9952_v19, %v9930_v45  ;;  %11922 = vmatpush.bf16.msrb.mxu1 %v24686_v28  ;;  %v10183_v19 = vld [vmem:[#allocation2 + $0x38] sm:$0x8]  ;;  %v10319_v28 = vrot.slane %v10223_v23, 3 }
 0x5e3   : > { %v9909_v51 = vpop.f32.mrf.mxu1  ;;  %v10307_v45 = vunpack.c.l.b16 %v10183_v19  ;;  %11947 = vmatpush.bf16.msrb.mxu2 %v24692_v9  ;;  %v24698_v9 = vld [vmem:[%s31042_s3 + $0x2d8] sm:$0xff] }
 0x5e4   : > { %v9910_v22 = vadd.f32 %v9909_v51, %v28829_v60  ;;  %11774 = vmatmul.bf16.gmra.mxu2 %v28911_v46  ;;  %v24677_v60 = vld [vmem:[%s31042_s3 + $0x230] sm:$0xff] }
 0x5e5   : > { %v9955_v63 = vpop.f32.mrf.mxu3  ;;  %11900 = vmatpush.bf16.msrb.mxu0 %v24677_v60  ;;  %11969 = vmatpush.bf16.msrb.mxu3 %v24701_v34  ;;  %v10309_v36 = vpack.c.b16 %v28814_v47, %v10307_v45  ;;  %v10293_v34 = vunpack.c.l.b16 %v10181_v2  ;;  %v24689_v45 = vld [vmem:[%s31042_s3 + $0x290] sm:$0xff]  ;;  %v10182_v2 = vld [vmem:[#allocation2 + $0x64] sm:$0x3] }
 0x5e6   : > { %v28923_v0 = vpop.f32.mrf.mxu0  ;;  %11751 = vmatmul.bf16.gmra.mxu1 %v28921_v57 }
 0x5e7   : > { %v9932_v6 = vpop.f32.mrf.mxu2  ;;  %11923 = vmatpush.bf16.msrb.mxu1 %v24685_v37  ;;  %v10312_v60 = vshrl.u32 %v10309_v36, 16  ;;  %v10315_v11 = vshll.u32 %v10309_v36, 16  ;;  %v10321_v37 = vor.u32 %v10320_v12, %v10319_v28  ;;  %v10295_v19 = vpack.c.b16 %v31384_v8, %v10293_v34 }
 0x5e8   : > { %v9933_v15 = vadd.f32 %v9932_v6, %v9910_v22  ;;  %v24673_v22 = vld [vmem:[%s31042_s3 + $0x210] sm:$0xff]  ;;  %v10282_v6 = vshll.u32 %v28951_v20, 16  ;;  %v10298_v8 = vrot.slane %v31385_v55, 1 }
 0x5e9   : > { %11901 = vmatpush.bf16.msrb.mxu0 %v24676_v44  ;;  %11970 = vmatpush.bf16.msrb.mxu3 %v24700_v14  ;;  %v10314_v39 = vrot.slane %v10312_v60, 3  ;;  %v10317_v25 = vrot.slane %v10315_v11, 4  ;;  %v24682_v14 = vld [vmem:[%s31042_s3 + $0x258] sm:$0xff]  ;;  %v24697_v60 = vld [vmem:[%s31042_s3 + $0x2d0] sm:$0xff] }
 0x5ea   : > { %v28942_v62 = vadd.f32 %v9955_v63, %v9933_v15  ;;  %v24691_v63 = vld [vmem:[%s31042_s3 + $0x2a0] sm:$0xff]  ;;  %v24672_v15 = vld [vmem:[%s31042_s3 + $0x208] sm:$0xff]  ;;  %v10284_v23 = vrot.slane %v10282_v6, 1 }
 0x5eb   : > { %v9911_v16 = vpop.f32.mrf.mxu1  ;;  %11924 = vmatpush.bf16.msrb.mxu1 %v24684_v61  ;;  %11948 = vmatpush.bf16.msrb.mxu2 %v24691_v63  ;;  %v31393_v63 = vld [vmem:[#allocation43_spill] sm:$0xff] }
 0x5ed   : > { %v9957_v27 = vpop.f32.mrf.mxu3  ;;  %11902 = vmatpush.bf16.msrb.mxu0 %v24675_v42  ;;  %11971 = vmatpush.bf16.msrb.mxu3 %v24699_v3  ;;  %v29025_v42 = vpack.c.b16 %v31390_v52, %v28814_v47  ;;  %v10318_v47 = vor.u32 %v10317_v25, %v10314_v39  ;;  %v10310_v3 = vpack.c.b16 %v31393_v63, %v31393_v63 }
 0x5ee   : > { %v28949_v31 = vpop.f32.mrf.mxu0  ;;  %v10280_v27 = vor.u32 %v31388_v18, %v10276_v13  ;;  %v24671_v13 = vld [vmem:[%s31042_s3 + $0x200] sm:$0xff]  ;;  %v10294_v18 = vunpack.c.l.b16 %v10182_v2 }
 0x5ef   : > { %v9934_v40 = vpop.f32.mrf.mxu2  ;;  %11925 = vmatpush.bf16.msrb.mxu1 %v24683_v21  ;;  %11949 = vmatpush.bf16.msrb.mxu2 %v24690_v30  ;;  %31391 = vst [vmem:[#allocation39_spill] sm:$0xff] %v29025_v42  ;;  %v29049_v36 = vsel %vm3611_vm12, %v10318_v47, %v10321_v37  ;;  %v10324_v28 = vshrl.u32 %v10310_v3, 16  ;;  %v10327_v12 = vshll.u32 %v10310_v3, 16  ;;  %v24681_v30 = vld [vmem:[%s31042_s3 + $0x250] sm:$0xff]  ;;  %v24688_v47 = vld [vmem:[%s31042_s3 + $0x288] sm:$0xff] }
 0x5f0   : > { %31392 = vst [vmem:[#allocation15_spill] sm:$0xff] %v29049_v36 }
 0x5f1   : > { %11815 = vmatmul.bf16.vlgmr.msra.gmra.mxu0 %v28960_v10  ;;  %11972 = vmatpush.bf16.msrb.mxu3 %v24698_v9  ;;  %v29072_v39 = vrot.slane %v10324_v28, 3  ;;  %v10329_v25 = vrot.slane %v10327_v12, 4  ;;  %v31396_v9 = vld [vmem:[#allocation44_spill] sm:$0xff]  ;;  %v10346_v28 = vshll.u32 %v29025_v42, 16 }
 0x5f2   : > { %11802 = vmatmul.bf16.gmra.mxu3 %v28951_v20  ;;  %11903 = vmatpush.bf16.msrb.mxu0 %v24674_v48  ;;  %v29038_v48 = vsel %vm2956_vm3, %v10280_v27, %v10284_v23  ;;  %v10296_v23 = vpack.c.b16 %v10294_v18, %v10294_v18 }
 0x5f3   : > { %v28973_v26 = vpop.f32.mrf.mxu1  ;;  %11926 = vmatpush.bf16.msrb.mxu1 %v24682_v14  ;;  %11950 = vmatpush.bf16.msrb.mxu2 %v24689_v45  ;;  %31394 = vst [vmem:[#allocation24_spill] sm:$0xff] %v29072_v39  ;;  %v24696_v45 = vld [vmem:[%s31042_s3 + $0x2c8] sm:$0xff] }
 0x5f4   : > { %11779 = vmatmul.bf16.gmra.mxu2 %v28888_v17  ;;  %v29086_v14 = vrot.slane %v10296_v23, 1  ;;  %v10185_v23 = vld [vmem:[#allocation2 + $0x4c] sm:$0x1] }
 0x5f5   : > { %v28976_v29 = vpop.f32.mrf.mxu3  ;;  %11973 = vmatpush.bf16.msrb.mxu3 %v24697_v60 }
 0x5f6   : > { %v28985_v51 = vpop.f32.mrf.mxu0  ;;  %11756 = vmatmul.bf16.gmra.mxu1 %v28979_v35  ;;  %11904 = vmatpush.bf16.msrb.mxu0 %v24673_v22  ;;  %v10297_v22 = vrot.slane %v10295_v19, 1  ;;  %v29081_v19 = vshrl.u32 %v28951_v20, 16  ;;  %31397 = vst [vmem:[#allocation34_spill] sm:$0xff] %v29086_v14  ;;  %v29115_v12 = vsel %vm3541_vm11, %v10298_v8, %v29086_v14  ;;  %v31400_v20 = vshll.u32 %v31396_v9, 16 }
 0x5f7   : > { %v28988_v50 = vpop.f32.mrf.mxu2  ;;  %11927 = vmatpush.bf16.msrb.mxu1 %v24681_v30  ;;  %31399 = vst [vmem:[#allocation33_spill] sm:$0xff] %v29115_v12  ;;  %11951 = vmatpush.bf16.msrb.mxu2 %v24688_v47  ;;  %v24695_v47 = vld [vmem:[%s31042_s3 + $0x2c0] sm:$0xff] }
 0x5f8   : > { %v29062_v11 = vsel %vm3541_vm11, %v10297_v22, %v10298_v8  ;;  %31395 = vst [vmem:[#allocation31_spill] sm:$0xff] %v29081_v19  ;;  %v24680_v22 = vld [vmem:[%s31042_s3 + $0x248] sm:$0xff]  ;;  %v10344_v8 = vshrl.u32 %v29025_v42, 16 }
 0x5f9   : > { %11974 = vmatpush.bf16.msrb.mxu3 %v24696_v45  ;;  %v24679_v45 = vld [vmem:[%s31042_s3 + $0x240] sm:$0xff] }
 0x5fa   : > { %11905 = vmatpush.bf16.msrb.mxu0 %v24672_v15 }
 0x5fb   : > { %v29008_v44 = vpop.f32.mrf.mxu1  ;;  %11928 = vmatpush.bf16.msrb.mxu1 %v24680_v22  ;;  %v24710_v22 = vld [vmem:[%s31042_s3 + $0x338] sm:$0xff] }
 0x5fd   : > { %v29015_v16 = vpop.f32.mrf.mxu3  ;;  %11975 = vmatpush.bf16.msrb.mxu3 %v24695_v47 }
 0x5fe   : > { %v29018_v41 = vpop.f32.mrf.mxu0  ;;  %11906 = vmatpush.bf16.msrb.mxu0 %v24671_v13  ;;  %v10330_v13 = vor.u32 %v10329_v25, %v29072_v39  ;;  %v10348_v25 = vrot.slane %v10346_v28, 1  ;;  %v10336_v28 = vunpack.c.l.b16 %v10185_v23 }
 0x5ff   : > { %v29020_v40 = vpop.f32.mrf.mxu2  ;;  %11929 = vmatpush.bf16.msrb.mxu1 %v24679_v45  ;;  %v24717_v45 = vld [vmem:[%s31042_s3 + $0x370] sm:$0xff] }
 0x600   : > { %v29105_v60 = vsel %vm3611_vm12, %v10321_v37, %v10330_v13  ;;  %v24687_v37 = vld [vmem:[%s31042_s3 + $0x280] sm:$0xff]  ;;  %v9969_v13 = vadd.f32 %v28886_v5, %v28816_v54  ;;  %v24726_v54 = vld [vmem:[%s31042_s3 + $0x3b8] sm:$0xff] }
 0x601   : > { %11820 = vmatmul.bf16.gmra.mxu0 %v29038_v48  ;;  %31398 = vst [vmem:[#allocation7_spill] sm:$0xff] %v29105_v60  ;;  %11952 = vmatpush.bf16.msrb.mxu2 %v24687_v37  ;;  %v24734_v5 = vld [vmem:[%s31042_s3 + $0x3f8] sm:$0xff] }
 0x602   : > { %11884 = vmatmul.bf16.vlgmr.msra.gmra.mxu3 %v29025_v42  ;;  %v9992_v37 = vadd.f32 %v28973_v26, %v9969_v13  ;;  %11991 = vmatpush.bf16.msra.mxu0 %v24710_v22  ;;  %v24718_v13 = vld [vmem:[%s31042_s3 + $0x378] sm:$0xff] }
 0x603   : > { %v29046_v61 = vpop.f32.mrf.mxu1  ;;  %12060 = vmatpush.bf16.msra.mxu3 %v24734_v5 }
 0x604   : > { %11861 = vmatmul.bf16.vlgmr.msra.gmra.mxu2 %v29049_v36  ;;  %v10015_v23 = vadd.f32 %v28988_v50, %v9992_v37  ;;  %v24709_v36 = vld [vmem:[%s31042_s3 + $0x330] sm:$0xff]  ;;  %v9971_v50 = vadd.f32 %v28923_v0, %v28852_v4 }
 0x605   : > { %v29056_v21 = vpop.f32.mrf.mxu3  ;;  %12037 = vmatpush.bf16.msra.mxu2 %v24726_v54  ;;  %v24733_v4 = vld [vmem:[%s31042_s3 + $0x3f0] sm:$0xff] }
 0x606   : > { %v9980_v6 = vpop.f32.mrf.mxu0  ;;  %11838 = vmatmul.bf16.vlgmr.msra.gmra.mxu1 %v29062_v11  ;;  %11992 = vmatpush.bf16.msra.mxu0 %v24709_v36  ;;  %v9994_v0 = vadd.f32 %v29008_v44, %v9971_v50  ;;  %v25257_v44 = vld [vmem:[#allocation2 + $0x58] sm:$0xff]   ;;  %v9974_v50 = vadd.f32 %v28949_v31, %v28879_v53  ;;  %v24716_v31 = vld [vmem:[%s31042_s3 + $0x368] sm:$0xff] }
 0x607   : > { %v29065_v15 = vpop.f32.mrf.mxu2  ;;  %v25295_v6 = vmov 0.0   ;;  %12014 = vmatpush.bf16.msra.mxu1 %v24718_v13  ;;  %12061 = vmatpush.bf16.msra.mxu3 %v24733_v4  ;;  %v10409_v5 = vshll.u32 %v25257_v44, 16  ;;  %v24732_v4 = vld [vmem:[%s31042_s3 + $0x3e8] sm:$0xff]  ;;  %v10407_v53 = vshrl.u32 %v25257_v44, 16 }
 0x608   : > { %10168 = vst.msk [vmem:[%s29091_s13 + $0x21] sm:$0x7f] %vm10167_vm6, %v25295_v6  ;;  %v10017_v22 = vadd.f32 %v29020_v40, %v9994_v0  ;;  %v29194_v40 = vld [vmem:[%s31043_s4] ss:$0 sm:$0xff] }
 0x609   : > { %23926 = vst.msk [vmem:[%s29091_s13 + $0x49] sm:$0x7f] %vm10167_vm6, %v25295_v6 }
 0x60b   : > { %v29070_v27 = vpop.f32.mrf.mxu1  ;;  %12015 = vmatpush.bf16.msra.mxu1 %v24717_v45  ;;  %12062 = vmatpush.bf16.msra.mxu3 %v24732_v4 }
 0x60d   : > { %v29074_v34 = vpop.f32.mrf.mxu3 }
 0x60e   : > { %v29076_v1 = vpop.f32.mrf.mxu0 }
 0x60f   : > { %v29078_v52 = vpop.f32.mrf.mxu2  ;;  %12016 = vmatpush.bf16.msra.mxu1 %v24716_v31  ;;  %v24704_v31 = vld [vmem:[%s31042_s3 + $0x308] sm:$0xff] }
 0x611   : > { %11825 = vmatmul.bf16.gmra.mxu0 %v29081_v19  ;;  %v29146_v19 = vrot.slane %v31400_v20, 1 }
 0x612   : > { %11889 = vmatmul.bf16.gmra.mxu3 %v31396_v9 }
 0x613   : > { %v29102_v3 = vpop.f32.mrf.mxu1 }
 0x614   : > { %11866 = vmatmul.bf16.gmra.mxu2 %v29105_v60  ;;  %v10349_v60 = vor.u32 %v10348_v25, %v10344_v8  ;;  %v10038_v25 = vadd.f32 %v28976_v29, %v10015_v23  ;;  %v24708_v8 = vld [vmem:[%s31042_s3 + $0x328] sm:$0xff] }
 0x615   : > { %v29109_v2 = vpop.f32.mrf.mxu3  ;;  %11993 = vmatpush.bf16.msra.mxu0 %v24708_v8  ;;  %v10411_v8 = vrot.slane %v10409_v5, 1 }
 0x616   : > { %v29120_v30 = vpop.f32.mrf.mxu0  ;;  %11843 = vmatmul.bf16.gmra.mxu1 %v29115_v12  ;;  %v29158_v20 = vsel %vm2956_vm3, %v10349_v60, %v29146_v19  ;;  %v24725_v60 = vld [vmem:[%s31042_s3 + $0x3b0] sm:$0xff]  ;;  %v10061_v29 = vadd.f32 %v29076_v1, %v10038_v25  ;;  %v24707_v1 = vld [vmem:[%s31042_s3 + $0x320] sm:$0xff]  ;;  %v10040_v25 = vadd.f32 %v29015_v16, %v10017_v22  ;;  %v9997_v16 = vadd.f32 %v29046_v61, %v9974_v50 }
 0x617   : > { %v29123_v18 = vpop.f32.mrf.mxu2  ;;  %31401 = vst [vmem:[#allocation35_spill] sm:$0xff] %v29158_v20  ;;  %12038 = vmatpush.bf16.msra.mxu2 %v24725_v60  ;;  %v24724_v60 = vld [vmem:[%s31042_s3 + $0x3a8] sm:$0xff] }
 0x618   : > { %v10020_v61 = vadd.f32 %v29065_v15, %v9997_v16  ;;  %v24715_v16 = vld [vmem:[%s31042_s3 + $0x360] sm:$0xff] }
 0x619   : > { %11994 = vmatpush.bf16.msra.mxu0 %v24707_v1  ;;  %12017 = vmatpush.bf16.msra.mxu1 %v24715_v16 }
 0x61b   : > { %v10003_v6 = vpop.f32.mrf.mxu1  ;;  %12039 = vmatpush.bf16.msra.mxu2 %v24724_v60  ;;  %v24705_v60 = vld [vmem:[%s31042_s3 + $0x310] sm:$0xff] }
 0x61d   : > { %v10049_v42 = vpop.f32.mrf.mxu3 }
 0x61e   : > { %v29149_v6 = vpop.f32.mrf.mxu0  ;;  %v29154_v42 = vpack.c.b16 %v10336_v28, %v10336_v28 }
 0x61f   : > { %v10026_v26 = vpop.f32.mrf.mxu2 }
 0x620   : > { %v10359_v23 = vshll.u32 %v29154_v42, 16 }
 0x621   : > { %11907 = vmatmul.bf16.vlgmr.msrb.gmra.mxu0 %v29158_v20 }
 0x622   : > { %11894 = vmatmul.bf16.gmra.mxu3 %v29154_v42 }
 0x623   : > { %v10083_v47 = vpop.f32.mrf.mxu1 }
 0x624   : > { %11871 = vmatmul.bf16.gmra.mxu2 %v29072_v39  ;;  %v10084_v28 = vadd.f32 %v10083_v47, %v10061_v29  ;;  %v24706_v47 = vld [vmem:[%s31042_s3 + $0x318] sm:$0xff]  ;;  %v10361_v29 = vrot.slane %v10359_v23, 1  ;;  %v31404_v23 = vshrl.u32 %v31396_v9, 16 }
 0x625   : > { %v10129_v36 = vpop.f32.mrf.mxu3  ;;  %11995 = vmatpush.bf16.msra.mxu0 %v24706_v47  ;;  %v9976_v47 = vadd.f32 %v28985_v51, %v28905_v38  ;;  %v24722_v38 = vld [vmem:[%s31042_s3 + $0x398] sm:$0xff] }
 0x626   : > { %v29184_v54 = vpop.f32.mrf.mxu0  ;;  %11848 = vmatmul.bf16.gmra.mxu1 %v29086_v14 }
 0x627   : > { %v10106_v37 = vpop.f32.mrf.mxu2  ;;  %v9999_v51 = vadd.f32 %v29070_v27, %v9976_v47  ;;  %v24721_v27 = vld [vmem:[%s31042_s3 + $0x390] sm:$0xff] }
 0x628   : > { %v10107_v26 = vadd.f32 %v10106_v37, %v10084_v28  ;;  %v31402_v28 = vld [vmem:[#allocation9_spill] sm:$0xff]  ;;  %v24723_v37 = vld [vmem:[%s31042_s3 + $0x3a0] sm:$0xff] }
 0x629   : > { %v31403_v5 = vshll.u32 %v31402_v28, 16  ;;  %12040 = vmatpush.bf16.msra.mxu2 %v24723_v37  ;;  %11996 = vmatpush.bf16.msra.mxu0 %v24705_v60  ;;  %v24713_v60 = vld [vmem:[%s31042_s3 + $0x350] sm:$0xff] }
 0x62a   : > { %v10130_v13 = vadd.f32 %v10129_v36, %v10107_v26  ;;  %v10063_v36 = vadd.f32 %v29120_v30, %v10040_v25  ;;  %v10357_v26 = vor.u32 %v31404_v23, %v29146_v19  ;;  %v10412_v25 = vor.u32 %v10411_v8, %v10407_v53  ;;  %v24714_v23 = vld [vmem:[%s31042_s3 + $0x358] sm:$0xff] }
 0x62b   : > { %v10085_v0 = vpop.f32.mrf.mxu1  ;;  %v29216_v1 = vrot.slane %v31403_v5, 1  ;;  %12018 = vmatpush.bf16.msra.mxu1 %v24714_v23 }
 0x62c   : > { %v10143_v45 = vmax.f32 %v28554_v7, %v10130_v13  ;;  %v10086_v30 = vadd.f32 %v10085_v0, %v10063_v36  ;;  %v10188_v13 = vld [vmem:[#allocation2 + $0x68] sm:$0x1]  ;;  %v29232_v19 = vsel %vm2956_vm3, %v10357_v26, %v10361_v29  ;;  %v10043_v0 = vadd.f32 %v29056_v21, %v10020_v61  ;;  %v24731_v29 = vld [vmem:[%s31042_s3 + $0x3e0] sm:$0xff]  ;;  %v31407_v61 = vld [vmem:[#allocation29_spill] sm:$0xff] }
 0x62d   : > { %v10131_v22 = vpop.f32.mrf.mxu3  ;;  %v29236_v15 = vsel %vm2956_vm3, %v10412_v25, %v29216_v1  ;;  %v10399_v8 = vunpack.c.l.b16 %v10188_v13  ;;  %12063 = vmatpush.bf16.msra.mxu3 %v24731_v29  ;;  %12041 = vmatpush.bf16.msra.mxu2 %v24722_v38  ;;  %v31408_v38 = vshrl.u32 %v31402_v28, 16 }
 0x62e   : > { %v10151_v7 = vadd.f32 %v29194_v40, %v10143_v45  ;;  %v29226_v50 = vpop.f32.mrf.mxu0  ;;  %31405 = vst [vmem:[#allocation28_spill] sm:$0xff] %v29236_v15  ;;  %v10066_v21 = vadd.f32 %v29149_v6, %v10043_v0  ;;  %11997 = vmatpush.bf16.msra.mxu0 %v24704_v31 }
 0x62f   : > { %v10108_v4 = vpop.f32.mrf.mxu2  ;;  %v29263_v37 = vpack.c.b16 %v10399_v8, %v10399_v8  ;;  %12019 = vmatpush.bf16.msra.mxu1 %v24713_v60 }
 0x630   : > { %v10156_v5 = vmax.f32 %v10151_v7, 0.0  ;;  %v10109_v39 = vadd.f32 %v10108_v4, %v10086_v30  ;;  %v24703_v7 = vld [vmem:[%s31042_s3 + $0x300] sm:$0xff]  ;;  %v24720_v4 = vld [vmem:[%s31042_s3 + $0x388] sm:$0xff] }
 0x631   : > { %11912 = vmatmul.bf16.gmra.mxu0 %v29232_v19  ;;  %31406 = vst [vmem:[#allocation38_spill] sm:$0xff] %v29263_v37  ;;  %12042 = vmatpush.bf16.msra.mxu2 %v24721_v27  ;;  %v10422_v0 = vshll.u32 %v29263_v37, 16  ;;  %v24727_v27 = vld [vmem:[%s31042_s3 + $0x3c0] sm:$0xff] }
 0x632   : > { %11976 = vmatmul.bf16.vlgmr.msrb.gmra.mxu3 %v29236_v15  ;;  %10161 = vst.msk [vmem:[%s29091_s13] sm:$0xff] %vm2995_vm4, %v10156_v5  ;;  %v10132_v53 = vadd.f32 %v10131_v22, %v10109_v39  ;;  %v24730_v22 = vld [vmem:[%s31042_s3 + $0x3d8] sm:$0xff]  ;;  %v9979_v5 = vadd.f32 %v29018_v41, %v28942_v62  ;;  %11998 = vmatpush.bf16.msra.mxu0 %v24703_v7  ;;  %v24728_v41 = vld [vmem:[%s31042_s3 + $0x3c8] sm:$0xff]  ;;  %v24711_v7 = vld [vmem:[%s31042_s3 + $0x340] sm:$0xff] }
 0x633   : > { %v10088_v36 = vpop.f32.mrf.mxu1  ;;  %12064 = vmatpush.bf16.msra.mxu3 %v24730_v22  ;;  %v10420_v62 = vor.u32 %v31408_v38, %v29216_v1  ;;  %v24712_v1 = vld [vmem:[%s31042_s3 + $0x348] sm:$0xff] }
 0x634   : > { %v10144_v39 = vmax.f32 %v28581_v32, %v10132_v53  ;;  %11953 = vmatmul.bf16.vlgmr.msrb.gmra.mxu2 %v25257_v44  ;;  %v10022_v32 = vadd.f32 %v29078_v52, %v9999_v51  ;;  %v10089_v44 = vadd.f32 %v10088_v36, %v10066_v21  ;;  %v24729_v52 = vld [vmem:[%s31042_s3 + $0x3d0] sm:$0xff]  ;;  %v10002_v29 = vadd.f32 %v29102_v3, %v9979_v5  ;;  %v24719_v21 = vld [vmem:[%s31042_s3 + $0x380] sm:$0xff]  ;;  %v31410_v5 = vld [vmem:[#allocation27_spill] sm:$0xff] }
 0x635   : > { %v10134_v45 = vpop.f32.mrf.mxu3  ;;  %12043 = vmatpush.bf16.msra.mxu2 %v24720_v4  ;;  %12020 = vmatpush.bf16.msra.mxu1 %v24712_v1 }
 0x636   : > { %v10152_v6 = vadd.f32 %v29194_v40, %v10144_v39  ;;  %v10072_v26 = vpop.f32.mrf.mxu0  ;;  %11930 = vmatmul.bf16.vlgmr.msrb.gmra.mxu1 %v31407_v61  ;;  %v10045_v8 = vadd.f32 %v29074_v34, %v10022_v32  ;;  %v10025_v34 = vadd.f32 %v29123_v18, %v10002_v29  ;;  %v24742_v32 = vld [vmem:[%s31042_s3 + $0x438] sm:$0xff]  ;;  %v24740_v29 = vld [vmem:[%s31042_s3 + $0x428] sm:$0xff] }
 0x637   : > { %v10111_v30 = vpop.f32.mrf.mxu2  ;;  %12065 = vmatpush.bf16.msra.mxu3 %v24729_v52  ;;  %12083 = vmatpush.bf16.msrb.mxu0 %v24742_v32  ;;  %v10190_v32 = vld [vmem:[#allocation2 + $0x4c] sm:$0xf] }
 0x638   : > { %v10157_v25 = vmax.f32 %v10152_v6, 0.0  ;;  %v10112_v13 = vadd.f32 %v10111_v30, %v10089_v44  ;;  %v10068_v31 = vadd.f32 %v29184_v54, %v10045_v8  ;;  %v10048_v6 = vadd.f32 %v29109_v2, %v10025_v34  ;;  %v24758_v2 = vld [vmem:[%s31042_s3 + $0x4b8] sm:$0xff]  ;;  %v24765_v34 = vld [vmem:[%s31042_s3 + $0x4f0] sm:$0xff] }
 0x639   : > { %12044 = vmatpush.bf16.msra.mxu2 %v24719_v21  ;;  %12021 = vmatpush.bf16.msra.mxu1 %v24711_v7 }
 0x63a   : > { %10162 = vst.msk [vmem:[%s29091_s13 + $0x8] sm:$0xff] %vm2995_vm4, %v10157_v25  ;;  %v10135_v47 = vadd.f32 %v10134_v45, %v10112_v13  ;;  %v29312_v45 = vshrl.u32 %v29154_v42, 16  ;;  %v10071_v30 = vadd.f32 %v29226_v50, %v10048_v6  ;;  %v24766_v50 = vld [vmem:[%s31042_s3 + $0x4f8] sm:$0xff]  ;;  %v24764_v6 = vld [vmem:[%s31042_s3 + $0x4e8] sm:$0xff] }
 0x63b   : > { %v10090_v53 = vpop.f32.mrf.mxu1  ;;  %12066 = vmatpush.bf16.msra.mxu3 %v24728_v41  ;;  %v10438_v41 = vrot.slane %v31396_v9, 3 }
 0x63c   : > { %v10145_v16 = vmax.f32 %v28604_v58, %v10135_v47  ;;  %v10091_v51 = vadd.f32 %v10090_v53, %v10068_v31  ;;  %v10424_v58 = vrot.slane %v10422_v0, 1  ;;  %v24750_v53 = vld [vmem:[%s31042_s3 + $0x478] sm:$0xff]  ;;  %v24757_v31 = vld [vmem:[%s31042_s3 + $0x4b0] sm:$0xff] }
 0x63d   : > { %v10136_v36 = vpop.f32.mrf.mxu3  ;;  %13281 = vmatpush.bf16.msrb.mxu2 %v24758_v2  ;;  %12106 = vmatpush.bf16.msrb.mxu1 %v24750_v53 }
 0x63e   : > { %v10153_v3 = vadd.f32 %v29194_v40, %v10145_v16  ;;  %v29303_v54 = vpop.f32.mrf.mxu0  ;;  %v29315_v23 = vsel %vm2956_vm3, %v10420_v62, %v10424_v58  ;;  %v31411_v58 = vld [vmem:[#allocation45_spill] sm:$0xff]  ;;  %vm10165_vm3 = vcmask 516096  }
 0x63f   : > { %v10113_v39 = vpop.f32.mrf.mxu2  ;;  %31409 = vst [vmem:[#allocation37_spill] sm:$0xff] %v29315_v23  ;;  %12067 = vmatpush.bf16.msra.mxu3 %v24727_v27  ;;  %v10437_v1 = vrot.slane %v31411_v58, 3  ;;  %v24756_v27 = vld [vmem:[%s31042_s3 + $0x4a8] sm:$0xff]  ;;  %v31415_v58 = vld [vmem:[#allocation14_spill] sm:$0xff] }
 0x640   : > { %v10158_v18 = vmax.f32 %v10153_v3, 0.0  ;;  %v10114_v22 = vadd.f32 %v10113_v39, %v10091_v51  ;;  %v24739_v39 = vld [vmem:[%s31042_s3 + $0x420] sm:$0xff] }
 0x641   : > { %11917 = vmatmul.bf16.gmra.mxu0 %v29312_v45  ;;  %13282 = vmatpush.bf16.msrb.mxu2 %v24757_v31 }
 0x642   : > { %11981 = vmatmul.bf16.gmra.mxu3 %v29315_v23  ;;  %10163 = vst.msk [vmem:[%s29091_s13 + $0x10] sm:$0xff] %vm2995_vm4, %v10158_v18  ;;  %v10137_v44 = vadd.f32 %v10136_v36, %v10114_v22  ;;  %v24749_v18 = vld [vmem:[%s31042_s3 + $0x470] sm:$0xff]  ;;  %v29379_v22 = vsel %vm1341_vm0, %v10437_v1, %v10438_v41  ;;  %v10481_v1 = vrot.slane %v31415_v58, 3 }
 0x643   : > { %v10093_v26 = vpop.f32.mrf.mxu1  ;;  %13304 = vmatpush.bf16.msrb.mxu3 %v24766_v50  ;;  %12107 = vmatpush.bf16.msrb.mxu1 %v24749_v18  ;;  %v24746_v18 = vld [vmem:[%s31042_s3 + $0x458] sm:$0xff] }
 0x644   : > { %v10146_v25 = vmax.f32 %v28622_v59, %v10137_v44  ;;  %11958 = vmatmul.bf16.gmra.mxu2 %v31402_v28  ;;  %v10094_v60 = vadd.f32 %v10093_v26, %v10071_v30  ;;  %v24741_v59 = vld [vmem:[%s31042_s3 + $0x430] sm:$0xff]  ;;  %v24738_v44 = vld [vmem:[%s31042_s3 + $0x418] sm:$0xff] }
 0x645   : > { %v10139_v13 = vpop.f32.mrf.mxu3  ;;  %12084 = vmatpush.bf16.msrb.mxu0 %v24741_v59  ;;  %13283 = vmatpush.bf16.msrb.mxu2 %v24756_v27  ;;  %v24755_v59 = vld [vmem:[%s31042_s3 + $0x4a0] sm:$0xff] }
 0x646   : > { %v10154_v52 = vadd.f32 %v29194_v40, %v10146_v25  ;;  %v29338_v4 = vpop.f32.mrf.mxu0  ;;  %11935 = vmatmul.bf16.gmra.mxu1 %v31410_v5  ;;  %v29396_v25 = vunpack.c.l.b16 %v10190_v32 }
 0x647   : > { %v10116_v8 = vpop.f32.mrf.mxu2  ;;  %13305 = vmatpush.bf16.msrb.mxu3 %v24765_v34  ;;  %v10482_v34 = vrot.slane %v31402_v28, 3 }
 0x648   : > { %v10159_v47 = vmax.f32 %v10154_v52, 0.0  ;;  %v10117_v0 = vadd.f32 %v10116_v8, %v10094_v60  ;;  %v31413_v52 = vld [vmem:[#allocation47_spill] sm:$0xff]  ;;  %v10436_v8 = vpack.c.b16 %v29396_v25, %v29396_v25 }
 0x649   : > { %12085 = vmatpush.bf16.msrb.mxu0 %v24740_v29  ;;  %13284 = vmatpush.bf16.msrb.mxu2 %v24755_v59  ;;  %v24736_v29 = vld [vmem:[%s31042_s3 + $0x408] sm:$0xff]  ;;  %v29447_v32 = vsel %vm1341_vm0, %v10481_v1, %v10482_v34 }
 0x64a   : > { %10164 = vst.msk [vmem:[%s29091_s13 + $0x18] sm:$0xff] %vm2995_vm4, %v10159_v47  ;;  %v10140_v16 = vadd.f32 %v10139_v13, %v10117_v0  ;;  %v24748_v13 = vld [vmem:[%s31042_s3 + $0x468] sm:$0xff]  ;;  %v24763_v47 = vld [vmem:[%s31042_s3 + $0x4e0] sm:$0xff] }
 0x64b   : > { %v10095_v36 = vpop.f32.mrf.mxu1  ;;  %13306 = vmatpush.bf16.msrb.mxu3 %v24764_v6  ;;  %12108 = vmatpush.bf16.msrb.mxu1 %v24748_v13  ;;  %v24747_v0 = vld [vmem:[%s31042_s3 + $0x460] sm:$0xff]  ;;  %31417 = vst [vmem:[#allocation40_spill] sm:$0xff] %v29447_v32  ;;  %v24753_v6 = vld [vmem:[%s31042_s3 + $0x490] sm:$0xff] }
 0x64c   : > { %v10147_v38 = vmax.f32 %v28645_v33, %v10140_v16  ;;  %v29368_v33 = vshrl.u32 %v29263_v37, 16  ;;  %v24754_v16 = vld [vmem:[%s31042_s3 + $0x498] sm:$0xff]  ;;  %v24761_v13 = vld [vmem:[%s31042_s3 + $0x4d0] sm:$0xff] }
 0x64d   : > { %v10141_v62 = vpop.f32.mrf.mxu3  ;;  %12086 = vmatpush.bf16.msrb.mxu0 %v24739_v39  ;;  %13285 = vmatpush.bf16.msrb.mxu2 %v24754_v16  ;;  %v24735_v39 = vld [vmem:[%s31042_s3 + $0x400] sm:$0xff]  ;;  %v10458_v16 = vshrl.u32 %v10436_v8, 16 }
 0x64e   : > { %v10155_v3 = vadd.f32 %v29194_v40, %v10147_v38  ;;  %v29364_v51 = vpop.f32.mrf.mxu0  ;;  %31412 = vst [vmem:[#allocation21_spill] sm:$0xff] %v29368_v33  ;;  %v29425_v62 = vrot.slane %v10436_v8, 3 }
 0x64f   : > { %v10118_v21 = vpop.f32.mrf.mxu2  ;;  %13307 = vmatpush.bf16.msrb.mxu3 %v24763_v47  ;;  %12109 = vmatpush.bf16.msrb.mxu1 %v24747_v0 }
 0x650   : > { %v10160_v40 = vmax.f32 %v10155_v3, 0.0  ;;  %31414 = vst [vmem:[#allocation30_spill] sm:$0xff] %v29425_v62  ;;  %v29444_v27 = vsel %vm1341_vm0, %v10438_v41, %v29425_v62 }
 0x651   : > { %11999 = vmatmul.bf16.vlgmr.msra.gmra.mxu0 %v29379_v22  ;;  %31416 = vst [vmem:[#allocation26_spill] sm:$0xff] %v29444_v27  ;;  %13286 = vmatpush.bf16.msrb.mxu2 %v24753_v6 }
 0x652   : > { %11986 = vmatmul.bf16.gmra.mxu3 %v29368_v33  ;;  %10166 = vst.msk [vmem:[%s29091_s13 + $0x20] sm:$0x1] %vm10165_vm3, %v10160_v40  ;;  %12087 = vmatpush.bf16.msrb.mxu0 %v24738_v44 }
 0x653   : > { %v11747_v26 = vpop.f32.mrf.mxu1  ;;  %12110 = vmatpush.bf16.msrb.mxu1 %v24746_v18  ;;  %v29484_v18 = vrot.slane %v10458_v16, 3  ;;  %v31423_v16 = vld [vmem:[#allocation46_spill] sm:$0xff] }
 0x654   : > { %v11748_v7 = vadd.f32 %v11747_v26, %v29303_v54  ;;  %11963 = vmatmul.bf16.gmra.mxu2 %v29263_v37  ;;  %v24737_v54 = vld [vmem:[%s31042_s3 + $0x410] sm:$0xff] }
 0x655   : > { %v11793_v30 = vpop.f32.mrf.mxu3  ;;  %31421 = vst [vmem:[#allocation32_spill] sm:$0xff] %v29484_v18 }
 0x656   : > { %v29401_v2 = vpop.f32.mrf.mxu0  ;;  %11940 = vmatmul.bf16.gmra.mxu1 %v31413_v52  ;;  %12088 = vmatpush.bf16.msrb.mxu0 %v24737_v54  ;;  %v31418_v54 = vld [vmem:[#allocation12_spill] sm:$0xff] }
 0x657   : > { %v11770_v60 = vpop.f32.mrf.mxu2 }
 0x658   : > { %v11771_v50 = vadd.f32 %v11770_v60, %v11748_v7  ;;  %v29457_v7 = vld [vmem:[#allocation2 + $0x40] sm:$0xff]  }
 0x65a   : > { %v11794_v53 = vadd.f32 %v11793_v30, %v11771_v50  ;;  %12089 = vmatpush.bf16.msrb.mxu0 %v24736_v29  ;;  %v24745_v50 = vld [vmem:[%s31042_s3 + $0x450] sm:$0xff]  ;;  %v24752_v29 = vld [vmem:[%s31042_s3 + $0x488] sm:$0xff] }
 0x65b   : > { %v11749_v31 = vpop.f32.mrf.mxu1  ;;  %12111 = vmatpush.bf16.msrb.mxu1 %v24745_v50  ;;  %13287 = vmatpush.bf16.msrb.mxu2 %v24752_v29 }
 0x65c   : > { %v11750_v36 = vadd.f32 %v11749_v31, %v29338_v4  ;;  %v24762_v4 = vld [vmem:[%s31042_s3 + $0x4d8] sm:$0xff]  ;;  %v24760_v31 = vld [vmem:[%s31042_s3 + $0x4c8] sm:$0xff] }
 0x65d   : > { %v11795_v38 = vpop.f32.mrf.mxu3  ;;  %13308 = vmatpush.bf16.msrb.mxu3 %v24762_v4  ;;  %v24744_v4 = vld [vmem:[%s31042_s3 + $0x448] sm:$0xff] }
 0x65e   : > { %v29428_v3 = vpop.f32.mrf.mxu0  ;;  %12090 = vmatpush.bf16.msrb.mxu0 %v24735_v39 }
 0x65f   : > { %v11772_v21 = vpop.f32.mrf.mxu2  ;;  %12112 = vmatpush.bf16.msrb.mxu1 %v24744_v4  ;;  %v24782_v4 = vld [vmem:[%s31042_s3 + $0x578] sm:$0xff] }
 0x660   : > { %v11773_v40 = vadd.f32 %v11772_v21, %v11750_v36  ;;  %v10461_v36 = vshll.u32 %v10436_v8, 16 }
 0x661   : > { %12004 = vmatmul.bf16.gmra.mxu0 %v29444_v27  ;;  %13309 = vmatpush.bf16.msrb.mxu3 %v24761_v13  ;;  %v24759_v13 = vld [vmem:[%s31042_s3 + $0x4c0] sm:$0xff] }
 0x662   : > { %12068 = vmatmul.bf16.vlgmr.msra.gmra.mxu3 %v29447_v32  ;;  %v29454_v44 = vadd.f32 %v11795_v38, %v11773_v40  ;;  %v10463_v40 = vrot.slane %v10461_v36, 4 }
 0x663   : > { %v11752_v26 = vpop.f32.mrf.mxu1 }
 0x664   : > { %v11753_v41 = vadd.f32 %v11752_v26, %v29364_v51  ;;  %12045 = vmatmul.bf16.vlgmr.msra.gmra.mxu2 %v29457_v7  ;;  %v31419_v51 = vld [vmem:[#allocation19_spill] sm:$0xff] }
 0x665   : > { %v11798_v30 = vpop.f32.mrf.mxu3  ;;  %v29469_v0 = vpack.c.b16 %v31419_v51, %v31419_v51  ;;  %13310 = vmatpush.bf16.msrb.mxu3 %v24760_v31  ;;  %v24790_v31 = vld [vmem:[%s31042_s3 + $0x5b8] sm:$0xff] }
 0x666   : > { %v11736_v60 = vpop.f32.mrf.mxu0  ;;  %12022 = vmatmul.bf16.vlgmr.msra.gmra.mxu1 %v31418_v54 }
 0x667   : > { %v11775_v59 = vpop.f32.mrf.mxu2  ;;  %v29479_v39 = vrot.slane %v29469_v0, 3  ;;  %v24743_v60 = vld [vmem:[%s31042_s3 + $0x440] sm:$0xff] }
 0x668   : > { %v11776_v47 = vadd.f32 %v11775_v59, %v11753_v41  ;;  %v24751_v41 = vld [vmem:[%s31042_s3 + $0x480] sm:$0xff]  ;;  %v24774_v59 = vld [vmem:[%s31042_s3 + $0x538] sm:$0xff]  ;;  %12113 = vmatpush.bf16.msrb.mxu1 %v24743_v60 }
 0x669   : > { %31420 = vst [vmem:[#allocation11_spill] sm:$0xff] %v29479_v39  ;;  %13288 = vmatpush.bf16.msrb.mxu2 %v24751_v41  ;;  %13311 = vmatpush.bf16.msrb.mxu3 %v24759_v13  ;;  %v10191_v41 = vld [vmem:[#allocation2 + $0x50] sm:$0x1] }
 0x66a   : > { %v11799_v38 = vadd.f32 %v11798_v30, %v11776_v47  ;;  %v29491_v30 = vsel %vm1341_vm0, %v10482_v34, %v29479_v39  ;;  %v29507_v34 = vpack.c.b16 %v29396_v25, %v31393_v63  ;;  %13327 = vmatpush.bf16.msra.mxu0 %v24774_v59  ;;  %v24773_v25 = vld [vmem:[%s31042_s3 + $0x530] sm:$0xff]  ;;  %v10470_v60 = vunpack.c.l.b16 %v10191_v41 }
 0x66b   : > { %v11754_v58 = vpop.f32.mrf.mxu1  ;;  %31422 = vst [vmem:[#allocation36_spill] sm:$0xff] %v29491_v30  ;;  %v24797_v13 = vld [vmem:[%s31042_s3 + $0x5f0] sm:$0xff] }
 0x66c   : > { %v11755_v1 = vadd.f32 %v11754_v58, %v29401_v2  ;;  %13350 = vmatpush.bf16.msra.mxu1 %v24782_v4  ;;  %v10540_v4 = vshrl.u32 %v29469_v0, 16 }
 0x66d   : > { %v11800_v21 = vpop.f32.mrf.mxu3  ;;  %13373 = vmatpush.bf16.msra.mxu2 %v24790_v31  ;;  %v24788_v31 = vld [vmem:[%s31042_s3 + $0x5a8] sm:$0xff] }
 0x66e   : > { %v11816_v6 = vpop.f32.mrf.mxu0  ;;  %13328 = vmatpush.bf16.msra.mxu0 %v24773_v25  ;;  %v24770_v25 = vld [vmem:[%s31042_s3 + $0x518] sm:$0xff] }
 0x66f   : > { %v11817_v8 = vadd.f32 %v11816_v6, %v11794_v53  ;;  %v11777_v26 = vpop.f32.mrf.mxu2  ;;  %v10464_v53 = vor.u32 %v10463_v40, %v29484_v18  ;;  %v24772_v40 = vld [vmem:[%s31042_s3 + $0x528] sm:$0xff]  ;;  %v24789_v6 = vld [vmem:[%s31042_s3 + $0x5b0] sm:$0xff] }
 0x670   : > { %v11778_v2 = vadd.f32 %v11777_v26, %v11755_v1 }
 0x671   : > { %12009 = vmatmul.bf16.gmra.mxu0 %v29425_v62  ;;  %v29516_v36 = vsel %vm3611_vm12, %v31423_v16, %v10464_v53  ;;  %13374 = vmatpush.bf16.msra.mxu2 %v24789_v6  ;;  %v31425_v16 = vld [vmem:[#allocation22_spill] sm:$0xff]  ;;  %v24780_v6 = vld [vmem:[%s31042_s3 + $0x568] sm:$0xff] }
 0x672   : > { %12073 = vmatmul.bf16.gmra.mxu3 %v29491_v30  ;;  %v11801_v50 = vadd.f32 %v11800_v21, %v11778_v2  ;;  %31424 = vst [vmem:[#allocation42_spill] sm:$0xff] %v29516_v36  ;;  %13329 = vmatpush.bf16.msra.mxu0 %v24772_v40  ;;  %v10543_v40 = vshll.u32 %v29469_v0, 16 }
 0x673   : > { %v11757_v47 = vpop.f32.mrf.mxu1 }
 0x674   : > { %v11758_v51 = vadd.f32 %v11757_v47, %v29428_v3  ;;  %12050 = vmatmul.bf16.gmra.mxu2 %v29507_v34  ;;  %v24798_v3 = vld [vmem:[%s31042_s3 + $0x5f8] sm:$0xff] }
 0x675   : > { %v11803_v29 = vpop.f32.mrf.mxu3  ;;  %13396 = vmatpush.bf16.msra.mxu3 %v24798_v3  ;;  %13375 = vmatpush.bf16.msra.mxu2 %v24788_v31 }
 0x676   : > { %v11818_v63 = vpop.f32.mrf.mxu0  ;;  %12027 = vmatmul.bf16.gmra.mxu1 %v29516_v36 }
 0x677   : > { %v11819_v58 = vadd.f32 %v11818_v63, %v29454_v44  ;;  %v11780_v1 = vpop.f32.mrf.mxu2  ;;  %v29554_v63 = vpack.c.b16 %v10470_v60, %v10470_v60  ;;  %v10545_v60 = vrot.slane %v10543_v40, 4 }
 0x678   : > { %v11781_v21 = vadd.f32 %v11780_v1, %v11758_v51  ;;  %v24771_v51 = vld [vmem:[%s31042_s3 + $0x520] sm:$0xff] }
 0x679   : > { %13397 = vmatpush.bf16.msra.mxu3 %v24797_v13  ;;  %13330 = vmatpush.bf16.msra.mxu0 %v24771_v51  ;;  %v24787_v13 = vld [vmem:[%s31042_s3 + $0x5a0] sm:$0xff] }
 0x67a   : > { %v11804_v26 = vadd.f32 %v11803_v29, %v11781_v21  ;;  %v24781_v29 = vld [vmem:[%s31042_s3 + $0x570] sm:$0xff]  ;;  %13376 = vmatpush.bf16.msra.mxu2 %v24787_v13 }
 0x67b   : > { %v11759_v44 = vpop.f32.mrf.mxu1  ;;  %13351 = vmatpush.bf16.msra.mxu1 %v24781_v29  ;;  %v24768_v29 = vld [vmem:[%s31042_s3 + $0x508] sm:$0xff] }
 0x67d   : > { %v11805_v2 = vpop.f32.mrf.mxu3  ;;  %13331 = vmatpush.bf16.msra.mxu0 %v24770_v25 }
 0x67e   : > { %v11821_v53 = vpop.f32.mrf.mxu0 }
 0x67f   : > { %v29538_v59 = vadd.f32 %v11821_v53, %v11799_v38  ;;  %v11782_v47 = vpop.f32.mrf.mxu2  ;;  %v24796_v38 = vld [vmem:[%s31042_s3 + $0x5e8] sm:$0xff]  ;;  %13352 = vmatpush.bf16.msra.mxu1 %v24780_v6  ;;  %v29572_v53 = vrot.slane %v10540_v4, 3  ;;  %v24767_v6 = vld [vmem:[%s31042_s3 + $0x500] sm:$0xff] }
 0x680   : > { %13398 = vmatpush.bf16.msra.mxu3 %v24796_v38  ;;  %v24795_v47 = vld [vmem:[%s31042_s3 + $0x5e0] sm:$0xff]  ;;  %v24786_v38 = vld [vmem:[%s31042_s3 + $0x598] sm:$0xff] }
 0x681   : > { %12091 = vmatmul.bf16.vlgmr.msrb.gmra.mxu0 %v31425_v16  ;;  %13377 = vmatpush.bf16.msra.mxu2 %v24786_v38 }
 0x682   : > { %12078 = vmatmul.bf16.gmra.mxu3 %v29479_v39 }
 0x683   : > { %v11839_v3 = vpop.f32.mrf.mxu1 }
 0x684   : > { %v11840_v1 = vadd.f32 %v11839_v3, %v11817_v8  ;;  %12055 = vmatmul.bf16.gmra.mxu2 %v29554_v63  ;;  %v24769_v8 = vld [vmem:[%s31042_s3 + $0x510] sm:$0xff]  ;;  %13399 = vmatpush.bf16.msra.mxu3 %v24795_v47 }
 0x685   : > { %v11885_v21 = vpop.f32.mrf.mxu3  ;;  %13332 = vmatpush.bf16.msra.mxu0 %v24769_v8  ;;  %v31426_v8 = vld [vmem:[#allocation48_spill] sm:$0xff] }
 0x686   : > { %v11823_v44 = vpop.f32.mrf.mxu0  ;;  %12032 = vmatmul.bf16.gmra.mxu1 %v29484_v18 }
 0x687   : > { %v11824_v41 = vadd.f32 %v11823_v44, %v11801_v50  ;;  %v11862_v2 = vpop.f32.mrf.mxu2  ;;  %v24779_v50 = vld [vmem:[%s31042_s3 + $0x560] sm:$0xff]  ;;  %v24794_v44 = vld [vmem:[%s31042_s3 + $0x5d8] sm:$0xff] }
 0x688   : > { %v11863_v0 = vadd.f32 %v11862_v2, %v11840_v1  ;;  %13353 = vmatpush.bf16.msra.mxu1 %v24779_v50  ;;  %v10546_v1 = vor.u32 %v10545_v60, %v29572_v53  ;;  %13400 = vmatpush.bf16.msra.mxu3 %v24794_v44  ;;  %v25259_v50 = vld [vmem:[#allocation2 + $0x38] sm:$0xff]  }
 0x689   : > { %13333 = vmatpush.bf16.msra.mxu0 %v24768_v29 }
 0x68a   : > { %v11886_v51 = vadd.f32 %v11885_v21, %v11863_v0  ;;  %v29598_v13 = vsel %vm3611_vm12, %v31426_v8, %v10546_v1  ;;  %v24776_v8 = vld [vmem:[%s31042_s3 + $0x548] sm:$0xff] }
 0x68b   : > { %v11841_v31 = vpop.f32.mrf.mxu1  ;;  %31427 = vst [vmem:[#allocation6_spill] sm:$0xff] %v29598_v13 }
 0x68c   : > { %v11842_v25 = vadd.f32 %v11841_v31, %v11819_v58  ;;  %v24778_v58 = vld [vmem:[%s31042_s3 + $0x558] sm:$0xff]  ;;  %v24793_v31 = vld [vmem:[%s31042_s3 + $0x5d0] sm:$0xff] }
 0x68d   : > { %v11887_v3 = vpop.f32.mrf.mxu3  ;;  %13334 = vmatpush.bf16.msra.mxu0 %v24767_v6  ;;  %13354 = vmatpush.bf16.msra.mxu1 %v24778_v58 }
 0x68e   : > { %v11826_v4 = vpop.f32.mrf.mxu0  ;;  %13401 = vmatpush.bf16.msra.mxu3 %v24793_v31 }
 0x68f   : > { %v11827_v21 = vadd.f32 %v11826_v4, %v11804_v26  ;;  %v11864_v40 = vpop.f32.mrf.mxu2  ;;  %v24785_v26 = vld [vmem:[%s31042_s3 + $0x590] sm:$0xff] }
 0x690   : > { %v11865_v2 = vadd.f32 %v11864_v40, %v11842_v25  ;;  %13378 = vmatpush.bf16.msra.mxu2 %v24785_v26  ;;  %v31428_v25 = vld [vmem:[#allocation49_spill] sm:$0xff]  ;;  %v24792_v40 = vld [vmem:[%s31042_s3 + $0x5c8] sm:$0xff] }
 0x691   : > { %12096 = vmatmul.bf16.gmra.mxu0 %v29598_v13 }
 0x692   : > { %13312 = vmatmul.bf16.vlgmr.msrb.gmra.mxu3 %v28865_v24  ;;  %v11888_v0 = vadd.f32 %v11887_v3, %v11865_v2  ;;  %v24777_v3 = vld [vmem:[%s31042_s3 + $0x550] sm:$0xff] }
 0x693   : > { %v11844_v60 = vpop.f32.mrf.mxu1  ;;  %13355 = vmatpush.bf16.msra.mxu1 %v24777_v3  ;;  %13402 = vmatpush.bf16.msra.mxu3 %v24792_v40 }
 0x694   : > { %v11845_v47 = vadd.f32 %v11844_v60, %v29538_v59  ;;  %13289 = vmatmul.bf16.vlgmr.msrb.gmra.mxu2 %v25259_v50  ;;  %v24784_v59 = vld [vmem:[%s31042_s3 + $0x588] sm:$0xff]  ;;  %v24783_v50 = vld [vmem:[%s31042_s3 + $0x580] sm:$0xff] }
 0x695   : > { %v11890_v29 = vpop.f32.mrf.mxu3  ;;  %13379 = vmatpush.bf16.msra.mxu2 %v24784_v59  ;;  %v24822_v59 = vld [vmem:[%s31042_s3 + $0x6b8] sm:$0xff] }
 0x696   : > { %v11828_v38 = vpop.f32.mrf.mxu0  ;;  %12114 = vmatmul.bf16.vlgmr.msrb.gmra.mxu1 %v31428_v25 }
 0x697   : > { %v11867_v1 = vpop.f32.mrf.mxu2  ;;  %13356 = vmatpush.bf16.msra.mxu1 %v24776_v8 }
 0x698   : > { %v11868_v4 = vadd.f32 %v11867_v1, %v11845_v47 }
 0x699   : > { %13380 = vmatpush.bf16.msra.mxu2 %v24783_v50  ;;  %v24821_v50 = vld [vmem:[%s31042_s3 + $0x6b0] sm:$0xff] }
 0x69a   : > { %v11891_v6 = vadd.f32 %v11890_v29, %v11868_v4  ;;  %v24791_v29 = vld [vmem:[%s31042_s3 + $0x5c0] sm:$0xff] }
 0x69b   : > { %v11846_v44 = vpop.f32.mrf.mxu1  ;;  %13403 = vmatpush.bf16.msra.mxu3 %v24791_v29 }
 0x69c   : > { %v11847_v58 = vadd.f32 %v11846_v44, %v11824_v41  ;;  %v24775_v41 = vld [vmem:[%s31042_s3 + $0x540] sm:$0xff] }
 0x69d   : > { %v11892_v2 = vpop.f32.mrf.mxu3  ;;  %13357 = vmatpush.bf16.msra.mxu1 %v24775_v41  ;;  %v31429_v44 = vld [vmem:[#allocation50_spill] sm:$0xff]  ;;  %13465 = vmatpush.bf16.msrb.mxu2 %v24822_v59  ;;  %v24829_v41 = vld [vmem:[%s31042_s3 + $0x6f0] sm:$0xff] }
 0x69e   : > { %v11908_v26 = vpop.f32.mrf.mxu0  ;;  %v24803_v59 = vld [vmem:[%s31042_s3 + $0x620] sm:$0xff] }
 0x69f   : > { %v11909_v60 = vadd.f32 %v11908_v26, %v11886_v51  ;;  %v11869_v47 = vpop.f32.mrf.mxu2  ;;  %v24806_v51 = vld [vmem:[%s31042_s3 + $0x638] sm:$0xff] }
 0x6a0   : > { %v11870_v31 = vadd.f32 %v11869_v47, %v11847_v58  ;;  %13419 = vmatpush.bf16.msrb.mxu0 %v24806_v51  ;;  %v24805_v58 = vld [vmem:[%s31042_s3 + $0x630] sm:$0xff]  ;;  %v24814_v26 = vld [vmem:[%s31042_s3 + $0x678] sm:$0xff]  ;;  %v24804_v47 = vld [vmem:[%s31042_s3 + $0x628] sm:$0xff] }
 0x6a1   : > { %12101 = vmatmul.bf16.gmra.mxu0 %v29572_v53  ;;  %13442 = vmatpush.bf16.msrb.mxu1 %v24814_v26  ;;  %v24812_v26 = vld [vmem:[%s31042_s3 + $0x668] sm:$0xff] }
 0x6a2   : > { %13317 = vmatmul.bf16.gmra.mxu3 %v28921_v57  ;;  %v11893_v38 = vadd.f32 %v11892_v2, %v11870_v31  ;;  %v24830_v2 = vld [vmem:[%s31042_s3 + $0x6f8] sm:$0xff]  ;;  %13466 = vmatpush.bf16.msrb.mxu2 %v24821_v50 }
 0x6a3   : > { %v11849_v1 = vpop.f32.mrf.mxu1  ;;  %13488 = vmatpush.bf16.msrb.mxu3 %v24830_v2  ;;  %v31430_v50 = vld [vmem:[#allocation25_spill] sm:$0xff] }
 0x6a4   : > { %v11850_v3 = vadd.f32 %v11849_v1, %v11827_v21  ;;  %13294 = vmatmul.bf16.gmra.mxu2 %v29457_v7  ;;  %13420 = vmatpush.bf16.msrb.mxu0 %v24805_v58  ;;  %v24802_v58 = vld [vmem:[%s31042_s3 + $0x618] sm:$0xff] }
 0x6a5   : > { %v11895_v4 = vpop.f32.mrf.mxu3 }
 0x6a6   : > { %v11910_v40 = vpop.f32.mrf.mxu0  ;;  %12119 = vmatmul.bf16.gmra.mxu1 %v31429_v44 }
 0x6a7   : > { %v11911_v21 = vadd.f32 %v11910_v40, %v11888_v0  ;;  %v11872_v8 = vpop.f32.mrf.mxu2  ;;  %13489 = vmatpush.bf16.msrb.mxu3 %v24829_v41  ;;  %v24820_v40 = vld [vmem:[%s31042_s3 + $0x6a8] sm:$0xff]  ;;  %v24801_v41 = vld [vmem:[%s31042_s3 + $0x610] sm:$0xff] }
 0x6a8   : > { %v11873_v7 = vadd.f32 %v11872_v8, %v11850_v3  ;;  %13421 = vmatpush.bf16.msrb.mxu0 %v24804_v47  ;;  %13467 = vmatpush.bf16.msrb.mxu2 %v24820_v40 }
 0x6aa   : > { %v11896_v31 = vadd.f32 %v11895_v4, %v11873_v7  ;;  %v24813_v4 = vld [vmem:[%s31042_s3 + $0x670] sm:$0xff] }
 0x6ab   : > { %v11851_v0 = vpop.f32.mrf.mxu1  ;;  %13443 = vmatpush.bf16.msrb.mxu1 %v24813_v4  ;;  %v24800_v4 = vld [vmem:[%s31042_s3 + $0x608] sm:$0xff] }
 0x6ac   : > { %13422 = vmatpush.bf16.msrb.mxu0 %v24803_v59  ;;  %v24811_v59 = vld [vmem:[%s31042_s3 + $0x660] sm:$0xff] }
 0x6ad   : > { %v11897_v29 = vpop.f32.mrf.mxu3 }
 0x6ae   : > { %v11913_v51 = vpop.f32.mrf.mxu0 }
 0x6af   : > { %v11914_v1 = vadd.f32 %v11913_v51, %v11891_v6  ;;  %v11874_v3 = vpop.f32.mrf.mxu2  ;;  %v24828_v6 = vld [vmem:[%s31042_s3 + $0x6e8] sm:$0xff]  ;;  %13444 = vmatpush.bf16.msrb.mxu1 %v24812_v26 }
 0x6b0   : > { %13490 = vmatpush.bf16.msrb.mxu3 %v24828_v6  ;;  %13423 = vmatpush.bf16.msrb.mxu0 %v24802_v58  ;;  %v24827_v3 = vld [vmem:[%s31042_s3 + $0x6e0] sm:$0xff]  ;;  %v24818_v6 = vld [vmem:[%s31042_s3 + $0x698] sm:$0xff] }
 0x6b1   : > { %13335 = vmatmul.bf16.vlgmr.msra.gmra.mxu0 %v28857_v49 }
 0x6b2   : > { %13322 = vmatmul.bf16.gmra.mxu3 %v28979_v35 }
 0x6b3   : > { %v11931_v2 = vpop.f32.mrf.mxu1  ;;  %13445 = vmatpush.bf16.msrb.mxu1 %v24811_v59 }
 0x6b4   : > { %v11932_v8 = vadd.f32 %v11931_v2, %v11909_v60  ;;  %13299 = vmatmul.bf16.gmra.mxu2 %v28877_v56  ;;  %v24819_v60 = vld [vmem:[%s31042_s3 + $0x6a0] sm:$0xff]  ;;  %13424 = vmatpush.bf16.msrb.mxu0 %v24801_v41  ;;  %v24810_v41 = vld [vmem:[%s31042_s3 + $0x658] sm:$0xff] }
 0x6b5   : > { %v11977_v7 = vpop.f32.mrf.mxu3  ;;  %13468 = vmatpush.bf16.msrb.mxu2 %v24819_v60  ;;  %13491 = vmatpush.bf16.msrb.mxu3 %v24827_v3 }
 0x6b6   : > { %v11915_v47 = vpop.f32.mrf.mxu0  ;;  %12124 = vmatmul.bf16.gmra.mxu1 %v31430_v50 }
 0x6b7   : > { %v11916_v0 = vadd.f32 %v11915_v47, %v11893_v38  ;;  %v11954_v29 = vpop.f32.mrf.mxu2  ;;  %13446 = vmatpush.bf16.msrb.mxu1 %v24810_v41 }
 0x6b8   : > { %v11955_v51 = vadd.f32 %v11954_v29, %v11932_v8  ;;  %13425 = vmatpush.bf16.msrb.mxu0 %v24800_v4  ;;  %v24826_v29 = vld [vmem:[%s31042_s3 + $0x6d8] sm:$0xff]  ;;  %v24825_v4 = vld [vmem:[%s31042_s3 + $0x6d0] sm:$0xff] }
 0x6b9   : > { %13469 = vmatpush.bf16.msrb.mxu2 %v24818_v6  ;;  %13492 = vmatpush.bf16.msrb.mxu3 %v24826_v29 }
 0x6ba   : > { %v11978_v38 = vadd.f32 %v11977_v7, %v11955_v51  ;;  %v24799_v7 = vld [vmem:[%s31042_s3 + $0x600] sm:$0xff] }
 0x6bb   : > { %v11933_v40 = vpop.f32.mrf.mxu1 }
 0x6bc   : > { %v11934_v58 = vadd.f32 %v11933_v40, %v11911_v21  ;;  %v24817_v21 = vld [vmem:[%s31042_s3 + $0x690] sm:$0xff]  ;;  %13426 = vmatpush.bf16.msrb.mxu0 %v24799_v7 }
 0x6bd   : > { %v11979_v2 = vpop.f32.mrf.mxu3  ;;  %13470 = vmatpush.bf16.msrb.mxu2 %v24817_v21  ;;  %13493 = vmatpush.bf16.msrb.mxu3 %v24825_v4  ;;  %v24815_v4 = vld [vmem:[%s31042_s3 + $0x680] sm:$0xff] }
 0x6be   : > { %v11918_v8 = vpop.f32.mrf.mxu0 }
 0x6bf   : > { %v11919_v26 = vadd.f32 %v11918_v8, %v11896_v31  ;;  %v11956_v47 = vpop.f32.mrf.mxu2  ;;  %v24824_v8 = vld [vmem:[%s31042_s3 + $0x6c8] sm:$0xff] }
 0x6c0   : > { %v11957_v60 = vadd.f32 %v11956_v47, %v11934_v58  ;;  %v24809_v58 = vld [vmem:[%s31042_s3 + $0x650] sm:$0xff] }
 0x6c1   : > { %13340 = vmatmul.bf16.gmra.mxu0 %v28911_v46  ;;  %13447 = vmatpush.bf16.msrb.mxu1 %v24809_v58 }
 0x6c2   : > { %13404 = vmatmul.bf16.vlgmr.msra.gmra.mxu3 %v29062_v11  ;;  %v11980_v31 = vadd.f32 %v11979_v2, %v11957_v60  ;;  %v24808_v60 = vld [vmem:[%s31042_s3 + $0x648] sm:$0xff] }
 0x6c3   : > { %v11936_v51 = vpop.f32.mrf.mxu1  ;;  %13494 = vmatpush.bf16.msrb.mxu3 %v24824_v8  ;;  %v24854_v8 = vld [vmem:[%s31042_s3 + $0x7b8] sm:$0xff] }
 0x6c4   : > { %v11937_v3 = vadd.f32 %v11936_v51, %v11914_v1  ;;  %13381 = vmatmul.bf16.vlgmr.msra.gmra.mxu2 %v28960_v10  ;;  %v24816_v1 = vld [vmem:[%s31042_s3 + $0x688] sm:$0xff] }
 0x6c5   : > { %v11982_v59 = vpop.f32.mrf.mxu3  ;;  %13471 = vmatpush.bf16.msrb.mxu2 %v24816_v1  ;;  %13448 = vmatpush.bf16.msrb.mxu1 %v24808_v60 }
 0x6c6   : > { %v11920_v40 = vpop.f32.mrf.mxu0  ;;  %13358 = vmatmul.bf16.vlgmr.msra.gmra.mxu1 %v28832_v43 }
 0x6c7   : > { %v11959_v6 = vpop.f32.mrf.mxu2 }
 0x6c8   : > { %v11960_v2 = vadd.f32 %v11959_v6, %v11937_v3 }
 0x6c9   : > { %13472 = vmatpush.bf16.msrb.mxu2 %v24815_v4  ;;  %v24836_v4 = vld [vmem:[%s31042_s3 + $0x728] sm:$0xff] }
 0x6ca   : > { %v11983_v47 = vadd.f32 %v11982_v59, %v11960_v2  ;;  %v24823_v59 = vld [vmem:[%s31042_s3 + $0x6c0] sm:$0xff] }
 0x6cb   : > { %v11938_v7 = vpop.f32.mrf.mxu1  ;;  %13495 = vmatpush.bf16.msrb.mxu3 %v24823_v59 }
 0x6cc   : > { %v11939_v29 = vadd.f32 %v11938_v7, %v11916_v0  ;;  %v24807_v0 = vld [vmem:[%s31042_s3 + $0x640] sm:$0xff] }
 0x6cd   : > { %v11984_v41 = vpop.f32.mrf.mxu3  ;;  %13449 = vmatpush.bf16.msrb.mxu1 %v24807_v0  ;;  %13557 = vmatpush.bf16.msra.mxu2 %v24854_v8 }
 0x6ce   : > { %v12000_v21 = vpop.f32.mrf.mxu0 }
 0x6cf   : > { %v12001_v51 = vadd.f32 %v12000_v21, %v11978_v38  ;;  %v11961_v3 = vpop.f32.mrf.mxu2  ;;  %v24838_v38 = vld [vmem:[%s31042_s3 + $0x738] sm:$0xff] }
 0x6d0   : > { %v11962_v40 = vadd.f32 %v11961_v3, %v11939_v29  ;;  %13511 = vmatpush.bf16.msra.mxu0 %v24838_v38  ;;  %v24837_v29 = vld [vmem:[%s31042_s3 + $0x730] sm:$0xff]  ;;  %v24846_v3 = vld [vmem:[%s31042_s3 + $0x778] sm:$0xff] }
 0x6d1   : > { %13345 = vmatmul.bf16.gmra.mxu0 %v28888_v17  ;;  %13534 = vmatpush.bf16.msra.mxu1 %v24846_v3  ;;  %v24861_v38 = vld [vmem:[%s31042_s3 + $0x7f0] sm:$0xff] }
 0x6d2   : > { %13409 = vmatmul.bf16.gmra.mxu3 %v29115_v12  ;;  %v11985_v6 = vadd.f32 %v11984_v41, %v11962_v40  ;;  %v24862_v41 = vld [vmem:[%s31042_s3 + $0x7f8] sm:$0xff]  ;;  %v24853_v40 = vld [vmem:[%s31042_s3 + $0x7b0] sm:$0xff] }
 0x6d3   : > { %v11941_v58 = vpop.f32.mrf.mxu1  ;;  %13580 = vmatpush.bf16.msra.mxu3 %v24862_v41  ;;  %13558 = vmatpush.bf16.msra.mxu2 %v24853_v40  ;;  %v31431_v41 = vld [vmem:[#allocation15_spill] sm:$0xff] }
 0x6d4   : > { %v11942_v2 = vadd.f32 %v11941_v58, %v11919_v26  ;;  %13386 = vmatmul.bf16.gmra.mxu2 %v29038_v48  ;;  %13512 = vmatpush.bf16.msra.mxu0 %v24837_v29  ;;  %v24852_v29 = vld [vmem:[%s31042_s3 + $0x7a8] sm:$0xff] }
 0x6d5   : > { %v11987_v1 = vpop.f32.mrf.mxu3 }
 0x6d6   : > { %v12002_v7 = vpop.f32.mrf.mxu0  ;;  %13363 = vmatmul.bf16.gmra.mxu1 %v31385_v55 }
 0x6d7   : > { %v12003_v26 = vadd.f32 %v12002_v7, %v11980_v31  ;;  %v11964_v60 = vpop.f32.mrf.mxu2  ;;  %13581 = vmatpush.bf16.msra.mxu3 %v24861_v38  ;;  %v24835_v7 = vld [vmem:[%s31042_s3 + $0x720] sm:$0xff]  ;;  %13559 = vmatpush.bf16.msra.mxu2 %v24852_v29  ;;  %v31433_v38 = vld [vmem:[#allocation5_spill] sm:$0xff] }
 0x6d8   : > { %v11965_v21 = vadd.f32 %v11964_v60, %v11942_v2  ;;  %13513 = vmatpush.bf16.msra.mxu0 %v24836_v4  ;;  %v24834_v60 = vld [vmem:[%s31042_s3 + $0x718] sm:$0xff]  ;;  %v31432_v4 = vld [vmem:[#allocation31_spill] sm:$0xff]  ;;  %v24859_v29 = vld [vmem:[%s31042_s3 + $0x7e0] sm:$0xff] }
 0x6da   : > { %v11988_v59 = vadd.f32 %v11987_v1, %v11965_v21  ;;  %v24845_v1 = vld [vmem:[%s31042_s3 + $0x770] sm:$0xff] }
 0x6db   : > { %v11943_v31 = vpop.f32.mrf.mxu1  ;;  %13535 = vmatpush.bf16.msra.mxu1 %v24845_v1 }
 0x6dc   : > { %13514 = vmatpush.bf16.msra.mxu0 %v24835_v7  ;;  %v24844_v31 = vld [vmem:[%s31042_s3 + $0x768] sm:$0xff]  ;;  %v24833_v7 = vld [vmem:[%s31042_s3 + $0x710] sm:$0xff] }
 0x6dd   : > { %v11989_v0 = vpop.f32.mrf.mxu3 }
 0x6de   : > { %v12005_v58 = vpop.f32.mrf.mxu0 }
 0x6df   : > { %v12006_v2 = vadd.f32 %v12005_v58, %v11983_v47  ;;  %v11966_v8 = vpop.f32.mrf.mxu2  ;;  %v24860_v47 = vld [vmem:[%s31042_s3 + $0x7e8] sm:$0xff]  ;;  %13536 = vmatpush.bf16.msra.mxu1 %v24844_v31 }
 0x6e0   : > { %13582 = vmatpush.bf16.msra.mxu3 %v24860_v47  ;;  %13515 = vmatpush.bf16.msra.mxu0 %v24834_v60  ;;  %v24843_v47 = vld [vmem:[%s31042_s3 + $0x760] sm:$0xff]  ;;  %v24832_v60 = vld [vmem:[%s31042_s3 + $0x708] sm:$0xff] }
 0x6e1   : > { %13427 = vmatmul.bf16.vlgmr.msrb.gmra.mxu0 %v31431_v41 }
 0x6e2   : > { %13414 = vmatmul.bf16.gmra.mxu3 %v29086_v14 }
 0x6e3   : > { %v12023_v21 = vpop.f32.mrf.mxu1  ;;  %13537 = vmatpush.bf16.msra.mxu1 %v24843_v47 }
 0x6e4   : > { %v12024_v3 = vadd.f32 %v12023_v21, %v12001_v51  ;;  %13391 = vmatmul.bf16.gmra.mxu2 %v31432_v4  ;;  %v24851_v51 = vld [vmem:[%s31042_s3 + $0x7a0] sm:$0xff]  ;;  %13516 = vmatpush.bf16.msra.mxu0 %v24833_v7  ;;  %v24858_v7 = vld [vmem:[%s31042_s3 + $0x7d8] sm:$0xff] }
 0x6e5   : > { %v12069_v40 = vpop.f32.mrf.mxu3  ;;  %13560 = vmatpush.bf16.msra.mxu2 %v24851_v51  ;;  %13583 = vmatpush.bf16.msra.mxu3 %v24859_v29 }
 0x6e6   : > { %v12007_v0 = vpop.f32.mrf.mxu0  ;;  %13368 = vmatmul.bf16.gmra.mxu1 %v31433_v38 }
 0x6e7   : > { %v12008_v58 = vadd.f32 %v12007_v0, %v11985_v6  ;;  %v12046_v8 = vpop.f32.mrf.mxu2 }
 0x6e8   : > { %v12047_v1 = vadd.f32 %v12046_v8, %v12024_v3  ;;  %v24850_v3 = vld [vmem:[%s31042_s3 + $0x798] sm:$0xff]  ;;  %13517 = vmatpush.bf16.msra.mxu0 %v24832_v60 }
 0x6e9   : > { %13561 = vmatpush.bf16.msra.mxu2 %v24850_v3  ;;  %13584 = vmatpush.bf16.msra.mxu3 %v24858_v7  ;;  %v24856_v7 = vld [vmem:[%s31042_s3 + $0x7c8] sm:$0xff] }
 0x6ea   : > { %v12070_v6 = vadd.f32 %v12069_v40, %v12047_v1  ;;  %v24831_v40 = vld [vmem:[%s31042_s3 + $0x700] sm:$0xff]  ;;  %v24842_v1 = vld [vmem:[%s31042_s3 + $0x758] sm:$0xff] }
 0x6eb   : > { %v12025_v21 = vpop.f32.mrf.mxu1  ;;  %13538 = vmatpush.bf16.msra.mxu1 %v24842_v1 }
 0x6ec   : > { %v12026_v31 = vadd.f32 %v12025_v21, %v12003_v26  ;;  %v31434_v26 = vld [vmem:[#allocation7_spill] sm:$0xff]  ;;  %13518 = vmatpush.bf16.msra.mxu0 %v24831_v40 }
 0x6ed   : > { %v12071_v0 = vpop.f32.mrf.mxu3 }
 0x6ee   : > { %v12010_v8 = vpop.f32.mrf.mxu0 }
 0x6ef   : > { %v12011_v14 = vadd.f32 %v12010_v8, %v11988_v59  ;;  %v12048_v51 = vpop.f32.mrf.mxu2  ;;  %v24849_v59 = vld [vmem:[%s31042_s3 + $0x790] sm:$0xff] }
 0x6f0   : > { %v12049_v29 = vadd.f32 %v12048_v51, %v12026_v31  ;;  %13562 = vmatpush.bf16.msra.mxu2 %v24849_v59  ;;  %v24857_v31 = vld [vmem:[%s31042_s3 + $0x7d0] sm:$0xff]  ;;  %v31435_v51 = vld [vmem:[#allocation39_spill] sm:$0xff] }
 0x6f1   : > { %13432 = vmatmul.bf16.gmra.mxu0 %v31434_v26  ;;  %13585 = vmatpush.bf16.msra.mxu3 %v24857_v31  ;;  %v24840_v31 = vld [vmem:[%s31042_s3 + $0x748] sm:$0xff] }
 0x6f2   : > { %13496 = vmatmul.bf16.vlgmr.msrb.gmra.mxu3 %v31407_v61  ;;  %v12072_v47 = vadd.f32 %v12071_v0, %v12049_v29  ;;  %v24841_v0 = vld [vmem:[%s31042_s3 + $0x750] sm:$0xff] }
 0x6f3   : > { %v12028_v60 = vpop.f32.mrf.mxu1  ;;  %13539 = vmatpush.bf16.msra.mxu1 %v24841_v0  ;;  %v31436_v0 = vld [vmem:[#allocation24_spill] sm:$0xff] }
 0x6f4   : > { %v12029_v21 = vadd.f32 %v12028_v60, %v12006_v2  ;;  %13473 = vmatmul.bf16.vlgmr.msrb.gmra.mxu2 %v29158_v20  ;;  %v24848_v2 = vld [vmem:[%s31042_s3 + $0x788] sm:$0xff]  ;;  %v24847_v20 = vld [vmem:[%s31042_s3 + $0x780] sm:$0xff] }
 0x6f5   : > { %v12074_v3 = vpop.f32.mrf.mxu3  ;;  %13563 = vmatpush.bf16.msra.mxu2 %v24848_v2  ;;  %13586 = vmatpush.bf16.msra.mxu3 %v24856_v7 }
 0x6f6   : > { %v12012_v8 = vpop.f32.mrf.mxu0  ;;  %13450 = vmatmul.bf16.vlgmr.msrb.gmra.mxu1 %v31435_v51 }
 0x6f7   : > { %v12051_v61 = vpop.f32.mrf.mxu2  ;;  %13540 = vmatpush.bf16.msra.mxu1 %v24840_v31 }
 0x6f8   : > { %v12052_v40 = vadd.f32 %v12051_v61, %v12029_v21 }
 0x6f9   : > { %13564 = vmatpush.bf16.msra.mxu2 %v24847_v20  ;;  %v24894_v20 = vld [vmem:[%s31042_s3 + $0x8f8] sm:$0xff] }
 0x6fa   : > { %v12075_v1 = vadd.f32 %v12074_v3, %v12052_v40  ;;  %v24855_v3 = vld [vmem:[%s31042_s3 + $0x7c0] sm:$0xff] }
 0x6fb   : > { %v12030_v29 = vpop.f32.mrf.mxu1  ;;  %13587 = vmatpush.bf16.msra.mxu3 %v24855_v3  ;;  %v24868_v3 = vld [vmem:[%s31042_s3 + $0x828] sm:$0xff] }
 0x6fc   : > { %v12031_v59 = vadd.f32 %v12030_v29, %v12008_v58  ;;  %v24839_v58 = vld [vmem:[%s31042_s3 + $0x740] sm:$0xff] }
 0x6fd   : > { %v12076_v60 = vpop.f32.mrf.mxu3  ;;  %13541 = vmatpush.bf16.msra.mxu1 %v24839_v58  ;;  %v24885_v58 = vld [vmem:[%s31042_s3 + $0x8b0] sm:$0xff] }
 0x6fe   : > { %v12092_v61 = vpop.f32.mrf.mxu0 }
 0x6ff   : > { %v12093_v21 = vadd.f32 %v12092_v61, %v12070_v6  ;;  %v12053_v8 = vpop.f32.mrf.mxu2  ;;  %v24870_v6 = vld [vmem:[%s31042_s3 + $0x838] sm:$0xff]  ;;  %13672 = vmatpush.bf16.msrb.mxu3 %v24894_v20  ;;  %v24867_v20 = vld [vmem:[%s31042_s3 + $0x820] sm:$0xff] }
 0x700   : > { %v12054_v12 = vadd.f32 %v12053_v8, %v12031_v59  ;;  %13603 = vmatpush.bf16.msrb.mxu0 %v24870_v6  ;;  %v24886_v59 = vld [vmem:[%s31042_s3 + $0x8b8] sm:$0xff] }
 0x701   : > { %13437 = vmatmul.bf16.gmra.mxu0 %v31436_v0  ;;  %13649 = vmatpush.bf16.msrb.mxu2 %v24886_v59  ;;  %v24878_v8 = vld [vmem:[%s31042_s3 + $0x878] sm:$0xff] }
 0x702   : > { %13501 = vmatmul.bf16.gmra.mxu3 %v31410_v5  ;;  %v12077_v40 = vadd.f32 %v12076_v60, %v12054_v12  ;;  %v24869_v12 = vld [vmem:[%s31042_s3 + $0x830] sm:$0xff]  ;;  %13626 = vmatpush.bf16.msrb.mxu1 %v24878_v8  ;;  %v24866_v8 = vld [vmem:[%s31042_s3 + $0x818] sm:$0xff] }
 0x703   : > { %v12033_v2 = vpop.f32.mrf.mxu1 }
 0x704   : > { %v12034_v7 = vadd.f32 %v12033_v2, %v12011_v14  ;;  %13478 = vmatmul.bf16.gmra.mxu2 %v29232_v19  ;;  %13604 = vmatpush.bf16.msrb.mxu0 %v24869_v12 }
 0x705   : > { %v12079_v29 = vpop.f32.mrf.mxu3  ;;  %13650 = vmatpush.bf16.msrb.mxu2 %v24885_v58 }
 0x706   : > { %v12094_v31 = vpop.f32.mrf.mxu0  ;;  %13455 = vmatmul.bf16.gmra.mxu1 %v31396_v9 }
 0x707   : > { %v12095_v14 = vadd.f32 %v12094_v31, %v12072_v47  ;;  %v12056_v60 = vpop.f32.mrf.mxu2 }
 0x708   : > { %v12057_v61 = vadd.f32 %v12056_v60, %v12034_v7  ;;  %13605 = vmatpush.bf16.msrb.mxu0 %v24868_v3  ;;  %v24893_v7 = vld [vmem:[%s31042_s3 + $0x8f0] sm:$0xff]  ;;  %v24884_v60 = vld [vmem:[%s31042_s3 + $0x8a8] sm:$0xff] }
 0x709   : > { %13673 = vmatpush.bf16.msrb.mxu3 %v24893_v7  ;;  %13651 = vmatpush.bf16.msrb.mxu2 %v24884_v60  ;;  %v24891_v60 = vld [vmem:[%s31042_s3 + $0x8e0] sm:$0xff] }
 0x70a   : > { %v12080_v6 = vadd.f32 %v12079_v29, %v12057_v61  ;;  %v24877_v29 = vld [vmem:[%s31042_s3 + $0x870] sm:$0xff]  ;;  %v25260_v61 = vld [vmem:[#allocation2 + $0x58] sm:$0xff]  }
 0x70b   : > { %v12035_v47 = vpop.f32.mrf.mxu1  ;;  %13627 = vmatpush.bf16.msrb.mxu1 %v24877_v29 }
 0x70c   : > { %13606 = vmatpush.bf16.msrb.mxu0 %v24867_v20  ;;  %v24865_v20 = vld [vmem:[%s31042_s3 + $0x810] sm:$0xff] }
 0x70d   : > { %v12081_v2 = vpop.f32.mrf.mxu3 }
 0x70e   : > { %v12097_v59 = vpop.f32.mrf.mxu0  ;;  %v24876_v2 = vld [vmem:[%s31042_s3 + $0x868] sm:$0xff] }
 0x70f   : > { %v12098_v31 = vadd.f32 %v12097_v59, %v12075_v1  ;;  %v12058_v12 = vpop.f32.mrf.mxu2  ;;  %v24892_v1 = vld [vmem:[%s31042_s3 + $0x8e8] sm:$0xff]  ;;  %13628 = vmatpush.bf16.msrb.mxu1 %v24876_v2 }
 0x710   : > { %13674 = vmatpush.bf16.msrb.mxu3 %v24892_v1  ;;  %13607 = vmatpush.bf16.msrb.mxu0 %v24866_v8  ;;  %v24882_v8 = vld [vmem:[%s31042_s3 + $0x898] sm:$0xff] }
 0x711   : > { %13519 = vmatmul.bf16.vlgmr.msra.gmra.mxu0 %v25260_v61  ;;  %v24875_v61 = vld [vmem:[%s31042_s3 + $0x860] sm:$0xff] }
 0x712   : > { %13506 = vmatmul.bf16.gmra.mxu3 %v31413_v52 }
 0x713   : > { %v12115_v3 = vpop.f32.mrf.mxu1  ;;  %13629 = vmatpush.bf16.msrb.mxu1 %v24875_v61 }
 0x714   : > { %v29891_v58 = vadd.f32 %v12115_v3, %v12093_v21  ;;  %13483 = vmatmul.bf16.gmra.mxu2 %v29312_v45  ;;  %v24883_v21 = vld [vmem:[%s31042_s3 + $0x8a0] sm:$0xff]  ;;  %13608 = vmatpush.bf16.msrb.mxu0 %v24865_v20 }
 0x715   : > { %v13313_v47 = vpop.f32.mrf.mxu3  ;;  %13652 = vmatpush.bf16.msrb.mxu2 %v24883_v21  ;;  %13675 = vmatpush.bf16.msrb.mxu3 %v24891_v60  ;;  %v24863_v20 = vld [vmem:[%s31042_s3 + $0x800] sm:$0xff]  ;;  %v24890_v21 = vld [vmem:[%s31042_s3 + $0x8d8] sm:$0xff] }
 0x716   : > { %v12099_v7 = vpop.f32.mrf.mxu0  ;;  %13460 = vmatmul.bf16.gmra.mxu1 %v29154_v42  ;;  %v24874_v60 = vld [vmem:[%s31042_s3 + $0x858] sm:$0xff] }
 0x717   : > { %v12100_v59 = vadd.f32 %v12099_v7, %v12077_v40  ;;  %v13290_v12 = vpop.f32.mrf.mxu2  ;;  %v24864_v40 = vld [vmem:[%s31042_s3 + $0x808] sm:$0xff]  ;;  %13630 = vmatpush.bf16.msrb.mxu1 %v24874_v60 }
 0x718   : > { %v13314_v29 = vadd.f32 %v13313_v47, %v13290_v12  ;;  %13609 = vmatpush.bf16.msrb.mxu0 %v24864_v40 }
 0x719   : > { %13653 = vmatpush.bf16.msrb.mxu2 %v24882_v8  ;;  %13676 = vmatpush.bf16.msrb.mxu3 %v24890_v21  ;;  %v24889_v8 = vld [vmem:[%s31042_s3 + $0x8d0] sm:$0xff]  ;;  %v24888_v21 = vld [vmem:[%s31042_s3 + $0x8c8] sm:$0xff] }
 0x71b   : > { %v12117_v1 = vpop.f32.mrf.mxu1 }
 0x71c   : > { %v29916_v3 = vadd.f32 %v12117_v1, %v12095_v14  ;;  %13610 = vmatpush.bf16.msrb.mxu0 %v24863_v20 }
 0x71d   : > { %v13315_v47 = vpop.f32.mrf.mxu3  ;;  %13677 = vmatpush.bf16.msrb.mxu3 %v24889_v8  ;;  %v24872_v8 = vld [vmem:[%s31042_s3 + $0x848] sm:$0xff] }
 0x71e   : > { %v12102_v2 = vpop.f32.mrf.mxu0 }
 0x71f   : > { %v12103_v7 = vadd.f32 %v12102_v2, %v12080_v6  ;;  %v13292_v12 = vpop.f32.mrf.mxu2  ;;  %v24881_v6 = vld [vmem:[%s31042_s3 + $0x890] sm:$0xff] }
 0x720   : > { %v13316_v14 = vadd.f32 %v13315_v47, %v13292_v12  ;;  %13654 = vmatpush.bf16.msrb.mxu2 %v24881_v6  ;;  %v24873_v12 = vld [vmem:[%s31042_s3 + $0x850] sm:$0xff] }
 0x721   : > { %13524 = vmatmul.bf16.gmra.mxu0 %v31402_v28  ;;  %13631 = vmatpush.bf16.msrb.mxu1 %v24873_v12  ;;  %v24887_v12 = vld [vmem:[%s31042_s3 + $0x8c0] sm:$0xff] }
 0x722   : > { %13588 = vmatmul.bf16.vlgmr.msra.gmra.mxu3 %v31418_v54  ;;  %v24879_v54 = vld [vmem:[%s31042_s3 + $0x880] sm:$0xff] }
 0x723   : > { %v12120_v61 = vpop.f32.mrf.mxu1  ;;  %13678 = vmatpush.bf16.msrb.mxu3 %v24888_v21 }
 0x724   : > { %v29932_v40 = vadd.f32 %v12120_v61, %v12098_v31  ;;  %13565 = vmatmul.bf16.vlgmr.msra.gmra.mxu2 %v29379_v22  ;;  %v24880_v31 = vld [vmem:[%s31042_s3 + $0x888] sm:$0xff] }
 0x725   : > { %v13318_v1 = vpop.f32.mrf.mxu3  ;;  %13655 = vmatpush.bf16.msrb.mxu2 %v24880_v31  ;;  %13632 = vmatpush.bf16.msrb.mxu1 %v24872_v8 }
 0x726   : > { %31437 = vst [vmem:[#allocation10_spill] sm:$0xff] %v29932_v40  ;;  %v12104_v47 = vpop.f32.mrf.mxu0  ;;  %13542 = vmatmul.bf16.vlgmr.msra.gmra.mxu1 %v29236_v15 }
 0x727   : > { %v13295_v2 = vpop.f32.mrf.mxu2  ;;  %13679 = vmatpush.bf16.msrb.mxu3 %v24887_v12 }
 0x728   : > { %v13319_v20 = vadd.f32 %v13318_v1, %v13295_v2 }
 0x729   : > { %13656 = vmatpush.bf16.msrb.mxu2 %v24879_v54  ;;  %v24901_v54 = vld [vmem:[%s31042_s3 + $0x930] sm:$0xff] }
 0x72b   : > { %v12122_v60 = vpop.f32.mrf.mxu1 }
 0x72c   : > { %v29948_v6 = vadd.f32 %v12122_v60, %v12100_v59  ;;  %v24871_v59 = vld [vmem:[%s31042_s3 + $0x840] sm:$0xff] }
 0x72d   : > { %v13320_v61 = vpop.f32.mrf.mxu3  ;;  %13633 = vmatpush.bf16.msrb.mxu1 %v24871_v59  ;;  %v24910_v59 = vld [vmem:[%s31042_s3 + $0x978] sm:$0xff] }
 0x72e   : > { %31438 = vst [vmem:[#allocation16_spill] sm:$0xff] %v29948_v6  ;;  %v13336_v1 = vpop.f32.mrf.mxu0 }
 0x72f   : > { %v13337_v47 = vadd.f32 %v13336_v1, %v13314_v29  ;;  %v13297_v2 = vpop.f32.mrf.mxu2  ;;  %v24902_v29 = vld [vmem:[%s31042_s3 + $0x938] sm:$0xff] }
 0x730   : > { %v13321_v52 = vadd.f32 %v13320_v61, %v13297_v2  ;;  %14852 = vmatpush.bf16.msra.mxu0 %v24902_v29  ;;  %v24918_v61 = vld [vmem:[%s31042_s3 + $0x9b8] sm:$0xff]  ;;  %v24900_v29 = vld [vmem:[%s31042_s3 + $0x928] sm:$0xff] }
 0x731   : > { %13529 = vmatmul.bf16.gmra.mxu0 %v29263_v37  ;;  %14898 = vmatpush.bf16.msra.mxu2 %v24918_v61 }
 0x732   : > { %13593 = vmatmul.bf16.gmra.mxu3 %v29516_v36  ;;  %14875 = vmatpush.bf16.msra.mxu1 %v24910_v59  ;;  %v24909_v59 = vld [vmem:[%s31042_s3 + $0x970] sm:$0xff] }
 0x733   : > { %v12125_v31 = vpop.f32.mrf.mxu1 }
 0x734   : > { %v29967_v21 = vadd.f32 %v12125_v31, %v12103_v7  ;;  %13570 = vmatmul.bf16.gmra.mxu2 %v29444_v27  ;;  %v24926_v7 = vld [vmem:[%s31042_s3 + $0x9f8] sm:$0xff]  ;;  %14853 = vmatpush.bf16.msra.mxu0 %v24901_v54  ;;  %v24917_v31 = vld [vmem:[%s31042_s3 + $0x9b0] sm:$0xff] }
 0x735   : > { %v13323_v60 = vpop.f32.mrf.mxu3  ;;  %14921 = vmatpush.bf16.msra.mxu3 %v24926_v7  ;;  %14899 = vmatpush.bf16.msra.mxu2 %v24917_v31  ;;  %v30001_v31 = vld [vmem:[#allocation2 + $0x40] sm:$0xff]  }
 0x736   : > { %31439 = vst [vmem:[#allocation4_spill] sm:$0xff] %v29967_v21  ;;  %v13338_v8 = vpop.f32.mrf.mxu0  ;;  %13547 = vmatmul.bf16.gmra.mxu1 %v29315_v23 }
 0x737   : > { %v13339_v1 = vadd.f32 %v13338_v8, %v13316_v14  ;;  %v13300_v2 = vpop.f32.mrf.mxu2  ;;  %14876 = vmatpush.bf16.msra.mxu1 %v24909_v59 }
 0x738   : > { %v13324_v12 = vadd.f32 %v13323_v60, %v13300_v2  ;;  %14854 = vmatpush.bf16.msra.mxu0 %v24900_v29  ;;  %v24925_v60 = vld [vmem:[%s31042_s3 + $0x9f0] sm:$0xff]  ;;  %v24899_v2 = vld [vmem:[%s31042_s3 + $0x920] sm:$0xff]  ;;  %v24916_v29 = vld [vmem:[%s31042_s3 + $0x9a8] sm:$0xff] }
 0x739   : > { %14922 = vmatpush.bf16.msra.mxu3 %v24925_v60  ;;  %14900 = vmatpush.bf16.msra.mxu2 %v24916_v29  ;;  %v24897_v29 = vld [vmem:[%s31042_s3 + $0x910] sm:$0xff] }
 0x73b   : > { %v12127_v61 = vpop.f32.mrf.mxu1 }
 0x73c   : > { %14855 = vmatpush.bf16.msra.mxu0 %v24899_v2  ;;  %v24898_v61 = vld [vmem:[%s31042_s3 + $0x918] sm:$0xff] }
 0x73d   : > { %v13325_v14 = vpop.f32.mrf.mxu3 }
 0x73e   : > { %v13341_v8 = vpop.f32.mrf.mxu0 }
 0x73f   : > { %v13342_v54 = vadd.f32 %v13341_v8, %v13319_v20  ;;  %v13302_v7 = vpop.f32.mrf.mxu2  ;;  %v24924_v20 = vld [vmem:[%s31042_s3 + $0x9e8] sm:$0xff] }
 0x740   : > { %14923 = vmatpush.bf16.msra.mxu3 %v24924_v20  ;;  %v24908_v7 = vld [vmem:[%s31042_s3 + $0x968] sm:$0xff]  ;;  %14856 = vmatpush.bf16.msra.mxu0 %v24898_v61  ;;  %v24907_v61 = vld [vmem:[%s31042_s3 + $0x960] sm:$0xff] }
 0x741   : > { %13611 = vmatmul.bf16.vlgmr.msrb.gmra.mxu0 %v30001_v31  ;;  %14877 = vmatpush.bf16.msra.mxu1 %v24908_v7 }
 0x742   : > { %13598 = vmatmul.bf16.gmra.mxu3 %v29484_v18 }
 0x743   : > { %v13359_v14 = vpop.f32.mrf.mxu1 }
 0x744   : > { %v13360_v60 = vadd.f32 %v13359_v14, %v13337_v47  ;;  %13575 = vmatmul.bf16.gmra.mxu2 %v29425_v62  ;;  %v24915_v47 = vld [vmem:[%s31042_s3 + $0x9a0] sm:$0xff]  ;;  %14857 = vmatpush.bf16.msra.mxu0 %v24897_v29  ;;  %v24922_v29 = vld [vmem:[%s31042_s3 + $0x9d8] sm:$0xff] }
 0x745   : > { %v13405_v8 = vpop.f32.mrf.mxu3  ;;  %v24923_v14 = vld [vmem:[%s31042_s3 + $0x9e0] sm:$0xff]  ;;  %14901 = vmatpush.bf16.msra.mxu2 %v24915_v47  ;;  %14878 = vmatpush.bf16.msra.mxu1 %v24907_v61 }
 0x746   : > { %v13343_v18 = vpop.f32.mrf.mxu0  ;;  %13552 = vmatmul.bf16.gmra.mxu1 %v29368_v33  ;;  %14924 = vmatpush.bf16.msra.mxu3 %v24923_v14 }
 0x747   : > { %v13344_v2 = vadd.f32 %v13343_v18, %v13321_v52  ;;  %v13382_v59 = vpop.f32.mrf.mxu2  ;;  %v24896_v18 = vld [vmem:[%s31042_s3 + $0x908] sm:$0xff] }
 0x748   : > { %v13383_v20 = vadd.f32 %v13382_v59, %v13360_v60  ;;  %v24914_v60 = vld [vmem:[%s31042_s3 + $0x998] sm:$0xff]  ;;  %14858 = vmatpush.bf16.msra.mxu0 %v24896_v18 }
 0x749   : > { %14902 = vmatpush.bf16.msra.mxu2 %v24914_v60 }
 0x74a   : > { %v13406_v52 = vadd.f32 %v13405_v8, %v13383_v20  ;;  %v24895_v8 = vld [vmem:[%s31042_s3 + $0x900] sm:$0xff]  ;;  %v24906_v20 = vld [vmem:[%s31042_s3 + $0x958] sm:$0xff]  ;;  %14925 = vmatpush.bf16.msra.mxu3 %v24922_v29 }
 0x74b   : > { %v13361_v7 = vpop.f32.mrf.mxu1  ;;  %14879 = vmatpush.bf16.msra.mxu1 %v24906_v20 }
 0x74c   : > { %v13362_v59 = vadd.f32 %v13361_v7, %v13339_v1  ;;  %14859 = vmatpush.bf16.msra.mxu0 %v24895_v8  ;;  %v24921_v7 = vld [vmem:[%s31042_s3 + $0x9d0] sm:$0xff]  ;;  %v24920_v8 = vld [vmem:[%s31042_s3 + $0x9c8] sm:$0xff] }
 0x74d   : > { %v13407_v36 = vpop.f32.mrf.mxu3 }
 0x74e   : > { %v13346_v62 = vpop.f32.mrf.mxu0  ;;  %14926 = vmatpush.bf16.msra.mxu3 %v24921_v7 }
 0x74f   : > { %v13347_v27 = vadd.f32 %v13346_v62, %v13324_v12  ;;  %v13384_v47 = vpop.f32.mrf.mxu2  ;;  %v24913_v62 = vld [vmem:[%s31042_s3 + $0x990] sm:$0xff] }
 0x750   : > { %v13385_v14 = vadd.f32 %v13384_v47, %v13362_v59  ;;  %14903 = vmatpush.bf16.msra.mxu2 %v24913_v62 }
 0x751   : > { %13616 = vmatmul.bf16.gmra.mxu0 %v29507_v34 }
 0x752   : > { %13680 = vmatmul.bf16.vlgmr.msrb.gmra.mxu3 %v31428_v25  ;;  %v13408_v1 = vadd.f32 %v13407_v36, %v13385_v14  ;;  %v24905_v36 = vld [vmem:[%s31042_s3 + $0x950] sm:$0xff] }
 0x753   : > { %v13364_v12 = vpop.f32.mrf.mxu1  ;;  %14880 = vmatpush.bf16.msra.mxu1 %v24905_v36  ;;  %14927 = vmatpush.bf16.msra.mxu3 %v24920_v8 }
 0x754   : > { %v13365_v61 = vadd.f32 %v13364_v12, %v13342_v54  ;;  %13657 = vmatmul.bf16.vlgmr.msrb.gmra.mxu2 %v31425_v16  ;;  %v24912_v54 = vld [vmem:[%s31042_s3 + $0x988] sm:$0xff] }
 0x755   : > { %v13410_v18 = vpop.f32.mrf.mxu3  ;;  %14904 = vmatpush.bf16.msra.mxu2 %v24912_v54  ;;  %v24904_v12 = vld [vmem:[%s31042_s3 + $0x948] sm:$0xff] }
 0x756   : > { %v13348_v60 = vpop.f32.mrf.mxu0  ;;  %13634 = vmatmul.bf16.vlgmr.msrb.gmra.mxu1 %v29447_v32 }
 0x757   : > { %v13387_v59 = vpop.f32.mrf.mxu2  ;;  %14881 = vmatpush.bf16.msra.mxu1 %v24904_v12 }
 0x758   : > { %v13388_v47 = vadd.f32 %v13387_v59, %v13365_v61  ;;  %v24911_v59 = vld [vmem:[%s31042_s3 + $0x980] sm:$0xff] }
 0x759   : > { %14905 = vmatpush.bf16.msra.mxu2 %v24911_v59  ;;  %v24932_v59 = vld [vmem:[%s31042_s3 + $0xa28] sm:$0xff] }
 0x75a   : > { %v13411_v29 = vadd.f32 %v13410_v18, %v13388_v47  ;;  %v24919_v18 = vld [vmem:[%s31042_s3 + $0x9c0] sm:$0xff] }
 0x75b   : > { %v13366_v20 = vpop.f32.mrf.mxu1  ;;  %14928 = vmatpush.bf16.msra.mxu3 %v24919_v18  ;;  %v24949_v18 = vld [vmem:[%s31042_s3 + $0xab0] sm:$0xff] }
 0x75c   : > { %v13367_v14 = vadd.f32 %v13366_v20, %v13344_v2  ;;  %v24903_v2 = vld [vmem:[%s31042_s3 + $0x940] sm:$0xff]  ;;  %v24950_v20 = vld [vmem:[%s31042_s3 + $0xab8] sm:$0xff] }
 0x75d   : > { %v13412_v62 = vpop.f32.mrf.mxu3  ;;  %14882 = vmatpush.bf16.msra.mxu1 %v24903_v2  ;;  %14990 = vmatpush.bf16.msrb.mxu2 %v24950_v20 }
 0x75e   : > { %v13428_v61 = vpop.f32.mrf.mxu0 }
 0x75f   : > { %v13429_v7 = vadd.f32 %v13428_v61, %v13406_v52  ;;  %v13389_v60 = vpop.f32.mrf.mxu2  ;;  %v24934_v52 = vld [vmem:[%s31042_s3 + $0xa38] sm:$0xff] }
 0x760   : > { %v13390_v25 = vadd.f32 %v13389_v60, %v13367_v14  ;;  %14944 = vmatpush.bf16.msrb.mxu0 %v24934_v52  ;;  %v24942_v60 = vld [vmem:[%s31042_s3 + $0xa78] sm:$0xff] }
 0x761   : > { %13621 = vmatmul.bf16.gmra.mxu0 %v29554_v63  ;;  %14967 = vmatpush.bf16.msrb.mxu1 %v24942_v60 }
 0x762   : > { %13685 = vmatmul.bf16.gmra.mxu3 %v31429_v44  ;;  %v13413_v36 = vadd.f32 %v13412_v62, %v13390_v25  ;;  %v24933_v25 = vld [vmem:[%s31042_s3 + $0xa30] sm:$0xff]  ;;  %v24958_v62 = vld [vmem:[%s31042_s3 + $0xaf8] sm:$0xff]  ;;  %14991 = vmatpush.bf16.msrb.mxu2 %v24949_v18 }
 0x763   : > { %v13369_v47 = vpop.f32.mrf.mxu1  ;;  %15013 = vmatpush.bf16.msrb.mxu3 %v24958_v62  ;;  %v24948_v62 = vld [vmem:[%s31042_s3 + $0xaa8] sm:$0xff] }
 0x764   : > { %v13370_v54 = vadd.f32 %v13369_v47, %v13347_v27  ;;  %13662 = vmatmul.bf16.gmra.mxu2 %v29598_v13  ;;  %14945 = vmatpush.bf16.msrb.mxu0 %v24933_v25  ;;  %v24957_v47 = vld [vmem:[%s31042_s3 + $0xaf0] sm:$0xff]  ;;  %v24931_v25 = vld [vmem:[%s31042_s3 + $0xa20] sm:$0xff] }
 0x765   : > { %v13415_v8 = vpop.f32.mrf.mxu3 }
 0x766   : > { %v13430_v14 = vpop.f32.mrf.mxu0  ;;  %13639 = vmatmul.bf16.gmra.mxu1 %v29491_v30  ;;  %14992 = vmatpush.bf16.msrb.mxu2 %v24948_v62  ;;  %v24939_v62 = vld [vmem:[%s31042_s3 + $0xa60] sm:$0xff] }
 0x767   : > { %v13431_v27 = vadd.f32 %v13430_v14, %v13408_v1  ;;  %v13392_v12 = vpop.f32.mrf.mxu2  ;;  %15014 = vmatpush.bf16.msrb.mxu3 %v24957_v47 }
 0x768   : > { %v13393_v61 = vadd.f32 %v13392_v12, %v13370_v54  ;;  %14946 = vmatpush.bf16.msrb.mxu0 %v24932_v59  ;;  %v25262_v12 = vld [vmem:[#allocation2 + $0x38] sm:$0xff]  }
 0x76a   : > { %v13416_v2 = vadd.f32 %v13415_v8, %v13393_v61  ;;  %v24941_v8 = vld [vmem:[%s31042_s3 + $0xa70] sm:$0xff]  ;;  %v24930_v61 = vld [vmem:[%s31042_s3 + $0xa18] sm:$0xff] }
 0x76b   : > { %v13371_v1 = vpop.f32.mrf.mxu1  ;;  %14968 = vmatpush.bf16.msrb.mxu1 %v24941_v8  ;;  %v24955_v8 = vld [vmem:[%s31042_s3 + $0xae0] sm:$0xff] }
 0x76c   : > { %14947 = vmatpush.bf16.msrb.mxu0 %v24931_v25  ;;  %v24940_v1 = vld [vmem:[%s31042_s3 + $0xa68] sm:$0xff] }
 0x76d   : > { %v13417_v52 = vpop.f32.mrf.mxu3 }
 0x76e   : > { %v13433_v54 = vpop.f32.mrf.mxu0 }
 0x76f   : > { %v13434_v20 = vadd.f32 %v13433_v54, %v13411_v29  ;;  %v13394_v14 = vpop.f32.mrf.mxu2  ;;  %v24956_v29 = vld [vmem:[%s31042_s3 + $0xae8] sm:$0xff]  ;;  %14969 = vmatpush.bf16.msrb.mxu1 %v24940_v1 }
 0x770   : > { %15015 = vmatpush.bf16.msrb.mxu3 %v24956_v29  ;;  %14948 = vmatpush.bf16.msrb.mxu0 %v24930_v61  ;;  %v24929_v14 = vld [vmem:[%s31042_s3 + $0xa10] sm:$0xff]  ;;  %v24946_v61 = vld [vmem:[%s31042_s3 + $0xa98] sm:$0xff] }
 0x771   : > { %14860 = vmatmul.bf16.vlgmr.msra.gmra.mxu0 %v25262_v12  ;;  %v24928_v12 = vld [vmem:[%s31042_s3 + $0xa08] sm:$0xff] }
 0x772   : > { %13690 = vmatmul.bf16.gmra.mxu3 %v31430_v50 }
 0x773   : > { %v13451_v60 = vpop.f32.mrf.mxu1  ;;  %14970 = vmatpush.bf16.msrb.mxu1 %v24939_v62 }
 0x774   : > { %v13452_v59 = vadd.f32 %v13451_v60, %v13429_v7  ;;  %13667 = vmatmul.bf16.gmra.mxu2 %v29572_v53  ;;  %v24947_v7 = vld [vmem:[%s31042_s3 + $0xaa0] sm:$0xff]  ;;  %14949 = vmatpush.bf16.msrb.mxu0 %v24929_v14  ;;  %v24954_v14 = vld [vmem:[%s31042_s3 + $0xad8] sm:$0xff] }
 0x775   : > { %v13497_v18 = vpop.f32.mrf.mxu3  ;;  %14993 = vmatpush.bf16.msrb.mxu2 %v24947_v7  ;;  %15016 = vmatpush.bf16.msrb.mxu3 %v24955_v8  ;;  %v24938_v7 = vld [vmem:[%s31042_s3 + $0xa58] sm:$0xff] }
 0x776   : > { %v13435_v52 = vpop.f32.mrf.mxu0  ;;  %13644 = vmatmul.bf16.gmra.mxu1 %v29479_v39 }
 0x777   : > { %v13436_v47 = vadd.f32 %v13435_v52, %v13413_v36  ;;  %v13474_v54 = vpop.f32.mrf.mxu2  ;;  %14971 = vmatpush.bf16.msrb.mxu1 %v24938_v7 }
 0x778   : > { %v13475_v25 = vadd.f32 %v13474_v54, %v13452_v59  ;;  %14950 = vmatpush.bf16.msrb.mxu0 %v24928_v12 }
 0x779   : > { %14994 = vmatpush.bf16.msrb.mxu2 %v24946_v61  ;;  %15017 = vmatpush.bf16.msrb.mxu3 %v24954_v14 }
 0x77a   : > { %v13498_v36 = vadd.f32 %v13497_v18, %v13475_v25  ;;  %v24927_v18 = vld [vmem:[%s31042_s3 + $0xa00] sm:$0xff] }
 0x77b   : > { %v13453_v29 = vpop.f32.mrf.mxu1 }
 0x77c   : > { %v13454_v60 = vadd.f32 %v13453_v29, %v13431_v27  ;;  %v24945_v27 = vld [vmem:[%s31042_s3 + $0xa90] sm:$0xff]  ;;  %14951 = vmatpush.bf16.msrb.mxu0 %v24927_v18 }
 0x77d   : > { %v13499_v59 = vpop.f32.mrf.mxu3  ;;  %14995 = vmatpush.bf16.msrb.mxu2 %v24945_v27 }
 0x77e   : > { %v13438_v1 = vpop.f32.mrf.mxu0 }
 0x77f   : > { %v13439_v52 = vadd.f32 %v13438_v1, %v13416_v2  ;;  %v13476_v54 = vpop.f32.mrf.mxu2  ;;  %v24952_v1 = vld [vmem:[%s31042_s3 + $0xac8] sm:$0xff] }
 0x780   : > { %v13477_v25 = vadd.f32 %v13476_v54, %v13454_v60  ;;  %v24937_v60 = vld [vmem:[%s31042_s3 + $0xa50] sm:$0xff] }
 0x781   : > { %14865 = vmatmul.bf16.gmra.mxu0 %v30001_v31  ;;  %v24953_v31 = vld [vmem:[%s31042_s3 + $0xad0] sm:$0xff]  ;;  %14972 = vmatpush.bf16.msrb.mxu1 %v24937_v60 }
 0x782   : > { %14929 = vmatmul.bf16.vlgmr.msra.gmra.mxu3 %v28832_v43  ;;  %v13500_v2 = vadd.f32 %v13499_v59, %v13477_v25  ;;  %v24936_v25 = vld [vmem:[%s31042_s3 + $0xa48] sm:$0xff] }
 0x783   : > { %v13456_v8 = vpop.f32.mrf.mxu1  ;;  %15018 = vmatpush.bf16.msrb.mxu3 %v24953_v31  ;;  %v24943_v31 = vld [vmem:[%s31042_s3 + $0xa80] sm:$0xff] }
 0x784   : > { %v13457_v62 = vadd.f32 %v13456_v8, %v13434_v20  ;;  %14906 = vmatmul.bf16.vlgmr.msra.gmra.mxu2 %v28857_v49  ;;  %v24944_v20 = vld [vmem:[%s31042_s3 + $0xa88] sm:$0xff] }
 0x785   : > { %v13502_v12 = vpop.f32.mrf.mxu3  ;;  %14996 = vmatpush.bf16.msrb.mxu2 %v24944_v20  ;;  %14973 = vmatpush.bf16.msrb.mxu1 %v24936_v25 }
 0x786   : > { %v13440_v29 = vpop.f32.mrf.mxu0  ;;  %14883 = vmatmul.bf16.vlgmr.msra.gmra.mxu1 %v28865_v24 }
 0x787   : > { %v13479_v61 = vpop.f32.mrf.mxu2  ;;  %15019 = vmatpush.bf16.msrb.mxu3 %v24952_v1  ;;  %v24982_v1 = vld [vmem:[%s31042_s3 + $0xbb8] sm:$0xff] }
 0x788   : > { %v13480_v59 = vadd.f32 %v13479_v61, %v13457_v62 }
 0x789   : > { %14997 = vmatpush.bf16.msrb.mxu2 %v24943_v31  ;;  %v24964_v31 = vld [vmem:[%s31042_s3 + $0xb28] sm:$0xff] }
 0x78a   : > { %v13503_v54 = vadd.f32 %v13502_v12, %v13480_v59  ;;  %v24951_v12 = vld [vmem:[%s31042_s3 + $0xac0] sm:$0xff] }
 0x78b   : > { %v13458_v18 = vpop.f32.mrf.mxu1  ;;  %15020 = vmatpush.bf16.msrb.mxu3 %v24951_v12 }
 0x78c   : > { %v13459_v14 = vadd.f32 %v13458_v18, %v13436_v47  ;;  %v24935_v47 = vld [vmem:[%s31042_s3 + $0xa40] sm:$0xff] }
 0x78d   : > { %v13504_v7 = vpop.f32.mrf.mxu3  ;;  %14974 = vmatpush.bf16.msrb.mxu1 %v24935_v47  ;;  %15082 = vmatpush.bf16.msra.mxu2 %v24982_v1 }
 0x78e   : > { %v13520_v27 = vpop.f32.mrf.mxu0 }
 0x78f   : > { %v13521_v8 = vadd.f32 %v13520_v27, %v13498_v36  ;;  %v13481_v62 = vpop.f32.mrf.mxu2  ;;  %v24966_v36 = vld [vmem:[%s31042_s3 + $0xb38] sm:$0xff] }
 0x790   : > { %v13482_v29 = vadd.f32 %v13481_v62, %v13459_v14  ;;  %15036 = vmatpush.bf16.msra.mxu0 %v24966_v36  ;;  %v24965_v14 = vld [vmem:[%s31042_s3 + $0xb30] sm:$0xff]  ;;  %v24974_v62 = vld [vmem:[%s31042_s3 + $0xb78] sm:$0xff] }
 0x791   : > { %14870 = vmatmul.bf16.gmra.mxu0 %v28877_v56  ;;  %15059 = vmatpush.bf16.msra.mxu1 %v24974_v62  ;;  %v24989_v36 = vld [vmem:[%s31042_s3 + $0xbf0] sm:$0xff] }
 0x792   : > { %14934 = vmatmul.bf16.gmra.mxu3 %v31385_v55  ;;  %v13505_v61 = vadd.f32 %v13504_v7, %v13482_v29  ;;  %v24990_v7 = vld [vmem:[%s31042_s3 + $0xbf8] sm:$0xff]  ;;  %v24981_v29 = vld [vmem:[%s31042_s3 + $0xbb0] sm:$0xff] }
 0x793   : > { %v13461_v60 = vpop.f32.mrf.mxu1  ;;  %15105 = vmatpush.bf16.msra.mxu3 %v24990_v7  ;;  %15083 = vmatpush.bf16.msra.mxu2 %v24981_v29  ;;  %v24962_v7 = vld [vmem:[%s31042_s3 + $0xb18] sm:$0xff] }
 0x794   : > { %v13462_v59 = vadd.f32 %v13461_v60, %v13439_v52  ;;  %14911 = vmatmul.bf16.gmra.mxu2 %v28911_v46  ;;  %15037 = vmatpush.bf16.msra.mxu0 %v24965_v14  ;;  %v24980_v14 = vld [vmem:[%s31042_s3 + $0xba8] sm:$0xff] }
 0x795   : > { %v13507_v20 = vpop.f32.mrf.mxu3 }
 0x796   : > { %v13522_v18 = vpop.f32.mrf.mxu0  ;;  %14888 = vmatmul.bf16.gmra.mxu1 %v28921_v57 }
 0x797   : > { %v13523_v52 = vadd.f32 %v13522_v18, %v13500_v2  ;;  %v13484_v25 = vpop.f32.mrf.mxu2  ;;  %15106 = vmatpush.bf16.msra.mxu3 %v24989_v36  ;;  %v24963_v18 = vld [vmem:[%s31042_s3 + $0xb20] sm:$0xff]  ;;  %15084 = vmatpush.bf16.msra.mxu2 %v24980_v14  ;;  %v24961_v36 = vld [vmem:[%s31042_s3 + $0xb10] sm:$0xff] }
 0x798   : > { %v13485_v27 = vadd.f32 %v13484_v25, %v13462_v59  ;;  %15038 = vmatpush.bf16.msra.mxu0 %v24964_v31  ;;  %v24972_v31 = vld [vmem:[%s31042_s3 + $0xb68] sm:$0xff] }
 0x79a   : > { %v13508_v12 = vadd.f32 %v13507_v20, %v13485_v27  ;;  %v24973_v20 = vld [vmem:[%s31042_s3 + $0xb70] sm:$0xff] }
 0x79b   : > { %v13463_v2 = vpop.f32.mrf.mxu1  ;;  %15060 = vmatpush.bf16.msra.mxu1 %v24973_v20  ;;  %v24960_v20 = vld [vmem:[%s31042_s3 + $0xb08] sm:$0xff] }
 0x79c   : > { %15039 = vmatpush.bf16.msra.mxu0 %v24963_v18  ;;  %v24971_v18 = vld [vmem:[%s31042_s3 + $0xb60] sm:$0xff] }
 0x79d   : > { %v13509_v47 = vpop.f32.mrf.mxu3 }
 0x79e   : > { %v13525_v60 = vpop.f32.mrf.mxu0 }
 0x79f   : > { %v13526_v59 = vadd.f32 %v13525_v60, %v13503_v54  ;;  %v13486_v1 = vpop.f32.mrf.mxu2  ;;  %v24988_v54 = vld [vmem:[%s31042_s3 + $0xbe8] sm:$0xff]  ;;  %15061 = vmatpush.bf16.msra.mxu1 %v24972_v31 }
 0x7a0   : > { %15107 = vmatpush.bf16.msra.mxu3 %v24988_v54  ;;  %15040 = vmatpush.bf16.msra.mxu0 %v24962_v7  ;;  %v24987_v1 = vld [vmem:[%s31042_s3 + $0xbe0] sm:$0xff]  ;;  %v24978_v54 = vld [vmem:[%s31042_s3 + $0xb98] sm:$0xff] }
 0x7a1   : > { %14952 = vmatmul.bf16.vlgmr.msrb.gmra.mxu0 %v28960_v10 }
 0x7a2   : > { %14939 = vmatmul.bf16.gmra.mxu3 %v31433_v38 }
 0x7a3   : > { %v13543_v25 = vpop.f32.mrf.mxu1  ;;  %15062 = vmatpush.bf16.msra.mxu1 %v24971_v18 }
 0x7a4   : > { %v13544_v27 = vadd.f32 %v13543_v25, %v13521_v8  ;;  %14916 = vmatmul.bf16.gmra.mxu2 %v28888_v17  ;;  %v24979_v8 = vld [vmem:[%s31042_s3 + $0xba0] sm:$0xff]  ;;  %15041 = vmatpush.bf16.msra.mxu0 %v24961_v36  ;;  %v24970_v36 = vld [vmem:[%s31042_s3 + $0xb58] sm:$0xff] }
 0x7a5   : > { %v13589_v62 = vpop.f32.mrf.mxu3  ;;  %15085 = vmatpush.bf16.msra.mxu2 %v24979_v8  ;;  %15108 = vmatpush.bf16.msra.mxu3 %v24987_v1 }
 0x7a6   : > { %v13527_v29 = vpop.f32.mrf.mxu0  ;;  %14893 = vmatmul.bf16.gmra.mxu1 %v28979_v35 }
 0x7a7   : > { %v13528_v2 = vadd.f32 %v13527_v29, %v13505_v61  ;;  %v13566_v47 = vpop.f32.mrf.mxu2  ;;  %15063 = vmatpush.bf16.msra.mxu1 %v24970_v36 }
 0x7a8   : > { %v13567_v60 = vadd.f32 %v13566_v47, %v13544_v27  ;;  %15042 = vmatpush.bf16.msra.mxu0 %v24960_v20  ;;  %v24986_v47 = vld [vmem:[%s31042_s3 + $0xbd8] sm:$0xff]  ;;  %v24985_v20 = vld [vmem:[%s31042_s3 + $0xbd0] sm:$0xff] }
 0x7a9   : > { %15086 = vmatpush.bf16.msra.mxu2 %v24978_v54  ;;  %15109 = vmatpush.bf16.msra.mxu3 %v24986_v47 }
 0x7aa   : > { %v13590_v61 = vadd.f32 %v13589_v62, %v13567_v60  ;;  %v24959_v62 = vld [vmem:[%s31042_s3 + $0xb00] sm:$0xff] }
 0x7ab   : > { %v13545_v14 = vpop.f32.mrf.mxu1 }
 0x7ac   : > { %v13546_v7 = vadd.f32 %v13545_v14, %v13523_v52  ;;  %v24977_v52 = vld [vmem:[%s31042_s3 + $0xb90] sm:$0xff]  ;;  %15043 = vmatpush.bf16.msra.mxu0 %v24959_v62 }
 0x7ad   : > { %v13591_v25 = vpop.f32.mrf.mxu3  ;;  %15087 = vmatpush.bf16.msra.mxu2 %v24977_v52  ;;  %15110 = vmatpush.bf16.msra.mxu3 %v24985_v20 }
 0x7ae   : > { %v13530_v27 = vpop.f32.mrf.mxu0 }
 0x7af   : > { %v13531_v31 = vadd.f32 %v13530_v27, %v13508_v12  ;;  %v13568_v29 = vpop.f32.mrf.mxu2 }
 0x7b0   : > { %v13569_v8 = vadd.f32 %v13568_v29, %v13546_v7  ;;  %v24969_v7 = vld [vmem:[%s31042_s3 + $0xb50] sm:$0xff]  ;;  %v24984_v29 = vld [vmem:[%s31042_s3 + $0xbc8] sm:$0xff] }
 0x7b1   : > { %14957 = vmatmul.bf16.gmra.mxu0 %v29038_v48  ;;  %15064 = vmatpush.bf16.msra.mxu1 %v24969_v7 }
 0x7b2   : > { %15021 = vmatmul.bf16.vlgmr.msrb.gmra.mxu3 %v31435_v51  ;;  %v13592_v12 = vadd.f32 %v13591_v25, %v13569_v8  ;;  %v24968_v8 = vld [vmem:[%s31042_s3 + $0xb48] sm:$0xff] }
 0x7b3   : > { %v13548_v60 = vpop.f32.mrf.mxu1  ;;  %15111 = vmatpush.bf16.msra.mxu3 %v24984_v29  ;;  %v25014_v29 = vld [vmem:[%s31042_s3 + $0xcb8] sm:$0xff] }
 0x7b4   : > { %v13549_v1 = vadd.f32 %v13548_v60, %v13526_v59  ;;  %14998 = vmatmul.bf16.vlgmr.msrb.gmra.mxu2 %v31431_v41  ;;  %v24976_v59 = vld [vmem:[%s31042_s3 + $0xb88] sm:$0xff] }
 0x7b5   : > { %v13594_v18 = vpop.f32.mrf.mxu3  ;;  %15088 = vmatpush.bf16.msra.mxu2 %v24976_v59  ;;  %15065 = vmatpush.bf16.msra.mxu1 %v24968_v8 }
 0x7b6   : > { %v13532_v14 = vpop.f32.mrf.mxu0  ;;  %14975 = vmatmul.bf16.vlgmr.msrb.gmra.mxu1 %v29062_v11 }
 0x7b7   : > { %v13571_v54 = vpop.f32.mrf.mxu2  ;;  %v24983_v14 = vld [vmem:[%s31042_s3 + $0xbc0] sm:$0xff] }
 0x7b8   : > { %v13572_v25 = vadd.f32 %v13571_v54, %v13549_v1  ;;  %v24998_v54 = vld [vmem:[%s31042_s3 + $0xc38] sm:$0xff]  ;;  %15112 = vmatpush.bf16.msra.mxu3 %v24983_v14  ;;  %v24996_v14 = vld [vmem:[%s31042_s3 + $0xc28] sm:$0xff] }
 0x7b9   : > { %15128 = vmatpush.bf16.msrb.mxu0 %v24998_v54 }
 0x7ba   : > { %v13595_v27 = vadd.f32 %v13594_v18, %v13572_v25  ;;  %v24975_v18 = vld [vmem:[%s31042_s3 + $0xb80] sm:$0xff] }
 0x7bb   : > { %v13550_v62 = vpop.f32.mrf.mxu1  ;;  %15089 = vmatpush.bf16.msra.mxu2 %v24975_v18 }
 0x7bc   : > { %v13551_v47 = vadd.f32 %v13550_v62, %v13528_v2 }
 0x7bd   : > { %v13596_v36 = vpop.f32.mrf.mxu3 }
 0x7be   : > { %v13612_v52 = vpop.f32.mrf.mxu0 }
 0x7bf   : > { %v13613_v60 = vadd.f32 %v13612_v52, %v13590_v61  ;;  %v13573_v1 = vpop.f32.mrf.mxu2  ;;  %v24967_v61 = vld [vmem:[%s31042_s3 + $0xb40] sm:$0xff]  ;;  %15174 = vmatpush.bf16.msrb.mxu2 %v25014_v29  ;;  %v25005_v29 = vld [vmem:[%s31042_s3 + $0xc70] sm:$0xff] }
 0x7c0   : > { %v13574_v20 = vadd.f32 %v13573_v1, %v13551_v47  ;;  %15066 = vmatpush.bf16.msra.mxu1 %v24967_v61  ;;  %v31440_v47 = vld [vmem:[#allocation33_spill] sm:$0xff]  ;;  %v25013_v61 = vld [vmem:[%s31042_s3 + $0xcb0] sm:$0xff] }
 0x7c1   : > { %14962 = vmatmul.bf16.gmra.mxu0 %v31432_v4 }
 0x7c2   : > { %15026 = vmatmul.bf16.gmra.mxu3 %v31396_v9  ;;  %v13597_v2 = vadd.f32 %v13596_v36, %v13574_v20  ;;  %v24997_v36 = vld [vmem:[%s31042_s3 + $0xc30] sm:$0xff]  ;;  %v25006_v20 = vld [vmem:[%s31042_s3 + $0xc78] sm:$0xff] }
 0x7c3   : > { %v13553_v7 = vpop.f32.mrf.mxu1  ;;  %15129 = vmatpush.bf16.msrb.mxu0 %v24997_v36  ;;  %15175 = vmatpush.bf16.msrb.mxu2 %v25013_v61 }
 0x7c4   : > { %v13554_v25 = vadd.f32 %v13553_v7, %v13531_v31  ;;  %15003 = vmatmul.bf16.gmra.mxu2 %v31434_v26  ;;  %v25022_v31 = vld [vmem:[%s31042_s3 + $0xcf8] sm:$0xff]  ;;  %15151 = vmatpush.bf16.msrb.mxu1 %v25006_v20  ;;  %v25020_v20 = vld [vmem:[%s31042_s3 + $0xce8] sm:$0xff] }
 0x7c5   : > { %v13599_v59 = vpop.f32.mrf.mxu3  ;;  %15197 = vmatpush.bf16.msrb.mxu3 %v25022_v31  ;;  %v31441_v31 = vld [vmem:[#allocation35_spill] sm:$0xff] }
 0x7c6   : > { %v13614_v62 = vpop.f32.mrf.mxu0  ;;  %14980 = vmatmul.bf16.gmra.mxu1 %v31440_v47 }
 0x7c7   : > { %v13615_v8 = vadd.f32 %v13614_v62, %v13592_v12  ;;  %v13576_v52 = vpop.f32.mrf.mxu2  ;;  %v25021_v12 = vld [vmem:[%s31042_s3 + $0xcf0] sm:$0xff]  ;;  %15130 = vmatpush.bf16.msrb.mxu0 %v24996_v14 }
 0x7c8   : > { %v13577_v1 = vadd.f32 %v13576_v52, %v13554_v25  ;;  %15152 = vmatpush.bf16.msrb.mxu1 %v25005_v29  ;;  %v25012_v52 = vld [vmem:[%s31042_s3 + $0xca8] sm:$0xff] }
 0x7c9   : > { %15198 = vmatpush.bf16.msrb.mxu3 %v25021_v12  ;;  %15176 = vmatpush.bf16.msrb.mxu2 %v25012_v52  ;;  %v31442_v12 = vld [vmem:[#allocation34_spill] sm:$0xff] }
 0x7ca   : > { %v13600_v18 = vadd.f32 %v13599_v59, %v13577_v1  ;;  %v24995_v59 = vld [vmem:[%s31042_s3 + $0xc20] sm:$0xff]  ;;  %v24994_v1 = vld [vmem:[%s31042_s3 + $0xc18] sm:$0xff] }
 0x7cb   : > { %v13555_v54 = vpop.f32.mrf.mxu1  ;;  %15131 = vmatpush.bf16.msrb.mxu0 %v24995_v59  ;;  %v25019_v52 = vld [vmem:[%s31042_s3 + $0xce0] sm:$0xff] }
 0x7cc   : > { %v25004_v54 = vld [vmem:[%s31042_s3 + $0xc68] sm:$0xff] }
 0x7cd   : > { %v13601_v7 = vpop.f32.mrf.mxu3  ;;  %15199 = vmatpush.bf16.msrb.mxu3 %v25020_v20  ;;  %15153 = vmatpush.bf16.msrb.mxu1 %v25004_v54 }
 0x7ce   : > { %v13617_v25 = vpop.f32.mrf.mxu0 }
 0x7cf   : > { %v13618_v62 = vadd.f32 %v13617_v25, %v13595_v27  ;;  %v13578_v36 = vpop.f32.mrf.mxu2  ;;  %15132 = vmatpush.bf16.msrb.mxu0 %v24994_v1  ;;  %v24993_v25 = vld [vmem:[%s31042_s3 + $0xc10] sm:$0xff]  ;;  %v24992_v1 = vld [vmem:[%s31042_s3 + $0xc08] sm:$0xff] }
 0x7d1   : > { %15044 = vmatmul.bf16.vlgmr.msra.gmra.mxu0 %v31441_v31  ;;  %15200 = vmatpush.bf16.msrb.mxu3 %v25019_v52  ;;  %v25009_v52 = vld [vmem:[%s31042_s3 + $0xc90] sm:$0xff] }
 0x7d2   : > { %15031 = vmatmul.bf16.gmra.mxu3 %v29154_v42 }
 0x7d3   : > { %v13635_v27 = vpop.f32.mrf.mxu1  ;;  %15133 = vmatpush.bf16.msrb.mxu0 %v24993_v25  ;;  %v24991_v25 = vld [vmem:[%s31042_s3 + $0xc00] sm:$0xff] }
 0x7d4   : > { %v13636_v14 = vadd.f32 %v13635_v27, %v13613_v60  ;;  %15008 = vmatmul.bf16.gmra.mxu2 %v31436_v0  ;;  %v25011_v60 = vld [vmem:[%s31042_s3 + $0xca0] sm:$0xff] }
 0x7d5   : > { %v13681_v61 = vpop.f32.mrf.mxu3  ;;  %15177 = vmatpush.bf16.msrb.mxu2 %v25011_v60  ;;  %v25003_v27 = vld [vmem:[%s31042_s3 + $0xc60] sm:$0xff]  ;;  %v25018_v60 = vld [vmem:[%s31042_s3 + $0xcd8] sm:$0xff] }
 0x7d6   : > { %v13619_v7 = vpop.f32.mrf.mxu0  ;;  %14985 = vmatmul.bf16.gmra.mxu1 %v31442_v12  ;;  %15201 = vmatpush.bf16.msrb.mxu3 %v25018_v60 }
 0x7d7   : > { %v13620_v59 = vadd.f32 %v13619_v7, %v13597_v2  ;;  %v13658_v29 = vpop.f32.mrf.mxu2  ;;  %15154 = vmatpush.bf16.msrb.mxu1 %v25003_v27  ;;  %15134 = vmatpush.bf16.msrb.mxu0 %v24992_v1 }
 0x7d8   : > { %v13659_v36 = vadd.f32 %v13658_v29, %v13636_v14  ;;  %v25010_v14 = vld [vmem:[%s31042_s3 + $0xc98] sm:$0xff] }
 0x7d9   : > { %15178 = vmatpush.bf16.msrb.mxu2 %v25010_v14  ;;  %v25263_v14 = vld [vmem:[#allocation2 + $0x58] sm:$0xff]  }
 0x7da   : > { %v30345_v20 = vadd.f32 %v13681_v61, %v13659_v36 }
 0x7db   : > { %v13637_v2 = vpop.f32.mrf.mxu1  ;;  %15135 = vmatpush.bf16.msrb.mxu0 %v24991_v25 }
 0x7dc   : > { %v13638_v61 = vadd.f32 %v13637_v2, %v13615_v8  ;;  %v25002_v8 = vld [vmem:[%s31042_s3 + $0xc58] sm:$0xff] }
 0x7dd   : > { %v13683_v54 = vpop.f32.mrf.mxu3  ;;  %15155 = vmatpush.bf16.msrb.mxu1 %v25002_v8  ;;  %15179 = vmatpush.bf16.msrb.mxu2 %v25009_v52  ;;  %v25016_v52 = vld [vmem:[%s31042_s3 + $0xcc8] sm:$0xff] }
 0x7de   : > { %v13622_v7 = vpop.f32.mrf.mxu0 }
 0x7df   : > { %v13623_v29 = vadd.f32 %v13622_v7, %v13600_v18  ;;  %v13660_v36 = vpop.f32.mrf.mxu2 }
 0x7e0   : > { %v13661_v2 = vadd.f32 %v13660_v36, %v13638_v61  ;;  %v25017_v61 = vld [vmem:[%s31042_s3 + $0xcd0] sm:$0xff]  ;;  %v31443_v36 = vld [vmem:[#allocation29_spill] sm:$0xff] }
 0x7e1   : > { %15049 = vmatmul.bf16.gmra.mxu0 %v29232_v19  ;;  %15202 = vmatpush.bf16.msrb.mxu3 %v25017_v61 }
 0x7e2   : > { %15113 = vmatmul.bf16.vlgmr.msra.gmra.mxu3 %v29236_v15  ;;  %v30373_v1 = vadd.f32 %v13683_v54, %v13661_v2  ;;  %v25001_v54 = vld [vmem:[%s31042_s3 + $0xc50] sm:$0xff]  ;;  %v25008_v2 = vld [vmem:[%s31042_s3 + $0xc88] sm:$0xff] }
 0x7e3   : > { %v13640_v18 = vpop.f32.mrf.mxu1  ;;  %15156 = vmatpush.bf16.msrb.mxu1 %v25001_v54  ;;  %15180 = vmatpush.bf16.msrb.mxu2 %v25008_v2  ;;  %v24999_v2 = vld [vmem:[%s31042_s3 + $0xc40] sm:$0xff] }
 0x7e4   : > { %v13641_v27 = vadd.f32 %v13640_v18, %v13618_v62  ;;  %15090 = vmatmul.bf16.vlgmr.msra.gmra.mxu2 %v25263_v14 }
 0x7e5   : > { %v13686_v7 = vpop.f32.mrf.mxu3  ;;  %15203 = vmatpush.bf16.msrb.mxu3 %v25016_v52  ;;  %v25030_v52 = vld [vmem:[%s31042_s3 + $0xd38] sm:$0xff] }
 0x7e6   : > { %v13624_v60 = vpop.f32.mrf.mxu0  ;;  %15067 = vmatmul.bf16.vlgmr.msra.gmra.mxu1 %v31443_v36  ;;  %15220 = vmatpush.bf16.msra.mxu0 %v25030_v52  ;;  %v25038_v52 = vld [vmem:[%s31042_s3 + $0xd78] sm:$0xff] }
 0x7e7   : > { %v13663_v8 = vpop.f32.mrf.mxu2 }
 0x7e8   : > { %v13664_v62 = vadd.f32 %v13663_v8, %v13641_v27  ;;  %v25000_v27 = vld [vmem:[%s31042_s3 + $0xc48] sm:$0xff]  ;;  %v25007_v8 = vld [vmem:[%s31042_s3 + $0xc80] sm:$0xff] }
 0x7e9   : > { %15157 = vmatpush.bf16.msrb.mxu1 %v25000_v27  ;;  %15181 = vmatpush.bf16.msrb.mxu2 %v25007_v8 }
 0x7ea   : > { %v30390_v18 = vadd.f32 %v13686_v7, %v13664_v62 }
 0x7eb   : > { %v13642_v14 = vpop.f32.mrf.mxu1 }
 0x7ec   : > { %31444 = vst [vmem:[#allocation23_spill] sm:$0xff] %v30390_v18  ;;  %v13643_v61 = vadd.f32 %v13642_v14, %v13620_v59  ;;  %v25015_v59 = vld [vmem:[%s31042_s3 + $0xcc0] sm:$0xff] }
 0x7ed   : > { %v13688_v60 = vpop.f32.mrf.mxu3  ;;  %15204 = vmatpush.bf16.msrb.mxu3 %v25015_v59  ;;  %15158 = vmatpush.bf16.msrb.mxu1 %v24999_v2  ;;  %v25039_v18 = vld [vmem:[%s31042_s3 + $0xd80] sm:$0xff] }
 0x7ee   : > { %v14861_v54 = vpop.f32.mrf.mxu0 }
 0x7ef   : > { %v13665_v7 = vpop.f32.mrf.mxu2 }
 0x7f0   : > { %v13666_v62 = vadd.f32 %v13665_v7, %v13643_v61  ;;  %v25046_v7 = vld [vmem:[%s31042_s3 + $0xdb8] sm:$0xff] }
 0x7f1   : > { %15054 = vmatmul.bf16.gmra.mxu0 %v29312_v45  ;;  %16423 = vmatpush.bf16.msra.mxu2 %v25046_v7  ;;  %v25045_v7 = vld [vmem:[%s31042_s3 + $0xdb0] sm:$0xff] }
 0x7f2   : > { %15118 = vmatmul.bf16.gmra.mxu3 %v29315_v23  ;;  %v30411_v14 = vadd.f32 %v13688_v60, %v13666_v62  ;;  %v25029_v60 = vld [vmem:[%s31042_s3 + $0xd30] sm:$0xff]  ;;  %v25054_v62 = vld [vmem:[%s31042_s3 + $0xdf8] sm:$0xff]  ;;  %15243 = vmatpush.bf16.msra.mxu1 %v25038_v52 }
 0x7f3   : > { %v13645_v61 = vpop.f32.mrf.mxu1  ;;  %15221 = vmatpush.bf16.msra.mxu0 %v25029_v60  ;;  %16446 = vmatpush.bf16.msra.mxu3 %v25054_v62  ;;  %v25053_v60 = vld [vmem:[%s31042_s3 + $0xdf0] sm:$0xff]  ;;  %v25026_v52 = vld [vmem:[%s31042_s3 + $0xd18] sm:$0xff] }
 0x7f4   : > { %31445 = vst [vmem:[#allocation8_spill] sm:$0xff] %v30411_v14  ;;  %v13646_v27 = vadd.f32 %v13645_v61, %v13623_v29  ;;  %15095 = vmatmul.bf16.gmra.mxu2 %v31402_v28  ;;  %v25028_v61 = vld [vmem:[%s31042_s3 + $0xd28] sm:$0xff] }
 0x7f5   : > { %v13691_v8 = vpop.f32.mrf.mxu3  ;;  %16424 = vmatpush.bf16.msra.mxu2 %v25045_v7 }
 0x7f6   : > { %v14863_v25 = vpop.f32.mrf.mxu0  ;;  %15072 = vmatmul.bf16.gmra.mxu1 %v31410_v5 }
 0x7f7   : > { %v13668_v59 = vpop.f32.mrf.mxu2  ;;  %15222 = vmatpush.bf16.msra.mxu0 %v25028_v61  ;;  %16447 = vmatpush.bf16.msra.mxu3 %v25053_v60  ;;  %v25036_v60 = vld [vmem:[%s31042_s3 + $0xd68] sm:$0xff] }
 0x7f8   : > { %v13669_v2 = vadd.f32 %v13668_v59, %v13646_v27 }
 0x7fa   : > { %v30435_v23 = vadd.f32 %v13691_v8, %v13669_v2  ;;  %v25027_v8 = vld [vmem:[%s31042_s3 + $0xd20] sm:$0xff]  ;;  %v25044_v2 = vld [vmem:[%s31042_s3 + $0xda8] sm:$0xff] }
 0x7fb   : > { %v13647_v29 = vpop.f32.mrf.mxu1  ;;  %15223 = vmatpush.bf16.msra.mxu0 %v25027_v8  ;;  %16425 = vmatpush.bf16.msra.mxu2 %v25044_v2  ;;  %v25043_v2 = vld [vmem:[%s31042_s3 + $0xda0] sm:$0xff] }
 0x7fc   : > { %31446 = vst [vmem:[#allocation17_spill] sm:$0xff] %v30435_v23  ;;  %v25037_v29 = vld [vmem:[%s31042_s3 + $0xd70] sm:$0xff] }
 0x7fd   : > { %v13693_v27 = vpop.f32.mrf.mxu3  ;;  %15244 = vmatpush.bf16.msra.mxu1 %v25037_v29 }
 0x7fe   : > { %v14866_v62 = vpop.f32.mrf.mxu0 }
 0x7ff   : > { %v13670_v15 = vpop.f32.mrf.mxu2  ;;  %15224 = vmatpush.bf16.msra.mxu0 %v25026_v52  ;;  %v25035_v52 = vld [vmem:[%s31042_s3 + $0xd60] sm:$0xff]  ;;  %16426 = vmatpush.bf16.msra.mxu2 %v25043_v2  ;;  %v25034_v2 = vld [vmem:[%s31042_s3 + $0xd58] sm:$0xff] }
 0x800   : > { %v25052_v15 = vld [vmem:[%s31042_s3 + $0xde8] sm:$0xff] }
 0x801   : > { %15136 = vmatmul.bf16.vlgmr.msrb.gmra.mxu0 %v29379_v22  ;;  %16448 = vmatpush.bf16.msra.mxu3 %v25052_v15 }
 0x802   : > { %15123 = vmatmul.bf16.gmra.mxu3 %v29368_v33  ;;  %v31447_v33 = vld [vmem:[#allocation47_spill] sm:$0xff]  ;;  %15245 = vmatpush.bf16.msra.mxu1 %v25036_v60 }
 0x803   : > { %v14884_v61 = vpop.f32.mrf.mxu1  ;;  %v25024_v60 = vld [vmem:[%s31042_s3 + $0xd08] sm:$0xff] }
 0x804   : > { %v14885_v7 = vadd.f32 %v14884_v61, %v14861_v54  ;;  %15100 = vmatmul.bf16.gmra.mxu2 %v29263_v37  ;;  %v25025_v54 = vld [vmem:[%s31042_s3 + $0xd10] sm:$0xff]  ;;  %v25051_v61 = vld [vmem:[%s31042_s3 + $0xde0] sm:$0xff] }
 0x805   : > { %v14930_v27 = vpop.f32.mrf.mxu3  ;;  %15225 = vmatpush.bf16.msra.mxu0 %v25025_v54  ;;  %16449 = vmatpush.bf16.msra.mxu3 %v25051_v61  ;;  %v25050_v54 = vld [vmem:[%s31042_s3 + $0xdd8] sm:$0xff]  ;;  %v31448_v61 = vld [vmem:[#allocation26_spill] sm:$0xff] }
 0x806   : > { %v14868_v59 = vpop.f32.mrf.mxu0  ;;  %15077 = vmatmul.bf16.gmra.mxu1 %v31447_v33 }
 0x807   : > { %v14907_v29 = vpop.f32.mrf.mxu2  ;;  %15246 = vmatpush.bf16.msra.mxu1 %v25035_v52 }
 0x808   : > { %v14908_v15 = vadd.f32 %v14907_v29, %v14885_v7  ;;  %v25042_v7 = vld [vmem:[%s31042_s3 + $0xd98] sm:$0xff] }
 0x809   : > { %16427 = vmatpush.bf16.msra.mxu2 %v25042_v7  ;;  %15226 = vmatpush.bf16.msra.mxu0 %v25024_v60  ;;  %v30498_v7 = vld [vmem:[#allocation2 + $0x40] sm:$0xff]  }
 0x80a   : > { %v14931_v8 = vadd.f32 %v14930_v27, %v14908_v15  ;;  %v25023_v27 = vld [vmem:[%s31042_s3 + $0xd00] sm:$0xff]  ;;  %16450 = vmatpush.bf16.msra.mxu3 %v25050_v54 }
 0x80b   : > { %v14886_v23 = vpop.f32.mrf.mxu1  ;;  %15247 = vmatpush.bf16.msra.mxu1 %v25034_v2  ;;  %v25048_v2 = vld [vmem:[%s31042_s3 + $0xdc8] sm:$0xff] }
 0x80c   : > { %v14887_v29 = vadd.f32 %v14886_v23, %v14863_v25  ;;  %v25041_v23 = vld [vmem:[%s31042_s3 + $0xd90] sm:$0xff] }
 0x80d   : > { %v14932_v21 = vpop.f32.mrf.mxu3  ;;  %15227 = vmatpush.bf16.msra.mxu0 %v25023_v27  ;;  %16428 = vmatpush.bf16.msra.mxu2 %v25041_v23  ;;  %v25033_v27 = vld [vmem:[%s31042_s3 + $0xd50] sm:$0xff] }
 0x80e   : > { %v14871_v37 = vpop.f32.mrf.mxu0 }
 0x80f   : > { %v14909_v14 = vpop.f32.mrf.mxu2  ;;  %15248 = vmatpush.bf16.msra.mxu1 %v25033_v27  ;;  %v31450_v27 = vld [vmem:[#allocation30_spill] sm:$0xff] }
 0x810   : > { %v14910_v15 = vadd.f32 %v14909_v14, %v14887_v29  ;;  %v25049_v29 = vld [vmem:[%s31042_s3 + $0xdd0] sm:$0xff] }
 0x811   : > { %15141 = vmatmul.bf16.gmra.mxu0 %v31448_v61  ;;  %v31449_v61 = vld [vmem:[#allocation12_spill] sm:$0xff]  ;;  %16451 = vmatpush.bf16.msra.mxu3 %v25049_v29  ;;  %v25032_v29 = vld [vmem:[%s31042_s3 + $0xd48] sm:$0xff] }
 0x812   : > { %15205 = vmatmul.bf16.vlgmr.msrb.gmra.mxu3 %v29447_v32  ;;  %v14933_v25 = vadd.f32 %v14932_v21, %v14910_v15 }
 0x813   : > { %v14889_v52 = vpop.f32.mrf.mxu1  ;;  %15249 = vmatpush.bf16.msra.mxu1 %v25032_v29  ;;  %v31451_v29 = vld [vmem:[#allocation42_spill] sm:$0xff] }
 0x814   : > { %v14890_v60 = vadd.f32 %v14889_v52, %v14866_v62  ;;  %15182 = vmatmul.bf16.vlgmr.msrb.gmra.mxu2 %v30498_v7  ;;  %v25040_v62 = vld [vmem:[%s31042_s3 + $0xd88] sm:$0xff] }
 0x815   : > { %v14935_v14 = vpop.f32.mrf.mxu3  ;;  %16429 = vmatpush.bf16.msra.mxu2 %v25040_v62  ;;  %16452 = vmatpush.bf16.msra.mxu3 %v25048_v2 }
 0x816   : > { %v14873_v32 = vpop.f32.mrf.mxu0  ;;  %15159 = vmatmul.bf16.vlgmr.msrb.gmra.mxu1 %v31449_v61 }
 0x817   : > { %v14912_v21 = vpop.f32.mrf.mxu2 }
 0x818   : > { %v14913_v54 = vadd.f32 %v14912_v21, %v14890_v60 }
 0x819   : > { %16430 = vmatpush.bf16.msra.mxu2 %v25039_v18  ;;  %v25086_v18 = vld [vmem:[%s31042_s3 + $0xef8] sm:$0xff] }
 0x81a   : > { %v14936_v15 = vadd.f32 %v14935_v14, %v14913_v54  ;;  %v25047_v14 = vld [vmem:[%s31042_s3 + $0xdc0] sm:$0xff] }
 0x81b   : > { %v14891_v32 = vpop.f32.mrf.mxu1  ;;  %16453 = vmatpush.bf16.msra.mxu3 %v25047_v14  ;;  %v25070_v14 = vld [vmem:[%s31042_s3 + $0xe78] sm:$0xff] }
 0x81c   : > { %v14892_v23 = vadd.f32 %v14891_v32, %v14868_v59  ;;  %v25031_v59 = vld [vmem:[%s31042_s3 + $0xd40] sm:$0xff]  ;;  %v25078_v32 = vld [vmem:[%s31042_s3 + $0xeb8] sm:$0xff] }
 0x81d   : > { %v14937_v52 = vpop.f32.mrf.mxu3  ;;  %15250 = vmatpush.bf16.msra.mxu1 %v25031_v59  ;;  %16515 = vmatpush.bf16.msrb.mxu2 %v25078_v32  ;;  %v25060_v59 = vld [vmem:[%s31042_s3 + $0xe28] sm:$0xff] }
 0x81e   : > { %v14953_v60 = vpop.f32.mrf.mxu0 }
 0x81f   : > { %v14954_v21 = vadd.f32 %v14953_v60, %v14931_v8  ;;  %v14914_v6 = vpop.f32.mrf.mxu2  ;;  %v25062_v8 = vld [vmem:[%s31042_s3 + $0xe38] sm:$0xff]  ;;  %16538 = vmatpush.bf16.msrb.mxu3 %v25086_v18 }
 0x820   : > { %v14915_v40 = vadd.f32 %v14914_v6, %v14892_v23  ;;  %16469 = vmatpush.bf16.msrb.mxu0 %v25062_v8  ;;  %v25077_v8 = vld [vmem:[%s31042_s3 + $0xeb0] sm:$0xff] }
 0x821   : > { %15146 = vmatmul.bf16.gmra.mxu0 %v31450_v27  ;;  %16492 = vmatpush.bf16.msrb.mxu1 %v25070_v14  ;;  %v25058_v14 = vld [vmem:[%s31042_s3 + $0xe18] sm:$0xff] }
 0x822   : > { %15210 = vmatmul.bf16.gmra.mxu3 %v29491_v30  ;;  %v14938_v54 = vadd.f32 %v14937_v52, %v14915_v40  ;;  %v25061_v40 = vld [vmem:[%s31042_s3 + $0xe30] sm:$0xff]  ;;  %16516 = vmatpush.bf16.msrb.mxu2 %v25077_v8 }
 0x823   : > { %v14894_v6 = vpop.f32.mrf.mxu1 }
 0x824   : > { %v14895_v62 = vadd.f32 %v14894_v6, %v14871_v37  ;;  %15187 = vmatmul.bf16.gmra.mxu2 %v29507_v34  ;;  %16470 = vmatpush.bf16.msrb.mxu0 %v25061_v40 }
 0x825   : > { %v14940_v2 = vpop.f32.mrf.mxu3 }
 0x826   : > { %v14955_v23 = vpop.f32.mrf.mxu0  ;;  %15164 = vmatmul.bf16.gmra.mxu1 %v31451_v29 }
 0x827   : > { %v14956_v37 = vadd.f32 %v14955_v23, %v14933_v25  ;;  %v14917_v52 = vpop.f32.mrf.mxu2 }
 0x828   : > { %v14918_v60 = vadd.f32 %v14917_v52, %v14895_v62  ;;  %16471 = vmatpush.bf16.msrb.mxu0 %v25060_v59  ;;  %v25085_v62 = vld [vmem:[%s31042_s3 + $0xef0] sm:$0xff]  ;;  %v25059_v52 = vld [vmem:[%s31042_s3 + $0xe20] sm:$0xff] }
 0x829   : > { %16539 = vmatpush.bf16.msrb.mxu3 %v25085_v62 }
 0x82a   : > { %v14941_v6 = vadd.f32 %v14940_v2, %v14918_v60  ;;  %v25069_v2 = vld [vmem:[%s31042_s3 + $0xe70] sm:$0xff]  ;;  %v25076_v60 = vld [vmem:[%s31042_s3 + $0xea8] sm:$0xff] }
 0x82b   : > { %v14896_v25 = vpop.f32.mrf.mxu1  ;;  %16493 = vmatpush.bf16.msrb.mxu1 %v25069_v2  ;;  %16517 = vmatpush.bf16.msrb.mxu2 %v25076_v60  ;;  %v25057_v2 = vld [vmem:[%s31042_s3 + $0xe10] sm:$0xff] }
 0x82c   : > { %16472 = vmatpush.bf16.msrb.mxu0 %v25059_v52 }
 0x82d   : > { %v14942_v32 = vpop.f32.mrf.mxu3 }
 0x82e   : > { %v14958_v23 = vpop.f32.mrf.mxu0  ;;  %v25068_v32 = vld [vmem:[%s31042_s3 + $0xe68] sm:$0xff] }
 0x82f   : > { %v14959_v40 = vadd.f32 %v14958_v23, %v14936_v15  ;;  %v14919_v18 = vpop.f32.mrf.mxu2  ;;  %v25084_v15 = vld [vmem:[%s31042_s3 + $0xee8] sm:$0xff]  ;;  %v31452_v23 = vld [vmem:[#allocation32_spill] sm:$0xff]  ;;  %16494 = vmatpush.bf16.msrb.mxu1 %v25068_v32 }
 0x830   : > { %16540 = vmatpush.bf16.msrb.mxu3 %v25084_v15  ;;  %16473 = vmatpush.bf16.msrb.mxu0 %v25058_v14  ;;  %v25083_v15 = vld [vmem:[%s31042_s3 + $0xee0] sm:$0xff] }
 0x831   : > { %15228 = vmatmul.bf16.vlgmr.msra.gmra.mxu0 %v31425_v16  ;;  %v25067_v14 = vld [vmem:[%s31042_s3 + $0xe60] sm:$0xff] }
 0x832   : > { %15215 = vmatmul.bf16.gmra.mxu3 %v29479_v39 }
 0x833   : > { %v14976_v59 = vpop.f32.mrf.mxu1  ;;  %16495 = vmatpush.bf16.msrb.mxu1 %v25067_v14 }
 0x834   : > { %v14977_v8 = vadd.f32 %v14976_v59, %v14954_v21  ;;  %15192 = vmatmul.bf16.gmra.mxu2 %v29554_v63  ;;  %v25075_v21 = vld [vmem:[%s31042_s3 + $0xea0] sm:$0xff]  ;;  %16474 = vmatpush.bf16.msrb.mxu0 %v25057_v2  ;;  %v25056_v59 = vld [vmem:[%s31042_s3 + $0xe08] sm:$0xff]  ;;  %v25082_v2 = vld [vmem:[%s31042_s3 + $0xed8] sm:$0xff] }
 0x835   : > { %v15022_v25 = vpop.f32.mrf.mxu3  ;;  %16518 = vmatpush.bf16.msrb.mxu2 %v25075_v21  ;;  %16541 = vmatpush.bf16.msrb.mxu3 %v25083_v15 }
 0x836   : > { %v14960_v62 = vpop.f32.mrf.mxu0  ;;  %15169 = vmatmul.bf16.gmra.mxu1 %v31452_v23 }
 0x837   : > { %v14961_v18 = vadd.f32 %v14960_v62, %v14938_v54  ;;  %v14999_v52 = vpop.f32.mrf.mxu2 }
 0x838   : > { %v15000_v60 = vadd.f32 %v14999_v52, %v14977_v8  ;;  %v25074_v8 = vld [vmem:[%s31042_s3 + $0xe98] sm:$0xff]  ;;  %16475 = vmatpush.bf16.msrb.mxu0 %v25056_v59 }
 0x839   : > { %16519 = vmatpush.bf16.msrb.mxu2 %v25074_v8  ;;  %16542 = vmatpush.bf16.msrb.mxu3 %v25082_v2  ;;  %v25265_v59 = vld [vmem:[#allocation2 + $0x38] sm:$0xff]   ;;  %v25081_v8 = vld [vmem:[%s31042_s3 + $0xed0] sm:$0xff]  ;;  %v25080_v2 = vld [vmem:[%s31042_s3 + $0xec8] sm:$0xff] }
 0x83a   : > { %v15023_v54 = vadd.f32 %v15022_v25, %v15000_v60  ;;  %v25055_v25 = vld [vmem:[%s31042_s3 + $0xe00] sm:$0xff]  ;;  %v25066_v60 = vld [vmem:[%s31042_s3 + $0xe58] sm:$0xff] }
 0x83b   : > { %v14978_v32 = vpop.f32.mrf.mxu1  ;;  %16496 = vmatpush.bf16.msrb.mxu1 %v25066_v60 }
 0x83c   : > { %v14979_v62 = vadd.f32 %v14978_v32, %v14956_v37  ;;  %16476 = vmatpush.bf16.msrb.mxu0 %v25055_v25 }
 0x83d   : > { %v15024_v52 = vpop.f32.mrf.mxu3  ;;  %16543 = vmatpush.bf16.msrb.mxu3 %v25081_v8 }
 0x83e   : > { %v14963_v39 = vpop.f32.mrf.mxu0 }
 0x83f   : > { %v14964_v30 = vadd.f32 %v14963_v39, %v14941_v6  ;;  %v15001_v21 = vpop.f32.mrf.mxu2  ;;  %v25073_v39 = vld [vmem:[%s31042_s3 + $0xe90] sm:$0xff] }
 0x840   : > { %v15002_v15 = vadd.f32 %v15001_v21, %v14979_v62  ;;  %16520 = vmatpush.bf16.msrb.mxu2 %v25073_v39 }
 0x841   : > { %15233 = vmatmul.bf16.gmra.mxu0 %v29598_v13  ;;  %16544 = vmatpush.bf16.msrb.mxu3 %v25080_v2 }
 0x842   : > { %16454 = vmatmul.bf16.vlgmr.msra.gmra.mxu3 %v28865_v24  ;;  %v15025_v37 = vadd.f32 %v15024_v52, %v15002_v15  ;;  %v31453_v24 = vld [vmem:[#allocation49_spill] sm:$0xff]  ;;  %v25065_v52 = vld [vmem:[%s31042_s3 + $0xe50] sm:$0xff] }
 0x843   : > { %v14981_v6 = vpop.f32.mrf.mxu1  ;;  %16497 = vmatpush.bf16.msrb.mxu1 %v25065_v52 }
 0x844   : > { %v14982_v14 = vadd.f32 %v14981_v6, %v14959_v40  ;;  %16431 = vmatmul.bf16.vlgmr.msra.gmra.mxu2 %v25265_v59  ;;  %v25072_v40 = vld [vmem:[%s31042_s3 + $0xe88] sm:$0xff] }
 0x845   : > { %v15027_v32 = vpop.f32.mrf.mxu3  ;;  %16521 = vmatpush.bf16.msrb.mxu2 %v25072_v40  ;;  %v25064_v59 = vld [vmem:[%s31042_s3 + $0xe48] sm:$0xff] }
 0x846   : > { %v14965_v62 = vpop.f32.mrf.mxu0  ;;  %15251 = vmatmul.bf16.vlgmr.msra.gmra.mxu1 %v31453_v24 }
 0x847   : > { %v15004_v21 = vpop.f32.mrf.mxu2  ;;  %16498 = vmatpush.bf16.msrb.mxu1 %v25064_v59  ;;  %v25102_v59 = vld [vmem:[%s31042_s3 + $0xf78] sm:$0xff] }
 0x848   : > { %v15005_v25 = vadd.f32 %v15004_v21, %v14982_v14  ;;  %v25071_v21 = vld [vmem:[%s31042_s3 + $0xe80] sm:$0xff] }
 0x849   : > { %16522 = vmatpush.bf16.msrb.mxu2 %v25071_v21 }
 0x84a   : > { %v15028_v60 = vadd.f32 %v15027_v32, %v15005_v25  ;;  %v25079_v32 = vld [vmem:[%s31042_s3 + $0xec0] sm:$0xff] }
 0x84b   : > { %v14983_v15 = vpop.f32.mrf.mxu1  ;;  %16545 = vmatpush.bf16.msrb.mxu3 %v25079_v32 }
 0x84c   : > { %v14984_v39 = vadd.f32 %v14983_v15, %v14961_v18  ;;  %v25063_v18 = vld [vmem:[%s31042_s3 + $0xe40] sm:$0xff] }
 0x84d   : > { %v15029_v6 = vpop.f32.mrf.mxu3  ;;  %16499 = vmatpush.bf16.msrb.mxu1 %v25063_v18  ;;  %v25117_v18 = vld [vmem:[%s31042_s3 + $0xff0] sm:$0xff] }
 0x84e   : > { %v15045_v14 = vpop.f32.mrf.mxu0 }
 0x84f   : > { %v15046_v8 = vadd.f32 %v15045_v14, %v15023_v54  ;;  %v15006_v62 = vpop.f32.mrf.mxu2  ;;  %v25094_v54 = vld [vmem:[%s31042_s3 + $0xf38] sm:$0xff]  ;;  %v25092_v14 = vld [vmem:[%s31042_s3 + $0xf28] sm:$0xff] }
 0x850   : > { %v15007_v13 = vadd.f32 %v15006_v62, %v14984_v39  ;;  %16561 = vmatpush.bf16.msra.mxu0 %v25094_v54  ;;  %v25118_v39 = vld [vmem:[%s31042_s3 + $0xff8] sm:$0xff]  ;;  %v25109_v62 = vld [vmem:[%s31042_s3 + $0xfb0] sm:$0xff] }
 0x851   : > { %15238 = vmatmul.bf16.gmra.mxu0 %v29572_v53  ;;  %16630 = vmatpush.bf16.msra.mxu3 %v25118_v39 }
 0x852   : > { %16459 = vmatmul.bf16.gmra.mxu3 %v28921_v57  ;;  %v15030_v52 = vadd.f32 %v15029_v6, %v15007_v13  ;;  %v25110_v57 = vld [vmem:[%s31042_s3 + $0xfb8] sm:$0xff]  ;;  %v25093_v13 = vld [vmem:[%s31042_s3 + $0xf30] sm:$0xff]  ;;  %16584 = vmatpush.bf16.msra.mxu1 %v25102_v59 }
 0x853   : > { %v14986_v25 = vpop.f32.mrf.mxu1  ;;  %16607 = vmatpush.bf16.msra.mxu2 %v25110_v57  ;;  %v25091_v57 = vld [vmem:[%s31042_s3 + $0xf20] sm:$0xff] }
 0x854   : > { %v14987_v40 = vadd.f32 %v14986_v25, %v14964_v30  ;;  %16436 = vmatmul.bf16.gmra.mxu2 %v30498_v7  ;;  %16562 = vmatpush.bf16.msra.mxu0 %v25093_v13  ;;  %v25090_v13 = vld [vmem:[%s31042_s3 + $0xf18] sm:$0xff] }
 0x855   : > { %v15032_v2 = vpop.f32.mrf.mxu3  ;;  %16631 = vmatpush.bf16.msra.mxu3 %v25117_v18  ;;  %v25088_v18 = vld [vmem:[%s31042_s3 + $0xf08] sm:$0xff] }
 0x856   : > { %v15047_v15 = vpop.f32.mrf.mxu0  ;;  %15256 = vmatmul.bf16.gmra.mxu1 %v31429_v44 }
 0x857   : > { %v15048_v30 = vadd.f32 %v15047_v15, %v15025_v37  ;;  %v15009_v6 = vpop.f32.mrf.mxu2  ;;  %16608 = vmatpush.bf16.msra.mxu2 %v25109_v62  ;;  %v25108_v15 = vld [vmem:[%s31042_s3 + $0xfa8] sm:$0xff]  ;;  %v25089_v62 = vld [vmem:[%s31042_s3 + $0xf10] sm:$0xff] }
 0x858   : > { %v15010_v7 = vadd.f32 %v15009_v6, %v14987_v40  ;;  %16563 = vmatpush.bf16.msra.mxu0 %v25092_v14 }
 0x85a   : > { %v15033_v21 = vadd.f32 %v15032_v2, %v15010_v7  ;;  %v25101_v2 = vld [vmem:[%s31042_s3 + $0xf70] sm:$0xff] }
 0x85b   : > { %v14988_v37 = vpop.f32.mrf.mxu1  ;;  %16585 = vmatpush.bf16.msra.mxu1 %v25101_v2  ;;  %16609 = vmatpush.bf16.msra.mxu2 %v25108_v15 }
 0x85c   : > { %16564 = vmatpush.bf16.msra.mxu0 %v25091_v57  ;;  %v25115_v37 = vld [vmem:[%s31042_s3 + $0xfe0] sm:$0xff] }
 0x85d   : > { %v15034_v32 = vpop.f32.mrf.mxu3 }
 0x85e   : > { %v15050_v54 = vpop.f32.mrf.mxu0  ;;  %v25099_v32 = vld [vmem:[%s31042_s3 + $0xf60] sm:$0xff] }
 0x85f   : > { %v15051_v25 = vadd.f32 %v15050_v54, %v15028_v60  ;;  %v15011_v40 = vpop.f32.mrf.mxu2  ;;  %v25116_v60 = vld [vmem:[%s31042_s3 + $0xfe8] sm:$0xff] }
 0x860   : > { %16632 = vmatpush.bf16.msra.mxu3 %v25116_v60  ;;  %16565 = vmatpush.bf16.msra.mxu0 %v25090_v13  ;;  %v25106_v40 = vld [vmem:[%s31042_s3 + $0xf98] sm:$0xff] }
 0x861   : > { %16477 = vmatmul.bf16.vlgmr.msrb.gmra.mxu0 %v28857_v49  ;;  %v25100_v49 = vld [vmem:[%s31042_s3 + $0xf68] sm:$0xff] }
 0x862   : > { %16464 = vmatmul.bf16.gmra.mxu3 %v28979_v35  ;;  %16586 = vmatpush.bf16.msra.mxu1 %v25100_v49 }
 0x863   : > { %v15068_v39 = vpop.f32.mrf.mxu1 }
 0x864   : > { %v15069_v6 = vadd.f32 %v15068_v39, %v15046_v8  ;;  %16441 = vmatmul.bf16.gmra.mxu2 %v28877_v56  ;;  %v25107_v56 = vld [vmem:[%s31042_s3 + $0xfa0] sm:$0xff]  ;;  %16566 = vmatpush.bf16.msra.mxu0 %v25089_v62 }
 0x865   : > { %v15114_v7 = vpop.f32.mrf.mxu3  ;;  %16610 = vmatpush.bf16.msra.mxu2 %v25107_v56  ;;  %16633 = vmatpush.bf16.msra.mxu3 %v25115_v37  ;;  %v25087_v39 = vld [vmem:[%s31042_s3 + $0xf00] sm:$0xff] }
 0x866   : > { %v15052_v35 = vpop.f32.mrf.mxu0  ;;  %15261 = vmatmul.bf16.gmra.mxu1 %v31430_v50 }
 0x867   : > { %v15053_v59 = vadd.f32 %v15052_v35, %v15030_v52  ;;  %v15091_v14 = vpop.f32.mrf.mxu2  ;;  %16587 = vmatpush.bf16.msra.mxu1 %v25099_v32 }
 0x868   : > { %v15092_v8 = vadd.f32 %v15091_v14, %v15069_v6  ;;  %16567 = vmatpush.bf16.msra.mxu0 %v25088_v18  ;;  %v25114_v6 = vld [vmem:[%s31042_s3 + $0xfd8] sm:$0xff] }
 0x869   : > { %16611 = vmatpush.bf16.msra.mxu2 %v25106_v40  ;;  %16634 = vmatpush.bf16.msra.mxu3 %v25114_v6  ;;  %v25096_v40 = vld [vmem:[%s31042_s3 + $0xf48] sm:$0xff]  ;;  %v25111_v6 = vld [vmem:[%s31042_s3 + $0xfc0] sm:$0xff] }
 0x86a   : > { %v15115_v52 = vadd.f32 %v15114_v7, %v15092_v8  ;;  %v25098_v7 = vld [vmem:[%s31042_s3 + $0xf58] sm:$0xff]  ;;  %v25097_v8 = vld [vmem:[%s31042_s3 + $0xf50] sm:$0xff] }
 0x86b   : > { %v15070_v54 = vpop.f32.mrf.mxu1  ;;  %16588 = vmatpush.bf16.msra.mxu1 %v25098_v7 }
 0x86c   : > { %v15071_v57 = vadd.f32 %v15070_v54, %v15048_v30  ;;  %v25105_v30 = vld [vmem:[%s31042_s3 + $0xf90] sm:$0xff]  ;;  %16568 = vmatpush.bf16.msra.mxu0 %v25087_v39 }
 0x86d   : > { %v15116_v2 = vpop.f32.mrf.mxu3  ;;  %16612 = vmatpush.bf16.msra.mxu2 %v25105_v30 }
 0x86e   : > { %v15055_v15 = vpop.f32.mrf.mxu0 }
 0x86f   : > { %v15056_v60 = vadd.f32 %v15055_v15, %v15033_v21  ;;  %v15093_v13 = vpop.f32.mrf.mxu2  ;;  %16589 = vmatpush.bf16.msra.mxu1 %v25097_v8 }
 0x870   : > { %v15094_v49 = vadd.f32 %v15093_v13, %v15071_v57  ;;  %v25103_v13 = vld [vmem:[%s31042_s3 + $0xf80] sm:$0xff] }
 0x871   : > { %16482 = vmatmul.bf16.gmra.mxu0 %v28911_v46  ;;  %v25113_v46 = vld [vmem:[%s31042_s3 + $0xfd0] sm:$0xff] }
 0x872   : > { %16546 = vmatmul.bf16.vlgmr.msrb.gmra.mxu3 %v29062_v11  ;;  %v15117_v21 = vadd.f32 %v15116_v2, %v15094_v49 }
 0x873   : > { %v15073_v35 = vpop.f32.mrf.mxu1  ;;  %16635 = vmatpush.bf16.msra.mxu3 %v25113_v46  ;;  %16590 = vmatpush.bf16.msra.mxu1 %v25096_v40  ;;  %v25133_v40 = vld [vmem:[%s31042_s3 + $0x1070] sm:$0xff] }
 0x874   : > { %v15074_v14 = vadd.f32 %v15073_v35, %v15051_v25  ;;  %16523 = vmatmul.bf16.vlgmr.msrb.gmra.mxu2 %v28960_v10  ;;  %v25104_v25 = vld [vmem:[%s31042_s3 + $0xf88] sm:$0xff] }
 0x875   : > { %v15119_v62 = vpop.f32.mrf.mxu3  ;;  %v25112_v10 = vld [vmem:[%s31042_s3 + $0xfc8] sm:$0xff]  ;;  %16613 = vmatpush.bf16.msra.mxu2 %v25104_v25  ;;  %v25149_v25 = vld [vmem:[%s31042_s3 + $0x10f0] sm:$0xff] }
 0x876   : > { %v15057_v56 = vpop.f32.mrf.mxu0  ;;  %16500 = vmatmul.bf16.vlgmr.msrb.gmra.mxu1 %v28832_v43 }
 0x877   : > { %v15096_v11 = vpop.f32.mrf.mxu2  ;;  %16636 = vmatpush.bf16.msra.mxu3 %v25112_v10  ;;  %v25134_v56 = vld [vmem:[%s31042_s3 + $0x1078] sm:$0xff] }
 0x878   : > { %v15097_v37 = vadd.f32 %v15096_v11, %v15074_v14  ;;  %v25125_v14 = vld [vmem:[%s31042_s3 + $0x1030] sm:$0xff] }
 0x879   : > { %16614 = vmatpush.bf16.msra.mxu2 %v25103_v13  ;;  %v25141_v11 = vld [vmem:[%s31042_s3 + $0x10b0] sm:$0xff] }
 0x87a   : > { %v15120_v32 = vadd.f32 %v15119_v62, %v15097_v37  ;;  %v25150_v62 = vld [vmem:[%s31042_s3 + $0x10f8] sm:$0xff] }
 0x87b   : > { %v15075_v43 = vpop.f32.mrf.mxu1  ;;  %16637 = vmatpush.bf16.msra.mxu3 %v25111_v6 }
 0x87c   : > { %v15076_v18 = vadd.f32 %v15075_v43, %v15053_v59  ;;  %v25095_v59 = vld [vmem:[%s31042_s3 + $0xf40] sm:$0xff] }
 0x87d   : > { %v15121_v54 = vpop.f32.mrf.mxu3  ;;  %16591 = vmatpush.bf16.msra.mxu1 %v25095_v59 }
 0x87e   : > { %v15137_v57 = vpop.f32.mrf.mxu0 }
 0x87f   : > { %v15138_v2 = vadd.f32 %v15137_v57, %v15115_v52  ;;  %v15098_v15 = vpop.f32.mrf.mxu2  ;;  %v25126_v52 = vld [vmem:[%s31042_s3 + $0x1038] sm:$0xff]  ;;  %16722 = vmatpush.bf16.msrb.mxu3 %v25150_v62  ;;  %v25140_v57 = vld [vmem:[%s31042_s3 + $0x10a8] sm:$0xff] }
 0x880   : > { %v15099_v39 = vadd.f32 %v15098_v15, %v15076_v18  ;;  %16653 = vmatpush.bf16.msrb.mxu0 %v25126_v52  ;;  %v25122_v15 = vld [vmem:[%s31042_s3 + $0x1018] sm:$0xff] }
 0x881   : > { %16487 = vmatmul.bf16.gmra.mxu0 %v28888_v17  ;;  %16676 = vmatpush.bf16.msrb.mxu1 %v25134_v56 }
 0x882   : > { %16551 = vmatmul.bf16.gmra.mxu3 %v31440_v47  ;;  %v15122_v7 = vadd.f32 %v15121_v54, %v15099_v39  ;;  %v25142_v47 = vld [vmem:[%s31042_s3 + $0x10b8] sm:$0xff]  ;;  %v25123_v54 = vld [vmem:[%s31042_s3 + $0x1020] sm:$0xff] }
 0x883   : > { %v15078_v49 = vpop.f32.mrf.mxu1  ;;  %16699 = vmatpush.bf16.msrb.mxu2 %v25142_v47  ;;  %16723 = vmatpush.bf16.msrb.mxu3 %v25149_v25 }
 0x884   : > { %v15079_v30 = vadd.f32 %v15078_v49, %v15056_v60  ;;  %16528 = vmatmul.bf16.gmra.mxu2 %v29038_v48  ;;  %16654 = vmatpush.bf16.msrb.mxu0 %v25125_v14  ;;  %v25121_v49 = vld [vmem:[%s31042_s3 + $0x1010] sm:$0xff] }
 0x885   : > { %v15124_v17 = vpop.f32.mrf.mxu3  ;;  %16677 = vmatpush.bf16.msrb.mxu1 %v25133_v40  ;;  %v25129_v40 = vld [vmem:[%s31042_s3 + $0x1050] sm:$0xff] }
 0x886   : > { %v15139_v35 = vpop.f32.mrf.mxu0  ;;  %16505 = vmatmul.bf16.gmra.mxu1 %v31385_v55  ;;  %v25124_v55 = vld [vmem:[%s31042_s3 + $0x1028] sm:$0xff] }
 0x887   : > { %v15140_v60 = vadd.f32 %v15139_v35, %v15117_v21  ;;  %v15101_v46 = vpop.f32.mrf.mxu2  ;;  %16700 = vmatpush.bf16.msrb.mxu2 %v25141_v11  ;;  %v25138_v35 = vld [vmem:[%s31042_s3 + $0x1098] sm:$0xff] }
 0x888   : > { %v15102_v48 = vadd.f32 %v15101_v46, %v15079_v30  ;;  %16655 = vmatpush.bf16.msrb.mxu0 %v25124_v55  ;;  %v25147_v30 = vld [vmem:[%s31042_s3 + $0x10e0] sm:$0xff]  ;;  %v25146_v11 = vld [vmem:[%s31042_s3 + $0x10d8] sm:$0xff] }
 0x889   : > { %v25119_v55 = vld [vmem:[%s31042_s3 + $0x1000] sm:$0xff] }
 0x88a   : > { %v15125_v8 = vadd.f32 %v15124_v17, %v15102_v48  ;;  %v25120_v17 = vld [vmem:[%s31042_s3 + $0x1008] sm:$0xff] }
 0x88b   : > { %v15080_v21 = vpop.f32.mrf.mxu1  ;;  %16701 = vmatpush.bf16.msrb.mxu2 %v25140_v57 }
 0x88c   : > { %16656 = vmatpush.bf16.msrb.mxu0 %v25123_v54  ;;  %v25130_v21 = vld [vmem:[%s31042_s3 + $0x1058] sm:$0xff] }
 0x88d   : > { %v15126_v37 = vpop.f32.mrf.mxu3 }
 0x88e   : > { %v15142_v10 = vpop.f32.mrf.mxu0 }
 0x88f   : > { %v15143_v43 = vadd.f32 %v15142_v10, %v15120_v32  ;;  %v15103_v18 = vpop.f32.mrf.mxu2  ;;  %v25148_v32 = vld [vmem:[%s31042_s3 + $0x10e8] sm:$0xff] }
 0x890   : > { %16724 = vmatpush.bf16.msrb.mxu3 %v25148_v32  ;;  %16657 = vmatpush.bf16.msrb.mxu0 %v25122_v15 }
 0x891   : > { %16569 = vmatmul.bf16.vlgmr.msra.gmra.mxu0 %v31431_v41  ;;  %v25132_v41 = vld [vmem:[%s31042_s3 + $0x1068] sm:$0xff] }
 0x892   : > { %16556 = vmatmul.bf16.gmra.mxu3 %v31442_v12  ;;  %16678 = vmatpush.bf16.msrb.mxu1 %v25132_v41 }
 0x893   : > { %v15160_v13 = vpop.f32.mrf.mxu1 }
 0x894   : > { %v15161_v39 = vadd.f32 %v15160_v13, %v15138_v2  ;;  %16533 = vmatmul.bf16.gmra.mxu2 %v31432_v4  ;;  %v25139_v4 = vld [vmem:[%s31042_s3 + $0x10a0] sm:$0xff]  ;;  %16658 = vmatpush.bf16.msrb.mxu0 %v25121_v49 }
 0x895   : > { %v15206_v6 = vpop.f32.mrf.mxu3  ;;  %16702 = vmatpush.bf16.msrb.mxu2 %v25139_v4  ;;  %16725 = vmatpush.bf16.msrb.mxu3 %v25147_v30  ;;  %v25143_v4 = vld [vmem:[%s31042_s3 + $0x10c0] sm:$0xff] }
 0x896   : > { %v15144_v12 = vpop.f32.mrf.mxu0  ;;  %16510 = vmatmul.bf16.gmra.mxu1 %v31433_v38  ;;  %v25131_v38 = vld [vmem:[%s31042_s3 + $0x1060] sm:$0xff] }
 0x897   : > { %v15145_v59 = vadd.f32 %v15144_v12, %v15122_v7  ;;  %v15183_v52 = vpop.f32.mrf.mxu2  ;;  %16679 = vmatpush.bf16.msrb.mxu1 %v25131_v38 }
 0x898   : > { %v15184_v2 = vadd.f32 %v15183_v52, %v15161_v39  ;;  %16659 = vmatpush.bf16.msrb.mxu0 %v25120_v17  ;;  %v25135_v52 = vld [vmem:[%s31042_s3 + $0x1080] sm:$0xff] }
 0x899   : > { %16703 = vmatpush.bf16.msrb.mxu2 %v25138_v35  ;;  %16726 = vmatpush.bf16.msrb.mxu3 %v25146_v11  ;;  %v25182_v35 = vld [vmem:[%s31042_s3 + $0x11f8] sm:$0xff] }
 0x89a   : > { %v15207_v7 = vadd.f32 %v15206_v6, %v15184_v2  ;;  %v25128_v6 = vld [vmem:[%s31042_s3 + $0x1048] sm:$0xff]  ;;  %v25158_v2 = vld [vmem:[%s31042_s3 + $0x1138] sm:$0xff] }
 0x89b   : > { %v15162_v47 = vpop.f32.mrf.mxu1  ;;  %16680 = vmatpush.bf16.msrb.mxu1 %v25130_v21 }
 0x89c   : > { %v15163_v14 = vadd.f32 %v15162_v47, %v15140_v60  ;;  %v25137_v60 = vld [vmem:[%s31042_s3 + $0x1090] sm:$0xff]  ;;  %16660 = vmatpush.bf16.msrb.mxu0 %v25119_v55 }
 0x89d   : > { %v15208_v62 = vpop.f32.mrf.mxu3  ;;  %16704 = vmatpush.bf16.msrb.mxu2 %v25137_v60  ;;  %v25157_v47 = vld [vmem:[%s31042_s3 + $0x1130] sm:$0xff] }
 0x89e   : > { %v15147_v46 = vpop.f32.mrf.mxu0 }
 0x89f   : > { %v15148_v48 = vadd.f32 %v15147_v46, %v15125_v8  ;;  %v15185_v56 = vpop.f32.mrf.mxu2  ;;  %16681 = vmatpush.bf16.msrb.mxu1 %v25129_v40  ;;  %v25156_v46 = vld [vmem:[%s31042_s3 + $0x1128] sm:$0xff] }
 0x8a0   : > { %v15186_v37 = vadd.f32 %v15185_v56, %v15163_v14  ;;  %16745 = vmatpush.bf16.msra.mxu0 %v25158_v2 }
 0x8a1   : > { %16574 = vmatmul.bf16.gmra.mxu0 %v31434_v26  ;;  %v25145_v26 = vld [vmem:[%s31042_s3 + $0x10d0] sm:$0xff] }
 0x8a2   : > { %16638 = vmatmul.bf16.vlgmr.msra.gmra.mxu3 %v31443_v36  ;;  %v15209_v8 = vadd.f32 %v15208_v62, %v15186_v37  ;;  %v25181_v37 = vld [vmem:[%s31042_s3 + $0x11f0] sm:$0xff] }
 0x8a3   : > { %v15165_v25 = vpop.f32.mrf.mxu1  ;;  %16727 = vmatpush.bf16.msrb.mxu3 %v25145_v26  ;;  %16682 = vmatpush.bf16.msrb.mxu1 %v25128_v6  ;;  %v25180_v26 = vld [vmem:[%s31042_s3 + $0x11e8] sm:$0xff] }
 0x8a4   : > { %v15166_v10 = vadd.f32 %v15165_v25, %v15143_v43  ;;  %16615 = vmatmul.bf16.vlgmr.msra.gmra.mxu2 %v31441_v31  ;;  %v25136_v43 = vld [vmem:[%s31042_s3 + $0x1088] sm:$0xff]  ;;  %16746 = vmatpush.bf16.msra.mxu0 %v25157_v47  ;;  %v25155_v25 = vld [vmem:[%s31042_s3 + $0x1120] sm:$0xff] }
 0x8a5   : > { %v15211_v18 = vpop.f32.mrf.mxu3  ;;  %v25144_v31 = vld [vmem:[%s31042_s3 + $0x10c8] sm:$0xff]  ;;  %16705 = vmatpush.bf16.msrb.mxu2 %v25136_v43 }
 0x8a6   : > { %v15149_v54 = vpop.f32.mrf.mxu0  ;;  %16592 = vmatmul.bf16.vlgmr.msra.gmra.mxu1 %v31435_v51  ;;  %v25152_v6 = vld [vmem:[%s31042_s3 + $0x1108] sm:$0xff] }
 0x8a7   : > { %v15188_v36 = vpop.f32.mrf.mxu2  ;;  %16728 = vmatpush.bf16.msrb.mxu3 %v25144_v31  ;;  %v25266_v54 = vld [vmem:[#allocation2 + $0x58] sm:$0xff]  }
 0x8a8   : > { %v15189_v57 = vadd.f32 %v15188_v36, %v15166_v10  ;;  %16747 = vmatpush.bf16.msra.mxu0 %v25156_v46  ;;  %v25165_v10 = vld [vmem:[%s31042_s3 + $0x1170] sm:$0xff]  ;;  %v25154_v36 = vld [vmem:[%s31042_s3 + $0x1118] sm:$0xff] }
 0x8a9   : > { %16706 = vmatpush.bf16.msrb.mxu2 %v25135_v52  ;;  %v31459_v46 = vld [vmem:[#allocation28_spill] sm:$0xff] }
 0x8aa   : > { %v15212_v51 = vadd.f32 %v15211_v18, %v15189_v57  ;;  %v25172_v18 = vld [vmem:[%s31042_s3 + $0x11a8] sm:$0xff] }
 0x8ab   : > { %v15167_v32 = vpop.f32.mrf.mxu1  ;;  %16729 = vmatpush.bf16.msrb.mxu3 %v25143_v4  ;;  %v31455_v4 = vmax.f32 %v29916_v3, %v30373_v1  ;;  %v25169_v3 = vld [vmem:[%s31042_s3 + $0x1190] sm:$0xff] }
 0x8ac   : > { %v15168_v15 = vadd.f32 %v15167_v32, %v15145_v59  ;;  %v25127_v59 = vld [vmem:[%s31042_s3 + $0x1040] sm:$0xff]  ;;  %16748 = vmatpush.bf16.msra.mxu0 %v25155_v25  ;;  %v25164_v32 = vld [vmem:[%s31042_s3 + $0x1168] sm:$0xff]  ;;  %v31460_v25 = vld [vmem:[#allocation16_spill] sm:$0xff] }
 0x8ad   : > { %v15213_v13 = vpop.f32.mrf.mxu3  ;;  %16683 = vmatpush.bf16.msrb.mxu1 %v25127_v59 }
 0x8ae   : > { %v15229_v39 = vpop.f32.mrf.mxu0 }
 0x8af   : > { %v15230_v41 = vadd.f32 %v15229_v39, %v15207_v7  ;;  %v15190_v12 = vpop.f32.mrf.mxu2  ;;  %16814 = vmatpush.bf16.msra.mxu3 %v25182_v35  ;;  %v25163_v39 = vld [vmem:[%s31042_s3 + $0x1160] sm:$0xff] }
 0x8b0   : > { %v15191_v49 = vadd.f32 %v15190_v12, %v15168_v15  ;;  %16749 = vmatpush.bf16.msra.mxu0 %v25154_v36  ;;  %v25170_v12 = vld [vmem:[%s31042_s3 + $0x1198] sm:$0xff] }
 0x8b1   : > { %16579 = vmatmul.bf16.gmra.mxu0 %v31436_v0 }
 0x8b2   : > { %16643 = vmatmul.bf16.gmra.mxu3 %v31410_v5  ;;  %v15214_v30 = vadd.f32 %v15213_v13, %v15191_v49  ;;  %v25174_v5 = vld [vmem:[%s31042_s3 + $0x11b8] sm:$0xff] }
 0x8b3   : > { %v15170_v38 = vpop.f32.mrf.mxu1  ;;  %16791 = vmatpush.bf16.msra.mxu2 %v25174_v5  ;;  %16815 = vmatpush.bf16.msra.mxu3 %v25181_v37 }
 0x8b4   : > { %v15171_v7 = vadd.f32 %v15170_v38, %v15148_v48  ;;  %16620 = vmatmul.bf16.gmra.mxu2 %v29232_v19  ;;  %v25173_v48 = vld [vmem:[%s31042_s3 + $0x11b0] sm:$0xff] }
 0x8b5   : > { %v15216_v17 = vpop.f32.mrf.mxu3 }
 0x8b6   : > { %v15231_v0 = vpop.f32.mrf.mxu0  ;;  %16597 = vmatmul.bf16.gmra.mxu1 %v31396_v9  ;;  %v25166_v9 = vld [vmem:[%s31042_s3 + $0x1178] sm:$0xff] }
 0x8b7   : > { %v15232_v14 = vadd.f32 %v15231_v0, %v15209_v8  ;;  %v15193_v62 = vpop.f32.mrf.mxu2  ;;  %16768 = vmatpush.bf16.msra.mxu1 %v25166_v9  ;;  %16792 = vmatpush.bf16.msra.mxu2 %v25173_v48  ;;  %v25162_v0 = vld [vmem:[%s31042_s3 + $0x1158] sm:$0xff] }
 0x8b8   : > { %v15194_v19 = vadd.f32 %v15193_v62, %v15171_v7  ;;  %16816 = vmatpush.bf16.msra.mxu3 %v25180_v26  ;;  %v25151_v7 = vld [vmem:[%s31042_s3 + $0x1100] sm:$0xff]  ;;  %v31457_v62 = vld [vmem:[#allocation23_spill] sm:$0xff] }
 0x8ba   : > { %v15217_v56 = vadd.f32 %v15216_v17, %v15194_v19  ;;  %v25178_v17 = vld [vmem:[%s31042_s3 + $0x11d8] sm:$0xff] }
 0x8bb   : > { %v15172_v55 = vpop.f32.mrf.mxu1  ;;  %16769 = vmatpush.bf16.msra.mxu1 %v25165_v10  ;;  %16793 = vmatpush.bf16.msra.mxu2 %v25172_v18  ;;  %v31461_v10 = vld [vmem:[#allocation8_spill] sm:$0xff] }
 0x8bc   : > { %v25168_v55 = vld [vmem:[%s31042_s3 + $0x1188] sm:$0xff]  ;;  %v31462_v18 = vmax.f32 %v31460_v25, %v31461_v10 }
 0x8bd   : > { %v15218_v11 = vpop.f32.mrf.mxu3 }
 0x8be   : > { %v15234_v21 = vpop.f32.mrf.mxu0  ;;  %v25176_v11 = vld [vmem:[%s31042_s3 + $0x11c8] sm:$0xff] }
 0x8bf   : > { %v15235_v60 = vadd.f32 %v15234_v21, %v15212_v51  ;;  %v15195_v8 = vpop.f32.mrf.mxu2  ;;  %16770 = vmatpush.bf16.msra.mxu1 %v25164_v32  ;;  %v25159_v32 = vld [vmem:[%s31042_s3 + $0x1140] sm:$0xff] }
 0x8c0   : > { %v25160_v8 = vld [vmem:[%s31042_s3 + $0x1148] sm:$0xff] }
 0x8c1   : > { %16661 = vmatmul.bf16.vlgmr.msrb.gmra.mxu0 %v25266_v54 }
 0x8c2   : > { %16648 = vmatmul.bf16.gmra.mxu3 %v31447_v33  ;;  %v31454_v33 = vmax.f32 %v29891_v58, %v30345_v20  ;;  %v25171_v58 = vld [vmem:[%s31042_s3 + $0x11a0] sm:$0xff] }
 0x8c3   : > { %v15252_v40 = vpop.f32.mrf.mxu1  ;;  %16794 = vmatpush.bf16.msra.mxu2 %v25171_v58  ;;  %16771 = vmatpush.bf16.msra.mxu1 %v25163_v39 }
 0x8c4   : > { %v15253_v57 = vadd.f32 %v15252_v40, %v15230_v41  ;;  %16625 = vmatmul.bf16.gmra.mxu2 %v29312_v45  ;;  %v25153_v45 = vld [vmem:[%s31042_s3 + $0x1110] sm:$0xff] }
 0x8c5   : > { %v16455_v43 = vpop.f32.mrf.mxu3  ;;  %16750 = vmatpush.bf16.msra.mxu0 %v25153_v45  ;;  %v31464_v45 = vld [vmem:[#allocation26_spill] sm:$0xff] }
 0x8c6   : > { %v30897_v31 = vmax.f32 %v31454_v33, %v15253_v57  ;;  %v15236_v51 = vpop.f32.mrf.mxu0  ;;  %16602 = vmatmul.bf16.gmra.mxu1 %v29154_v42  ;;  %v25179_v42 = vld [vmem:[%s31042_s3 + $0x11e0] sm:$0xff] }
 0x8c7   : > { %v15237_v15 = vadd.f32 %v15236_v51, %v15214_v30  ;;  %v16432_v13 = vpop.f32.mrf.mxu2  ;;  %16817 = vmatpush.bf16.msra.mxu3 %v25179_v42  ;;  %16795 = vmatpush.bf16.msra.mxu2 %v25170_v12  ;;  %v25167_v57 = vld [vmem:[%s31042_s3 + $0x1180] sm:$0xff]  ;;  %v31466_v42 = vld [vmem:[#allocation17_spill] sm:$0xff] }
 0x8c8   : > { %v16456_v20 = vadd.f32 %v16455_v43, %v16432_v13  ;;  %16772 = vmatpush.bf16.msra.mxu1 %v25162_v0  ;;  %v25175_v33 = vld [vmem:[%s31042_s3 + $0x11c0] sm:$0xff]  ;;  %v31468_v12 = vld [vmem:[#allocation37_spill] sm:$0xff] }
 0x8c9   : > { %16751 = vmatpush.bf16.msra.mxu0 %v25152_v6  ;;  %v31463_v51 = vld [vmem:[#allocation38_spill] sm:$0xff] }
 0x8cb   : > { %v15254_v41 = vpop.f32.mrf.mxu1  ;;  %16818 = vmatpush.bf16.msra.mxu3 %v25178_v17  ;;  %16796 = vmatpush.bf16.msra.mxu2 %v25169_v3 }
 0x8cc   : > { %v15255_v52 = vadd.f32 %v15254_v41, %v15232_v14  ;;  %v25177_v14 = vld [vmem:[%s31042_s3 + $0x11d0] sm:$0xff] }
 0x8cd   : > { %v16457_v49 = vpop.f32.mrf.mxu3  ;;  %16752 = vmatpush.bf16.msra.mxu0 %v25151_v7 }
 0x8ce   : > { %v30924_v59 = vmax.f32 %v31455_v4, %v15255_v52  ;;  %v15239_v2 = vpop.f32.mrf.mxu0 }
 0x8cf   : > { %v15240_v30 = vadd.f32 %v15239_v2, %v15217_v56  ;;  %v16434_v38 = vpop.f32.mrf.mxu2  ;;  %16819 = vmatpush.bf16.msra.mxu3 %v25177_v14  ;;  %v25161_v56 = vld [vmem:[%s31042_s3 + $0x1150] sm:$0xff]  ;;  %16797 = vmatpush.bf16.msra.mxu2 %v25168_v55 }
 0x8d0   : > { %v16458_v5 = vadd.f32 %v16457_v49, %v16434_v38  ;;  %16773 = vmatpush.bf16.msra.mxu1 %v25161_v56 }
 0x8d1   : > { %16666 = vmatmul.bf16.gmra.mxu0 %v31402_v28  ;;  %v31456_v28 = vld [vmem:[#allocation10_spill] sm:$0xff] }
 0x8d2   : > { %16730 = vmatmul.bf16.vlgmr.msrb.gmra.mxu3 %v31449_v61  ;;  %v31458_v61 = vmax.f32 %v31456_v28, %v31457_v62 }
 0x8d3   : > { %v15257_v1 = vpop.f32.mrf.mxu1  ;;  %16820 = vmatpush.bf16.msra.mxu3 %v25176_v11  ;;  %16798 = vmatpush.bf16.msra.mxu2 %v25167_v57 }
 0x8d4   : > { %v15258_v47 = vadd.f32 %v15257_v1, %v15235_v60  ;;  %16707 = vmatmul.bf16.vlgmr.msrb.gmra.mxu2 %v29379_v22  ;;  %16774 = vmatpush.bf16.msra.mxu1 %v25160_v8 }
 0x8d5   : > { %v16460_v35 = vpop.f32.mrf.mxu3 }
 0x8d6   : > { %v30947_v19 = vmax.f32 %v31458_v61, %v15258_v47  ;;  %v15241_v9 = vpop.f32.mrf.mxu0  ;;  %16684 = vmatmul.bf16.vlgmr.msrb.gmra.mxu1 %v31459_v46 }
 0x8d7   : > { %v16437_v48 = vpop.f32.mrf.mxu2  ;;  %16821 = vmatpush.bf16.msra.mxu3 %v25175_v33 }
 0x8d8   : > { %v16461_v22 = vadd.f32 %v16460_v35, %v16437_v48  ;;  %16775 = vmatpush.bf16.msra.mxu1 %v25159_v32  ;;  %v31469_v35 = vld [vmem:[#allocation21_spill] sm:$0xff] }
 0x8db   : > { %v15259_v21 = vpop.f32.mrf.mxu1 }
 0x8dc   : > { %v15260_v37 = vadd.f32 %v15259_v21, %v15237_v15 }
 0x8dd   : > { %v16462_v60 = vpop.f32.mrf.mxu3 }
 0x8de   : > { %v30965_v54 = vmax.f32 %v31462_v18, %v15260_v37  ;;  %v16478_v26 = vpop.f32.mrf.mxu0 }
 0x8df   : > { %v16479_v36 = vadd.f32 %v16478_v26, %v16456_v20  ;;  %v16439_v40 = vpop.f32.mrf.mxu2  ;;  %v31465_v20 = vld [vmem:[#allocation4_spill] sm:$0xff] }
 0x8e0   : > { %v16463_v43 = vadd.f32 %v16462_v60, %v16439_v40  ;;  %v31467_v39 = vmax.f32 %v31465_v20, %v31466_v42  ;;  %v31470_v60 = vld [vmem:[#allocation40_spill] sm:$0xff] }
 0x8e1   : > { %16671 = vmatmul.bf16.gmra.mxu0 %v31463_v51  ;;  %v31471_v51 = vld [vmem:[#allocation6_spill] sm:$0xff] }
 0x8e2   : > { %16735 = vmatmul.bf16.gmra.mxu3 %v31451_v29 }
 0x8e3   : > { %v15262_v15 = vpop.f32.mrf.mxu1 }
 0x8e4   : > { %v15263_v13 = vadd.f32 %v15262_v15, %v15240_v30  ;;  %16712 = vmatmul.bf16.gmra.mxu2 %v31464_v45  ;;  %v25267_v30 = vld [vmem:[#allocation2 + $0x40] sm:$0xff]  }
 0x8e5   : > { %v16465_v58 = vpop.f32.mrf.mxu3 }
 0x8e6   : > { %v30982_v6 = vmax.f32 %v31467_v39, %v15263_v13  ;;  %v16480_v41 = vpop.f32.mrf.mxu0  ;;  %16689 = vmatmul.bf16.gmra.mxu1 %v31468_v12  ;;  %v31472_v13 = vld [vmem:[#allocation36_spill] sm:$0xff] }
 0x8e7   : > { %v16481_v29 = vadd.f32 %v16480_v41, %v16458_v5  ;;  %v16442_v52 = vpop.f32.mrf.mxu2 }
 0x8e8   : > { %v16466_v49 = vadd.f32 %v16465_v58, %v16442_v52 }
 0x8eb   : > { %v15264_v4 = vpop.f32.mrf.mxu1 }
 0x8ed   : > { %v16467_v2 = vpop.f32.mrf.mxu3 }
 0x8ee   : > { %v16483_v38 = vpop.f32.mrf.mxu0  ;;  %v31473_v2 = vld [vmem:[#allocation11_spill] sm:$0xff] }
 0x8ef   : > { %v16484_v7 = vadd.f32 %v16483_v38, %v16461_v22  ;;  %v16444_v17 = vpop.f32.mrf.mxu2 }
 0x8f1   : > { %16753 = vmatmul.bf16.vlgmr.msra.gmra.mxu0 %v25267_v30 }
 0x8f2   : > { %16740 = vmatmul.bf16.gmra.mxu3 %v31452_v23 }
 0x8f3   : > { %v16501_v0 = vpop.f32.mrf.mxu1 }
 0x8f4   : > { %v16502_v3 = vadd.f32 %v16501_v0, %v16479_v36  ;;  %16717 = vmatmul.bf16.gmra.mxu2 %v31450_v27 }
 0x8f5   : > { %v16547_v1 = vpop.f32.mrf.mxu3 }
 0x8f6   : > { %v16485_v47 = vpop.f32.mrf.mxu0  ;;  %16694 = vmatmul.bf16.gmra.mxu1 %v31469_v35 }
 0x8f7   : > { %v16486_v5 = vadd.f32 %v16485_v47, %v16463_v43  ;;  %v16524_v14 = vpop.f32.mrf.mxu2 }
 0x8f8   : > { %v16525_v28 = vadd.f32 %v16524_v14, %v16502_v3 }
 0x8fa   : > { %v16548_v62 = vadd.f32 %v16547_v1, %v16525_v28 }
 0x8fb   : > { %v16503_v61 = vpop.f32.mrf.mxu1 }
 0x8fc   : > { %v16504_v9 = vadd.f32 %v16503_v61, %v16481_v29 }
 0x8fd   : > { %v16549_v46 = vpop.f32.mrf.mxu3 }
 0x8fe   : > { %v16488_v48 = vpop.f32.mrf.mxu0 }
 0x8ff   : > { %v16489_v56 = vadd.f32 %v16488_v48, %v16466_v49  ;;  %v16526_v22 = vpop.f32.mrf.mxu2 }
 0x900   : > { %v16527_v55 = vadd.f32 %v16526_v22, %v16504_v9 }
 0x901   : > { %16758 = vmatmul.bf16.gmra.mxu0 %v29507_v34 }
 0x902   : > { %16822 = vmatmul.bf16.vlgmr.msra.gmra.mxu3 %v31453_v24  ;;  %v16550_v27 = vadd.f32 %v16549_v46, %v16527_v55 }
 0x903   : > { %v16506_v23 = vpop.f32.mrf.mxu1 }
 0x904   : > { %v16507_v11 = vadd.f32 %v16506_v23, %v16484_v7  ;;  %16799 = vmatmul.bf16.vlgmr.msra.gmra.mxu2 %v31425_v16 }
 0x905   : > { %v16552_v21 = vpop.f32.mrf.mxu3 }
 0x906   : > { %v16490_v37 = vpop.f32.mrf.mxu0  ;;  %16776 = vmatmul.bf16.vlgmr.msra.gmra.mxu1 %v31470_v60 }
 0x907   : > { %v16529_v8 = vpop.f32.mrf.mxu2 }
 0x908   : > { %v16530_v25 = vadd.f32 %v16529_v8, %v16507_v11 }
 0x90a   : > { %v16553_v10 = vadd.f32 %v16552_v21, %v16530_v25 }
 0x90b   : > { %v16508_v18 = vpop.f32.mrf.mxu1 }
 0x90c   : > { %v16509_v26 = vadd.f32 %v16508_v18, %v16486_v5 }
 0x90d   : > { %v16554_v36 = vpop.f32.mrf.mxu3 }
 0x90e   : > { %v16570_v40 = vpop.f32.mrf.mxu0 }
 0x90f   : > { %v16571_v57 = vadd.f32 %v16570_v40, %v16548_v62  ;;  %v16531_v34 = vpop.f32.mrf.mxu2 }
 0x910   : > { %v16532_v43 = vadd.f32 %v16531_v34, %v16509_v26 }
 0x911   : > { %16763 = vmatmul.bf16.gmra.mxu0 %v29554_v63 }
 0x912   : > { %16827 = vmatmul.bf16.gmra.mxu3 %v31429_v44  ;;  %v16555_v24 = vadd.f32 %v16554_v36, %v16532_v43 }
 0x913   : > { %v16511_v16 = vpop.f32.mrf.mxu1 }
 0x914   : > { %v16512_v33 = vadd.f32 %v16511_v16, %v16489_v56  ;;  %16804 = vmatmul.bf16.gmra.mxu2 %v31471_v51 }
 0x915   : > { %v16557_v32 = vpop.f32.mrf.mxu3 }
 0x916   : > { %v16572_v15 = vpop.f32.mrf.mxu0  ;;  %16781 = vmatmul.bf16.gmra.mxu1 %v31472_v13 }
 0x917   : > { %v16573_v45 = vadd.f32 %v16572_v15, %v16550_v27  ;;  %v16534_v58 = vpop.f32.mrf.mxu2 }
 0x918   : > { %v16535_v20 = vadd.f32 %v16534_v58, %v16512_v33 }
 0x91a   : > { %v16558_v42 = vadd.f32 %v16557_v32, %v16535_v20 }
 0x91b   : > { %v16513_v39 = vpop.f32.mrf.mxu1 }
 0x91d   : > { %v16559_v41 = vpop.f32.mrf.mxu3 }
 0x91e   : > { %v16575_v12 = vpop.f32.mrf.mxu0 }
 0x91f   : > { %v16576_v29 = vadd.f32 %v16575_v12, %v16553_v10  ;;  %v16536_v63 = vpop.f32.mrf.mxu2 }
 0x922   : > { %16832 = vmatmul.bf16.gmra.mxu3 %v31430_v50 }
 0x923   : > { %v16593_v44 = vpop.f32.mrf.mxu1 }
 0x924   : > { %v16594_v52 = vadd.f32 %v16593_v44, %v16571_v57  ;;  %16809 = vmatmul.bf16.gmra.mxu2 %v29572_v53 }
 0x925   : > { %v16639_v49 = vpop.f32.mrf.mxu3 }
 0x926   : > { %v16577_v4 = vpop.f32.mrf.mxu0  ;;  %16786 = vmatmul.bf16.gmra.mxu1 %v31473_v2 }
 0x927   : > { %v16578_v38 = vadd.f32 %v16577_v4, %v16555_v24  ;;  %v16616_v7 = vpop.f32.mrf.mxu2 }
 0x928   : > { %v16617_v17 = vadd.f32 %v16616_v7, %v16594_v52 }
 0x92a   : > { %v16640_v30 = vadd.f32 %v16639_v49, %v16617_v17 }
 0x92b   : > { %v16595_v0 = vpop.f32.mrf.mxu1 }
 0x92c   : > { %v16596_v3 = vadd.f32 %v16595_v0, %v16573_v45 }
 0x92d   : > { %v16641_v1 = vpop.f32.mrf.mxu3 }
 0x92e   : > { %v16580_v47 = vpop.f32.mrf.mxu0 }
 0x92f   : > { %v16581_v35 = vadd.f32 %v16580_v47, %v16558_v42  ;;  %v16618_v5 = vpop.f32.mrf.mxu2 }
 0x930   : > { %v16619_v14 = vadd.f32 %v16618_v5, %v16596_v3 }
 0x932   : > { %v16642_v50 = vadd.f32 %v16641_v1, %v16619_v14 }
 0x933   : > { %v16598_v28 = vpop.f32.mrf.mxu1 }
 0x934   : > { %v16599_v62 = vadd.f32 %v16598_v28, %v16576_v29 }
 0x935   : > { %v16644_v61 = vpop.f32.mrf.mxu3 }
 0x936   : > { %v16582_v53 = vpop.f32.mrf.mxu0 }
 0x937   : > { %v16621_v9 = vpop.f32.mrf.mxu2 }
 0x938   : > { %v16622_v46 = vadd.f32 %v16621_v9, %v16599_v62 }
 0x93a   : > { %v16645_v48 = vadd.f32 %v16644_v61, %v16622_v46 }
 0x93b   : > { %v16600_v56 = vpop.f32.mrf.mxu1 }
 0x93c   : > { %v16601_v22 = vadd.f32 %v16600_v56, %v16578_v38 }
 0x93d   : > { %v16646_v55 = vpop.f32.mrf.mxu3 }
 0x93e   : > { %v16662_v27 = vpop.f32.mrf.mxu0 }
 0x93f   : > { %v16623_v23 = vpop.f32.mrf.mxu2  ;;  %v16663_v4 = vadd.f32 %v16662_v27, %v16640_v30 }
 0x940   : > { %v16624_v11 = vadd.f32 %v16623_v23, %v16601_v22 }
 0x942   : > { %v30999_v21 = vadd.f32 %v16646_v55, %v16624_v11 }
 0x943   : > { %v16603_v37 = vpop.f32.mrf.mxu1 }
 0x944   : > { %v16604_v60 = vadd.f32 %v16603_v37, %v16581_v35 }
 0x945   : > { %v16649_v8 = vpop.f32.mrf.mxu3 }
 0x946   : > { %v16664_v25 = vpop.f32.mrf.mxu0 }
 0x947   : > { %v16626_v10 = vpop.f32.mrf.mxu2  ;;  %v16665_v1 = vadd.f32 %v16664_v25, %v16642_v50 }
 0x948   : > { %v16627_v18 = vadd.f32 %v16626_v10, %v16604_v60  ;;  %v25268_v60 = vld [vmem:[%s31043_s4] ss:$0 sm:$0xff] }
 0x94a   : > { %v31001_v26 = vadd.f32 %v16649_v8, %v16627_v18 }
 0x94b   : > { %v16605_v36 = vpop.f32.mrf.mxu1 }
 0x94d   : > { %v16651_v40 = vpop.f32.mrf.mxu3 }
 0x94e   : > { %v16667_v57 = vpop.f32.mrf.mxu0 }
 0x94f   : > { %v16628_v34 = vpop.f32.mrf.mxu2  ;;  %v16668_v56 = vadd.f32 %v16667_v57, %v16645_v48 }
 0x953   : > { %v16685_v43 = vpop.f32.mrf.mxu1 }
 0x954   : > { %v16686_v38 = vadd.f32 %v16685_v43, %v16663_v4 }
 0x955   : > { %v16731_v24 = vpop.f32.mrf.mxu3 }
 0x956   : > { %v16669_v16 = vpop.f32.mrf.mxu0 }
 0x957   : > { %v16708_v33 = vpop.f32.mrf.mxu2  ;;  %v16670_v40 = vadd.f32 %v16669_v16, %v30999_v21 }
 0x958   : > { %v16709_v17 = vadd.f32 %v16708_v33, %v16686_v38 }
 0x95a   : > { %v16732_v47 = vadd.f32 %v16731_v24, %v16709_v17 }
 0x95b   : > { %v16687_v51 = vpop.f32.mrf.mxu1 }
 0x95c   : > { %v16688_v5 = vadd.f32 %v16687_v51, %v16665_v1 }
 0x95d   : > { %v16733_v32 = vpop.f32.mrf.mxu3 }
 0x95e   : > { %v31003_v15 = vpop.f32.mrf.mxu0 }
 0x95f   : > { %v16710_v13 = vpop.f32.mrf.mxu2  ;;  %v16673_v21 = vadd.f32 %v31003_v15, %v31001_v26 }
 0x960   : > { %v16711_v62 = vadd.f32 %v16710_v13, %v16688_v5 }
 0x962   : > { %v16734_v22 = vadd.f32 %v16733_v32, %v16711_v62 }
 0x963   : > { %v16690_v45 = vpop.f32.mrf.mxu1 }
 0x964   : > { %v16691_v27 = vadd.f32 %v16690_v45, %v16668_v56 }
 0x965   : > { %v16736_v58 = vpop.f32.mrf.mxu3 }
 0x966   : > { %v16674_v20 = vpop.f32.mrf.mxu0 }
 0x967   : > { %v16713_v42 = vpop.f32.mrf.mxu2 }
 0x968   : > { %v16714_v37 = vadd.f32 %v16713_v42, %v16691_v27 }
 0x96a   : > { %v16737_v57 = vadd.f32 %v16736_v58, %v16714_v37 }
 0x96b   : > { %v16692_v39 = vpop.f32.mrf.mxu1 }
 0x96c   : > { %v16693_v43 = vadd.f32 %v16692_v39, %v16670_v40 }
 0x96d   : > { %v16738_v41 = vpop.f32.mrf.mxu3 }
 0x96e   : > { %v16754_v12 = vpop.f32.mrf.mxu0 }
 0x96f   : > { %v16715_v29 = vpop.f32.mrf.mxu2  ;;  %v16755_v14 = vadd.f32 %v16754_v12, %v16732_v47 }
 0x970   : > { %v16716_v32 = vadd.f32 %v16715_v29, %v16693_v43 }
 0x972   : > { %v16739_v16 = vadd.f32 %v16738_v41, %v16716_v32 }
 0x973   : > { %v16695_v63 = vpop.f32.mrf.mxu1 }
 0x974   : > { %v16696_v4 = vadd.f32 %v16695_v63, %v16673_v21 }
 0x975   : > { %v31005_v44 = vpop.f32.mrf.mxu3 }
 0x976   : > { %v16756_v52 = vpop.f32.mrf.mxu0 }
 0x977   : > { %v16718_v49 = vpop.f32.mrf.mxu2  ;;  %v16757_v23 = vadd.f32 %v16756_v52, %v16734_v22 }
 0x978   : > { %v16719_v38 = vadd.f32 %v16718_v49, %v16696_v4 }
 0x97a   : > { %v16742_v26 = vadd.f32 %v31005_v44, %v16719_v38 }
 0x97b   : > { %v16697_v2 = vpop.f32.mrf.mxu1 }
 0x97d   : > { %v16743_v7 = vpop.f32.mrf.mxu3 }
 0x97e   : > { %v16759_v0 = vpop.f32.mrf.mxu0 }
 0x97f   : > { %v16720_v3 = vpop.f32.mrf.mxu2  ;;  %v16760_v24 = vadd.f32 %v16759_v0, %v16737_v57 }
 0x983   : > { %v16777_v35 = vpop.f32.mrf.mxu1 }
 0x984   : > { %v16778_v61 = vadd.f32 %v16777_v35, %v16755_v14 }
 0x985   : > { %v16823_v28 = vpop.f32.mrf.mxu3 }
 0x986   : > { %v16761_v53 = vpop.f32.mrf.mxu0 }
 0x987   : > { %v16800_v9 = vpop.f32.mrf.mxu2  ;;  %v16762_v2 = vadd.f32 %v16761_v53, %v16739_v16 }
 0x988   : > { %v16801_v46 = vadd.f32 %v16800_v9, %v16778_v61 }
 0x98a   : > { %v16824_v30 = vadd.f32 %v16823_v28, %v16801_v46 }
 0x98b   : > { %v16779_v55 = vpop.f32.mrf.mxu1 }
 0x98c   : > { %v16837_v11 = vmax.f32 %v30897_v31, %v16824_v30  ;;  %v16780_v25 = vadd.f32 %v16779_v55, %v16757_v23 }
 0x98d   : > { %v16825_v50 = vpop.f32.mrf.mxu3 }
 0x98e   : > { %v16842_v8 = vadd.f32 %v25268_v60, %v16837_v11  ;;  %v16764_v10 = vpop.f32.mrf.mxu0 }
 0x98f   : > { %v16802_v18 = vpop.f32.mrf.mxu2  ;;  %v16765_v47 = vadd.f32 %v16764_v10, %v16742_v26 }
 0x990   : > { %v16847_v36 = vmax.f32 %v16842_v8, 0.0  ;;  %v16803_v48 = vadd.f32 %v16802_v18, %v16780_v25 }
 0x992   : > { %23921 = vst.msk [vmem:[%s29091_s13 + $0x28] sm:$0xff] %vm2995_vm4, %v16847_v36  ;;  %v16826_v34 = vadd.f32 %v16825_v50, %v16803_v48 }
 0x993   : > { %v16782_v31 = vpop.f32.mrf.mxu1 }
 0x994   : > { %v16838_v33 = vmax.f32 %v30924_v59, %v16826_v34  ;;  %v16783_v45 = vadd.f32 %v16782_v31, %v16760_v24 }
 0x995   : > { %v16828_v51 = vpop.f32.mrf.mxu3 }
 0x996   : > { %v16843_v13 = vadd.f32 %v25268_v60, %v16838_v33  ;;  %v16766_v20 = vpop.f32.mrf.mxu0 }
 0x997   : > { %v16805_v42 = vpop.f32.mrf.mxu2 }
 0x998   : > { %v16848_v12 = vmax.f32 %v16843_v13, 0.0  ;;  %v16806_v52 = vadd.f32 %v16805_v42, %v16783_v45 }
 0x99a   : > { %23922 = vst.msk [vmem:[%s29091_s13 + $0x30] sm:$0xff] %vm2995_vm4, %v16848_v12  ;;  %v16829_v58 = vadd.f32 %v16828_v51, %v16806_v52 }
 0x99b   : > { %v16784_v39 = vpop.f32.mrf.mxu1 }
 0x99c   : > { %v16839_v59 = vmax.f32 %v30947_v19, %v16829_v58  ;;  %v16785_v17 = vadd.f32 %v16784_v39, %v16762_v2 }
 0x99d   : > { %v16830_v29 = vpop.f32.mrf.mxu3 }
 0x99e   : > { %v16844_v7 = vadd.f32 %v25268_v60, %v16839_v59 }
 0x99f   : > { %v16807_v0 = vpop.f32.mrf.mxu2 }
 0x9a0   : > { %v16849_v3 = vmax.f32 %v16844_v7, 0.0  ;;  %v16808_v1 = vadd.f32 %v16807_v0, %v16785_v17 }
 0x9a2   : > { %23923 = vst.msk [vmem:[%s29091_s13 + $0x38] sm:$0xff] %vm2995_vm4, %v16849_v3  ;;  %v16831_v15 = vadd.f32 %v16830_v29, %v16808_v1 }
 0x9a3   : > { %v16787_v41 = vpop.f32.mrf.mxu1 }
 0x9a4   : > { %v16840_v63 = vmax.f32 %v30965_v54, %v16831_v15  ;;  %v16788_v5 = vadd.f32 %v16787_v41, %v16765_v47 }
 0x9a5   : > { %v16833_v35 = vpop.f32.mrf.mxu3 }
 0x9a6   : > { %v16845_v19 = vadd.f32 %v25268_v60, %v16840_v63 }
 0x9a7   : > { %v16810_v49 = vpop.f32.mrf.mxu2 }
 0x9a8   : > { %v16850_v14 = vmax.f32 %v16845_v19, 0.0  ;;  %v16811_v28 = vadd.f32 %v16810_v49, %v16788_v5 }
 0x9aa   : > { %23924 = vst.msk [vmem:[%s29091_s13 + $0x40] sm:$0xff] %vm2995_vm4, %v16850_v14  ;;  %v16834_v62 = vadd.f32 %v16833_v35, %v16811_v28 }
 0x9ab   : > { %v16789_v61 = vpop.f32.mrf.mxu1 }
 0x9ac   : > { %v16841_v44 = vmax.f32 %v30982_v6, %v16834_v62 }
 0x9ad   : > { %v16835_v53 = vpop.f32.mrf.mxu3 }
 0x9ae   : > { %v16846_v9 = vadd.f32 %v25268_v60, %v16841_v44 }
 0x9af   : > { %v16812_v46 = vpop.f32.mrf.mxu2 }
 0x9b0   : > { %v16851_v56 = vmax.f32 %v16846_v9, 0.0 }
 0x9b2   : > { %23925 = vst.msk [vmem:[%s29091_s13 + $0x48] sm:$0x1] %vm10165_vm3, %v16851_v56 }
 0x9b3 PF: > { %p12_p9 = scmp.ge.s32.totalorder %s25343_s22, 4   ;;  %s31474_s18 = smov %s25287_s19 }
 0x9b4   : > { %s31475_s19 = smov %s25352_s25  ;;  %s31476_s20 = smov %s25343_s22 }
 0x9b5   :  { %14 = sbr.rel (!%p12_p9) target bundleno = 2 (0x2), region = 126 }

</bundles_post_ra>
